<compile_context>
chip_gen: v6e
topology: v6e:2x2x1
jax: 0.10.0
libtpu: 0.0.40
codegen_flags: <defaults>
</compile_context>

<pallas_src>
import functools

import jax
import jax.numpy as jnp
from jax.experimental import pallas as pl
from jax.experimental.pallas import tpu as pltpu

VMEM = pltpu.MemorySpace.VMEM
LANES = 128

# ---------------------------------------------------------------------------
# Small synthetic configs (structure mirrors ViT-base / roberta-large, scaled
# down so everything is VMEM-resident).  CLS_DIM = 2*32 + 64 = 128 -> the
# classifier feature dim is exactly one lane-dense vreg row.
# ---------------------------------------------------------------------------
VIT_CFG = dict(hidden=32, layers=2, heads=4, inter=64,
               channels=3, image=16, patch=8, eps=1e-12)
ROB_CFG = dict(hidden=64, layers=2, heads=4, inter=128,
               vocab=100, max_pos=64, type_vocab=1, pad=1, eps=1e-5)
CLS_DIM = 2 * VIT_CFG["hidden"] + ROB_CFG["hidden"]   # vit_hidden*2 + roberta_hidden


# ---------------------------------------------------------------------------
# In-kernel helpers
# ---------------------------------------------------------------------------
def _ln(x, g, b, eps):
    mu = jnp.mean(x, axis=-1, keepdims=True)
    var = jnp.mean(jnp.square(x - mu), axis=-1, keepdims=True)
    return (x - mu) * jax.lax.rsqrt(var + eps) * g + b


def _softmax(s):
    s = s - jnp.max(s, axis=-1, keepdims=True)
    p = jnp.exp(s)
    return p * pl.reciprocal(jnp.sum(p, axis=-1, keepdims=True), approx=True)


def _attention(x, qkv_w_ref, o_w_ref, qb_ref, l, nh, mask=None):
    """Multi-head self-attention on one (S, H) sequence.

    qkv_w_ref: (nL*3*nh, H, dh) bf16, head-major (leading-dim index == free view)
    o_w_ref  : (nL*nh, dh, H)   bf16
    qb_ref   : (nL*nh, 1, dh)   f32   (K bias dropped, V bias folded host-side)
    """
    S, H = x.shape
    dh = H // nh
    scale = 1.0 / float(dh) ** 0.5
    xb = x.astype(jnp.bfloat16)
    out = None
    for h in range(nh):
        wq = qkv_w_ref[(l * 3 + 0) * nh + h]                      # (H, dh)
        wk = qkv_w_ref[(l * 3 + 1) * nh + h]
        wv = qkv_w_ref[(l * 3 + 2) * nh + h]
        q = jnp.dot(xb, wq, preferred_element_type=jnp.float32) + qb_ref[l * nh + h]
        k = jnp.dot(xb, wk, preferred_element_type=jnp.float32)
        v = jnp.dot(xb, wv, preferred_element_type=jnp.float32)
        s = jax.lax.dot_general(q.astype(jnp.bfloat16), k.astype(jnp.bfloat16),
                                (((1,), (1,)), ((), ())),
                                preferred_element_type=jnp.float32) * scale
        if mask is not None:
            s = s + mask                                          # (1, S) additive
        pmat = _softmax(s)
        ctx = jnp.dot(pmat.astype(jnp.bfloat16), v.astype(jnp.bfloat16),
                      preferred_element_type=jnp.float32)         # (S, dh)
        oh = jnp.dot(ctx.astype(jnp.bfloat16), o_w_ref[l * nh + h],
                     preferred_element_type=jnp.float32)          # (S, H)
        out = oh if out is None else out + oh
    return out


# ---------------------------------------------------------------------------
# Host-side parameter packing helpers (pure data movement)
# ---------------------------------------------------------------------------
def _pack_rows(vecs, width=LANES):
    rows = []
    for v in vecs:
        v = jnp.asarray(v, jnp.float32).reshape(-1)
        rows.append(jnp.pad(v, (0, width - v.shape[0])))
    return jnp.stack(rows, axis=0)                                # (n, 128) f32


def _pack_attn(p, prefix, nL, nh, H):
    dh = H // nh
    qkv_w, o_w, q_b = [], [], []
    for l in range(nL):
        pre = f"{prefix}.l{l}"
        for name in ("q", "k", "v"):
            W = p[f"{pre}.{name}.w"]
            for h in range(nh):
                qkv_w.append(W[:, h * dh:(h + 1) * dh])           # (H, dh)
        Wo = p[f"{pre}.o.w"]
        for h in range(nh):
            o_w.append(Wo[h * dh:(h + 1) * dh, :])                # (dh, H)
            q_b.append(p[f"{pre}.q.b"][h * dh:(h + 1) * dh].reshape(1, dh))
    return (jnp.stack(qkv_w).astype(jnp.bfloat16),                # (nL*3*nh, H, dh)
            jnp.stack(o_w).astype(jnp.bfloat16),                  # (nL*nh, dh, H)
            jnp.stack(q_b).astype(jnp.float32))                   # (nL*nh, 1, dh)


# ---------------------------------------------------------------------------
# Fused ViT encoder kernel: one grid step == bt batch elements x 2 images.
# ---------------------------------------------------------------------------
def _vit_kernel(nL, nh, bt, eps,
                patch_ref, pos_ref, slab_ref, qkv_w_ref, o_w_ref, qb_ref,
                fc1_ref, fc2_ref, pw_ref, plw_ref, o_ref):
    S, H = pos_ref.shape
    I = fc1_ref.shape[-1]
    D = o_ref.shape[-1]
    pos = pos_ref[...]                                            # (S, H) f32
    pw = pw_ref[...]                                              # (CPP, H) bf16
    rf = 7 * nL
    rows = []
    for b in range(bt):
        pair = []
        for im in range(2):
            # Patch embed; pos already contains patch bias + (cls+pos0) fixup.
            x = jnp.dot(patch_ref[2 * b + im], pw,
                        preferred_element_type=jnp.float32) + pos  # (S, H)
            for l in range(nL):                                    # pre-LN blocks
                r = 7 * l
                g1 = slab_ref[r:r + 1, 0:H]
                b1 = slab_ref[r + 1:r + 2, 0:H]
                ob = slab_ref[r + 2:r + 3, 0:H]        # bo + bv @ Wo (folded)
                g2 = slab_ref[r + 3:r + 4, 0:H]
                b2 = slab_ref[r + 4:r + 5, 0:H]
                f1b = slab_ref[r + 5:r + 6, 0:I]
                f2b = slab_ref[r + 6:r + 7, 0:H]
                hln = _ln(x, g1, b1, eps)
                x = x + _attention(hln, qkv_w_ref, o_w_ref, qb_ref, l, nh) + ob
                hln = _ln(x, g2, b2, eps)
                ff = jax.nn.gelu(
                    jnp.dot(hln.astype(jnp.bfloat16), fc1_ref[l],
                            preferred_element_type=jnp.float32) + f1b,
                    approximate=True)
                x = x + jnp.dot(ff.astype(jnp.bfloat16), fc2_ref[l],
                                preferred_element_type=jnp.float32) + f2b
            x = _ln(x, slab_ref[rf:rf + 1, 0:H], slab_ref[rf + 1:rf + 2, 0:H], eps)
            pooled = jnp.tanh(
                jnp.dot(x[0:1, :].astype(jnp.bfloat16), plw_ref[...],
                        preferred_element_type=jnp.float32)
                + slab_ref[rf + 2:rf + 3, 0:H])                    # (1, H)
            pair.append(pooled)
        pad = D - 2 * H
        parts = pair + ([jnp.zeros((1, pad), jnp.float32)] if pad > 0 else [])
        rows.append(jnp.concatenate(parts, axis=-1))               # (1, D) lane-dense
    o_ref[0] = jnp.concatenate(rows, axis=0) if bt > 1 else rows[0]


def vit_forward(pv1, pv2, p, cfg):
    """pv1/pv2: NCHW (B, C, H, W) -> (B, CLS_DIM) rows = [pool1 | pool2 | 0]."""
    B, C, Hi, Wi = pv1.shape
    P, H, eps = cfg["patch"], cfg["hidden"], cfg["eps"]
    nL, nh = cfg["layers"], cfg["heads"]
    hP, wP = Hi // P, Wi // P
    n_patch = hP * wP
    S = n_patch + 1
    CPP = C * P * P
    D = CLS_DIM

    # Conv2d(kernel=stride=P) == matmul over flattened (C,P,P) patches; zero
    # row 0 stands in for the CLS slot (fixed up through pos_eff below).
    def to_patches(pv):
        x = (pv.reshape(B, C, hP, P, wP, P)
             .transpose(0, 2, 4, 1, 3, 5)
             .reshape(B, n_patch, CPP))
        return jnp.concatenate([jnp.zeros((B, 1, CPP), jnp.float32), x], axis=1)

    patches = jnp.stack([to_patches(pv1), to_patches(pv2)], axis=1)   # (B,2,S,CPP)
    patches = patches.reshape(B * 2, S, CPP).astype(jnp.bfloat16)

    # Hoisted CLS / patch-bias fixup: row0 = pos0 + cls, rows1.. = pos + patch_b.
    pos = p["vit.pos"]
    pos_eff = pos + p["vit.patch.b"][None, :]
    pos_eff = pos_eff.at[0].set(pos[0] + p["vit.cls"])

    rows = []
    for l in range(nL):
        pre = f"vit.l{l}"
        o_eff = p[f"{pre}.o.b"] + p[f"{pre}.v.b"] @ p[f"{pre}.o.w"]
        rows += [p[f"{pre}.ln1.g"], p[f"{pre}.ln1.b"], o_eff,
                 p[f"{pre}.ln2.g"], p[f"{pre}.ln2.b"],
                 p[f"{pre}.fc1.b"], p[f"{pre}.fc2.b"]]
    rows += [p["vit.ln.g"], p["vit.ln.b"], p["vit.pool.b"]]
    slab = _pack_rows(rows)

    qkv_w, o_w, q_b = _pack_attn(p, "vit", nL, nh, H)
    fc1_w = jnp.stack([p[f"vit.l{l}.fc1.w"] for l in range(nL)]).astype(jnp.bfloat16)
    fc2_w = jnp.stack([p[f"vit.l{l}.fc2.w"] for l in range(nL)]).astype(jnp.bfloat16)

    nsteps = 2 if B % 2 == 0 else 1          # <= 2 fat steps (megacore-friendly)
    bt = B // nsteps

    out = pl.pallas_call(
        functools.partial(_vit_kernel, nL, nh, bt, eps),
        out_shape=jax.ShapeDtypeStruct((nsteps, bt, D), jnp.float32),
        grid=(nsteps,),
        in_specs=[pl.BlockSpec((2 * bt, S, CPP), lambda i: (i, 0, 0))]
                 + [pl.BlockSpec(memory_space=VMEM)] * 9,
        out_specs=pl.BlockSpec((1, bt, D), lambda i: (i, 0, 0)),
        compiler_params=pltpu.CompilerParams(dimension_semantics=("parallel",)),
    )(patches, pos_eff, slab, qkv_w, o_w, q_b, fc1_w, fc2_w,
      p["vit.patch.w"].astype(jnp.bfloat16), p["vit.pool.w"].astype(jnp.bfloat16))
    return out.reshape(B, D)


# ---------------------------------------------------------------------------
# Fused RoBERTa encoder kernel: one grid step == bt sequences.
# ---------------------------------------------------------------------------
def _rob_kernel(nL, nh, bt, S, off, eps,
                x_ref, slab_ref, qkv_w_ref, o_w_ref, qb_ref,
                fc1_ref, fc2_ref, o_ref):
    H = x_ref.shape[-1]
    I = fc1_ref.shape[-1]
    D = o_ref.shape[-1]
    rows = []
    for b in range(bt):
        xa = x_ref[b]                                   # (S+1, H); row S = mask
        mask = xa[S:S + 1, 0:S]                         # (1, S) additive mask
        x = _ln(xa[0:S, :], slab_ref[0:1, 0:H], slab_ref[1:2, 0:H], eps)
        for l in range(nL):                             # post-LN blocks
            r = 2 + 7 * l
            ob = slab_ref[r:r + 1, 0:H]                 # bo + bv @ Wo (folded)
            ag = slab_ref[r + 1:r + 2, 0:H]
            ab = slab_ref[r + 2:r + 3, 0:H]
            f1b = slab_ref[r + 3:r + 4, 0:I]
            f2b = slab_ref[r + 4:r + 5, 0:H]
            og = slab_ref[r + 5:r + 6, 0:H]
            obt = slab_ref[r + 6:r + 7, 0:H]
            attn = _attention(x, qkv_w_ref, o_w_ref, qb_ref, l, nh, mask=mask) + ob
            x = _ln(x + attn, ag, ab, eps)
            ff = jax.nn.gelu(
                jnp.dot(x.astype(jnp.bfloat16), fc1_ref[l],
                        preferred_element_type=jnp.float32) + f1b,
                approximate=True)
            x = _ln(x + jnp.dot(ff.astype(jnp.bfloat16), fc2_ref[l],
                                preferred_element_type=jnp.float32) + f2b,
                    og, obt, eps)
        cls = x[0:1, :]                                 # CLS of last hidden state
        parts = [jnp.zeros((1, off), jnp.float32), cls]
        tail = D - off - H
        if tail > 0:
            parts.append(jnp.zeros((1, tail), jnp.float32))
        rows.append(jnp.concatenate(parts, axis=-1))    # (1, D) lane-dense
    o_ref[0] = jnp.concatenate(rows, axis=0) if bt > 1 else rows[0]


def roberta_forward(input_ids, attention_mask, p, cfg):
    B, S = input_ids.shape
    H, eps, pad = cfg["hidden"], cfg["eps"], cfg["pad"]
    nL, nh = cfg["layers"], cfg["heads"]
    D = CLS_DIM
    off = D - H                       # cls feature lands in lanes [off, off+H)
    assert S <= H, "mask row folding needs seq_len <= hidden"

    # Embedding gathers + RoBERTa position ids (host-side glue).
    not_pad = (input_ids != pad).astype(jnp.int32)
    position_ids = jnp.cumsum(not_pad, axis=1) * not_pad + pad
    x = (p["rob.word"][input_ids]
         + p["rob.pos"][position_ids]
         + p["rob.type"][jnp.zeros_like(input_ids)])              # (B, S, H) f32
    mask_add = (1.0 - attention_mask.astype(jnp.float32)) * -1e9  # (B, S)
    mask_row = jnp.zeros((B, 1, H), jnp.float32).at[:, 0, :S].set(mask_add)
    x_aug = jnp.concatenate([x, mask_row], axis=1)                # (B, S+1, H)

    rows = [p["rob.emb_ln.g"], p["rob.emb_ln.b"]]
    for l in range(nL):
        pre = f"rob.l{l}"
        o_eff = p[f"{pre}.o.b"] + p[f"{pre}.v.b"] @ p[f"{pre}.o.w"]
        rows += [o_eff, p[f"{pre}.attn_ln.g"], p[f"{pre}.attn_ln.b"],
                 p[f"{pre}.fc1.b"], p[f"{pre}.fc2.b"],
                 p[f"{pre}.out_ln.g"], p[f"{pre}.out_ln.b"]]
    slab = _pack_rows(rows)

    qkv_w, o_w, q_b = _pack_attn(p, "rob", nL, nh, H)
    fc1_w = jnp.stack([p[f"rob.l{l}.fc1.w"] for l in range(nL)]).astype(jnp.bfloat16)
    fc2_w = jnp.stack([p[f"rob.l{l}.fc2.w"] for l in range(nL)]).astype(jnp.bfloat16)

    nsteps = 2 if B % 2 == 0 else 1
    bt = B // nsteps

    out = pl.pallas_call(
        functools.partial(_rob_kernel, nL, nh, bt, S, off, eps),
        out_shape=jax.ShapeDtypeStruct((nsteps, bt, D), jnp.float32),
        grid=(nsteps,),
        in_specs=[pl.BlockSpec((bt, S + 1, H), lambda i: (i, 0, 0))]
                 + [pl.BlockSpec(memory_space=VMEM)] * 6,
        out_specs=pl.BlockSpec((1, bt, D), lambda i: (i, 0, 0)),
        compiler_params=pltpu.CompilerParams(dimension_semantics=("parallel",)),
    )(x_aug, slab, qkv_w, o_w, q_b, fc1_w, fc2_w)
    return out.reshape(B, D)


# ---------------------------------------------------------------------------
# Fused classifier head: feat = vit_slab + rob_slab (== concat(x1,x2,x3)),
# then Linear -> LayerNorm -> GELU -> Linear(2), all lane-dense (D = 128).
# ---------------------------------------------------------------------------
def _head_kernel(eps, vit_ref, rob_ref, w1_ref, slab_ref, w2_ref, b2_ref, o_ref):
    feat = vit_ref[...] + rob_ref[...]                  # (B, D) == concat features
    h = jnp.dot(feat.astype(jnp.bfloat16), w1_ref[...],
                preferred_element_type=jnp.float32) + slab_ref[0:1, :]
    h = _ln(h, slab_ref[1:2, :], slab_ref[2:3, :], eps)
    h = jax.nn.gelu(h, approximate=True)
    o_ref[...] = jnp.dot(h.astype(jnp.bfloat16), w2_ref[...],
                         preferred_element_type=jnp.float32) + b2_ref[...]


def classifier_head(vit_feat, rob_feat, p, eps=1e-5):
    B, D = vit_feat.shape
    slab = _pack_rows([p["cls.fc1.b"], p["cls.ln.g"], p["cls.ln.b"]], width=D)
    return pl.pallas_call(
        functools.partial(_head_kernel, eps),
        out_shape=jax.ShapeDtypeStruct((B, 2), jnp.float32),
        in_specs=[pl.BlockSpec(memory_space=VMEM)] * 6,
        out_specs=pl.BlockSpec(memory_space=VMEM),
    )(vit_feat, rob_feat, p["cls.fc1.w"].astype(jnp.bfloat16), slab,
      p["cls.fc2.w"].astype(jnp.bfloat16), p["cls.fc2.b"].reshape(1, 2))


# ---------------------------------------------------------------------------
# Full model forward
# ---------------------------------------------------------------------------
def nlvr2_forward(params, pixel_values_1, pixel_values_2, input_ids, attention_mask):
    # TODO(synk): on v7x, co-schedule the independent ViT and RoBERTa calls on
    # the two TensorCores (pl.core_map); here they run back-to-back.
    vit_feat = vit_forward(pixel_values_1, pixel_values_2, params, VIT_CFG)  # (B, 128)
    rob_feat = roberta_forward(input_ids, attention_mask, params, ROB_CFG)   # (B, 128)
    return classifier_head(vit_feat, rob_feat, params)                       # (B, 2)


# ---------------------------------------------------------------------------
# Deterministic parameter init (synthetic; no checkpoint loading)
# ---------------------------------------------------------------------------
def init_params(key):
    cnt = [0]

    def nrm(shape, scale=0.02):
        cnt[0] += 1
        return scale * jax.random.normal(jax.random.fold_in(key, cnt[0]), shape,
                                         dtype=jnp.float32)

    zeros = lambda s: jnp.zeros(s, jnp.float32)
    ones = lambda s: jnp.ones(s, jnp.float32)
    p = {}

    H, I, P, C = VIT_CFG["hidden"], VIT_CFG["inter"], VIT_CFG["patch"], VIT_CFG["channels"]
    n_tok = (VIT_CFG["image"] // P) ** 2 + 1
    p["vit.patch.w"] = nrm((C * P * P, H)); p["vit.patch.b"] = nrm((H,))
    p["vit.cls"] = nrm((H,)); p["vit.pos"] = nrm((n_tok, H))
    for l in range(VIT_CFG["layers"]):
        pre = f"vit.l{l}"
        for nme in ("q", "k", "v", "o"):
            p[f"{pre}.{nme}.w"] = nrm((H, H)); p[f"{pre}.{nme}.b"] = nrm((H,))
        p[f"{pre}.ln1.g"] = ones((H,)); p[f"{pre}.ln1.b"] = zeros((H,))
        p[f"{pre}.ln2.g"] = ones((H,)); p[f"{pre}.ln2.b"] = zeros((H,))
        p[f"{pre}.fc1.w"] = nrm((H, I)); p[f"{pre}.fc1.b"] = nrm((I,))
        p[f"{pre}.fc2.w"] = nrm((I, H)); p[f"{pre}.fc2.b"] = nrm((H,))
    p["vit.ln.g"] = ones((H,)); p["vit.ln.b"] = zeros((H,))
    p["vit.pool.w"] = nrm((H, H)); p["vit.pool.b"] = nrm((H,))

    Hr, Ir = ROB_CFG["hidden"], ROB_CFG["inter"]
    p["rob.word"] = nrm((ROB_CFG["vocab"], Hr))
    p["rob.pos"] = nrm((ROB_CFG["max_pos"], Hr))
    p["rob.type"] = nrm((ROB_CFG["type_vocab"], Hr))
    p["rob.emb_ln.g"] = ones((Hr,)); p["rob.emb_ln.b"] = zeros((Hr,))
    for l in range(ROB_CFG["layers"]):
        pre = f"rob.l{l}"
        for nme in ("q", "k", "v", "o"):
            p[f"{pre}.{nme}.w"] = nrm((Hr, Hr)); p[f"{pre}.{nme}.b"] = nrm((Hr,))
        p[f"{pre}.attn_ln.g"] = ones((Hr,)); p[f"{pre}.attn_ln.b"] = zeros((Hr,))
        p[f"{pre}.fc1.w"] = nrm((Hr, Ir)); p[f"{pre}.fc1.b"] = nrm((Ir,))
        p[f"{pre}.fc2.w"] = nrm((Ir, Hr)); p[f"{pre}.fc2.b"] = nrm((Hr,))
        p[f"{pre}.out_ln.g"] = ones((Hr,)); p[f"{pre}.out_ln.b"] = zeros((Hr,))

    D = CLS_DIM
    p["cls.fc1.w"] = nrm((D, D)); p["cls.fc1.b"] = nrm((D,))
    p["cls.ln.g"] = ones((D,)); p["cls.ln.b"] = zeros((D,))
    p["cls.fc2.w"] = nrm((D, 2)); p["cls.fc2.b"] = nrm((2,))
    return p


# ---------------------------------------------------------------------------
if __name__ == "__main__":
    key = jax.random.PRNGKey(0)
    params = init_params(key)

    B, C, IMG, SEQ = 2, VIT_CFG["channels"], VIT_CFG["image"], 8
    k1, k2, k3 = jax.random.split(jax.random.fold_in(key, 12345), 3)
    pixel_values_1 = jax.random.normal(k1, (B, C, IMG, IMG), dtype=jnp.float32)
    pixel_values_2 = jax.random.normal(k2, (B, C, IMG, IMG), dtype=jnp.float32)
    input_ids = jax.random.randint(k3, (B, SEQ), 2, ROB_CFG["vocab"], dtype=jnp.int32)
    attention_mask = jnp.ones((B, SEQ), dtype=jnp.int32)
    # pad the tail of the second sequence
    input_ids = input_ids.at[1, -2:].set(ROB_CFG["pad"])
    attention_mask = attention_mask.at[1, -2:].set(0)

    fwd = jax.jit(nlvr2_forward)
    logits = fwd(params, pixel_values_1, pixel_values_2, input_ids, attention_mask)
    jax.block_until_ready(logits)
    assert logits.shape == (B, 2) and logits.dtype == jnp.float32
    print("KERNEL_OK")
</pallas_src>

<mosaic_0001>
module attributes {stable_mosaic.version = 11 : i64} {
  func.func @_rob_kernel(%arg0: i32, %arg1: memref<1x9x64xf32, #tpu.memory_space<vmem>>, %arg2: memref<16x128xf32, #tpu.memory_space<vmem>>, %arg3: memref<24x64x16xbf16, #tpu.memory_space<vmem>>, %arg4: memref<8x16x64xbf16, #tpu.memory_space<vmem>>, %arg5: memref<8x1x16xf32, #tpu.memory_space<vmem>>, %arg6: memref<2x64x128xbf16, #tpu.memory_space<vmem>>, %arg7: memref<2x128x64xbf16, #tpu.memory_space<vmem>>, %arg8: memref<1x1x128xf32, #tpu.memory_space<vmem>>) attributes {dimension_semantics = [#tpu.dimension_semantics<parallel>], iteration_bounds = array<i64: 2>, scalar_prefetch = 0 : i64, scratch_operands = 0 : i64, tpu.core_type = #tpu.core_type<tc>, window_params = [{transform_indices = @transform_0, window_bounds = array<i64: 1, 9, 64>}, {pipeline_mode = #tpu.pipeline_mode<synchronous>, transform_indices = @transform_1, window_bounds = array<i64: 16, 128>}, {pipeline_mode = #tpu.pipeline_mode<synchronous>, transform_indices = @transform_2, window_bounds = array<i64: 24, 64, 16>}, {pipeline_mode = #tpu.pipeline_mode<synchronous>, transform_indices = @transform_3, window_bounds = array<i64: 8, 16, 64>}, {pipeline_mode = #tpu.pipeline_mode<synchronous>, transform_indices = @transform_4, window_bounds = array<i64: 8, 1, 16>}, {pipeline_mode = #tpu.pipeline_mode<synchronous>, transform_indices = @transform_5, window_bounds = array<i64: 2, 64, 128>}, {pipeline_mode = #tpu.pipeline_mode<synchronous>, transform_indices = @transform_6, window_bounds = array<i64: 2, 128, 64>}, {transform_indices = @transform_7, window_bounds = array<i64: 1, 1, 128>}]} {
    %c0 = arith.constant 0 : index
    %c0_0 = arith.constant 0 : index
    %c0_1 = arith.constant 0 : index
    %0 = vector.load %arg1[%c0, %c0_0, %c0_1] : memref<1x9x64xf32, #tpu.memory_space<vmem>>, vector<1x9x64xf32>
    %1 = vector.shape_cast %0 : vector<1x9x64xf32> to vector<9x64xf32>
    %2 = vector.extract_strided_slice %1 {offsets = [8, 0], sizes = [1, 8], strides = [1, 1]} : vector<9x64xf32> to vector<1x8xf32>
    %3 = vector.extract_strided_slice %1 {offsets = [0, 0], sizes = [8, 64], strides = [1, 1]} : vector<9x64xf32> to vector<8x64xf32>
    %c0_2 = arith.constant 0 : index
    %c0_3 = arith.constant 0 : index
    %4 = vector.load %arg2[%c0_2, %c0_3] : memref<16x128xf32, #tpu.memory_space<vmem>>, vector<1x64xf32>
    %c1 = arith.constant 1 : index
    %c0_4 = arith.constant 0 : index
    %5 = vector.load %arg2[%c1, %c0_4] : memref<16x128xf32, #tpu.memory_space<vmem>>, vector<1x64xf32>
    %cst = arith.constant dense<0.000000e+00> : vector<8xf32>
    %6 = vector.multi_reduction <add>, %3, %cst [1] : vector<8x64xf32> to vector<8xf32>
    %7 = vector.shape_cast %6 : vector<8xf32> to vector<8x1xf32>
    %cst_5 = arith.constant 6.400000e+01 : f32
    %8 = vector.broadcast %cst_5 : f32 to vector<8x1xf32>
    %9 = arith.divf %7, %8 : vector<8x1xf32>
    %10 = vector.broadcast %9 : vector<8x1xf32> to vector<8x64xf32>
    %11 = arith.subf %3, %10 : vector<8x64xf32>
    %12 = arith.mulf %11, %11 : vector<8x64xf32>
    %cst_6 = arith.constant dense<0.000000e+00> : vector<8xf32>
    %13 = vector.multi_reduction <add>, %12, %cst_6 [1] : vector<8x64xf32> to vector<8xf32>
    %14 = vector.shape_cast %13 : vector<8xf32> to vector<8x1xf32>
    %cst_7 = arith.constant 6.400000e+01 : f32
    %15 = vector.broadcast %cst_7 : f32 to vector<8x1xf32>
    %16 = arith.divf %14, %15 : vector<8x1xf32>
    %17 = vector.broadcast %9 : vector<8x1xf32> to vector<8x64xf32>
    %18 = arith.subf %3, %17 : vector<8x64xf32>
    %cst_8 = arith.constant 9.99999974E-6 : f32
    %19 = vector.broadcast %cst_8 : f32 to vector<8x1xf32>
    %20 = arith.addf %16, %19 : vector<8x1xf32>
    %21 = math.rsqrt %20 : vector<8x1xf32>
    %22 = vector.broadcast %21 : vector<8x1xf32> to vector<8x64xf32>
    %23 = arith.mulf %18, %22 : vector<8x64xf32>
    %24 = vector.broadcast %4 : vector<1x64xf32> to vector<8x64xf32>
    %25 = arith.mulf %23, %24 : vector<8x64xf32>
    %26 = vector.broadcast %5 : vector<1x64xf32> to vector<8x64xf32>
    %27 = arith.addf %25, %26 : vector<8x64xf32>
    %c2 = arith.constant 2 : index
    %c0_9 = arith.constant 0 : index
    %28 = vector.load %arg2[%c2, %c0_9] : memref<16x128xf32, #tpu.memory_space<vmem>>, vector<1x64xf32>
    %c3 = arith.constant 3 : index
    %c0_10 = arith.constant 0 : index
    %29 = vector.load %arg2[%c3, %c0_10] : memref<16x128xf32, #tpu.memory_space<vmem>>, vector<1x64xf32>
    %c4 = arith.constant 4 : index
    %c0_11 = arith.constant 0 : index
    %30 = vector.load %arg2[%c4, %c0_11] : memref<16x128xf32, #tpu.memory_space<vmem>>, vector<1x64xf32>
    %c5 = arith.constant 5 : index
    %c0_12 = arith.constant 0 : index
    %31 = vector.load %arg2[%c5, %c0_12] : memref<16x128xf32, #tpu.memory_space<vmem>>, vector<1x128xf32>
    %c6 = arith.constant 6 : index
    %c0_13 = arith.constant 0 : index
    %32 = vector.load %arg2[%c6, %c0_13] : memref<16x128xf32, #tpu.memory_space<vmem>>, vector<1x64xf32>
    %c7 = arith.constant 7 : index
    %c0_14 = arith.constant 0 : index
    %33 = vector.load %arg2[%c7, %c0_14] : memref<16x128xf32, #tpu.memory_space<vmem>>, vector<1x64xf32>
    %c8 = arith.constant 8 : index
    %c0_15 = arith.constant 0 : index
    %34 = vector.load %arg2[%c8, %c0_15] : memref<16x128xf32, #tpu.memory_space<vmem>>, vector<1x64xf32>
    %35 = arith.truncf %27 : vector<8x64xf32> to vector<8x64xbf16>
    %c0_16 = arith.constant 0 : index
    %c0_17 = arith.constant 0 : index
    %c0_18 = arith.constant 0 : index
    %36 = vector.load %arg3[%c0_16, %c0_17, %c0_18] : memref<24x64x16xbf16, #tpu.memory_space<vmem>>, vector<1x64x16xbf16>
    %37 = vector.shape_cast %36 : vector<1x64x16xbf16> to vector<64x16xbf16>
    %c4_19 = arith.constant 4 : index
    %c0_20 = arith.constant 0 : index
    %c0_21 = arith.constant 0 : index
    %38 = vector.load %arg3[%c4_19, %c0_20, %c0_21] : memref<24x64x16xbf16, #tpu.memory_space<vmem>>, vector<1x64x16xbf16>
    %39 = vector.shape_cast %38 : vector<1x64x16xbf16> to vector<64x16xbf16>
    %c8_22 = arith.constant 8 : index
    %c0_23 = arith.constant 0 : index
    %c0_24 = arith.constant 0 : index
    %40 = vector.load %arg3[%c8_22, %c0_23, %c0_24] : memref<24x64x16xbf16, #tpu.memory_space<vmem>>, vector<1x64x16xbf16>
    %41 = vector.shape_cast %40 : vector<1x64x16xbf16> to vector<64x16xbf16>
    %cst_25 = arith.constant dense<0.000000e+00> : vector<8x16xf32>
    %42 = tpu.matmul %35, %37, %cst_25 {dimension_numbers = #tpu.dot_dimension_numbers<[1], [0], [0], [1], [0, 0, 1, 1], [], []>} : vector<8x64xbf16>, vector<64x16xbf16>, vector<8x16xf32> -> vector<8x16xf32>
    %c0_26 = arith.constant 0 : index
    %c0_27 = arith.constant 0 : index
    %c0_28 = arith.constant 0 : index
    %43 = vector.load %arg5[%c0_26, %c0_27, %c0_28] : memref<8x1x16xf32, #tpu.memory_space<vmem>>, vector<1x1x16xf32>
    %44 = vector.shape_cast %43 : vector<1x1x16xf32> to vector<1x16xf32>
    %45 = vector.broadcast %44 : vector<1x16xf32> to vector<8x16xf32>
    %46 = arith.addf %42, %45 : vector<8x16xf32>
    %cst_29 = arith.constant dense<0.000000e+00> : vector<8x16xf32>
    %47 = tpu.matmul %35, %39, %cst_29 {dimension_numbers = #tpu.dot_dimension_numbers<[1], [0], [0], [1], [0, 0, 1, 1], [], []>} : vector<8x64xbf16>, vector<64x16xbf16>, vector<8x16xf32> -> vector<8x16xf32>
    %cst_30 = arith.constant dense<0.000000e+00> : vector<8x16xf32>
    %48 = tpu.matmul %35, %41, %cst_30 {dimension_numbers = #tpu.dot_dimension_numbers<[1], [0], [0], [1], [0, 0, 1, 1], [], []>} : vector<8x64xbf16>, vector<64x16xbf16>, vector<8x16xf32> -> vector<8x16xf32>
    %49 = arith.truncf %46 : vector<8x16xf32> to vector<8x16xbf16>
    %50 = arith.truncf %47 : vector<8x16xf32> to vector<8x16xbf16>
    %cst_31 = arith.constant dense<0.000000e+00> : vector<8x8xf32>
    %51 = tpu.matmul %49, %50, %cst_31 {dimension_numbers = #tpu.dot_dimension_numbers<[1], [1], [0], [0], [0, 0, 1, 0], [], []>} : vector<8x16xbf16>, vector<8x16xbf16>, vector<8x8xf32> -> vector<8x8xf32>
    %cst_32 = arith.constant 2.500000e-01 : f32
    %52 = vector.broadcast %cst_32 : f32 to vector<8x8xf32>
    %53 = arith.mulf %51, %52 : vector<8x8xf32>
    %54 = vector.broadcast %2 : vector<1x8xf32> to vector<8x8xf32>
    %55 = arith.addf %53, %54 : vector<8x8xf32>
    %cst_33 = arith.constant dense<0xFF800000> : vector<8xf32>
    %56 = vector.multi_reduction <maximumf>, %55, %cst_33 [1] : vector<8x8xf32> to vector<8xf32>
    %57 = vector.shape_cast %56 : vector<8xf32> to vector<8x1xf32>
    %58 = vector.broadcast %57 : vector<8x1xf32> to vector<8x8xf32>
    %59 = arith.subf %55, %58 : vector<8x8xf32>
    %60 = math.exp %59 : vector<8x8xf32>
    %cst_34 = arith.constant dense<0.000000e+00> : vector<8xf32>
    %61 = vector.multi_reduction <add>, %60, %cst_34 [1] : vector<8x8xf32> to vector<8xf32>
    %62 = vector.shape_cast %61 : vector<8xf32> to vector<8x1xf32>
    %63 = tpu.reciprocal %62 {approx = true} : vector<8x1xf32> -> vector<8x1xf32>
    %64 = vector.broadcast %63 : vector<8x1xf32> to vector<8x8xf32>
    %65 = arith.mulf %60, %64 : vector<8x8xf32>
    %66 = arith.truncf %65 : vector<8x8xf32> to vector<8x8xbf16>
    %67 = arith.truncf %48 : vector<8x16xf32> to vector<8x16xbf16>
    %cst_35 = arith.constant dense<0.000000e+00> : vector<8x16xf32>
    %68 = tpu.matmul %66, %67, %cst_35 {dimension_numbers = #tpu.dot_dimension_numbers<[1], [0], [0], [1], [0, 0, 1, 1], [], []>} : vector<8x8xbf16>, vector<8x16xbf16>, vector<8x16xf32> -> vector<8x16xf32>
    %69 = arith.truncf %68 : vector<8x16xf32> to vector<8x16xbf16>
    %c0_36 = arith.constant 0 : index
    %c0_37 = arith.constant 0 : index
    %c0_38 = arith.constant 0 : index
    %70 = vector.load %arg4[%c0_36, %c0_37, %c0_38] : memref<8x16x64xbf16, #tpu.memory_space<vmem>>, vector<1x16x64xbf16>
    %71 = vector.shape_cast %70 : vector<1x16x64xbf16> to vector<16x64xbf16>
    %cst_39 = arith.constant dense<0.000000e+00> : vector<8x64xf32>
    %72 = tpu.matmul %69, %71, %cst_39 {dimension_numbers = #tpu.dot_dimension_numbers<[1], [0], [0], [1], [0, 0, 1, 1], [], []>} : vector<8x16xbf16>, vector<16x64xbf16>, vector<8x64xf32> -> vector<8x64xf32>
    %c1_40 = arith.constant 1 : index
    %c0_41 = arith.constant 0 : index
    %c0_42 = arith.constant 0 : index
    %73 = vector.load %arg3[%c1_40, %c0_41, %c0_42] : memref<24x64x16xbf16, #tpu.memory_space<vmem>>, vector<1x64x16xbf16>
    %74 = vector.shape_cast %73 : vector<1x64x16xbf16> to vector<64x16xbf16>
    %c5_43 = arith.constant 5 : index
    %c0_44 = arith.constant 0 : index
    %c0_45 = arith.constant 0 : index
    %75 = vector.load %arg3[%c5_43, %c0_44, %c0_45] : memref<24x64x16xbf16, #tpu.memory_space<vmem>>, vector<1x64x16xbf16>
    %76 = vector.shape_cast %75 : vector<1x64x16xbf16> to vector<64x16xbf16>
    %c9 = arith.constant 9 : index
    %c0_46 = arith.constant 0 : index
    %c0_47 = arith.constant 0 : index
    %77 = vector.load %arg3[%c9, %c0_46, %c0_47] : memref<24x64x16xbf16, #tpu.memory_space<vmem>>, vector<1x64x16xbf16>
    %78 = vector.shape_cast %77 : vector<1x64x16xbf16> to vector<64x16xbf16>
    %cst_48 = arith.constant dense<0.000000e+00> : vector<8x16xf32>
    %79 = tpu.matmul %35, %74, %cst_48 {dimension_numbers = #tpu.dot_dimension_numbers<[1], [0], [0], [1], [0, 0, 1, 1], [], []>} : vector<8x64xbf16>, vector<64x16xbf16>, vector<8x16xf32> -> vector<8x16xf32>
    %c1_49 = arith.constant 1 : index
    %c0_50 = arith.constant 0 : index
    %c0_51 = arith.constant 0 : index
    %80 = vector.load %arg5[%c1_49, %c0_50, %c0_51] : memref<8x1x16xf32, #tpu.memory_space<vmem>>, vector<1x1x16xf32>
    %81 = vector.shape_cast %80 : vector<1x1x16xf32> to vector<1x16xf32>
    %82 = vector.broadcast %81 : vector<1x16xf32> to vector<8x16xf32>
    %83 = arith.addf %79, %82 : vector<8x16xf32>
    %cst_52 = arith.constant dense<0.000000e+00> : vector<8x16xf32>
    %84 = tpu.matmul %35, %76, %cst_52 {dimension_numbers = #tpu.dot_dimension_numbers<[1], [0], [0], [1], [0, 0, 1, 1], [], []>} : vector<8x64xbf16>, vector<64x16xbf16>, vector<8x16xf32> -> vector<8x16xf32>
    %cst_53 = arith.constant dense<0.000000e+00> : vector<8x16xf32>
    %85 = tpu.matmul %35, %78, %cst_53 {dimension_numbers = #tpu.dot_dimension_numbers<[1], [0], [0], [1], [0, 0, 1, 1], [], []>} : vector<8x64xbf16>, vector<64x16xbf16>, vector<8x16xf32> -> vector<8x16xf32>
    %86 = arith.truncf %83 : vector<8x16xf32> to vector<8x16xbf16>
    %87 = arith.truncf %84 : vector<8x16xf32> to vector<8x16xbf16>
    %cst_54 = arith.constant dense<0.000000e+00> : vector<8x8xf32>
    %88 = tpu.matmul %86, %87, %cst_54 {dimension_numbers = #tpu.dot_dimension_numbers<[1], [1], [0], [0], [0, 0, 1, 0], [], []>} : vector<8x16xbf16>, vector<8x16xbf16>, vector<8x8xf32> -> vector<8x8xf32>
    %cst_55 = arith.constant 2.500000e-01 : f32
    %89 = vector.broadcast %cst_55 : f32 to vector<8x8xf32>
    %90 = arith.mulf %88, %89 : vector<8x8xf32>
    %91 = vector.broadcast %2 : vector<1x8xf32> to vector<8x8xf32>
    %92 = arith.addf %90, %91 : vector<8x8xf32>
    %cst_56 = arith.constant dense<0xFF800000> : vector<8xf32>
    %93 = vector.multi_reduction <maximumf>, %92, %cst_56 [1] : vector<8x8xf32> to vector<8xf32>
    %94 = vector.shape_cast %93 : vector<8xf32> to vector<8x1xf32>
    %95 = vector.broadcast %94 : vector<8x1xf32> to vector<8x8xf32>
    %96 = arith.subf %92, %95 : vector<8x8xf32>
    %97 = math.exp %96 : vector<8x8xf32>
    %cst_57 = arith.constant dense<0.000000e+00> : vector<8xf32>
    %98 = vector.multi_reduction <add>, %97, %cst_57 [1] : vector<8x8xf32> to vector<8xf32>
    %99 = vector.shape_cast %98 : vector<8xf32> to vector<8x1xf32>
    %100 = tpu.reciprocal %99 {approx = true} : vector<8x1xf32> -> vector<8x1xf32>
    %101 = vector.broadcast %100 : vector<8x1xf32> to vector<8x8xf32>
    %102 = arith.mulf %97, %101 : vector<8x8xf32>
    %103 = arith.truncf %102 : vector<8x8xf32> to vector<8x8xbf16>
    %104 = arith.truncf %85 : vector<8x16xf32> to vector<8x16xbf16>
    %cst_58 = arith.constant dense<0.000000e+00> : vector<8x16xf32>
    %105 = tpu.matmul %103, %104, %cst_58 {dimension_numbers = #tpu.dot_dimension_numbers<[1], [0], [0], [1], [0, 0, 1, 1], [], []>} : vector<8x8xbf16>, vector<8x16xbf16>, vector<8x16xf32> -> vector<8x16xf32>
    %106 = arith.truncf %105 : vector<8x16xf32> to vector<8x16xbf16>
    %c1_59 = arith.constant 1 : index
    %c0_60 = arith.constant 0 : index
    %c0_61 = arith.constant 0 : index
    %107 = vector.load %arg4[%c1_59, %c0_60, %c0_61] : memref<8x16x64xbf16, #tpu.memory_space<vmem>>, vector<1x16x64xbf16>
    %108 = vector.shape_cast %107 : vector<1x16x64xbf16> to vector<16x64xbf16>
    %cst_62 = arith.constant dense<0.000000e+00> : vector<8x64xf32>
    %109 = tpu.matmul %106, %108, %cst_62 {dimension_numbers = #tpu.dot_dimension_numbers<[1], [0], [0], [1], [0, 0, 1, 1], [], []>} : vector<8x16xbf16>, vector<16x64xbf16>, vector<8x64xf32> -> vector<8x64xf32>
    %110 = arith.addf %72, %109 : vector<8x64xf32>
    %c2_63 = arith.constant 2 : index
    %c0_64 = arith.constant 0 : index
    %c0_65 = arith.constant 0 : index
    %111 = vector.load %arg3[%c2_63, %c0_64, %c0_65] : memref<24x64x16xbf16, #tpu.memory_space<vmem>>, vector<1x64x16xbf16>
    %112 = vector.shape_cast %111 : vector<1x64x16xbf16> to vector<64x16xbf16>
    %c6_66 = arith.constant 6 : index
    %c0_67 = arith.constant 0 : index
    %c0_68 = arith.constant 0 : index
    %113 = vector.load %arg3[%c6_66, %c0_67, %c0_68] : memref<24x64x16xbf16, #tpu.memory_space<vmem>>, vector<1x64x16xbf16>
    %114 = vector.shape_cast %113 : vector<1x64x16xbf16> to vector<64x16xbf16>
    %c10 = arith.constant 10 : index
    %c0_69 = arith.constant 0 : index
    %c0_70 = arith.constant 0 : index
    %115 = vector.load %arg3[%c10, %c0_69, %c0_70] : memref<24x64x16xbf16, #tpu.memory_space<vmem>>, vector<1x64x16xbf16>
    %116 = vector.shape_cast %115 : vector<1x64x16xbf16> to vector<64x16xbf16>
    %cst_71 = arith.constant dense<0.000000e+00> : vector<8x16xf32>
    %117 = tpu.matmul %35, %112, %cst_71 {dimension_numbers = #tpu.dot_dimension_numbers<[1], [0], [0], [1], [0, 0, 1, 1], [], []>} : vector<8x64xbf16>, vector<64x16xbf16>, vector<8x16xf32> -> vector<8x16xf32>
    %c2_72 = arith.constant 2 : index
    %c0_73 = arith.constant 0 : index
    %c0_74 = arith.constant 0 : index
    %118 = vector.load %arg5[%c2_72, %c0_73, %c0_74] : memref<8x1x16xf32, #tpu.memory_space<vmem>>, vector<1x1x16xf32>
    %119 = vector.shape_cast %118 : vector<1x1x16xf32> to vector<1x16xf32>
    %120 = vector.broadcast %119 : vector<1x16xf32> to vector<8x16xf32>
    %121 = arith.addf %117, %120 : vector<8x16xf32>
    %cst_75 = arith.constant dense<0.000000e+00> : vector<8x16xf32>
    %122 = tpu.matmul %35, %114, %cst_75 {dimension_numbers = #tpu.dot_dimension_numbers<[1], [0], [0], [1], [0, 0, 1, 1], [], []>} : vector<8x64xbf16>, vector<64x16xbf16>, vector<8x16xf32> -> vector<8x16xf32>
    %cst_76 = arith.constant dense<0.000000e+00> : vector<8x16xf32>
    %123 = tpu.matmul %35, %116, %cst_76 {dimension_numbers = #tpu.dot_dimension_numbers<[1], [0], [0], [1], [0, 0, 1, 1], [], []>} : vector<8x64xbf16>, vector<64x16xbf16>, vector<8x16xf32> -> vector<8x16xf32>
    %124 = arith.truncf %121 : vector<8x16xf32> to vector<8x16xbf16>
    %125 = arith.truncf %122 : vector<8x16xf32> to vector<8x16xbf16>
    %cst_77 = arith.constant dense<0.000000e+00> : vector<8x8xf32>
    %126 = tpu.matmul %124, %125, %cst_77 {dimension_numbers = #tpu.dot_dimension_numbers<[1], [1], [0], [0], [0, 0, 1, 0], [], []>} : vector<8x16xbf16>, vector<8x16xbf16>, vector<8x8xf32> -> vector<8x8xf32>
    %cst_78 = arith.constant 2.500000e-01 : f32
    %127 = vector.broadcast %cst_78 : f32 to vector<8x8xf32>
    %128 = arith.mulf %126, %127 : vector<8x8xf32>
    %129 = vector.broadcast %2 : vector<1x8xf32> to vector<8x8xf32>
    %130 = arith.addf %128, %129 : vector<8x8xf32>
    %cst_79 = arith.constant dense<0xFF800000> : vector<8xf32>
    %131 = vector.multi_reduction <maximumf>, %130, %cst_79 [1] : vector<8x8xf32> to vector<8xf32>
    %132 = vector.shape_cast %131 : vector<8xf32> to vector<8x1xf32>
    %133 = vector.broadcast %132 : vector<8x1xf32> to vector<8x8xf32>
    %134 = arith.subf %130, %133 : vector<8x8xf32>
    %135 = math.exp %134 : vector<8x8xf32>
    %cst_80 = arith.constant dense<0.000000e+00> : vector<8xf32>
    %136 = vector.multi_reduction <add>, %135, %cst_80 [1] : vector<8x8xf32> to vector<8xf32>
    %137 = vector.shape_cast %136 : vector<8xf32> to vector<8x1xf32>
    %138 = tpu.reciprocal %137 {approx = true} : vector<8x1xf32> -> vector<8x1xf32>
    %139 = vector.broadcast %138 : vector<8x1xf32> to vector<8x8xf32>
    %140 = arith.mulf %135, %139 : vector<8x8xf32>
    %141 = arith.truncf %140 : vector<8x8xf32> to vector<8x8xbf16>
    %142 = arith.truncf %123 : vector<8x16xf32> to vector<8x16xbf16>
    %cst_81 = arith.constant dense<0.000000e+00> : vector<8x16xf32>
    %143 = tpu.matmul %141, %142, %cst_81 {dimension_numbers = #tpu.dot_dimension_numbers<[1], [0], [0], [1], [0, 0, 1, 1], [], []>} : vector<8x8xbf16>, vector<8x16xbf16>, vector<8x16xf32> -> vector<8x16xf32>
    %144 = arith.truncf %143 : vector<8x16xf32> to vector<8x16xbf16>
    %c2_82 = arith.constant 2 : index
    %c0_83 = arith.constant 0 : index
    %c0_84 = arith.constant 0 : index
    %145 = vector.load %arg4[%c2_82, %c0_83, %c0_84] : memref<8x16x64xbf16, #tpu.memory_space<vmem>>, vector<1x16x64xbf16>
    %146 = vector.shape_cast %145 : vector<1x16x64xbf16> to vector<16x64xbf16>
    %cst_85 = arith.constant dense<0.000000e+00> : vector<8x64xf32>
    %147 = tpu.matmul %144, %146, %cst_85 {dimension_numbers = #tpu.dot_dimension_numbers<[1], [0], [0], [1], [0, 0, 1, 1], [], []>} : vector<8x16xbf16>, vector<16x64xbf16>, vector<8x64xf32> -> vector<8x64xf32>
    %148 = arith.addf %110, %147 : vector<8x64xf32>
    %c3_86 = arith.constant 3 : index
    %c0_87 = arith.constant 0 : index
    %c0_88 = arith.constant 0 : index
    %149 = vector.load %arg3[%c3_86, %c0_87, %c0_88] : memref<24x64x16xbf16, #tpu.memory_space<vmem>>, vector<1x64x16xbf16>
    %150 = vector.shape_cast %149 : vector<1x64x16xbf16> to vector<64x16xbf16>
    %c7_89 = arith.constant 7 : index
    %c0_90 = arith.constant 0 : index
    %c0_91 = arith.constant 0 : index
    %151 = vector.load %arg3[%c7_89, %c0_90, %c0_91] : memref<24x64x16xbf16, #tpu.memory_space<vmem>>, vector<1x64x16xbf16>
    %152 = vector.shape_cast %151 : vector<1x64x16xbf16> to vector<64x16xbf16>
    %c11 = arith.constant 11 : index
    %c0_92 = arith.constant 0 : index
    %c0_93 = arith.constant 0 : index
    %153 = vector.load %arg3[%c11, %c0_92, %c0_93] : memref<24x64x16xbf16, #tpu.memory_space<vmem>>, vector<1x64x16xbf16>
    %154 = vector.shape_cast %153 : vector<1x64x16xbf16> to vector<64x16xbf16>
    %cst_94 = arith.constant dense<0.000000e+00> : vector<8x16xf32>
    %155 = tpu.matmul %35, %150, %cst_94 {dimension_numbers = #tpu.dot_dimension_numbers<[1], [0], [0], [1], [0, 0, 1, 1], [], []>} : vector<8x64xbf16>, vector<64x16xbf16>, vector<8x16xf32> -> vector<8x16xf32>
    %c3_95 = arith.constant 3 : index
    %c0_96 = arith.constant 0 : index
    %c0_97 = arith.constant 0 : index
    %156 = vector.load %arg5[%c3_95, %c0_96, %c0_97] : memref<8x1x16xf32, #tpu.memory_space<vmem>>, vector<1x1x16xf32>
    %157 = vector.shape_cast %156 : vector<1x1x16xf32> to vector<1x16xf32>
    %158 = vector.broadcast %157 : vector<1x16xf32> to vector<8x16xf32>
    %159 = arith.addf %155, %158 : vector<8x16xf32>
    %cst_98 = arith.constant dense<0.000000e+00> : vector<8x16xf32>
    %160 = tpu.matmul %35, %152, %cst_98 {dimension_numbers = #tpu.dot_dimension_numbers<[1], [0], [0], [1], [0, 0, 1, 1], [], []>} : vector<8x64xbf16>, vector<64x16xbf16>, vector<8x16xf32> -> vector<8x16xf32>
    %cst_99 = arith.constant dense<0.000000e+00> : vector<8x16xf32>
    %161 = tpu.matmul %35, %154, %cst_99 {dimension_numbers = #tpu.dot_dimension_numbers<[1], [0], [0], [1], [0, 0, 1, 1], [], []>} : vector<8x64xbf16>, vector<64x16xbf16>, vector<8x16xf32> -> vector<8x16xf32>
    %162 = arith.truncf %159 : vector<8x16xf32> to vector<8x16xbf16>
    %163 = arith.truncf %160 : vector<8x16xf32> to vector<8x16xbf16>
    %cst_100 = arith.constant dense<0.000000e+00> : vector<8x8xf32>
    %164 = tpu.matmul %162, %163, %cst_100 {dimension_numbers = #tpu.dot_dimension_numbers<[1], [1], [0], [0], [0, 0, 1, 0], [], []>} : vector<8x16xbf16>, vector<8x16xbf16>, vector<8x8xf32> -> vector<8x8xf32>
    %cst_101 = arith.constant 2.500000e-01 : f32
    %165 = vector.broadcast %cst_101 : f32 to vector<8x8xf32>
    %166 = arith.mulf %164, %165 : vector<8x8xf32>
    %167 = vector.broadcast %2 : vector<1x8xf32> to vector<8x8xf32>
    %168 = arith.addf %166, %167 : vector<8x8xf32>
    %cst_102 = arith.constant dense<0xFF800000> : vector<8xf32>
    %169 = vector.multi_reduction <maximumf>, %168, %cst_102 [1] : vector<8x8xf32> to vector<8xf32>
    %170 = vector.shape_cast %169 : vector<8xf32> to vector<8x1xf32>
    %171 = vector.broadcast %170 : vector<8x1xf32> to vector<8x8xf32>
    %172 = arith.subf %168, %171 : vector<8x8xf32>
    %173 = math.exp %172 : vector<8x8xf32>
    %cst_103 = arith.constant dense<0.000000e+00> : vector<8xf32>
    %174 = vector.multi_reduction <add>, %173, %cst_103 [1] : vector<8x8xf32> to vector<8xf32>
    %175 = vector.shape_cast %174 : vector<8xf32> to vector<8x1xf32>
    %176 = tpu.reciprocal %175 {approx = true} : vector<8x1xf32> -> vector<8x1xf32>
    %177 = vector.broadcast %176 : vector<8x1xf32> to vector<8x8xf32>
    %178 = arith.mulf %173, %177 : vector<8x8xf32>
    %179 = arith.truncf %178 : vector<8x8xf32> to vector<8x8xbf16>
    %180 = arith.truncf %161 : vector<8x16xf32> to vector<8x16xbf16>
    %cst_104 = arith.constant dense<0.000000e+00> : vector<8x16xf32>
    %181 = tpu.matmul %179, %180, %cst_104 {dimension_numbers = #tpu.dot_dimension_numbers<[1], [0], [0], [1], [0, 0, 1, 1], [], []>} : vector<8x8xbf16>, vector<8x16xbf16>, vector<8x16xf32> -> vector<8x16xf32>
    %182 = arith.truncf %181 : vector<8x16xf32> to vector<8x16xbf16>
    %c3_105 = arith.constant 3 : index
    %c0_106 = arith.constant 0 : index
    %c0_107 = arith.constant 0 : index
    %183 = vector.load %arg4[%c3_105, %c0_106, %c0_107] : memref<8x16x64xbf16, #tpu.memory_space<vmem>>, vector<1x16x64xbf16>
    %184 = vector.shape_cast %183 : vector<1x16x64xbf16> to vector<16x64xbf16>
    %cst_108 = arith.constant dense<0.000000e+00> : vector<8x64xf32>
    %185 = tpu.matmul %182, %184, %cst_108 {dimension_numbers = #tpu.dot_dimension_numbers<[1], [0], [0], [1], [0, 0, 1, 1], [], []>} : vector<8x16xbf16>, vector<16x64xbf16>, vector<8x64xf32> -> vector<8x64xf32>
    %186 = arith.addf %148, %185 : vector<8x64xf32>
    %187 = vector.broadcast %28 : vector<1x64xf32> to vector<8x64xf32>
    %188 = arith.addf %186, %187 : vector<8x64xf32>
    %189 = arith.addf %27, %188 : vector<8x64xf32>
    %cst_109 = arith.constant dense<0.000000e+00> : vector<8xf32>
    %190 = vector.multi_reduction <add>, %189, %cst_109 [1] : vector<8x64xf32> to vector<8xf32>
    %191 = vector.shape_cast %190 : vector<8xf32> to vector<8x1xf32>
    %cst_110 = arith.constant 6.400000e+01 : f32
    %192 = vector.broadcast %cst_110 : f32 to vector<8x1xf32>
    %193 = arith.divf %191, %192 : vector<8x1xf32>
    %194 = vector.broadcast %193 : vector<8x1xf32> to vector<8x64xf32>
    %195 = arith.subf %189, %194 : vector<8x64xf32>
    %196 = arith.mulf %195, %195 : vector<8x64xf32>
    %cst_111 = arith.constant dense<0.000000e+00> : vector<8xf32>
    %197 = vector.multi_reduction <add>, %196, %cst_111 [1] : vector<8x64xf32> to vector<8xf32>
    %198 = vector.shape_cast %197 : vector<8xf32> to vector<8x1xf32>
    %cst_112 = arith.constant 6.400000e+01 : f32
    %199 = vector.broadcast %cst_112 : f32 to vector<8x1xf32>
    %200 = arith.divf %198, %199 : vector<8x1xf32>
    %201 = vector.broadcast %193 : vector<8x1xf32> to vector<8x64xf32>
    %202 = arith.subf %189, %201 : vector<8x64xf32>
    %cst_113 = arith.constant 9.99999974E-6 : f32
    %203 = vector.broadcast %cst_113 : f32 to vector<8x1xf32>
    %204 = arith.addf %200, %203 : vector<8x1xf32>
    %205 = math.rsqrt %204 : vector<8x1xf32>
    %206 = vector.broadcast %205 : vector<8x1xf32> to vector<8x64xf32>
    %207 = arith.mulf %202, %206 : vector<8x64xf32>
    %208 = vector.broadcast %29 : vector<1x64xf32> to vector<8x64xf32>
    %209 = arith.mulf %207, %208 : vector<8x64xf32>
    %210 = vector.broadcast %30 : vector<1x64xf32> to vector<8x64xf32>
    %211 = arith.addf %209, %210 : vector<8x64xf32>
    %212 = arith.truncf %211 : vector<8x64xf32> to vector<8x64xbf16>
    %c0_114 = arith.constant 0 : index
    %c0_115 = arith.constant 0 : index
    %c0_116 = arith.constant 0 : index
    %213 = vector.load %arg6[%c0_114, %c0_115, %c0_116] : memref<2x64x128xbf16, #tpu.memory_space<vmem>>, vector<1x64x128xbf16>
    %214 = vector.shape_cast %213 : vector<1x64x128xbf16> to vector<64x128xbf16>
    %cst_117 = arith.constant dense<0.000000e+00> : vector<8x128xf32>
    %215 = tpu.matmul %212, %214, %cst_117 {dimension_numbers = #tpu.dot_dimension_numbers<[1], [0], [0], [1], [0, 0, 1, 1], [], []>} : vector<8x64xbf16>, vector<64x128xbf16>, vector<8x128xf32> -> vector<8x128xf32>
    %216 = vector.broadcast %31 : vector<1x128xf32> to vector<8x128xf32>
    %217 = arith.addf %215, %216 : vector<8x128xf32>
    %218 = arith.mulf %217, %217 : vector<8x128xf32>
    %219 = arith.mulf %217, %218 : vector<8x128xf32>
    %cst_118 = arith.constant 4.471500e-02 : f32
    %220 = vector.broadcast %cst_118 : f32 to vector<8x128xf32>
    %221 = arith.mulf %220, %219 : vector<8x128xf32>
    %222 = arith.addf %217, %221 : vector<8x128xf32>
    %cst_119 = arith.constant 0.797884583 : f32
    %223 = vector.broadcast %cst_119 : f32 to vector<8x128xf32>
    %224 = arith.mulf %223, %222 : vector<8x128xf32>
    %225 = math.tanh %224 : vector<8x128xf32>
    %cst_120 = arith.constant 1.000000e+00 : f32
    %226 = vector.broadcast %cst_120 : f32 to vector<8x128xf32>
    %227 = arith.addf %226, %225 : vector<8x128xf32>
    %cst_121 = arith.constant 5.000000e-01 : f32
    %228 = vector.broadcast %cst_121 : f32 to vector<8x128xf32>
    %229 = arith.mulf %228, %227 : vector<8x128xf32>
    %230 = arith.mulf %217, %229 : vector<8x128xf32>
    %231 = arith.truncf %230 : vector<8x128xf32> to vector<8x128xbf16>
    %c0_122 = arith.constant 0 : index
    %c0_123 = arith.constant 0 : index
    %c0_124 = arith.constant 0 : index
    %232 = vector.load %arg7[%c0_122, %c0_123, %c0_124] : memref<2x128x64xbf16, #tpu.memory_space<vmem>>, vector<1x128x64xbf16>
    %233 = vector.shape_cast %232 : vector<1x128x64xbf16> to vector<128x64xbf16>
    %cst_125 = arith.constant dense<0.000000e+00> : vector<8x64xf32>
    %234 = tpu.matmul %231, %233, %cst_125 {dimension_numbers = #tpu.dot_dimension_numbers<[1], [0], [0], [1], [0, 0, 1, 1], [], []>} : vector<8x128xbf16>, vector<128x64xbf16>, vector<8x64xf32> -> vector<8x64xf32>
    %235 = arith.addf %211, %234 : vector<8x64xf32>
    %236 = vector.broadcast %32 : vector<1x64xf32> to vector<8x64xf32>
    %237 = arith.addf %235, %236 : vector<8x64xf32>
    %cst_126 = arith.constant dense<0.000000e+00> : vector<8xf32>
    %238 = vector.multi_reduction <add>, %237, %cst_126 [1] : vector<8x64xf32> to vector<8xf32>
    %239 = vector.shape_cast %238 : vector<8xf32> to vector<8x1xf32>
    %cst_127 = arith.constant 6.400000e+01 : f32
    %240 = vector.broadcast %cst_127 : f32 to vector<8x1xf32>
    %241 = arith.divf %239, %240 : vector<8x1xf32>
    %242 = vector.broadcast %241 : vector<8x1xf32> to vector<8x64xf32>
    %243 = arith.subf %237, %242 : vector<8x64xf32>
    %244 = arith.mulf %243, %243 : vector<8x64xf32>
    %cst_128 = arith.constant dense<0.000000e+00> : vector<8xf32>
    %245 = vector.multi_reduction <add>, %244, %cst_128 [1] : vector<8x64xf32> to vector<8xf32>
    %246 = vector.shape_cast %245 : vector<8xf32> to vector<8x1xf32>
    %cst_129 = arith.constant 6.400000e+01 : f32
    %247 = vector.broadcast %cst_129 : f32 to vector<8x1xf32>
    %248 = arith.divf %246, %247 : vector<8x1xf32>
    %249 = vector.broadcast %241 : vector<8x1xf32> to vector<8x64xf32>
    %250 = arith.subf %237, %249 : vector<8x64xf32>
    %cst_130 = arith.constant 9.99999974E-6 : f32
    %251 = vector.broadcast %cst_130 : f32 to vector<8x1xf32>
    %252 = arith.addf %248, %251 : vector<8x1xf32>
    %253 = math.rsqrt %252 : vector<8x1xf32>
    %254 = vector.broadcast %253 : vector<8x1xf32> to vector<8x64xf32>
    %255 = arith.mulf %250, %254 : vector<8x64xf32>
    %256 = vector.broadcast %33 : vector<1x64xf32> to vector<8x64xf32>
    %257 = arith.mulf %255, %256 : vector<8x64xf32>
    %258 = vector.broadcast %34 : vector<1x64xf32> to vector<8x64xf32>
    %259 = arith.addf %257, %258 : vector<8x64xf32>
    %c9_131 = arith.constant 9 : index
    %c0_132 = arith.constant 0 : index
    %260 = vector.load %arg2[%c9_131, %c0_132] : memref<16x128xf32, #tpu.memory_space<vmem>>, vector<1x64xf32>
    %c10_133 = arith.constant 10 : index
    %c0_134 = arith.constant 0 : index
    %261 = vector.load %arg2[%c10_133, %c0_134] : memref<16x128xf32, #tpu.memory_space<vmem>>, vector<1x64xf32>
    %c11_135 = arith.constant 11 : index
    %c0_136 = arith.constant 0 : index
    %262 = vector.load %arg2[%c11_135, %c0_136] : memref<16x128xf32, #tpu.memory_space<vmem>>, vector<1x64xf32>
    %c12 = arith.constant 12 : index
    %c0_137 = arith.constant 0 : index
    %263 = vector.load %arg2[%c12, %c0_137] : memref<16x128xf32, #tpu.memory_space<vmem>>, vector<1x128xf32>
    %c13 = arith.constant 13 : index
    %c0_138 = arith.constant 0 : index
    %264 = vector.load %arg2[%c13, %c0_138] : memref<16x128xf32, #tpu.memory_space<vmem>>, vector<1x64xf32>
    %c14 = arith.constant 14 : index
    %c0_139 = arith.constant 0 : index
    %265 = vector.load %arg2[%c14, %c0_139] : memref<16x128xf32, #tpu.memory_space<vmem>>, vector<1x64xf32>
    %c15 = arith.constant 15 : index
    %c0_140 = arith.constant 0 : index
    %266 = vector.load %arg2[%c15, %c0_140] : memref<16x128xf32, #tpu.memory_space<vmem>>, vector<1x64xf32>
    %267 = arith.truncf %259 : vector<8x64xf32> to vector<8x64xbf16>
    %c12_141 = arith.constant 12 : index
    %c0_142 = arith.constant 0 : index
    %c0_143 = arith.constant 0 : index
    %268 = vector.load %arg3[%c12_141, %c0_142, %c0_143] : memref<24x64x16xbf16, #tpu.memory_space<vmem>>, vector<1x64x16xbf16>
    %269 = vector.shape_cast %268 : vector<1x64x16xbf16> to vector<64x16xbf16>
    %c16 = arith.constant 16 : index
    %c0_144 = arith.constant 0 : index
    %c0_145 = arith.constant 0 : index
    %270 = vector.load %arg3[%c16, %c0_144, %c0_145] : memref<24x64x16xbf16, #tpu.memory_space<vmem>>, vector<1x64x16xbf16>
    %271 = vector.shape_cast %270 : vector<1x64x16xbf16> to vector<64x16xbf16>
    %c20 = arith.constant 20 : index
    %c0_146 = arith.constant 0 : index
    %c0_147 = arith.constant 0 : index
    %272 = vector.load %arg3[%c20, %c0_146, %c0_147] : memref<24x64x16xbf16, #tpu.memory_space<vmem>>, vector<1x64x16xbf16>
    %273 = vector.shape_cast %272 : vector<1x64x16xbf16> to vector<64x16xbf16>
    %cst_148 = arith.constant dense<0.000000e+00> : vector<8x16xf32>
    %274 = tpu.matmul %267, %269, %cst_148 {dimension_numbers = #tpu.dot_dimension_numbers<[1], [0], [0], [1], [0, 0, 1, 1], [], []>} : vector<8x64xbf16>, vector<64x16xbf16>, vector<8x16xf32> -> vector<8x16xf32>
    %c4_149 = arith.constant 4 : index
    %c0_150 = arith.constant 0 : index
    %c0_151 = arith.constant 0 : index
    %275 = vector.load %arg5[%c4_149, %c0_150, %c0_151] : memref<8x1x16xf32, #tpu.memory_space<vmem>>, vector<1x1x16xf32>
    %276 = vector.shape_cast %275 : vector<1x1x16xf32> to vector<1x16xf32>
    %277 = vector.broadcast %276 : vector<1x16xf32> to vector<8x16xf32>
    %278 = arith.addf %274, %277 : vector<8x16xf32>
    %cst_152 = arith.constant dense<0.000000e+00> : vector<8x16xf32>
    %279 = tpu.matmul %267, %271, %cst_152 {dimension_numbers = #tpu.dot_dimension_numbers<[1], [0], [0], [1], [0, 0, 1, 1], [], []>} : vector<8x64xbf16>, vector<64x16xbf16>, vector<8x16xf32> -> vector<8x16xf32>
    %cst_153 = arith.constant dense<0.000000e+00> : vector<8x16xf32>
    %280 = tpu.matmul %267, %273, %cst_153 {dimension_numbers = #tpu.dot_dimension_numbers<[1], [0], [0], [1], [0, 0, 1, 1], [], []>} : vector<8x64xbf16>, vector<64x16xbf16>, vector<8x16xf32> -> vector<8x16xf32>
    %281 = arith.truncf %278 : vector<8x16xf32> to vector<8x16xbf16>
    %282 = arith.truncf %279 : vector<8x16xf32> to vector<8x16xbf16>
    %cst_154 = arith.constant dense<0.000000e+00> : vector<8x8xf32>
    %283 = tpu.matmul %281, %282, %cst_154 {dimension_numbers = #tpu.dot_dimension_numbers<[1], [1], [0], [0], [0, 0, 1, 0], [], []>} : vector<8x16xbf16>, vector<8x16xbf16>, vector<8x8xf32> -> vector<8x8xf32>
    %cst_155 = arith.constant 2.500000e-01 : f32
    %284 = vector.broadcast %cst_155 : f32 to vector<8x8xf32>
    %285 = arith.mulf %283, %284 : vector<8x8xf32>
    %286 = vector.broadcast %2 : vector<1x8xf32> to vector<8x8xf32>
    %287 = arith.addf %285, %286 : vector<8x8xf32>
    %cst_156 = arith.constant dense<0xFF800000> : vector<8xf32>
    %288 = vector.multi_reduction <maximumf>, %287, %cst_156 [1] : vector<8x8xf32> to vector<8xf32>
    %289 = vector.shape_cast %288 : vector<8xf32> to vector<8x1xf32>
    %290 = vector.broadcast %289 : vector<8x1xf32> to vector<8x8xf32>
    %291 = arith.subf %287, %290 : vector<8x8xf32>
    %292 = math.exp %291 : vector<8x8xf32>
    %cst_157 = arith.constant dense<0.000000e+00> : vector<8xf32>
    %293 = vector.multi_reduction <add>, %292, %cst_157 [1] : vector<8x8xf32> to vector<8xf32>
    %294 = vector.shape_cast %293 : vector<8xf32> to vector<8x1xf32>
    %295 = tpu.reciprocal %294 {approx = true} : vector<8x1xf32> -> vector<8x1xf32>
    %296 = vector.broadcast %295 : vector<8x1xf32> to vector<8x8xf32>
    %297 = arith.mulf %292, %296 : vector<8x8xf32>
    %298 = arith.truncf %297 : vector<8x8xf32> to vector<8x8xbf16>
    %299 = arith.truncf %280 : vector<8x16xf32> to vector<8x16xbf16>
    %cst_158 = arith.constant dense<0.000000e+00> : vector<8x16xf32>
    %300 = tpu.matmul %298, %299, %cst_158 {dimension_numbers = #tpu.dot_dimension_numbers<[1], [0], [0], [1], [0, 0, 1, 1], [], []>} : vector<8x8xbf16>, vector<8x16xbf16>, vector<8x16xf32> -> vector<8x16xf32>
    %301 = arith.truncf %300 : vector<8x16xf32> to vector<8x16xbf16>
    %c4_159 = arith.constant 4 : index
    %c0_160 = arith.constant 0 : index
    %c0_161 = arith.constant 0 : index
    %302 = vector.load %arg4[%c4_159, %c0_160, %c0_161] : memref<8x16x64xbf16, #tpu.memory_space<vmem>>, vector<1x16x64xbf16>
    %303 = vector.shape_cast %302 : vector<1x16x64xbf16> to vector<16x64xbf16>
    %cst_162 = arith.constant dense<0.000000e+00> : vector<8x64xf32>
    %304 = tpu.matmul %301, %303, %cst_162 {dimension_numbers = #tpu.dot_dimension_numbers<[1], [0], [0], [1], [0, 0, 1, 1], [], []>} : vector<8x16xbf16>, vector<16x64xbf16>, vector<8x64xf32> -> vector<8x64xf32>
    %c13_163 = arith.constant 13 : index
    %c0_164 = arith.constant 0 : index
    %c0_165 = arith.constant 0 : index
    %305 = vector.load %arg3[%c13_163, %c0_164, %c0_165] : memref<24x64x16xbf16, #tpu.memory_space<vmem>>, vector<1x64x16xbf16>
    %306 = vector.shape_cast %305 : vector<1x64x16xbf16> to vector<64x16xbf16>
    %c17 = arith.constant 17 : index
    %c0_166 = arith.constant 0 : index
    %c0_167 = arith.constant 0 : index
    %307 = vector.load %arg3[%c17, %c0_166, %c0_167] : memref<24x64x16xbf16, #tpu.memory_space<vmem>>, vector<1x64x16xbf16>
    %308 = vector.shape_cast %307 : vector<1x64x16xbf16> to vector<64x16xbf16>
    %c21 = arith.constant 21 : index
    %c0_168 = arith.constant 0 : index
    %c0_169 = arith.constant 0 : index
    %309 = vector.load %arg3[%c21, %c0_168, %c0_169] : memref<24x64x16xbf16, #tpu.memory_space<vmem>>, vector<1x64x16xbf16>
    %310 = vector.shape_cast %309 : vector<1x64x16xbf16> to vector<64x16xbf16>
    %cst_170 = arith.constant dense<0.000000e+00> : vector<8x16xf32>
    %311 = tpu.matmul %267, %306, %cst_170 {dimension_numbers = #tpu.dot_dimension_numbers<[1], [0], [0], [1], [0, 0, 1, 1], [], []>} : vector<8x64xbf16>, vector<64x16xbf16>, vector<8x16xf32> -> vector<8x16xf32>
    %c5_171 = arith.constant 5 : index
    %c0_172 = arith.constant 0 : index
    %c0_173 = arith.constant 0 : index
    %312 = vector.load %arg5[%c5_171, %c0_172, %c0_173] : memref<8x1x16xf32, #tpu.memory_space<vmem>>, vector<1x1x16xf32>
    %313 = vector.shape_cast %312 : vector<1x1x16xf32> to vector<1x16xf32>
    %314 = vector.broadcast %313 : vector<1x16xf32> to vector<8x16xf32>
    %315 = arith.addf %311, %314 : vector<8x16xf32>
    %cst_174 = arith.constant dense<0.000000e+00> : vector<8x16xf32>
    %316 = tpu.matmul %267, %308, %cst_174 {dimension_numbers = #tpu.dot_dimension_numbers<[1], [0], [0], [1], [0, 0, 1, 1], [], []>} : vector<8x64xbf16>, vector<64x16xbf16>, vector<8x16xf32> -> vector<8x16xf32>
    %cst_175 = arith.constant dense<0.000000e+00> : vector<8x16xf32>
    %317 = tpu.matmul %267, %310, %cst_175 {dimension_numbers = #tpu.dot_dimension_numbers<[1], [0], [0], [1], [0, 0, 1, 1], [], []>} : vector<8x64xbf16>, vector<64x16xbf16>, vector<8x16xf32> -> vector<8x16xf32>
    %318 = arith.truncf %315 : vector<8x16xf32> to vector<8x16xbf16>
    %319 = arith.truncf %316 : vector<8x16xf32> to vector<8x16xbf16>
    %cst_176 = arith.constant dense<0.000000e+00> : vector<8x8xf32>
    %320 = tpu.matmul %318, %319, %cst_176 {dimension_numbers = #tpu.dot_dimension_numbers<[1], [1], [0], [0], [0, 0, 1, 0], [], []>} : vector<8x16xbf16>, vector<8x16xbf16>, vector<8x8xf32> -> vector<8x8xf32>
    %cst_177 = arith.constant 2.500000e-01 : f32
    %321 = vector.broadcast %cst_177 : f32 to vector<8x8xf32>
    %322 = arith.mulf %320, %321 : vector<8x8xf32>
    %323 = vector.broadcast %2 : vector<1x8xf32> to vector<8x8xf32>
    %324 = arith.addf %322, %323 : vector<8x8xf32>
    %cst_178 = arith.constant dense<0xFF800000> : vector<8xf32>
    %325 = vector.multi_reduction <maximumf>, %324, %cst_178 [1] : vector<8x8xf32> to vector<8xf32>
    %326 = vector.shape_cast %325 : vector<8xf32> to vector<8x1xf32>
    %327 = vector.broadcast %326 : vector<8x1xf32> to vector<8x8xf32>
    %328 = arith.subf %324, %327 : vector<8x8xf32>
    %329 = math.exp %328 : vector<8x8xf32>
    %cst_179 = arith.constant dense<0.000000e+00> : vector<8xf32>
    %330 = vector.multi_reduction <add>, %329, %cst_179 [1] : vector<8x8xf32> to vector<8xf32>
    %331 = vector.shape_cast %330 : vector<8xf32> to vector<8x1xf32>
    %332 = tpu.reciprocal %331 {approx = true} : vector<8x1xf32> -> vector<8x1xf32>
    %333 = vector.broadcast %332 : vector<8x1xf32> to vector<8x8xf32>
    %334 = arith.mulf %329, %333 : vector<8x8xf32>
    %335 = arith.truncf %334 : vector<8x8xf32> to vector<8x8xbf16>
    %336 = arith.truncf %317 : vector<8x16xf32> to vector<8x16xbf16>
    %cst_180 = arith.constant dense<0.000000e+00> : vector<8x16xf32>
    %337 = tpu.matmul %335, %336, %cst_180 {dimension_numbers = #tpu.dot_dimension_numbers<[1], [0], [0], [1], [0, 0, 1, 1], [], []>} : vector<8x8xbf16>, vector<8x16xbf16>, vector<8x16xf32> -> vector<8x16xf32>
    %338 = arith.truncf %337 : vector<8x16xf32> to vector<8x16xbf16>
    %c5_181 = arith.constant 5 : index
    %c0_182 = arith.constant 0 : index
    %c0_183 = arith.constant 0 : index
    %339 = vector.load %arg4[%c5_181, %c0_182, %c0_183] : memref<8x16x64xbf16, #tpu.memory_space<vmem>>, vector<1x16x64xbf16>
    %340 = vector.shape_cast %339 : vector<1x16x64xbf16> to vector<16x64xbf16>
    %cst_184 = arith.constant dense<0.000000e+00> : vector<8x64xf32>
    %341 = tpu.matmul %338, %340, %cst_184 {dimension_numbers = #tpu.dot_dimension_numbers<[1], [0], [0], [1], [0, 0, 1, 1], [], []>} : vector<8x16xbf16>, vector<16x64xbf16>, vector<8x64xf32> -> vector<8x64xf32>
    %342 = arith.addf %304, %341 : vector<8x64xf32>
    %c14_185 = arith.constant 14 : index
    %c0_186 = arith.constant 0 : index
    %c0_187 = arith.constant 0 : index
    %343 = vector.load %arg3[%c14_185, %c0_186, %c0_187] : memref<24x64x16xbf16, #tpu.memory_space<vmem>>, vector<1x64x16xbf16>
    %344 = vector.shape_cast %343 : vector<1x64x16xbf16> to vector<64x16xbf16>
    %c18 = arith.constant 18 : index
    %c0_188 = arith.constant 0 : index
    %c0_189 = arith.constant 0 : index
    %345 = vector.load %arg3[%c18, %c0_188, %c0_189] : memref<24x64x16xbf16, #tpu.memory_space<vmem>>, vector<1x64x16xbf16>
    %346 = vector.shape_cast %345 : vector<1x64x16xbf16> to vector<64x16xbf16>
    %c22 = arith.constant 22 : index
    %c0_190 = arith.constant 0 : index
    %c0_191 = arith.constant 0 : index
    %347 = vector.load %arg3[%c22, %c0_190, %c0_191] : memref<24x64x16xbf16, #tpu.memory_space<vmem>>, vector<1x64x16xbf16>
    %348 = vector.shape_cast %347 : vector<1x64x16xbf16> to vector<64x16xbf16>
    %cst_192 = arith.constant dense<0.000000e+00> : vector<8x16xf32>
    %349 = tpu.matmul %267, %344, %cst_192 {dimension_numbers = #tpu.dot_dimension_numbers<[1], [0], [0], [1], [0, 0, 1, 1], [], []>} : vector<8x64xbf16>, vector<64x16xbf16>, vector<8x16xf32> -> vector<8x16xf32>
    %c6_193 = arith.constant 6 : index
    %c0_194 = arith.constant 0 : index
    %c0_195 = arith.constant 0 : index
    %350 = vector.load %arg5[%c6_193, %c0_194, %c0_195] : memref<8x1x16xf32, #tpu.memory_space<vmem>>, vector<1x1x16xf32>
    %351 = vector.shape_cast %350 : vector<1x1x16xf32> to vector<1x16xf32>
    %352 = vector.broadcast %351 : vector<1x16xf32> to vector<8x16xf32>
    %353 = arith.addf %349, %352 : vector<8x16xf32>
    %cst_196 = arith.constant dense<0.000000e+00> : vector<8x16xf32>
    %354 = tpu.matmul %267, %346, %cst_196 {dimension_numbers = #tpu.dot_dimension_numbers<[1], [0], [0], [1], [0, 0, 1, 1], [], []>} : vector<8x64xbf16>, vector<64x16xbf16>, vector<8x16xf32> -> vector<8x16xf32>
    %cst_197 = arith.constant dense<0.000000e+00> : vector<8x16xf32>
    %355 = tpu.matmul %267, %348, %cst_197 {dimension_numbers = #tpu.dot_dimension_numbers<[1], [0], [0], [1], [0, 0, 1, 1], [], []>} : vector<8x64xbf16>, vector<64x16xbf16>, vector<8x16xf32> -> vector<8x16xf32>
    %356 = arith.truncf %353 : vector<8x16xf32> to vector<8x16xbf16>
    %357 = arith.truncf %354 : vector<8x16xf32> to vector<8x16xbf16>
    %cst_198 = arith.constant dense<0.000000e+00> : vector<8x8xf32>
    %358 = tpu.matmul %356, %357, %cst_198 {dimension_numbers = #tpu.dot_dimension_numbers<[1], [1], [0], [0], [0, 0, 1, 0], [], []>} : vector<8x16xbf16>, vector<8x16xbf16>, vector<8x8xf32> -> vector<8x8xf32>
    %cst_199 = arith.constant 2.500000e-01 : f32
    %359 = vector.broadcast %cst_199 : f32 to vector<8x8xf32>
    %360 = arith.mulf %358, %359 : vector<8x8xf32>
    %361 = vector.broadcast %2 : vector<1x8xf32> to vector<8x8xf32>
    %362 = arith.addf %360, %361 : vector<8x8xf32>
    %cst_200 = arith.constant dense<0xFF800000> : vector<8xf32>
    %363 = vector.multi_reduction <maximumf>, %362, %cst_200 [1] : vector<8x8xf32> to vector<8xf32>
    %364 = vector.shape_cast %363 : vector<8xf32> to vector<8x1xf32>
    %365 = vector.broadcast %364 : vector<8x1xf32> to vector<8x8xf32>
    %366 = arith.subf %362, %365 : vector<8x8xf32>
    %367 = math.exp %366 : vector<8x8xf32>
    %cst_201 = arith.constant dense<0.000000e+00> : vector<8xf32>
    %368 = vector.multi_reduction <add>, %367, %cst_201 [1] : vector<8x8xf32> to vector<8xf32>
    %369 = vector.shape_cast %368 : vector<8xf32> to vector<8x1xf32>
    %370 = tpu.reciprocal %369 {approx = true} : vector<8x1xf32> -> vector<8x1xf32>
    %371 = vector.broadcast %370 : vector<8x1xf32> to vector<8x8xf32>
    %372 = arith.mulf %367, %371 : vector<8x8xf32>
    %373 = arith.truncf %372 : vector<8x8xf32> to vector<8x8xbf16>
    %374 = arith.truncf %355 : vector<8x16xf32> to vector<8x16xbf16>
    %cst_202 = arith.constant dense<0.000000e+00> : vector<8x16xf32>
    %375 = tpu.matmul %373, %374, %cst_202 {dimension_numbers = #tpu.dot_dimension_numbers<[1], [0], [0], [1], [0, 0, 1, 1], [], []>} : vector<8x8xbf16>, vector<8x16xbf16>, vector<8x16xf32> -> vector<8x16xf32>
    %376 = arith.truncf %375 : vector<8x16xf32> to vector<8x16xbf16>
    %c6_203 = arith.constant 6 : index
    %c0_204 = arith.constant 0 : index
    %c0_205 = arith.constant 0 : index
    %377 = vector.load %arg4[%c6_203, %c0_204, %c0_205] : memref<8x16x64xbf16, #tpu.memory_space<vmem>>, vector<1x16x64xbf16>
    %378 = vector.shape_cast %377 : vector<1x16x64xbf16> to vector<16x64xbf16>
    %cst_206 = arith.constant dense<0.000000e+00> : vector<8x64xf32>
    %379 = tpu.matmul %376, %378, %cst_206 {dimension_numbers = #tpu.dot_dimension_numbers<[1], [0], [0], [1], [0, 0, 1, 1], [], []>} : vector<8x16xbf16>, vector<16x64xbf16>, vector<8x64xf32> -> vector<8x64xf32>
    %380 = arith.addf %342, %379 : vector<8x64xf32>
    %c15_207 = arith.constant 15 : index
    %c0_208 = arith.constant 0 : index
    %c0_209 = arith.constant 0 : index
    %381 = vector.load %arg3[%c15_207, %c0_208, %c0_209] : memref<24x64x16xbf16, #tpu.memory_space<vmem>>, vector<1x64x16xbf16>
    %382 = vector.shape_cast %381 : vector<1x64x16xbf16> to vector<64x16xbf16>
    %c19 = arith.constant 19 : index
    %c0_210 = arith.constant 0 : index
    %c0_211 = arith.constant 0 : index
    %383 = vector.load %arg3[%c19, %c0_210, %c0_211] : memref<24x64x16xbf16, #tpu.memory_space<vmem>>, vector<1x64x16xbf16>
    %384 = vector.shape_cast %383 : vector<1x64x16xbf16> to vector<64x16xbf16>
    %c23 = arith.constant 23 : index
    %c0_212 = arith.constant 0 : index
    %c0_213 = arith.constant 0 : index
    %385 = vector.load %arg3[%c23, %c0_212, %c0_213] : memref<24x64x16xbf16, #tpu.memory_space<vmem>>, vector<1x64x16xbf16>
    %386 = vector.shape_cast %385 : vector<1x64x16xbf16> to vector<64x16xbf16>
    %cst_214 = arith.constant dense<0.000000e+00> : vector<8x16xf32>
    %387 = tpu.matmul %267, %382, %cst_214 {dimension_numbers = #tpu.dot_dimension_numbers<[1], [0], [0], [1], [0, 0, 1, 1], [], []>} : vector<8x64xbf16>, vector<64x16xbf16>, vector<8x16xf32> -> vector<8x16xf32>
    %c7_215 = arith.constant 7 : index
    %c0_216 = arith.constant 0 : index
    %c0_217 = arith.constant 0 : index
    %388 = vector.load %arg5[%c7_215, %c0_216, %c0_217] : memref<8x1x16xf32, #tpu.memory_space<vmem>>, vector<1x1x16xf32>
    %389 = vector.shape_cast %388 : vector<1x1x16xf32> to vector<1x16xf32>
    %390 = vector.broadcast %389 : vector<1x16xf32> to vector<8x16xf32>
    %391 = arith.addf %387, %390 : vector<8x16xf32>
    %cst_218 = arith.constant dense<0.000000e+00> : vector<8x16xf32>
    %392 = tpu.matmul %267, %384, %cst_218 {dimension_numbers = #tpu.dot_dimension_numbers<[1], [0], [0], [1], [0, 0, 1, 1], [], []>} : vector<8x64xbf16>, vector<64x16xbf16>, vector<8x16xf32> -> vector<8x16xf32>
    %cst_219 = arith.constant dense<0.000000e+00> : vector<8x16xf32>
    %393 = tpu.matmul %267, %386, %cst_219 {dimension_numbers = #tpu.dot_dimension_numbers<[1], [0], [0], [1], [0, 0, 1, 1], [], []>} : vector<8x64xbf16>, vector<64x16xbf16>, vector<8x16xf32> -> vector<8x16xf32>
    %394 = arith.truncf %391 : vector<8x16xf32> to vector<8x16xbf16>
    %395 = arith.truncf %392 : vector<8x16xf32> to vector<8x16xbf16>
    %cst_220 = arith.constant dense<0.000000e+00> : vector<8x8xf32>
    %396 = tpu.matmul %394, %395, %cst_220 {dimension_numbers = #tpu.dot_dimension_numbers<[1], [1], [0], [0], [0, 0, 1, 0], [], []>} : vector<8x16xbf16>, vector<8x16xbf16>, vector<8x8xf32> -> vector<8x8xf32>
    %cst_221 = arith.constant 2.500000e-01 : f32
    %397 = vector.broadcast %cst_221 : f32 to vector<8x8xf32>
    %398 = arith.mulf %396, %397 : vector<8x8xf32>
    %399 = vector.broadcast %2 : vector<1x8xf32> to vector<8x8xf32>
    %400 = arith.addf %398, %399 : vector<8x8xf32>
    %cst_222 = arith.constant dense<0xFF800000> : vector<8xf32>
    %401 = vector.multi_reduction <maximumf>, %400, %cst_222 [1] : vector<8x8xf32> to vector<8xf32>
    %402 = vector.shape_cast %401 : vector<8xf32> to vector<8x1xf32>
    %403 = vector.broadcast %402 : vector<8x1xf32> to vector<8x8xf32>
    %404 = arith.subf %400, %403 : vector<8x8xf32>
    %405 = math.exp %404 : vector<8x8xf32>
    %cst_223 = arith.constant dense<0.000000e+00> : vector<8xf32>
    %406 = vector.multi_reduction <add>, %405, %cst_223 [1] : vector<8x8xf32> to vector<8xf32>
    %407 = vector.shape_cast %406 : vector<8xf32> to vector<8x1xf32>
    %408 = tpu.reciprocal %407 {approx = true} : vector<8x1xf32> -> vector<8x1xf32>
    %409 = vector.broadcast %408 : vector<8x1xf32> to vector<8x8xf32>
    %410 = arith.mulf %405, %409 : vector<8x8xf32>
    %411 = arith.truncf %410 : vector<8x8xf32> to vector<8x8xbf16>
    %412 = arith.truncf %393 : vector<8x16xf32> to vector<8x16xbf16>
    %cst_224 = arith.constant dense<0.000000e+00> : vector<8x16xf32>
    %413 = tpu.matmul %411, %412, %cst_224 {dimension_numbers = #tpu.dot_dimension_numbers<[1], [0], [0], [1], [0, 0, 1, 1], [], []>} : vector<8x8xbf16>, vector<8x16xbf16>, vector<8x16xf32> -> vector<8x16xf32>
    %414 = arith.truncf %413 : vector<8x16xf32> to vector<8x16xbf16>
    %c7_225 = arith.constant 7 : index
    %c0_226 = arith.constant 0 : index
    %c0_227 = arith.constant 0 : index
    %415 = vector.load %arg4[%c7_225, %c0_226, %c0_227] : memref<8x16x64xbf16, #tpu.memory_space<vmem>>, vector<1x16x64xbf16>
    %416 = vector.shape_cast %415 : vector<1x16x64xbf16> to vector<16x64xbf16>
    %cst_228 = arith.constant dense<0.000000e+00> : vector<8x64xf32>
    %417 = tpu.matmul %414, %416, %cst_228 {dimension_numbers = #tpu.dot_dimension_numbers<[1], [0], [0], [1], [0, 0, 1, 1], [], []>} : vector<8x16xbf16>, vector<16x64xbf16>, vector<8x64xf32> -> vector<8x64xf32>
    %418 = arith.addf %380, %417 : vector<8x64xf32>
    %419 = vector.broadcast %260 : vector<1x64xf32> to vector<8x64xf32>
    %420 = arith.addf %418, %419 : vector<8x64xf32>
    %421 = arith.addf %259, %420 : vector<8x64xf32>
    %cst_229 = arith.constant dense<0.000000e+00> : vector<8xf32>
    %422 = vector.multi_reduction <add>, %421, %cst_229 [1] : vector<8x64xf32> to vector<8xf32>
    %423 = vector.shape_cast %422 : vector<8xf32> to vector<8x1xf32>
    %cst_230 = arith.constant 6.400000e+01 : f32
    %424 = vector.broadcast %cst_230 : f32 to vector<8x1xf32>
    %425 = arith.divf %423, %424 : vector<8x1xf32>
    %426 = vector.broadcast %425 : vector<8x1xf32> to vector<8x64xf32>
    %427 = arith.subf %421, %426 : vector<8x64xf32>
    %428 = arith.mulf %427, %427 : vector<8x64xf32>
    %cst_231 = arith.constant dense<0.000000e+00> : vector<8xf32>
    %429 = vector.multi_reduction <add>, %428, %cst_231 [1] : vector<8x64xf32> to vector<8xf32>
    %430 = vector.shape_cast %429 : vector<8xf32> to vector<8x1xf32>
    %cst_232 = arith.constant 6.400000e+01 : f32
    %431 = vector.broadcast %cst_232 : f32 to vector<8x1xf32>
    %432 = arith.divf %430, %431 : vector<8x1xf32>
    %433 = vector.broadcast %425 : vector<8x1xf32> to vector<8x64xf32>
    %434 = arith.subf %421, %433 : vector<8x64xf32>
    %cst_233 = arith.constant 9.99999974E-6 : f32
    %435 = vector.broadcast %cst_233 : f32 to vector<8x1xf32>
    %436 = arith.addf %432, %435 : vector<8x1xf32>
    %437 = math.rsqrt %436 : vector<8x1xf32>
    %438 = vector.broadcast %437 : vector<8x1xf32> to vector<8x64xf32>
    %439 = arith.mulf %434, %438 : vector<8x64xf32>
    %440 = vector.broadcast %261 : vector<1x64xf32> to vector<8x64xf32>
    %441 = arith.mulf %439, %440 : vector<8x64xf32>
    %442 = vector.broadcast %262 : vector<1x64xf32> to vector<8x64xf32>
    %443 = arith.addf %441, %442 : vector<8x64xf32>
    %444 = arith.truncf %443 : vector<8x64xf32> to vector<8x64xbf16>
    %c1_234 = arith.constant 1 : index
    %c0_235 = arith.constant 0 : index
    %c0_236 = arith.constant 0 : index
    %445 = vector.load %arg6[%c1_234, %c0_235, %c0_236] : memref<2x64x128xbf16, #tpu.memory_space<vmem>>, vector<1x64x128xbf16>
    %446 = vector.shape_cast %445 : vector<1x64x128xbf16> to vector<64x128xbf16>
    %cst_237 = arith.constant dense<0.000000e+00> : vector<8x128xf32>
    %447 = tpu.matmul %444, %446, %cst_237 {dimension_numbers = #tpu.dot_dimension_numbers<[1], [0], [0], [1], [0, 0, 1, 1], [], []>} : vector<8x64xbf16>, vector<64x128xbf16>, vector<8x128xf32> -> vector<8x128xf32>
    %448 = vector.broadcast %263 : vector<1x128xf32> to vector<8x128xf32>
    %449 = arith.addf %447, %448 : vector<8x128xf32>
    %450 = arith.mulf %449, %449 : vector<8x128xf32>
    %451 = arith.mulf %449, %450 : vector<8x128xf32>
    %cst_238 = arith.constant 4.471500e-02 : f32
    %452 = vector.broadcast %cst_238 : f32 to vector<8x128xf32>
    %453 = arith.mulf %452, %451 : vector<8x128xf32>
    %454 = arith.addf %449, %453 : vector<8x128xf32>
    %cst_239 = arith.constant 0.797884583 : f32
    %455 = vector.broadcast %cst_239 : f32 to vector<8x128xf32>
    %456 = arith.mulf %455, %454 : vector<8x128xf32>
    %457 = math.tanh %456 : vector<8x128xf32>
    %cst_240 = arith.constant 1.000000e+00 : f32
    %458 = vector.broadcast %cst_240 : f32 to vector<8x128xf32>
    %459 = arith.addf %458, %457 : vector<8x128xf32>
    %cst_241 = arith.constant 5.000000e-01 : f32
    %460 = vector.broadcast %cst_241 : f32 to vector<8x128xf32>
    %461 = arith.mulf %460, %459 : vector<8x128xf32>
    %462 = arith.mulf %449, %461 : vector<8x128xf32>
    %463 = arith.truncf %462 : vector<8x128xf32> to vector<8x128xbf16>
    %c1_242 = arith.constant 1 : index
    %c0_243 = arith.constant 0 : index
    %c0_244 = arith.constant 0 : index
    %464 = vector.load %arg7[%c1_242, %c0_243, %c0_244] : memref<2x128x64xbf16, #tpu.memory_space<vmem>>, vector<1x128x64xbf16>
    %465 = vector.shape_cast %464 : vector<1x128x64xbf16> to vector<128x64xbf16>
    %cst_245 = arith.constant dense<0.000000e+00> : vector<8x64xf32>
    %466 = tpu.matmul %463, %465, %cst_245 {dimension_numbers = #tpu.dot_dimension_numbers<[1], [0], [0], [1], [0, 0, 1, 1], [], []>} : vector<8x128xbf16>, vector<128x64xbf16>, vector<8x64xf32> -> vector<8x64xf32>
    %467 = arith.addf %443, %466 : vector<8x64xf32>
    %468 = vector.broadcast %264 : vector<1x64xf32> to vector<8x64xf32>
    %469 = arith.addf %467, %468 : vector<8x64xf32>
    %cst_246 = arith.constant dense<0.000000e+00> : vector<8xf32>
    %470 = vector.multi_reduction <add>, %469, %cst_246 [1] : vector<8x64xf32> to vector<8xf32>
    %471 = vector.shape_cast %470 : vector<8xf32> to vector<8x1xf32>
    %cst_247 = arith.constant 6.400000e+01 : f32
    %472 = vector.broadcast %cst_247 : f32 to vector<8x1xf32>
    %473 = arith.divf %471, %472 : vector<8x1xf32>
    %474 = vector.broadcast %473 : vector<8x1xf32> to vector<8x64xf32>
    %475 = arith.subf %469, %474 : vector<8x64xf32>
    %476 = arith.mulf %475, %475 : vector<8x64xf32>
    %cst_248 = arith.constant dense<0.000000e+00> : vector<8xf32>
    %477 = vector.multi_reduction <add>, %476, %cst_248 [1] : vector<8x64xf32> to vector<8xf32>
    %478 = vector.shape_cast %477 : vector<8xf32> to vector<8x1xf32>
    %cst_249 = arith.constant 6.400000e+01 : f32
    %479 = vector.broadcast %cst_249 : f32 to vector<8x1xf32>
    %480 = arith.divf %478, %479 : vector<8x1xf32>
    %481 = vector.broadcast %473 : vector<8x1xf32> to vector<8x64xf32>
    %482 = arith.subf %469, %481 : vector<8x64xf32>
    %cst_250 = arith.constant 9.99999974E-6 : f32
    %483 = vector.broadcast %cst_250 : f32 to vector<8x1xf32>
    %484 = arith.addf %480, %483 : vector<8x1xf32>
    %485 = math.rsqrt %484 : vector<8x1xf32>
    %486 = vector.broadcast %485 : vector<8x1xf32> to vector<8x64xf32>
    %487 = arith.mulf %482, %486 : vector<8x64xf32>
    %488 = vector.broadcast %265 : vector<1x64xf32> to vector<8x64xf32>
    %489 = arith.mulf %487, %488 : vector<8x64xf32>
    %490 = vector.broadcast %266 : vector<1x64xf32> to vector<8x64xf32>
    %491 = arith.addf %489, %490 : vector<8x64xf32>
    %492 = vector.extract_strided_slice %491 {offsets = [0, 0], sizes = [1, 64], strides = [1, 1]} : vector<8x64xf32> to vector<1x64xf32>
    %cst_251 = arith.constant 0.000000e+00 : f32
    %493 = vector.broadcast %cst_251 : f32 to vector<1x64xf32>
    %494 = tpu.concatenate %493, %492 in 1 : vector<1x64xf32>, vector<1x64xf32> -> vector<1x128xf32>
    %c0_252 = arith.constant 0 : index
    %c0_253 = arith.constant 0 : index
    %c0_254 = arith.constant 0 : index
    %495 = vector.load %arg8[%c0_252, %c0_253, %c0_254] : memref<1x1x128xf32, #tpu.memory_space<vmem>>, vector<1x1x128xf32>
    %496 = vector.shape_cast %495 : vector<1x1x128xf32> to vector<1x128xf32>
    %497 = vector.shape_cast %494 : vector<1x128xf32> to vector<1x1x128xf32>
    tpu.vector_store %arg8[%c0_252, %c0_253, %c0_254], %497 {strides = array<i32>} : memref<1x1x128xf32, #tpu.memory_space<vmem>>, vector<1x1x128xf32>,
    return
  }
  func.func @transform_0(%arg0: i32) -> (i32, i32, i32) {
    %c0_i32 = arith.constant 0 : i32
    %c0_i32_0 = arith.constant 0 : i32
    %c0_i32_1 = arith.constant 0 : i32
    return %arg0, %c0_i32, %c0_i32_0 : i32, i32, i32
  }
  func.func @transform_1(%arg0: i32) -> (i32, i32) {
    %c0_i32 = arith.constant 0 : i32
    %c0_i32_0 = arith.constant 0 : i32
    %c0_i32_1 = arith.constant 0 : i32
    return %c0_i32, %c0_i32_0 : i32, i32
  }
  func.func @transform_2(%arg0: i32) -> (i32, i32, i32) {
    %c0_i32 = arith.constant 0 : i32
    %c0_i32_0 = arith.constant 0 : i32
    %c0_i32_1 = arith.constant 0 : i32
    %c0_i32_2 = arith.constant 0 : i32
    return %c0_i32, %c0_i32_0, %c0_i32_1 : i32, i32, i32
  }
  func.func @transform_3(%arg0: i32) -> (i32, i32, i32) {
    %c0_i32 = arith.constant 0 : i32
    %c0_i32_0 = arith.constant 0 : i32
    %c0_i32_1 = arith.constant 0 : i32
    %c0_i32_2 = arith.constant 0 : i32
    return %c0_i32, %c0_i32_0, %c0_i32_1 : i32, i32, i32
  }
  func.func @transform_4(%arg0: i32) -> (i32, i32, i32) {
    %c0_i32 = arith.constant 0 : i32
    %c0_i32_0 = arith.constant 0 : i32
    %c0_i32_1 = arith.constant 0 : i32
    %c0_i32_2 = arith.constant 0 : i32
    return %c0_i32, %c0_i32_0, %c0_i32_1 : i32, i32, i32
  }
  func.func @transform_5(%arg0: i32) -> (i32, i32, i32) {
    %c0_i32 = arith.constant 0 : i32
    %c0_i32_0 = arith.constant 0 : i32
    %c0_i32_1 = arith.constant 0 : i32
    %c0_i32_2 = arith.constant 0 : i32
    return %c0_i32, %c0_i32_0, %c0_i32_1 : i32, i32, i32
  }
  func.func @transform_6(%arg0: i32) -> (i32, i32, i32) {
    %c0_i32 = arith.constant 0 : i32
    %c0_i32_0 = arith.constant 0 : i32
    %c0_i32_1 = arith.constant 0 : i32
    %c0_i32_2 = arith.constant 0 : i32
    return %c0_i32, %c0_i32_0, %c0_i32_1 : i32, i32, i32
  }
  func.func @transform_7(%arg0: i32) -> (i32, i32, i32) {
    %c0_i32 = arith.constant 0 : i32
    %c0_i32_0 = arith.constant 0 : i32
    %c0_i32_1 = arith.constant 0 : i32
    return %arg0, %c0_i32, %c0_i32_0 : i32, i32, i32
  }
}

module attributes {stable_mosaic.version = 11 : i64} {
  func.func @_head_kernel(%arg0: memref<2x128xf32, #tpu.memory_space<vmem>>, %arg1: memref<2x128xf32, #tpu.memory_space<vmem>>, %arg2: memref<128x128xbf16, #tpu.memory_space<vmem>>, %arg3: memref<3x128xf32, #tpu.memory_space<vmem>>, %arg4: memref<128x2xbf16, #tpu.memory_space<vmem>>, %arg5: memref<1x2xf32, #tpu.memory_space<vmem>>, %arg6: memref<2x2xf32, #tpu.memory_space<vmem>>) attributes {dimension_semantics = [], scalar_prefetch = 0 : i64, scratch_operands = 0 : i64, tpu.core_type = #tpu.core_type<tc>} {
    %c0 = arith.constant 0 : index
    %c0_0 = arith.constant 0 : index
    %0 = vector.load %arg0[%c0, %c0_0] : memref<2x128xf32, #tpu.memory_space<vmem>>, vector<2x128xf32>
    %c0_1 = arith.constant 0 : index
    %c0_2 = arith.constant 0 : index
    %1 = vector.load %arg1[%c0_1, %c0_2] : memref<2x128xf32, #tpu.memory_space<vmem>>, vector<2x128xf32>
    %2 = arith.addf %0, %1 : vector<2x128xf32>
    %3 = arith.truncf %2 : vector<2x128xf32> to vector<2x128xbf16>
    %c0_3 = arith.constant 0 : index
    %c0_4 = arith.constant 0 : index
    %4 = vector.load %arg2[%c0_3, %c0_4] : memref<128x128xbf16, #tpu.memory_space<vmem>>, vector<128x128xbf16>
    %cst = arith.constant dense<0.000000e+00> : vector<2x128xf32>
    %5 = tpu.matmul %3, %4, %cst {dimension_numbers = #tpu.dot_dimension_numbers<[1], [0], [0], [1], [0, 0, 1, 1], [], []>} : vector<2x128xbf16>, vector<128x128xbf16>, vector<2x128xf32> -> vector<2x128xf32>
    %c0_5 = arith.constant 0 : index
    %c0_6 = arith.constant 0 : index
    %6 = vector.load %arg3[%c0_5, %c0_6] : memref<3x128xf32, #tpu.memory_space<vmem>>, vector<1x128xf32>
    %7 = vector.broadcast %6 : vector<1x128xf32> to vector<2x128xf32>
    %8 = arith.addf %5, %7 : vector<2x128xf32>
    %c1 = arith.constant 1 : index
    %c0_7 = arith.constant 0 : index
    %9 = vector.load %arg3[%c1, %c0_7] : memref<3x128xf32, #tpu.memory_space<vmem>>, vector<1x128xf32>
    %c2 = arith.constant 2 : index
    %c0_8 = arith.constant 0 : index
    %10 = vector.load %arg3[%c2, %c0_8] : memref<3x128xf32, #tpu.memory_space<vmem>>, vector<1x128xf32>
    %cst_9 = arith.constant dense<0.000000e+00> : vector<2xf32>
    %11 = vector.multi_reduction <add>, %8, %cst_9 [1] : vector<2x128xf32> to vector<2xf32>
    %12 = vector.shape_cast %11 : vector<2xf32> to vector<2x1xf32>
    %cst_10 = arith.constant 1.280000e+02 : f32
    %13 = vector.broadcast %cst_10 : f32 to vector<2x1xf32>
    %14 = arith.divf %12, %13 : vector<2x1xf32>
    %15 = vector.broadcast %14 : vector<2x1xf32> to vector<2x128xf32>
    %16 = arith.subf %8, %15 : vector<2x128xf32>
    %17 = arith.mulf %16, %16 : vector<2x128xf32>
    %cst_11 = arith.constant dense<0.000000e+00> : vector<2xf32>
    %18 = vector.multi_reduction <add>, %17, %cst_11 [1] : vector<2x128xf32> to vector<2xf32>
    %19 = vector.shape_cast %18 : vector<2xf32> to vector<2x1xf32>
    %cst_12 = arith.constant 1.280000e+02 : f32
    %20 = vector.broadcast %cst_12 : f32 to vector<2x1xf32>
    %21 = arith.divf %19, %20 : vector<2x1xf32>
    %22 = vector.broadcast %14 : vector<2x1xf32> to vector<2x128xf32>
    %23 = arith.subf %8, %22 : vector<2x128xf32>
    %cst_13 = arith.constant 9.99999974E-6 : f32
    %24 = vector.broadcast %cst_13 : f32 to vector<2x1xf32>
    %25 = arith.addf %21, %24 : vector<2x1xf32>
    %26 = math.rsqrt %25 : vector<2x1xf32>
    %27 = vector.broadcast %26 : vector<2x1xf32> to vector<2x128xf32>
    %28 = arith.mulf %23, %27 : vector<2x128xf32>
    %29 = vector.broadcast %9 : vector<1x128xf32> to vector<2x128xf32>
    %30 = arith.mulf %28, %29 : vector<2x128xf32>
    %31 = vector.broadcast %10 : vector<1x128xf32> to vector<2x128xf32>
    %32 = arith.addf %30, %31 : vector<2x128xf32>
    %33 = arith.mulf %32, %32 : vector<2x128xf32>
    %34 = arith.mulf %32, %33 : vector<2x128xf32>
    %cst_14 = arith.constant 4.471500e-02 : f32
    %35 = vector.broadcast %cst_14 : f32 to vector<2x128xf32>
    %36 = arith.mulf %35, %34 : vector<2x128xf32>
    %37 = arith.addf %32, %36 : vector<2x128xf32>
    %cst_15 = arith.constant 0.797884583 : f32
    %38 = vector.broadcast %cst_15 : f32 to vector<2x128xf32>
    %39 = arith.mulf %38, %37 : vector<2x128xf32>
    %40 = math.tanh %39 : vector<2x128xf32>
    %cst_16 = arith.constant 1.000000e+00 : f32
    %41 = vector.broadcast %cst_16 : f32 to vector<2x128xf32>
    %42 = arith.addf %41, %40 : vector<2x128xf32>
    %cst_17 = arith.constant 5.000000e-01 : f32
    %43 = vector.broadcast %cst_17 : f32 to vector<2x128xf32>
    %44 = arith.mulf %43, %42 : vector<2x128xf32>
    %45 = arith.mulf %32, %44 : vector<2x128xf32>
    %46 = arith.truncf %45 : vector<2x128xf32> to vector<2x128xbf16>
    %c0_18 = arith.constant 0 : index
    %c0_19 = arith.constant 0 : index
    %47 = vector.load %arg4[%c0_18, %c0_19] : memref<128x2xbf16, #tpu.memory_space<vmem>>, vector<128x2xbf16>
    %cst_20 = arith.constant dense<0.000000e+00> : vector<2x2xf32>
    %48 = tpu.matmul %46, %47, %cst_20 {dimension_numbers = #tpu.dot_dimension_numbers<[1], [0], [0], [1], [0, 0, 1, 1], [], []>} : vector<2x128xbf16>, vector<128x2xbf16>, vector<2x2xf32> -> vector<2x2xf32>
    %c0_21 = arith.constant 0 : index
    %c0_22 = arith.constant 0 : index
    %49 = vector.load %arg5[%c0_21, %c0_22] : memref<1x2xf32, #tpu.memory_space<vmem>>, vector<1x2xf32>
    %50 = vector.broadcast %49 : vector<1x2xf32> to vector<2x2xf32>
    %51 = arith.addf %48, %50 : vector<2x2xf32>
    %c0_23 = arith.constant 0 : index
    %c0_24 = arith.constant 0 : index
    %52 = vector.load %arg6[%c0_23, %c0_24] : memref<2x2xf32, #tpu.memory_space<vmem>>, vector<2x2xf32>
    tpu.vector_store %arg6[%c0_23, %c0_24], %51 {strides = array<i32>} : memref<2x2xf32, #tpu.memory_space<vmem>>, vector<2x2xf32>,
    return
  }
}

module attributes {stable_mosaic.version = 11 : i64} {
  func.func @_vit_kernel(%arg0: i32, %arg1: memref<2x5x192xbf16, #tpu.memory_space<vmem>>, %arg2: memref<5x32xf32, #tpu.memory_space<vmem>>, %arg3: memref<17x128xf32, #tpu.memory_space<vmem>>, %arg4: memref<24x32x8xbf16, #tpu.memory_space<vmem>>, %arg5: memref<8x8x32xbf16, #tpu.memory_space<vmem>>, %arg6: memref<8x1x8xf32, #tpu.memory_space<vmem>>, %arg7: memref<2x32x64xbf16, #tpu.memory_space<vmem>>, %arg8: memref<2x64x32xbf16, #tpu.memory_space<vmem>>, %arg9: memref<192x32xbf16, #tpu.memory_space<vmem>>, %arg10: memref<32x32xbf16, #tpu.memory_space<vmem>>, %arg11: memref<1x1x128xf32, #tpu.memory_space<vmem>>) attributes {dimension_semantics = [#tpu.dimension_semantics<parallel>], iteration_bounds = array<i64: 2>, scalar_prefetch = 0 : i64, scratch_operands = 0 : i64, tpu.core_type = #tpu.core_type<tc>, window_params = [{transform_indices = @transform_0, window_bounds = array<i64: 2, 5, 192>}, {pipeline_mode = #tpu.pipeline_mode<synchronous>, transform_indices = @transform_1, window_bounds = array<i64: 5, 32>}, {pipeline_mode = #tpu.pipeline_mode<synchronous>, transform_indices = @transform_2, window_bounds = array<i64: 17, 128>}, {pipeline_mode = #tpu.pipeline_mode<synchronous>, transform_indices = @transform_3, window_bounds = array<i64: 24, 32, 8>}, {pipeline_mode = #tpu.pipeline_mode<synchronous>, transform_indices = @transform_4, window_bounds = array<i64: 8, 8, 32>}, {pipeline_mode = #tpu.pipeline_mode<synchronous>, transform_indices = @transform_5, window_bounds = array<i64: 8, 1, 8>}, {pipeline_mode = #tpu.pipeline_mode<synchronous>, transform_indices = @transform_6, window_bounds = array<i64: 2, 32, 64>}, {pipeline_mode = #tpu.pipeline_mode<synchronous>, transform_indices = @transform_7, window_bounds = array<i64: 2, 64, 32>}, {pipeline_mode = #tpu.pipeline_mode<synchronous>, transform_indices = @transform_8, window_bounds = array<i64: 192, 32>}, {pipeline_mode = #tpu.pipeline_mode<synchronous>, transform_indices = @transform_9, window_bounds = array<i64: 32, 32>}, {transform_indices = @transform_10, window_bounds = array<i64: 1, 1, 128>}]} {
    %c0 = arith.constant 0 : index
    %c0_0 = arith.constant 0 : index
    %0 = vector.load %arg2[%c0, %c0_0] : memref<5x32xf32, #tpu.memory_space<vmem>>, vector<5x32xf32>
    %c0_1 = arith.constant 0 : index
    %c0_2 = arith.constant 0 : index
    %1 = vector.load %arg9[%c0_1, %c0_2] : memref<192x32xbf16, #tpu.memory_space<vmem>>, vector<192x32xbf16>
    %c0_3 = arith.constant 0 : index
    %c0_4 = arith.constant 0 : index
    %c0_5 = arith.constant 0 : index
    %2 = vector.load %arg1[%c0_3, %c0_4, %c0_5] : memref<2x5x192xbf16, #tpu.memory_space<vmem>>, vector<1x5x192xbf16>
    %3 = vector.shape_cast %2 : vector<1x5x192xbf16> to vector<5x192xbf16>
    %cst = arith.constant dense<0.000000e+00> : vector<5x32xf32>
    %4 = tpu.matmul %3, %1, %cst {dimension_numbers = #tpu.dot_dimension_numbers<[1], [0], [0], [1], [0, 0, 1, 1], [], []>} : vector<5x192xbf16>, vector<192x32xbf16>, vector<5x32xf32> -> vector<5x32xf32>
    %5 = arith.addf %4, %0 : vector<5x32xf32>
    %c0_6 = arith.constant 0 : index
    %c0_7 = arith.constant 0 : index
    %6 = vector.load %arg3[%c0_6, %c0_7] : memref<17x128xf32, #tpu.memory_space<vmem>>, vector<1x32xf32>
    %c1 = arith.constant 1 : index
    %c0_8 = arith.constant 0 : index
    %7 = vector.load %arg3[%c1, %c0_8] : memref<17x128xf32, #tpu.memory_space<vmem>>, vector<1x32xf32>
    %c2 = arith.constant 2 : index
    %c0_9 = arith.constant 0 : index
    %8 = vector.load %arg3[%c2, %c0_9] : memref<17x128xf32, #tpu.memory_space<vmem>>, vector<1x32xf32>
    %c3 = arith.constant 3 : index
    %c0_10 = arith.constant 0 : index
    %9 = vector.load %arg3[%c3, %c0_10] : memref<17x128xf32, #tpu.memory_space<vmem>>, vector<1x32xf32>
    %c4 = arith.constant 4 : index
    %c0_11 = arith.constant 0 : index
    %10 = vector.load %arg3[%c4, %c0_11] : memref<17x128xf32, #tpu.memory_space<vmem>>, vector<1x32xf32>
    %c5 = arith.constant 5 : index
    %c0_12 = arith.constant 0 : index
    %11 = vector.load %arg3[%c5, %c0_12] : memref<17x128xf32, #tpu.memory_space<vmem>>, vector<1x64xf32>
    %c6 = arith.constant 6 : index
    %c0_13 = arith.constant 0 : index
    %12 = vector.load %arg3[%c6, %c0_13] : memref<17x128xf32, #tpu.memory_space<vmem>>, vector<1x32xf32>
    %cst_14 = arith.constant dense<0.000000e+00> : vector<5xf32>
    %13 = vector.multi_reduction <add>, %5, %cst_14 [1] : vector<5x32xf32> to vector<5xf32>
    %14 = vector.shape_cast %13 : vector<5xf32> to vector<5x1xf32>
    %cst_15 = arith.constant 3.200000e+01 : f32
    %15 = vector.broadcast %cst_15 : f32 to vector<5x1xf32>
    %16 = arith.divf %14, %15 : vector<5x1xf32>
    %17 = vector.broadcast %16 : vector<5x1xf32> to vector<5x32xf32>
    %18 = arith.subf %5, %17 : vector<5x32xf32>
    %19 = arith.mulf %18, %18 : vector<5x32xf32>
    %cst_16 = arith.constant dense<0.000000e+00> : vector<5xf32>
    %20 = vector.multi_reduction <add>, %19, %cst_16 [1] : vector<5x32xf32> to vector<5xf32>
    %21 = vector.shape_cast %20 : vector<5xf32> to vector<5x1xf32>
    %cst_17 = arith.constant 3.200000e+01 : f32
    %22 = vector.broadcast %cst_17 : f32 to vector<5x1xf32>
    %23 = arith.divf %21, %22 : vector<5x1xf32>
    %24 = vector.broadcast %16 : vector<5x1xf32> to vector<5x32xf32>
    %25 = arith.subf %5, %24 : vector<5x32xf32>
    %cst_18 = arith.constant 9.99999996E-13 : f32
    %26 = vector.broadcast %cst_18 : f32 to vector<5x1xf32>
    %27 = arith.addf %23, %26 : vector<5x1xf32>
    %28 = math.rsqrt %27 : vector<5x1xf32>
    %29 = vector.broadcast %28 : vector<5x1xf32> to vector<5x32xf32>
    %30 = arith.mulf %25, %29 : vector<5x32xf32>
    %31 = vector.broadcast %6 : vector<1x32xf32> to vector<5x32xf32>
    %32 = arith.mulf %30, %31 : vector<5x32xf32>
    %33 = vector.broadcast %7 : vector<1x32xf32> to vector<5x32xf32>
    %34 = arith.addf %32, %33 : vector<5x32xf32>
    %35 = arith.truncf %34 : vector<5x32xf32> to vector<5x32xbf16>
    %c0_19 = arith.constant 0 : index
    %c0_20 = arith.constant 0 : index
    %c0_21 = arith.constant 0 : index
    %36 = vector.load %arg4[%c0_19, %c0_20, %c0_21] : memref<24x32x8xbf16, #tpu.memory_space<vmem>>, vector<1x32x8xbf16>
    %37 = vector.shape_cast %36 : vector<1x32x8xbf16> to vector<32x8xbf16>
    %c4_22 = arith.constant 4 : index
    %c0_23 = arith.constant 0 : index
    %c0_24 = arith.constant 0 : index
    %38 = vector.load %arg4[%c4_22, %c0_23, %c0_24] : memref<24x32x8xbf16, #tpu.memory_space<vmem>>, vector<1x32x8xbf16>
    %39 = vector.shape_cast %38 : vector<1x32x8xbf16> to vector<32x8xbf16>
    %c8 = arith.constant 8 : index
    %c0_25 = arith.constant 0 : index
    %c0_26 = arith.constant 0 : index
    %40 = vector.load %arg4[%c8, %c0_25, %c0_26] : memref<24x32x8xbf16, #tpu.memory_space<vmem>>, vector<1x32x8xbf16>
    %41 = vector.shape_cast %40 : vector<1x32x8xbf16> to vector<32x8xbf16>
    %cst_27 = arith.constant dense<0.000000e+00> : vector<5x8xf32>
    %42 = tpu.matmul %35, %37, %cst_27 {dimension_numbers = #tpu.dot_dimension_numbers<[1], [0], [0], [1], [0, 0, 1, 1], [], []>} : vector<5x32xbf16>, vector<32x8xbf16>, vector<5x8xf32> -> vector<5x8xf32>
    %c0_28 = arith.constant 0 : index
    %c0_29 = arith.constant 0 : index
    %c0_30 = arith.constant 0 : index
    %43 = vector.load %arg6[%c0_28, %c0_29, %c0_30] : memref<8x1x8xf32, #tpu.memory_space<vmem>>, vector<1x1x8xf32>
    %44 = vector.shape_cast %43 : vector<1x1x8xf32> to vector<1x8xf32>
    %45 = vector.broadcast %44 : vector<1x8xf32> to vector<5x8xf32>
    %46 = arith.addf %42, %45 : vector<5x8xf32>
    %cst_31 = arith.constant dense<0.000000e+00> : vector<5x8xf32>
    %47 = tpu.matmul %35, %39, %cst_31 {dimension_numbers = #tpu.dot_dimension_numbers<[1], [0], [0], [1], [0, 0, 1, 1], [], []>} : vector<5x32xbf16>, vector<32x8xbf16>, vector<5x8xf32> -> vector<5x8xf32>
    %cst_32 = arith.constant dense<0.000000e+00> : vector<5x8xf32>
    %48 = tpu.matmul %35, %41, %cst_32 {dimension_numbers = #tpu.dot_dimension_numbers<[1], [0], [0], [1], [0, 0, 1, 1], [], []>} : vector<5x32xbf16>, vector<32x8xbf16>, vector<5x8xf32> -> vector<5x8xf32>
    %49 = arith.truncf %46 : vector<5x8xf32> to vector<5x8xbf16>
    %50 = arith.truncf %47 : vector<5x8xf32> to vector<5x8xbf16>
    %cst_33 = arith.constant dense<0.000000e+00> : vector<5x5xf32>
    %51 = tpu.matmul %49, %50, %cst_33 {dimension_numbers = #tpu.dot_dimension_numbers<[1], [1], [0], [0], [0, 0, 1, 0], [], []>} : vector<5x8xbf16>, vector<5x8xbf16>, vector<5x5xf32> -> vector<5x5xf32>
    %cst_34 = arith.constant 0.353553385 : f32
    %52 = vector.broadcast %cst_34 : f32 to vector<5x5xf32>
    %53 = arith.mulf %51, %52 : vector<5x5xf32>
    %cst_35 = arith.constant dense<0xFF800000> : vector<5xf32>
    %54 = vector.multi_reduction <maximumf>, %53, %cst_35 [1] : vector<5x5xf32> to vector<5xf32>
    %55 = vector.shape_cast %54 : vector<5xf32> to vector<5x1xf32>
    %56 = vector.broadcast %55 : vector<5x1xf32> to vector<5x5xf32>
    %57 = arith.subf %53, %56 : vector<5x5xf32>
    %58 = math.exp %57 : vector<5x5xf32>
    %cst_36 = arith.constant dense<0.000000e+00> : vector<5xf32>
    %59 = vector.multi_reduction <add>, %58, %cst_36 [1] : vector<5x5xf32> to vector<5xf32>
    %60 = vector.shape_cast %59 : vector<5xf32> to vector<5x1xf32>
    %61 = tpu.reciprocal %60 {approx = true} : vector<5x1xf32> -> vector<5x1xf32>
    %62 = vector.broadcast %61 : vector<5x1xf32> to vector<5x5xf32>
    %63 = arith.mulf %58, %62 : vector<5x5xf32>
    %64 = arith.truncf %63 : vector<5x5xf32> to vector<5x5xbf16>
    %65 = arith.truncf %48 : vector<5x8xf32> to vector<5x8xbf16>
    %cst_37 = arith.constant dense<0.000000e+00> : vector<5x8xf32>
    %66 = tpu.matmul %64, %65, %cst_37 {dimension_numbers = #tpu.dot_dimension_numbers<[1], [0], [0], [1], [0, 0, 1, 1], [], []>} : vector<5x5xbf16>, vector<5x8xbf16>, vector<5x8xf32> -> vector<5x8xf32>
    %67 = arith.truncf %66 : vector<5x8xf32> to vector<5x8xbf16>
    %c0_38 = arith.constant 0 : index
    %c0_39 = arith.constant 0 : index
    %c0_40 = arith.constant 0 : index
    %68 = vector.load %arg5[%c0_38, %c0_39, %c0_40] : memref<8x8x32xbf16, #tpu.memory_space<vmem>>, vector<1x8x32xbf16>
    %69 = vector.shape_cast %68 : vector<1x8x32xbf16> to vector<8x32xbf16>
    %cst_41 = arith.constant dense<0.000000e+00> : vector<5x32xf32>
    %70 = tpu.matmul %67, %69, %cst_41 {dimension_numbers = #tpu.dot_dimension_numbers<[1], [0], [0], [1], [0, 0, 1, 1], [], []>} : vector<5x8xbf16>, vector<8x32xbf16>, vector<5x32xf32> -> vector<5x32xf32>
    %c1_42 = arith.constant 1 : index
    %c0_43 = arith.constant 0 : index
    %c0_44 = arith.constant 0 : index
    %71 = vector.load %arg4[%c1_42, %c0_43, %c0_44] : memref<24x32x8xbf16, #tpu.memory_space<vmem>>, vector<1x32x8xbf16>
    %72 = vector.shape_cast %71 : vector<1x32x8xbf16> to vector<32x8xbf16>
    %c5_45 = arith.constant 5 : index
    %c0_46 = arith.constant 0 : index
    %c0_47 = arith.constant 0 : index
    %73 = vector.load %arg4[%c5_45, %c0_46, %c0_47] : memref<24x32x8xbf16, #tpu.memory_space<vmem>>, vector<1x32x8xbf16>
    %74 = vector.shape_cast %73 : vector<1x32x8xbf16> to vector<32x8xbf16>
    %c9 = arith.constant 9 : index
    %c0_48 = arith.constant 0 : index
    %c0_49 = arith.constant 0 : index
    %75 = vector.load %arg4[%c9, %c0_48, %c0_49] : memref<24x32x8xbf16, #tpu.memory_space<vmem>>, vector<1x32x8xbf16>
    %76 = vector.shape_cast %75 : vector<1x32x8xbf16> to vector<32x8xbf16>
    %cst_50 = arith.constant dense<0.000000e+00> : vector<5x8xf32>
    %77 = tpu.matmul %35, %72, %cst_50 {dimension_numbers = #tpu.dot_dimension_numbers<[1], [0], [0], [1], [0, 0, 1, 1], [], []>} : vector<5x32xbf16>, vector<32x8xbf16>, vector<5x8xf32> -> vector<5x8xf32>
    %c1_51 = arith.constant 1 : index
    %c0_52 = arith.constant 0 : index
    %c0_53 = arith.constant 0 : index
    %78 = vector.load %arg6[%c1_51, %c0_52, %c0_53] : memref<8x1x8xf32, #tpu.memory_space<vmem>>, vector<1x1x8xf32>
    %79 = vector.shape_cast %78 : vector<1x1x8xf32> to vector<1x8xf32>
    %80 = vector.broadcast %79 : vector<1x8xf32> to vector<5x8xf32>
    %81 = arith.addf %77, %80 : vector<5x8xf32>
    %cst_54 = arith.constant dense<0.000000e+00> : vector<5x8xf32>
    %82 = tpu.matmul %35, %74, %cst_54 {dimension_numbers = #tpu.dot_dimension_numbers<[1], [0], [0], [1], [0, 0, 1, 1], [], []>} : vector<5x32xbf16>, vector<32x8xbf16>, vector<5x8xf32> -> vector<5x8xf32>
    %cst_55 = arith.constant dense<0.000000e+00> : vector<5x8xf32>
    %83 = tpu.matmul %35, %76, %cst_55 {dimension_numbers = #tpu.dot_dimension_numbers<[1], [0], [0], [1], [0, 0, 1, 1], [], []>} : vector<5x32xbf16>, vector<32x8xbf16>, vector<5x8xf32> -> vector<5x8xf32>
    %84 = arith.truncf %81 : vector<5x8xf32> to vector<5x8xbf16>
    %85 = arith.truncf %82 : vector<5x8xf32> to vector<5x8xbf16>
    %cst_56 = arith.constant dense<0.000000e+00> : vector<5x5xf32>
    %86 = tpu.matmul %84, %85, %cst_56 {dimension_numbers = #tpu.dot_dimension_numbers<[1], [1], [0], [0], [0, 0, 1, 0], [], []>} : vector<5x8xbf16>, vector<5x8xbf16>, vector<5x5xf32> -> vector<5x5xf32>
    %cst_57 = arith.constant 0.353553385 : f32
    %87 = vector.broadcast %cst_57 : f32 to vector<5x5xf32>
    %88 = arith.mulf %86, %87 : vector<5x5xf32>
    %cst_58 = arith.constant dense<0xFF800000> : vector<5xf32>
    %89 = vector.multi_reduction <maximumf>, %88, %cst_58 [1] : vector<5x5xf32> to vector<5xf32>
    %90 = vector.shape_cast %89 : vector<5xf32> to vector<5x1xf32>
    %91 = vector.broadcast %90 : vector<5x1xf32> to vector<5x5xf32>
    %92 = arith.subf %88, %91 : vector<5x5xf32>
    %93 = math.exp %92 : vector<5x5xf32>
    %cst_59 = arith.constant dense<0.000000e+00> : vector<5xf32>
    %94 = vector.multi_reduction <add>, %93, %cst_59 [1] : vector<5x5xf32> to vector<5xf32>
    %95 = vector.shape_cast %94 : vector<5xf32> to vector<5x1xf32>
    %96 = tpu.reciprocal %95 {approx = true} : vector<5x1xf32> -> vector<5x1xf32>
    %97 = vector.broadcast %96 : vector<5x1xf32> to vector<5x5xf32>
    %98 = arith.mulf %93, %97 : vector<5x5xf32>
    %99 = arith.truncf %98 : vector<5x5xf32> to vector<5x5xbf16>
    %100 = arith.truncf %83 : vector<5x8xf32> to vector<5x8xbf16>
    %cst_60 = arith.constant dense<0.000000e+00> : vector<5x8xf32>
    %101 = tpu.matmul %99, %100, %cst_60 {dimension_numbers = #tpu.dot_dimension_numbers<[1], [0], [0], [1], [0, 0, 1, 1], [], []>} : vector<5x5xbf16>, vector<5x8xbf16>, vector<5x8xf32> -> vector<5x8xf32>
    %102 = arith.truncf %101 : vector<5x8xf32> to vector<5x8xbf16>
    %c1_61 = arith.constant 1 : index
    %c0_62 = arith.constant 0 : index
    %c0_63 = arith.constant 0 : index
    %103 = vector.load %arg5[%c1_61, %c0_62, %c0_63] : memref<8x8x32xbf16, #tpu.memory_space<vmem>>, vector<1x8x32xbf16>
    %104 = vector.shape_cast %103 : vector<1x8x32xbf16> to vector<8x32xbf16>
    %cst_64 = arith.constant dense<0.000000e+00> : vector<5x32xf32>
    %105 = tpu.matmul %102, %104, %cst_64 {dimension_numbers = #tpu.dot_dimension_numbers<[1], [0], [0], [1], [0, 0, 1, 1], [], []>} : vector<5x8xbf16>, vector<8x32xbf16>, vector<5x32xf32> -> vector<5x32xf32>
    %106 = arith.addf %70, %105 : vector<5x32xf32>
    %c2_65 = arith.constant 2 : index
    %c0_66 = arith.constant 0 : index
    %c0_67 = arith.constant 0 : index
    %107 = vector.load %arg4[%c2_65, %c0_66, %c0_67] : memref<24x32x8xbf16, #tpu.memory_space<vmem>>, vector<1x32x8xbf16>
    %108 = vector.shape_cast %107 : vector<1x32x8xbf16> to vector<32x8xbf16>
    %c6_68 = arith.constant 6 : index
    %c0_69 = arith.constant 0 : index
    %c0_70 = arith.constant 0 : index
    %109 = vector.load %arg4[%c6_68, %c0_69, %c0_70] : memref<24x32x8xbf16, #tpu.memory_space<vmem>>, vector<1x32x8xbf16>
    %110 = vector.shape_cast %109 : vector<1x32x8xbf16> to vector<32x8xbf16>
    %c10 = arith.constant 10 : index
    %c0_71 = arith.constant 0 : index
    %c0_72 = arith.constant 0 : index
    %111 = vector.load %arg4[%c10, %c0_71, %c0_72] : memref<24x32x8xbf16, #tpu.memory_space<vmem>>, vector<1x32x8xbf16>
    %112 = vector.shape_cast %111 : vector<1x32x8xbf16> to vector<32x8xbf16>
    %cst_73 = arith.constant dense<0.000000e+00> : vector<5x8xf32>
    %113 = tpu.matmul %35, %108, %cst_73 {dimension_numbers = #tpu.dot_dimension_numbers<[1], [0], [0], [1], [0, 0, 1, 1], [], []>} : vector<5x32xbf16>, vector<32x8xbf16>, vector<5x8xf32> -> vector<5x8xf32>
    %c2_74 = arith.constant 2 : index
    %c0_75 = arith.constant 0 : index
    %c0_76 = arith.constant 0 : index
    %114 = vector.load %arg6[%c2_74, %c0_75, %c0_76] : memref<8x1x8xf32, #tpu.memory_space<vmem>>, vector<1x1x8xf32>
    %115 = vector.shape_cast %114 : vector<1x1x8xf32> to vector<1x8xf32>
    %116 = vector.broadcast %115 : vector<1x8xf32> to vector<5x8xf32>
    %117 = arith.addf %113, %116 : vector<5x8xf32>
    %cst_77 = arith.constant dense<0.000000e+00> : vector<5x8xf32>
    %118 = tpu.matmul %35, %110, %cst_77 {dimension_numbers = #tpu.dot_dimension_numbers<[1], [0], [0], [1], [0, 0, 1, 1], [], []>} : vector<5x32xbf16>, vector<32x8xbf16>, vector<5x8xf32> -> vector<5x8xf32>
    %cst_78 = arith.constant dense<0.000000e+00> : vector<5x8xf32>
    %119 = tpu.matmul %35, %112, %cst_78 {dimension_numbers = #tpu.dot_dimension_numbers<[1], [0], [0], [1], [0, 0, 1, 1], [], []>} : vector<5x32xbf16>, vector<32x8xbf16>, vector<5x8xf32> -> vector<5x8xf32>
    %120 = arith.truncf %117 : vector<5x8xf32> to vector<5x8xbf16>
    %121 = arith.truncf %118 : vector<5x8xf32> to vector<5x8xbf16>
    %cst_79 = arith.constant dense<0.000000e+00> : vector<5x5xf32>
    %122 = tpu.matmul %120, %121, %cst_79 {dimension_numbers = #tpu.dot_dimension_numbers<[1], [1], [0], [0], [0, 0, 1, 0], [], []>} : vector<5x8xbf16>, vector<5x8xbf16>, vector<5x5xf32> -> vector<5x5xf32>
    %cst_80 = arith.constant 0.353553385 : f32
    %123 = vector.broadcast %cst_80 : f32 to vector<5x5xf32>
    %124 = arith.mulf %122, %123 : vector<5x5xf32>
    %cst_81 = arith.constant dense<0xFF800000> : vector<5xf32>
    %125 = vector.multi_reduction <maximumf>, %124, %cst_81 [1] : vector<5x5xf32> to vector<5xf32>
    %126 = vector.shape_cast %125 : vector<5xf32> to vector<5x1xf32>
    %127 = vector.broadcast %126 : vector<5x1xf32> to vector<5x5xf32>
    %128 = arith.subf %124, %127 : vector<5x5xf32>
    %129 = math.exp %128 : vector<5x5xf32>
    %cst_82 = arith.constant dense<0.000000e+00> : vector<5xf32>
    %130 = vector.multi_reduction <add>, %129, %cst_82 [1] : vector<5x5xf32> to vector<5xf32>
    %131 = vector.shape_cast %130 : vector<5xf32> to vector<5x1xf32>
    %132 = tpu.reciprocal %131 {approx = true} : vector<5x1xf32> -> vector<5x1xf32>
    %133 = vector.broadcast %132 : vector<5x1xf32> to vector<5x5xf32>
    %134 = arith.mulf %129, %133 : vector<5x5xf32>
    %135 = arith.truncf %134 : vector<5x5xf32> to vector<5x5xbf16>
    %136 = arith.truncf %119 : vector<5x8xf32> to vector<5x8xbf16>
    %cst_83 = arith.constant dense<0.000000e+00> : vector<5x8xf32>
    %137 = tpu.matmul %135, %136, %cst_83 {dimension_numbers = #tpu.dot_dimension_numbers<[1], [0], [0], [1], [0, 0, 1, 1], [], []>} : vector<5x5xbf16>, vector<5x8xbf16>, vector<5x8xf32> -> vector<5x8xf32>
    %138 = arith.truncf %137 : vector<5x8xf32> to vector<5x8xbf16>
    %c2_84 = arith.constant 2 : index
    %c0_85 = arith.constant 0 : index
    %c0_86 = arith.constant 0 : index
    %139 = vector.load %arg5[%c2_84, %c0_85, %c0_86] : memref<8x8x32xbf16, #tpu.memory_space<vmem>>, vector<1x8x32xbf16>
    %140 = vector.shape_cast %139 : vector<1x8x32xbf16> to vector<8x32xbf16>
    %cst_87 = arith.constant dense<0.000000e+00> : vector<5x32xf32>
    %141 = tpu.matmul %138, %140, %cst_87 {dimension_numbers = #tpu.dot_dimension_numbers<[1], [0], [0], [1], [0, 0, 1, 1], [], []>} : vector<5x8xbf16>, vector<8x32xbf16>, vector<5x32xf32> -> vector<5x32xf32>
    %142 = arith.addf %106, %141 : vector<5x32xf32>
    %c3_88 = arith.constant 3 : index
    %c0_89 = arith.constant 0 : index
    %c0_90 = arith.constant 0 : index
    %143 = vector.load %arg4[%c3_88, %c0_89, %c0_90] : memref<24x32x8xbf16, #tpu.memory_space<vmem>>, vector<1x32x8xbf16>
    %144 = vector.shape_cast %143 : vector<1x32x8xbf16> to vector<32x8xbf16>
    %c7 = arith.constant 7 : index
    %c0_91 = arith.constant 0 : index
    %c0_92 = arith.constant 0 : index
    %145 = vector.load %arg4[%c7, %c0_91, %c0_92] : memref<24x32x8xbf16, #tpu.memory_space<vmem>>, vector<1x32x8xbf16>
    %146 = vector.shape_cast %145 : vector<1x32x8xbf16> to vector<32x8xbf16>
    %c11 = arith.constant 11 : index
    %c0_93 = arith.constant 0 : index
    %c0_94 = arith.constant 0 : index
    %147 = vector.load %arg4[%c11, %c0_93, %c0_94] : memref<24x32x8xbf16, #tpu.memory_space<vmem>>, vector<1x32x8xbf16>
    %148 = vector.shape_cast %147 : vector<1x32x8xbf16> to vector<32x8xbf16>
    %cst_95 = arith.constant dense<0.000000e+00> : vector<5x8xf32>
    %149 = tpu.matmul %35, %144, %cst_95 {dimension_numbers = #tpu.dot_dimension_numbers<[1], [0], [0], [1], [0, 0, 1, 1], [], []>} : vector<5x32xbf16>, vector<32x8xbf16>, vector<5x8xf32> -> vector<5x8xf32>
    %c3_96 = arith.constant 3 : index
    %c0_97 = arith.constant 0 : index
    %c0_98 = arith.constant 0 : index
    %150 = vector.load %arg6[%c3_96, %c0_97, %c0_98] : memref<8x1x8xf32, #tpu.memory_space<vmem>>, vector<1x1x8xf32>
    %151 = vector.shape_cast %150 : vector<1x1x8xf32> to vector<1x8xf32>
    %152 = vector.broadcast %151 : vector<1x8xf32> to vector<5x8xf32>
    %153 = arith.addf %149, %152 : vector<5x8xf32>
    %cst_99 = arith.constant dense<0.000000e+00> : vector<5x8xf32>
    %154 = tpu.matmul %35, %146, %cst_99 {dimension_numbers = #tpu.dot_dimension_numbers<[1], [0], [0], [1], [0, 0, 1, 1], [], []>} : vector<5x32xbf16>, vector<32x8xbf16>, vector<5x8xf32> -> vector<5x8xf32>
    %cst_100 = arith.constant dense<0.000000e+00> : vector<5x8xf32>
    %155 = tpu.matmul %35, %148, %cst_100 {dimension_numbers = #tpu.dot_dimension_numbers<[1], [0], [0], [1], [0, 0, 1, 1], [], []>} : vector<5x32xbf16>, vector<32x8xbf16>, vector<5x8xf32> -> vector<5x8xf32>
    %156 = arith.truncf %153 : vector<5x8xf32> to vector<5x8xbf16>
    %157 = arith.truncf %154 : vector<5x8xf32> to vector<5x8xbf16>
    %cst_101 = arith.constant dense<0.000000e+00> : vector<5x5xf32>
    %158 = tpu.matmul %156, %157, %cst_101 {dimension_numbers = #tpu.dot_dimension_numbers<[1], [1], [0], [0], [0, 0, 1, 0], [], []>} : vector<5x8xbf16>, vector<5x8xbf16>, vector<5x5xf32> -> vector<5x5xf32>
    %cst_102 = arith.constant 0.353553385 : f32
    %159 = vector.broadcast %cst_102 : f32 to vector<5x5xf32>
    %160 = arith.mulf %158, %159 : vector<5x5xf32>
    %cst_103 = arith.constant dense<0xFF800000> : vector<5xf32>
    %161 = vector.multi_reduction <maximumf>, %160, %cst_103 [1] : vector<5x5xf32> to vector<5xf32>
    %162 = vector.shape_cast %161 : vector<5xf32> to vector<5x1xf32>
    %163 = vector.broadcast %162 : vector<5x1xf32> to vector<5x5xf32>
    %164 = arith.subf %160, %163 : vector<5x5xf32>
    %165 = math.exp %164 : vector<5x5xf32>
    %cst_104 = arith.constant dense<0.000000e+00> : vector<5xf32>
    %166 = vector.multi_reduction <add>, %165, %cst_104 [1] : vector<5x5xf32> to vector<5xf32>
    %167 = vector.shape_cast %166 : vector<5xf32> to vector<5x1xf32>
    %168 = tpu.reciprocal %167 {approx = true} : vector<5x1xf32> -> vector<5x1xf32>
    %169 = vector.broadcast %168 : vector<5x1xf32> to vector<5x5xf32>
    %170 = arith.mulf %165, %169 : vector<5x5xf32>
    %171 = arith.truncf %170 : vector<5x5xf32> to vector<5x5xbf16>
    %172 = arith.truncf %155 : vector<5x8xf32> to vector<5x8xbf16>
    %cst_105 = arith.constant dense<0.000000e+00> : vector<5x8xf32>
    %173 = tpu.matmul %171, %172, %cst_105 {dimension_numbers = #tpu.dot_dimension_numbers<[1], [0], [0], [1], [0, 0, 1, 1], [], []>} : vector<5x5xbf16>, vector<5x8xbf16>, vector<5x8xf32> -> vector<5x8xf32>
    %174 = arith.truncf %173 : vector<5x8xf32> to vector<5x8xbf16>
    %c3_106 = arith.constant 3 : index
    %c0_107 = arith.constant 0 : index
    %c0_108 = arith.constant 0 : index
    %175 = vector.load %arg5[%c3_106, %c0_107, %c0_108] : memref<8x8x32xbf16, #tpu.memory_space<vmem>>, vector<1x8x32xbf16>
    %176 = vector.shape_cast %175 : vector<1x8x32xbf16> to vector<8x32xbf16>
    %cst_109 = arith.constant dense<0.000000e+00> : vector<5x32xf32>
    %177 = tpu.matmul %174, %176, %cst_109 {dimension_numbers = #tpu.dot_dimension_numbers<[1], [0], [0], [1], [0, 0, 1, 1], [], []>} : vector<5x8xbf16>, vector<8x32xbf16>, vector<5x32xf32> -> vector<5x32xf32>
    %178 = arith.addf %142, %177 : vector<5x32xf32>
    %179 = arith.addf %5, %178 : vector<5x32xf32>
    %180 = vector.broadcast %8 : vector<1x32xf32> to vector<5x32xf32>
    %181 = arith.addf %179, %180 : vector<5x32xf32>
    %cst_110 = arith.constant dense<0.000000e+00> : vector<5xf32>
    %182 = vector.multi_reduction <add>, %181, %cst_110 [1] : vector<5x32xf32> to vector<5xf32>
    %183 = vector.shape_cast %182 : vector<5xf32> to vector<5x1xf32>
    %cst_111 = arith.constant 3.200000e+01 : f32
    %184 = vector.broadcast %cst_111 : f32 to vector<5x1xf32>
    %185 = arith.divf %183, %184 : vector<5x1xf32>
    %186 = vector.broadcast %185 : vector<5x1xf32> to vector<5x32xf32>
    %187 = arith.subf %181, %186 : vector<5x32xf32>
    %188 = arith.mulf %187, %187 : vector<5x32xf32>
    %cst_112 = arith.constant dense<0.000000e+00> : vector<5xf32>
    %189 = vector.multi_reduction <add>, %188, %cst_112 [1] : vector<5x32xf32> to vector<5xf32>
    %190 = vector.shape_cast %189 : vector<5xf32> to vector<5x1xf32>
    %cst_113 = arith.constant 3.200000e+01 : f32
    %191 = vector.broadcast %cst_113 : f32 to vector<5x1xf32>
    %192 = arith.divf %190, %191 : vector<5x1xf32>
    %193 = vector.broadcast %185 : vector<5x1xf32> to vector<5x32xf32>
    %194 = arith.subf %181, %193 : vector<5x32xf32>
    %cst_114 = arith.constant 9.99999996E-13 : f32
    %195 = vector.broadcast %cst_114 : f32 to vector<5x1xf32>
    %196 = arith.addf %192, %195 : vector<5x1xf32>
    %197 = math.rsqrt %196 : vector<5x1xf32>
    %198 = vector.broadcast %197 : vector<5x1xf32> to vector<5x32xf32>
    %199 = arith.mulf %194, %198 : vector<5x32xf32>
    %200 = vector.broadcast %9 : vector<1x32xf32> to vector<5x32xf32>
    %201 = arith.mulf %199, %200 : vector<5x32xf32>
    %202 = vector.broadcast %10 : vector<1x32xf32> to vector<5x32xf32>
    %203 = arith.addf %201, %202 : vector<5x32xf32>
    %204 = arith.truncf %203 : vector<5x32xf32> to vector<5x32xbf16>
    %c0_115 = arith.constant 0 : index
    %c0_116 = arith.constant 0 : index
    %c0_117 = arith.constant 0 : index
    %205 = vector.load %arg7[%c0_115, %c0_116, %c0_117] : memref<2x32x64xbf16, #tpu.memory_space<vmem>>, vector<1x32x64xbf16>
    %206 = vector.shape_cast %205 : vector<1x32x64xbf16> to vector<32x64xbf16>
    %cst_118 = arith.constant dense<0.000000e+00> : vector<5x64xf32>
    %207 = tpu.matmul %204, %206, %cst_118 {dimension_numbers = #tpu.dot_dimension_numbers<[1], [0], [0], [1], [0, 0, 1, 1], [], []>} : vector<5x32xbf16>, vector<32x64xbf16>, vector<5x64xf32> -> vector<5x64xf32>
    %208 = vector.broadcast %11 : vector<1x64xf32> to vector<5x64xf32>
    %209 = arith.addf %207, %208 : vector<5x64xf32>
    %210 = arith.mulf %209, %209 : vector<5x64xf32>
    %211 = arith.mulf %209, %210 : vector<5x64xf32>
    %cst_119 = arith.constant 4.471500e-02 : f32
    %212 = vector.broadcast %cst_119 : f32 to vector<5x64xf32>
    %213 = arith.mulf %212, %211 : vector<5x64xf32>
    %214 = arith.addf %209, %213 : vector<5x64xf32>
    %cst_120 = arith.constant 0.797884583 : f32
    %215 = vector.broadcast %cst_120 : f32 to vector<5x64xf32>
    %216 = arith.mulf %215, %214 : vector<5x64xf32>
    %217 = math.tanh %216 : vector<5x64xf32>
    %cst_121 = arith.constant 1.000000e+00 : f32
    %218 = vector.broadcast %cst_121 : f32 to vector<5x64xf32>
    %219 = arith.addf %218, %217 : vector<5x64xf32>
    %cst_122 = arith.constant 5.000000e-01 : f32
    %220 = vector.broadcast %cst_122 : f32 to vector<5x64xf32>
    %221 = arith.mulf %220, %219 : vector<5x64xf32>
    %222 = arith.mulf %209, %221 : vector<5x64xf32>
    %223 = arith.truncf %222 : vector<5x64xf32> to vector<5x64xbf16>
    %c0_123 = arith.constant 0 : index
    %c0_124 = arith.constant 0 : index
    %c0_125 = arith.constant 0 : index
    %224 = vector.load %arg8[%c0_123, %c0_124, %c0_125] : memref<2x64x32xbf16, #tpu.memory_space<vmem>>, vector<1x64x32xbf16>
    %225 = vector.shape_cast %224 : vector<1x64x32xbf16> to vector<64x32xbf16>
    %cst_126 = arith.constant dense<0.000000e+00> : vector<5x32xf32>
    %226 = tpu.matmul %223, %225, %cst_126 {dimension_numbers = #tpu.dot_dimension_numbers<[1], [0], [0], [1], [0, 0, 1, 1], [], []>} : vector<5x64xbf16>, vector<64x32xbf16>, vector<5x32xf32> -> vector<5x32xf32>
    %227 = arith.addf %181, %226 : vector<5x32xf32>
    %228 = vector.broadcast %12 : vector<1x32xf32> to vector<5x32xf32>
    %229 = arith.addf %227, %228 : vector<5x32xf32>
    %c7_127 = arith.constant 7 : index
    %c0_128 = arith.constant 0 : index
    %230 = vector.load %arg3[%c7_127, %c0_128] : memref<17x128xf32, #tpu.memory_space<vmem>>, vector<1x32xf32>
    %c8_129 = arith.constant 8 : index
    %c0_130 = arith.constant 0 : index
    %231 = vector.load %arg3[%c8_129, %c0_130] : memref<17x128xf32, #tpu.memory_space<vmem>>, vector<1x32xf32>
    %c9_131 = arith.constant 9 : index
    %c0_132 = arith.constant 0 : index
    %232 = vector.load %arg3[%c9_131, %c0_132] : memref<17x128xf32, #tpu.memory_space<vmem>>, vector<1x32xf32>
    %c10_133 = arith.constant 10 : index
    %c0_134 = arith.constant 0 : index
    %233 = vector.load %arg3[%c10_133, %c0_134] : memref<17x128xf32, #tpu.memory_space<vmem>>, vector<1x32xf32>
    %c11_135 = arith.constant 11 : index
    %c0_136 = arith.constant 0 : index
    %234 = vector.load %arg3[%c11_135, %c0_136] : memref<17x128xf32, #tpu.memory_space<vmem>>, vector<1x32xf32>
    %c12 = arith.constant 12 : index
    %c0_137 = arith.constant 0 : index
    %235 = vector.load %arg3[%c12, %c0_137] : memref<17x128xf32, #tpu.memory_space<vmem>>, vector<1x64xf32>
    %c13 = arith.constant 13 : index
    %c0_138 = arith.constant 0 : index
    %236 = vector.load %arg3[%c13, %c0_138] : memref<17x128xf32, #tpu.memory_space<vmem>>, vector<1x32xf32>
    %cst_139 = arith.constant dense<0.000000e+00> : vector<5xf32>
    %237 = vector.multi_reduction <add>, %229, %cst_139 [1] : vector<5x32xf32> to vector<5xf32>
    %238 = vector.shape_cast %237 : vector<5xf32> to vector<5x1xf32>
    %cst_140 = arith.constant 3.200000e+01 : f32
    %239 = vector.broadcast %cst_140 : f32 to vector<5x1xf32>
    %240 = arith.divf %238, %239 : vector<5x1xf32>
    %241 = vector.broadcast %240 : vector<5x1xf32> to vector<5x32xf32>
    %242 = arith.subf %229, %241 : vector<5x32xf32>
    %243 = arith.mulf %242, %242 : vector<5x32xf32>
    %cst_141 = arith.constant dense<0.000000e+00> : vector<5xf32>
    %244 = vector.multi_reduction <add>, %243, %cst_141 [1] : vector<5x32xf32> to vector<5xf32>
    %245 = vector.shape_cast %244 : vector<5xf32> to vector<5x1xf32>
    %cst_142 = arith.constant 3.200000e+01 : f32
    %246 = vector.broadcast %cst_142 : f32 to vector<5x1xf32>
    %247 = arith.divf %245, %246 : vector<5x1xf32>
    %248 = vector.broadcast %240 : vector<5x1xf32> to vector<5x32xf32>
    %249 = arith.subf %229, %248 : vector<5x32xf32>
    %cst_143 = arith.constant 9.99999996E-13 : f32
    %250 = vector.broadcast %cst_143 : f32 to vector<5x1xf32>
    %251 = arith.addf %247, %250 : vector<5x1xf32>
    %252 = math.rsqrt %251 : vector<5x1xf32>
    %253 = vector.broadcast %252 : vector<5x1xf32> to vector<5x32xf32>
    %254 = arith.mulf %249, %253 : vector<5x32xf32>
    %255 = vector.broadcast %230 : vector<1x32xf32> to vector<5x32xf32>
    %256 = arith.mulf %254, %255 : vector<5x32xf32>
    %257 = vector.broadcast %231 : vector<1x32xf32> to vector<5x32xf32>
    %258 = arith.addf %256, %257 : vector<5x32xf32>
    %259 = arith.truncf %258 : vector<5x32xf32> to vector<5x32xbf16>
    %c12_144 = arith.constant 12 : index
    %c0_145 = arith.constant 0 : index
    %c0_146 = arith.constant 0 : index
    %260 = vector.load %arg4[%c12_144, %c0_145, %c0_146] : memref<24x32x8xbf16, #tpu.memory_space<vmem>>, vector<1x32x8xbf16>
    %261 = vector.shape_cast %260 : vector<1x32x8xbf16> to vector<32x8xbf16>
    %c16 = arith.constant 16 : index
    %c0_147 = arith.constant 0 : index
    %c0_148 = arith.constant 0 : index
    %262 = vector.load %arg4[%c16, %c0_147, %c0_148] : memref<24x32x8xbf16, #tpu.memory_space<vmem>>, vector<1x32x8xbf16>
    %263 = vector.shape_cast %262 : vector<1x32x8xbf16> to vector<32x8xbf16>
    %c20 = arith.constant 20 : index
    %c0_149 = arith.constant 0 : index
    %c0_150 = arith.constant 0 : index
    %264 = vector.load %arg4[%c20, %c0_149, %c0_150] : memref<24x32x8xbf16, #tpu.memory_space<vmem>>, vector<1x32x8xbf16>
    %265 = vector.shape_cast %264 : vector<1x32x8xbf16> to vector<32x8xbf16>
    %cst_151 = arith.constant dense<0.000000e+00> : vector<5x8xf32>
    %266 = tpu.matmul %259, %261, %cst_151 {dimension_numbers = #tpu.dot_dimension_numbers<[1], [0], [0], [1], [0, 0, 1, 1], [], []>} : vector<5x32xbf16>, vector<32x8xbf16>, vector<5x8xf32> -> vector<5x8xf32>
    %c4_152 = arith.constant 4 : index
    %c0_153 = arith.constant 0 : index
    %c0_154 = arith.constant 0 : index
    %267 = vector.load %arg6[%c4_152, %c0_153, %c0_154] : memref<8x1x8xf32, #tpu.memory_space<vmem>>, vector<1x1x8xf32>
    %268 = vector.shape_cast %267 : vector<1x1x8xf32> to vector<1x8xf32>
    %269 = vector.broadcast %268 : vector<1x8xf32> to vector<5x8xf32>
    %270 = arith.addf %266, %269 : vector<5x8xf32>
    %cst_155 = arith.constant dense<0.000000e+00> : vector<5x8xf32>
    %271 = tpu.matmul %259, %263, %cst_155 {dimension_numbers = #tpu.dot_dimension_numbers<[1], [0], [0], [1], [0, 0, 1, 1], [], []>} : vector<5x32xbf16>, vector<32x8xbf16>, vector<5x8xf32> -> vector<5x8xf32>
    %cst_156 = arith.constant dense<0.000000e+00> : vector<5x8xf32>
    %272 = tpu.matmul %259, %265, %cst_156 {dimension_numbers = #tpu.dot_dimension_numbers<[1], [0], [0], [1], [0, 0, 1, 1], [], []>} : vector<5x32xbf16>, vector<32x8xbf16>, vector<5x8xf32> -> vector<5x8xf32>
    %273 = arith.truncf %270 : vector<5x8xf32> to vector<5x8xbf16>
    %274 = arith.truncf %271 : vector<5x8xf32> to vector<5x8xbf16>
    %cst_157 = arith.constant dense<0.000000e+00> : vector<5x5xf32>
    %275 = tpu.matmul %273, %274, %cst_157 {dimension_numbers = #tpu.dot_dimension_numbers<[1], [1], [0], [0], [0, 0, 1, 0], [], []>} : vector<5x8xbf16>, vector<5x8xbf16>, vector<5x5xf32> -> vector<5x5xf32>
    %cst_158 = arith.constant 0.353553385 : f32
    %276 = vector.broadcast %cst_158 : f32 to vector<5x5xf32>
    %277 = arith.mulf %275, %276 : vector<5x5xf32>
    %cst_159 = arith.constant dense<0xFF800000> : vector<5xf32>
    %278 = vector.multi_reduction <maximumf>, %277, %cst_159 [1] : vector<5x5xf32> to vector<5xf32>
    %279 = vector.shape_cast %278 : vector<5xf32> to vector<5x1xf32>
    %280 = vector.broadcast %279 : vector<5x1xf32> to vector<5x5xf32>
    %281 = arith.subf %277, %280 : vector<5x5xf32>
    %282 = math.exp %281 : vector<5x5xf32>
    %cst_160 = arith.constant dense<0.000000e+00> : vector<5xf32>
    %283 = vector.multi_reduction <add>, %282, %cst_160 [1] : vector<5x5xf32> to vector<5xf32>
    %284 = vector.shape_cast %283 : vector<5xf32> to vector<5x1xf32>
    %285 = tpu.reciprocal %284 {approx = true} : vector<5x1xf32> -> vector<5x1xf32>
    %286 = vector.broadcast %285 : vector<5x1xf32> to vector<5x5xf32>
    %287 = arith.mulf %282, %286 : vector<5x5xf32>
    %288 = arith.truncf %287 : vector<5x5xf32> to vector<5x5xbf16>
    %289 = arith.truncf %272 : vector<5x8xf32> to vector<5x8xbf16>
    %cst_161 = arith.constant dense<0.000000e+00> : vector<5x8xf32>
    %290 = tpu.matmul %288, %289, %cst_161 {dimension_numbers = #tpu.dot_dimension_numbers<[1], [0], [0], [1], [0, 0, 1, 1], [], []>} : vector<5x5xbf16>, vector<5x8xbf16>, vector<5x8xf32> -> vector<5x8xf32>
    %291 = arith.truncf %290 : vector<5x8xf32> to vector<5x8xbf16>
    %c4_162 = arith.constant 4 : index
    %c0_163 = arith.constant 0 : index
    %c0_164 = arith.constant 0 : index
    %292 = vector.load %arg5[%c4_162, %c0_163, %c0_164] : memref<8x8x32xbf16, #tpu.memory_space<vmem>>, vector<1x8x32xbf16>
    %293 = vector.shape_cast %292 : vector<1x8x32xbf16> to vector<8x32xbf16>
    %cst_165 = arith.constant dense<0.000000e+00> : vector<5x32xf32>
    %294 = tpu.matmul %291, %293, %cst_165 {dimension_numbers = #tpu.dot_dimension_numbers<[1], [0], [0], [1], [0, 0, 1, 1], [], []>} : vector<5x8xbf16>, vector<8x32xbf16>, vector<5x32xf32> -> vector<5x32xf32>
    %c13_166 = arith.constant 13 : index
    %c0_167 = arith.constant 0 : index
    %c0_168 = arith.constant 0 : index
    %295 = vector.load %arg4[%c13_166, %c0_167, %c0_168] : memref<24x32x8xbf16, #tpu.memory_space<vmem>>, vector<1x32x8xbf16>
    %296 = vector.shape_cast %295 : vector<1x32x8xbf16> to vector<32x8xbf16>
    %c17 = arith.constant 17 : index
    %c0_169 = arith.constant 0 : index
    %c0_170 = arith.constant 0 : index
    %297 = vector.load %arg4[%c17, %c0_169, %c0_170] : memref<24x32x8xbf16, #tpu.memory_space<vmem>>, vector<1x32x8xbf16>
    %298 = vector.shape_cast %297 : vector<1x32x8xbf16> to vector<32x8xbf16>
    %c21 = arith.constant 21 : index
    %c0_171 = arith.constant 0 : index
    %c0_172 = arith.constant 0 : index
    %299 = vector.load %arg4[%c21, %c0_171, %c0_172] : memref<24x32x8xbf16, #tpu.memory_space<vmem>>, vector<1x32x8xbf16>
    %300 = vector.shape_cast %299 : vector<1x32x8xbf16> to vector<32x8xbf16>
    %cst_173 = arith.constant dense<0.000000e+00> : vector<5x8xf32>
    %301 = tpu.matmul %259, %296, %cst_173 {dimension_numbers = #tpu.dot_dimension_numbers<[1], [0], [0], [1], [0, 0, 1, 1], [], []>} : vector<5x32xbf16>, vector<32x8xbf16>, vector<5x8xf32> -> vector<5x8xf32>
    %c5_174 = arith.constant 5 : index
    %c0_175 = arith.constant 0 : index
    %c0_176 = arith.constant 0 : index
    %302 = vector.load %arg6[%c5_174, %c0_175, %c0_176] : memref<8x1x8xf32, #tpu.memory_space<vmem>>, vector<1x1x8xf32>
    %303 = vector.shape_cast %302 : vector<1x1x8xf32> to vector<1x8xf32>
    %304 = vector.broadcast %303 : vector<1x8xf32> to vector<5x8xf32>
    %305 = arith.addf %301, %304 : vector<5x8xf32>
    %cst_177 = arith.constant dense<0.000000e+00> : vector<5x8xf32>
    %306 = tpu.matmul %259, %298, %cst_177 {dimension_numbers = #tpu.dot_dimension_numbers<[1], [0], [0], [1], [0, 0, 1, 1], [], []>} : vector<5x32xbf16>, vector<32x8xbf16>, vector<5x8xf32> -> vector<5x8xf32>
    %cst_178 = arith.constant dense<0.000000e+00> : vector<5x8xf32>
    %307 = tpu.matmul %259, %300, %cst_178 {dimension_numbers = #tpu.dot_dimension_numbers<[1], [0], [0], [1], [0, 0, 1, 1], [], []>} : vector<5x32xbf16>, vector<32x8xbf16>, vector<5x8xf32> -> vector<5x8xf32>
    %308 = arith.truncf %305 : vector<5x8xf32> to vector<5x8xbf16>
    %309 = arith.truncf %306 : vector<5x8xf32> to vector<5x8xbf16>
    %cst_179 = arith.constant dense<0.000000e+00> : vector<5x5xf32>
    %310 = tpu.matmul %308, %309, %cst_179 {dimension_numbers = #tpu.dot_dimension_numbers<[1], [1], [0], [0], [0, 0, 1, 0], [], []>} : vector<5x8xbf16>, vector<5x8xbf16>, vector<5x5xf32> -> vector<5x5xf32>
    %cst_180 = arith.constant 0.353553385 : f32
    %311 = vector.broadcast %cst_180 : f32 to vector<5x5xf32>
    %312 = arith.mulf %310, %311 : vector<5x5xf32>
    %cst_181 = arith.constant dense<0xFF800000> : vector<5xf32>
    %313 = vector.multi_reduction <maximumf>, %312, %cst_181 [1] : vector<5x5xf32> to vector<5xf32>
    %314 = vector.shape_cast %313 : vector<5xf32> to vector<5x1xf32>
    %315 = vector.broadcast %314 : vector<5x1xf32> to vector<5x5xf32>
    %316 = arith.subf %312, %315 : vector<5x5xf32>
    %317 = math.exp %316 : vector<5x5xf32>
    %cst_182 = arith.constant dense<0.000000e+00> : vector<5xf32>
    %318 = vector.multi_reduction <add>, %317, %cst_182 [1] : vector<5x5xf32> to vector<5xf32>
    %319 = vector.shape_cast %318 : vector<5xf32> to vector<5x1xf32>
    %320 = tpu.reciprocal %319 {approx = true} : vector<5x1xf32> -> vector<5x1xf32>
    %321 = vector.broadcast %320 : vector<5x1xf32> to vector<5x5xf32>
    %322 = arith.mulf %317, %321 : vector<5x5xf32>
    %323 = arith.truncf %322 : vector<5x5xf32> to vector<5x5xbf16>
    %324 = arith.truncf %307 : vector<5x8xf32> to vector<5x8xbf16>
    %cst_183 = arith.constant dense<0.000000e+00> : vector<5x8xf32>
    %325 = tpu.matmul %323, %324, %cst_183 {dimension_numbers = #tpu.dot_dimension_numbers<[1], [0], [0], [1], [0, 0, 1, 1], [], []>} : vector<5x5xbf16>, vector<5x8xbf16>, vector<5x8xf32> -> vector<5x8xf32>
    %326 = arith.truncf %325 : vector<5x8xf32> to vector<5x8xbf16>
    %c5_184 = arith.constant 5 : index
    %c0_185 = arith.constant 0 : index
    %c0_186 = arith.constant 0 : index
    %327 = vector.load %arg5[%c5_184, %c0_185, %c0_186] : memref<8x8x32xbf16, #tpu.memory_space<vmem>>, vector<1x8x32xbf16>
    %328 = vector.shape_cast %327 : vector<1x8x32xbf16> to vector<8x32xbf16>
    %cst_187 = arith.constant dense<0.000000e+00> : vector<5x32xf32>
    %329 = tpu.matmul %326, %328, %cst_187 {dimension_numbers = #tpu.dot_dimension_numbers<[1], [0], [0], [1], [0, 0, 1, 1], [], []>} : vector<5x8xbf16>, vector<8x32xbf16>, vector<5x32xf32> -> vector<5x32xf32>
    %330 = arith.addf %294, %329 : vector<5x32xf32>
    %c14 = arith.constant 14 : index
    %c0_188 = arith.constant 0 : index
    %c0_189 = arith.constant 0 : index
    %331 = vector.load %arg4[%c14, %c0_188, %c0_189] : memref<24x32x8xbf16, #tpu.memory_space<vmem>>, vector<1x32x8xbf16>
    %332 = vector.shape_cast %331 : vector<1x32x8xbf16> to vector<32x8xbf16>
    %c18 = arith.constant 18 : index
    %c0_190 = arith.constant 0 : index
    %c0_191 = arith.constant 0 : index
    %333 = vector.load %arg4[%c18, %c0_190, %c0_191] : memref<24x32x8xbf16, #tpu.memory_space<vmem>>, vector<1x32x8xbf16>
    %334 = vector.shape_cast %333 : vector<1x32x8xbf16> to vector<32x8xbf16>
    %c22 = arith.constant 22 : index
    %c0_192 = arith.constant 0 : index
    %c0_193 = arith.constant 0 : index
    %335 = vector.load %arg4[%c22, %c0_192, %c0_193] : memref<24x32x8xbf16, #tpu.memory_space<vmem>>, vector<1x32x8xbf16>
    %336 = vector.shape_cast %335 : vector<1x32x8xbf16> to vector<32x8xbf16>
    %cst_194 = arith.constant dense<0.000000e+00> : vector<5x8xf32>
    %337 = tpu.matmul %259, %332, %cst_194 {dimension_numbers = #tpu.dot_dimension_numbers<[1], [0], [0], [1], [0, 0, 1, 1], [], []>} : vector<5x32xbf16>, vector<32x8xbf16>, vector<5x8xf32> -> vector<5x8xf32>
    %c6_195 = arith.constant 6 : index
    %c0_196 = arith.constant 0 : index
    %c0_197 = arith.constant 0 : index
    %338 = vector.load %arg6[%c6_195, %c0_196, %c0_197] : memref<8x1x8xf32, #tpu.memory_space<vmem>>, vector<1x1x8xf32>
    %339 = vector.shape_cast %338 : vector<1x1x8xf32> to vector<1x8xf32>
    %340 = vector.broadcast %339 : vector<1x8xf32> to vector<5x8xf32>
    %341 = arith.addf %337, %340 : vector<5x8xf32>
    %cst_198 = arith.constant dense<0.000000e+00> : vector<5x8xf32>
    %342 = tpu.matmul %259, %334, %cst_198 {dimension_numbers = #tpu.dot_dimension_numbers<[1], [0], [0], [1], [0, 0, 1, 1], [], []>} : vector<5x32xbf16>, vector<32x8xbf16>, vector<5x8xf32> -> vector<5x8xf32>
    %cst_199 = arith.constant dense<0.000000e+00> : vector<5x8xf32>
    %343 = tpu.matmul %259, %336, %cst_199 {dimension_numbers = #tpu.dot_dimension_numbers<[1], [0], [0], [1], [0, 0, 1, 1], [], []>} : vector<5x32xbf16>, vector<32x8xbf16>, vector<5x8xf32> -> vector<5x8xf32>
    %344 = arith.truncf %341 : vector<5x8xf32> to vector<5x8xbf16>
    %345 = arith.truncf %342 : vector<5x8xf32> to vector<5x8xbf16>
    %cst_200 = arith.constant dense<0.000000e+00> : vector<5x5xf32>
    %346 = tpu.matmul %344, %345, %cst_200 {dimension_numbers = #tpu.dot_dimension_numbers<[1], [1], [0], [0], [0, 0, 1, 0], [], []>} : vector<5x8xbf16>, vector<5x8xbf16>, vector<5x5xf32> -> vector<5x5xf32>
    %cst_201 = arith.constant 0.353553385 : f32
    %347 = vector.broadcast %cst_201 : f32 to vector<5x5xf32>
    %348 = arith.mulf %346, %347 : vector<5x5xf32>
    %cst_202 = arith.constant dense<0xFF800000> : vector<5xf32>
    %349 = vector.multi_reduction <maximumf>, %348, %cst_202 [1] : vector<5x5xf32> to vector<5xf32>
    %350 = vector.shape_cast %349 : vector<5xf32> to vector<5x1xf32>
    %351 = vector.broadcast %350 : vector<5x1xf32> to vector<5x5xf32>
    %352 = arith.subf %348, %351 : vector<5x5xf32>
    %353 = math.exp %352 : vector<5x5xf32>
    %cst_203 = arith.constant dense<0.000000e+00> : vector<5xf32>
    %354 = vector.multi_reduction <add>, %353, %cst_203 [1] : vector<5x5xf32> to vector<5xf32>
    %355 = vector.shape_cast %354 : vector<5xf32> to vector<5x1xf32>
    %356 = tpu.reciprocal %355 {approx = true} : vector<5x1xf32> -> vector<5x1xf32>
    %357 = vector.broadcast %356 : vector<5x1xf32> to vector<5x5xf32>
    %358 = arith.mulf %353, %357 : vector<5x5xf32>
    %359 = arith.truncf %358 : vector<5x5xf32> to vector<5x5xbf16>
    %360 = arith.truncf %343 : vector<5x8xf32> to vector<5x8xbf16>
    %cst_204 = arith.constant dense<0.000000e+00> : vector<5x8xf32>
    %361 = tpu.matmul %359, %360, %cst_204 {dimension_numbers = #tpu.dot_dimension_numbers<[1], [0], [0], [1], [0, 0, 1, 1], [], []>} : vector<5x5xbf16>, vector<5x8xbf16>, vector<5x8xf32> -> vector<5x8xf32>
    %362 = arith.truncf %361 : vector<5x8xf32> to vector<5x8xbf16>
    %c6_205 = arith.constant 6 : index
    %c0_206 = arith.constant 0 : index
    %c0_207 = arith.constant 0 : index
    %363 = vector.load %arg5[%c6_205, %c0_206, %c0_207] : memref<8x8x32xbf16, #tpu.memory_space<vmem>>, vector<1x8x32xbf16>
    %364 = vector.shape_cast %363 : vector<1x8x32xbf16> to vector<8x32xbf16>
    %cst_208 = arith.constant dense<0.000000e+00> : vector<5x32xf32>
    %365 = tpu.matmul %362, %364, %cst_208 {dimension_numbers = #tpu.dot_dimension_numbers<[1], [0], [0], [1], [0, 0, 1, 1], [], []>} : vector<5x8xbf16>, vector<8x32xbf16>, vector<5x32xf32> -> vector<5x32xf32>
    %366 = arith.addf %330, %365 : vector<5x32xf32>
    %c15 = arith.constant 15 : index
    %c0_209 = arith.constant 0 : index
    %c0_210 = arith.constant 0 : index
    %367 = vector.load %arg4[%c15, %c0_209, %c0_210] : memref<24x32x8xbf16, #tpu.memory_space<vmem>>, vector<1x32x8xbf16>
    %368 = vector.shape_cast %367 : vector<1x32x8xbf16> to vector<32x8xbf16>
    %c19 = arith.constant 19 : index
    %c0_211 = arith.constant 0 : index
    %c0_212 = arith.constant 0 : index
    %369 = vector.load %arg4[%c19, %c0_211, %c0_212] : memref<24x32x8xbf16, #tpu.memory_space<vmem>>, vector<1x32x8xbf16>
    %370 = vector.shape_cast %369 : vector<1x32x8xbf16> to vector<32x8xbf16>
    %c23 = arith.constant 23 : index
    %c0_213 = arith.constant 0 : index
    %c0_214 = arith.constant 0 : index
    %371 = vector.load %arg4[%c23, %c0_213, %c0_214] : memref<24x32x8xbf16, #tpu.memory_space<vmem>>, vector<1x32x8xbf16>
    %372 = vector.shape_cast %371 : vector<1x32x8xbf16> to vector<32x8xbf16>
    %cst_215 = arith.constant dense<0.000000e+00> : vector<5x8xf32>
    %373 = tpu.matmul %259, %368, %cst_215 {dimension_numbers = #tpu.dot_dimension_numbers<[1], [0], [0], [1], [0, 0, 1, 1], [], []>} : vector<5x32xbf16>, vector<32x8xbf16>, vector<5x8xf32> -> vector<5x8xf32>
    %c7_216 = arith.constant 7 : index
    %c0_217 = arith.constant 0 : index
    %c0_218 = arith.constant 0 : index
    %374 = vector.load %arg6[%c7_216, %c0_217, %c0_218] : memref<8x1x8xf32, #tpu.memory_space<vmem>>, vector<1x1x8xf32>
    %375 = vector.shape_cast %374 : vector<1x1x8xf32> to vector<1x8xf32>
    %376 = vector.broadcast %375 : vector<1x8xf32> to vector<5x8xf32>
    %377 = arith.addf %373, %376 : vector<5x8xf32>
    %cst_219 = arith.constant dense<0.000000e+00> : vector<5x8xf32>
    %378 = tpu.matmul %259, %370, %cst_219 {dimension_numbers = #tpu.dot_dimension_numbers<[1], [0], [0], [1], [0, 0, 1, 1], [], []>} : vector<5x32xbf16>, vector<32x8xbf16>, vector<5x8xf32> -> vector<5x8xf32>
    %cst_220 = arith.constant dense<0.000000e+00> : vector<5x8xf32>
    %379 = tpu.matmul %259, %372, %cst_220 {dimension_numbers = #tpu.dot_dimension_numbers<[1], [0], [0], [1], [0, 0, 1, 1], [], []>} : vector<5x32xbf16>, vector<32x8xbf16>, vector<5x8xf32> -> vector<5x8xf32>
    %380 = arith.truncf %377 : vector<5x8xf32> to vector<5x8xbf16>
    %381 = arith.truncf %378 : vector<5x8xf32> to vector<5x8xbf16>
    %cst_221 = arith.constant dense<0.000000e+00> : vector<5x5xf32>
    %382 = tpu.matmul %380, %381, %cst_221 {dimension_numbers = #tpu.dot_dimension_numbers<[1], [1], [0], [0], [0, 0, 1, 0], [], []>} : vector<5x8xbf16>, vector<5x8xbf16>, vector<5x5xf32> -> vector<5x5xf32>
    %cst_222 = arith.constant 0.353553385 : f32
    %383 = vector.broadcast %cst_222 : f32 to vector<5x5xf32>
    %384 = arith.mulf %382, %383 : vector<5x5xf32>
    %cst_223 = arith.constant dense<0xFF800000> : vector<5xf32>
    %385 = vector.multi_reduction <maximumf>, %384, %cst_223 [1] : vector<5x5xf32> to vector<5xf32>
    %386 = vector.shape_cast %385 : vector<5xf32> to vector<5x1xf32>
    %387 = vector.broadcast %386 : vector<5x1xf32> to vector<5x5xf32>
    %388 = arith.subf %384, %387 : vector<5x5xf32>
    %389 = math.exp %388 : vector<5x5xf32>
    %cst_224 = arith.constant dense<0.000000e+00> : vector<5xf32>
    %390 = vector.multi_reduction <add>, %389, %cst_224 [1] : vector<5x5xf32> to vector<5xf32>
    %391 = vector.shape_cast %390 : vector<5xf32> to vector<5x1xf32>
    %392 = tpu.reciprocal %391 {approx = true} : vector<5x1xf32> -> vector<5x1xf32>
    %393 = vector.broadcast %392 : vector<5x1xf32> to vector<5x5xf32>
    %394 = arith.mulf %389, %393 : vector<5x5xf32>
    %395 = arith.truncf %394 : vector<5x5xf32> to vector<5x5xbf16>
    %396 = arith.truncf %379 : vector<5x8xf32> to vector<5x8xbf16>
    %cst_225 = arith.constant dense<0.000000e+00> : vector<5x8xf32>
    %397 = tpu.matmul %395, %396, %cst_225 {dimension_numbers = #tpu.dot_dimension_numbers<[1], [0], [0], [1], [0, 0, 1, 1], [], []>} : vector<5x5xbf16>, vector<5x8xbf16>, vector<5x8xf32> -> vector<5x8xf32>
    %398 = arith.truncf %397 : vector<5x8xf32> to vector<5x8xbf16>
    %c7_226 = arith.constant 7 : index
    %c0_227 = arith.constant 0 : index
    %c0_228 = arith.constant 0 : index
    %399 = vector.load %arg5[%c7_226, %c0_227, %c0_228] : memref<8x8x32xbf16, #tpu.memory_space<vmem>>, vector<1x8x32xbf16>
    %400 = vector.shape_cast %399 : vector<1x8x32xbf16> to vector<8x32xbf16>
    %cst_229 = arith.constant dense<0.000000e+00> : vector<5x32xf32>
    %401 = tpu.matmul %398, %400, %cst_229 {dimension_numbers = #tpu.dot_dimension_numbers<[1], [0], [0], [1], [0, 0, 1, 1], [], []>} : vector<5x8xbf16>, vector<8x32xbf16>, vector<5x32xf32> -> vector<5x32xf32>
    %402 = arith.addf %366, %401 : vector<5x32xf32>
    %403 = arith.addf %229, %402 : vector<5x32xf32>
    %404 = vector.broadcast %232 : vector<1x32xf32> to vector<5x32xf32>
    %405 = arith.addf %403, %404 : vector<5x32xf32>
    %cst_230 = arith.constant dense<0.000000e+00> : vector<5xf32>
    %406 = vector.multi_reduction <add>, %405, %cst_230 [1] : vector<5x32xf32> to vector<5xf32>
    %407 = vector.shape_cast %406 : vector<5xf32> to vector<5x1xf32>
    %cst_231 = arith.constant 3.200000e+01 : f32
    %408 = vector.broadcast %cst_231 : f32 to vector<5x1xf32>
    %409 = arith.divf %407, %408 : vector<5x1xf32>
    %410 = vector.broadcast %409 : vector<5x1xf32> to vector<5x32xf32>
    %411 = arith.subf %405, %410 : vector<5x32xf32>
    %412 = arith.mulf %411, %411 : vector<5x32xf32>
    %cst_232 = arith.constant dense<0.000000e+00> : vector<5xf32>
    %413 = vector.multi_reduction <add>, %412, %cst_232 [1] : vector<5x32xf32> to vector<5xf32>
    %414 = vector.shape_cast %413 : vector<5xf32> to vector<5x1xf32>
    %cst_233 = arith.constant 3.200000e+01 : f32
    %415 = vector.broadcast %cst_233 : f32 to vector<5x1xf32>
    %416 = arith.divf %414, %415 : vector<5x1xf32>
    %417 = vector.broadcast %409 : vector<5x1xf32> to vector<5x32xf32>
    %418 = arith.subf %405, %417 : vector<5x32xf32>
    %cst_234 = arith.constant 9.99999996E-13 : f32
    %419 = vector.broadcast %cst_234 : f32 to vector<5x1xf32>
    %420 = arith.addf %416, %419 : vector<5x1xf32>
    %421 = math.rsqrt %420 : vector<5x1xf32>
    %422 = vector.broadcast %421 : vector<5x1xf32> to vector<5x32xf32>
    %423 = arith.mulf %418, %422 : vector<5x32xf32>
    %424 = vector.broadcast %233 : vector<1x32xf32> to vector<5x32xf32>
    %425 = arith.mulf %423, %424 : vector<5x32xf32>
    %426 = vector.broadcast %234 : vector<1x32xf32> to vector<5x32xf32>
    %427 = arith.addf %425, %426 : vector<5x32xf32>
    %428 = arith.truncf %427 : vector<5x32xf32> to vector<5x32xbf16>
    %c1_235 = arith.constant 1 : index
    %c0_236 = arith.constant 0 : index
    %c0_237 = arith.constant 0 : index
    %429 = vector.load %arg7[%c1_235, %c0_236, %c0_237] : memref<2x32x64xbf16, #tpu.memory_space<vmem>>, vector<1x32x64xbf16>
    %430 = vector.shape_cast %429 : vector<1x32x64xbf16> to vector<32x64xbf16>
    %cst_238 = arith.constant dense<0.000000e+00> : vector<5x64xf32>
    %431 = tpu.matmul %428, %430, %cst_238 {dimension_numbers = #tpu.dot_dimension_numbers<[1], [0], [0], [1], [0, 0, 1, 1], [], []>} : vector<5x32xbf16>, vector<32x64xbf16>, vector<5x64xf32> -> vector<5x64xf32>
    %432 = vector.broadcast %235 : vector<1x64xf32> to vector<5x64xf32>
    %433 = arith.addf %431, %432 : vector<5x64xf32>
    %434 = arith.mulf %433, %433 : vector<5x64xf32>
    %435 = arith.mulf %433, %434 : vector<5x64xf32>
    %cst_239 = arith.constant 4.471500e-02 : f32
    %436 = vector.broadcast %cst_239 : f32 to vector<5x64xf32>
    %437 = arith.mulf %436, %435 : vector<5x64xf32>
    %438 = arith.addf %433, %437 : vector<5x64xf32>
    %cst_240 = arith.constant 0.797884583 : f32
    %439 = vector.broadcast %cst_240 : f32 to vector<5x64xf32>
    %440 = arith.mulf %439, %438 : vector<5x64xf32>
    %441 = math.tanh %440 : vector<5x64xf32>
    %cst_241 = arith.constant 1.000000e+00 : f32
    %442 = vector.broadcast %cst_241 : f32 to vector<5x64xf32>
    %443 = arith.addf %442, %441 : vector<5x64xf32>
    %cst_242 = arith.constant 5.000000e-01 : f32
    %444 = vector.broadcast %cst_242 : f32 to vector<5x64xf32>
    %445 = arith.mulf %444, %443 : vector<5x64xf32>
    %446 = arith.mulf %433, %445 : vector<5x64xf32>
    %447 = arith.truncf %446 : vector<5x64xf32> to vector<5x64xbf16>
    %c1_243 = arith.constant 1 : index
    %c0_244 = arith.constant 0 : index
    %c0_245 = arith.constant 0 : index
    %448 = vector.load %arg8[%c1_243, %c0_244, %c0_245] : memref<2x64x32xbf16, #tpu.memory_space<vmem>>, vector<1x64x32xbf16>
    %449 = vector.shape_cast %448 : vector<1x64x32xbf16> to vector<64x32xbf16>
    %cst_246 = arith.constant dense<0.000000e+00> : vector<5x32xf32>
    %450 = tpu.matmul %447, %449, %cst_246 {dimension_numbers = #tpu.dot_dimension_numbers<[1], [0], [0], [1], [0, 0, 1, 1], [], []>} : vector<5x64xbf16>, vector<64x32xbf16>, vector<5x32xf32> -> vector<5x32xf32>
    %451 = arith.addf %405, %450 : vector<5x32xf32>
    %452 = vector.broadcast %236 : vector<1x32xf32> to vector<5x32xf32>
    %453 = arith.addf %451, %452 : vector<5x32xf32>
    %c14_247 = arith.constant 14 : index
    %c0_248 = arith.constant 0 : index
    %454 = vector.load %arg3[%c14_247, %c0_248] : memref<17x128xf32, #tpu.memory_space<vmem>>, vector<1x32xf32>
    %c15_249 = arith.constant 15 : index
    %c0_250 = arith.constant 0 : index
    %455 = vector.load %arg3[%c15_249, %c0_250] : memref<17x128xf32, #tpu.memory_space<vmem>>, vector<1x32xf32>
    %cst_251 = arith.constant dense<0.000000e+00> : vector<5xf32>
    %456 = vector.multi_reduction <add>, %453, %cst_251 [1] : vector<5x32xf32> to vector<5xf32>
    %457 = vector.shape_cast %456 : vector<5xf32> to vector<5x1xf32>
    %cst_252 = arith.constant 3.200000e+01 : f32
    %458 = vector.broadcast %cst_252 : f32 to vector<5x1xf32>
    %459 = arith.divf %457, %458 : vector<5x1xf32>
    %460 = vector.broadcast %459 : vector<5x1xf32> to vector<5x32xf32>
    %461 = arith.subf %453, %460 : vector<5x32xf32>
    %462 = arith.mulf %461, %461 : vector<5x32xf32>
    %cst_253 = arith.constant dense<0.000000e+00> : vector<5xf32>
    %463 = vector.multi_reduction <add>, %462, %cst_253 [1] : vector<5x32xf32> to vector<5xf32>
    %464 = vector.shape_cast %463 : vector<5xf32> to vector<5x1xf32>
    %cst_254 = arith.constant 3.200000e+01 : f32
    %465 = vector.broadcast %cst_254 : f32 to vector<5x1xf32>
    %466 = arith.divf %464, %465 : vector<5x1xf32>
    %467 = vector.broadcast %459 : vector<5x1xf32> to vector<5x32xf32>
    %468 = arith.subf %453, %467 : vector<5x32xf32>
    %cst_255 = arith.constant 9.99999996E-13 : f32
    %469 = vector.broadcast %cst_255 : f32 to vector<5x1xf32>
    %470 = arith.addf %466, %469 : vector<5x1xf32>
    %471 = math.rsqrt %470 : vector<5x1xf32>
    %472 = vector.broadcast %471 : vector<5x1xf32> to vector<5x32xf32>
    %473 = arith.mulf %468, %472 : vector<5x32xf32>
    %474 = vector.broadcast %454 : vector<1x32xf32> to vector<5x32xf32>
    %475 = arith.mulf %473, %474 : vector<5x32xf32>
    %476 = vector.broadcast %455 : vector<1x32xf32> to vector<5x32xf32>
    %477 = arith.addf %475, %476 : vector<5x32xf32>
    %478 = vector.extract_strided_slice %477 {offsets = [0, 0], sizes = [1, 32], strides = [1, 1]} : vector<5x32xf32> to vector<1x32xf32>
    %479 = arith.truncf %478 : vector<1x32xf32> to vector<1x32xbf16>
    %c0_256 = arith.constant 0 : index
    %c0_257 = arith.constant 0 : index
    %480 = vector.load %arg10[%c0_256, %c0_257] : memref<32x32xbf16, #tpu.memory_space<vmem>>, vector<32x32xbf16>
    %cst_258 = arith.constant dense<0.000000e+00> : vector<1x32xf32>
    %481 = tpu.matmul %479, %480, %cst_258 {dimension_numbers = #tpu.dot_dimension_numbers<[1], [0], [0], [1], [0, 0, 1, 1], [], []>} : vector<1x32xbf16>, vector<32x32xbf16>, vector<1x32xf32> -> vector<1x32xf32>
    %c16_259 = arith.constant 16 : index
    %c0_260 = arith.constant 0 : index
    %482 = vector.load %arg3[%c16_259, %c0_260] : memref<17x128xf32, #tpu.memory_space<vmem>>, vector<1x32xf32>
    %483 = arith.addf %481, %482 : vector<1x32xf32>
    %484 = math.tanh %483 : vector<1x32xf32>
    %c1_261 = arith.constant 1 : index
    %c0_262 = arith.constant 0 : index
    %c0_263 = arith.constant 0 : index
    %485 = vector.load %arg1[%c1_261, %c0_262, %c0_263] : memref<2x5x192xbf16, #tpu.memory_space<vmem>>, vector<1x5x192xbf16>
    %486 = vector.shape_cast %485 : vector<1x5x192xbf16> to vector<5x192xbf16>
    %cst_264 = arith.constant dense<0.000000e+00> : vector<5x32xf32>
    %487 = tpu.matmul %486, %1, %cst_264 {dimension_numbers = #tpu.dot_dimension_numbers<[1], [0], [0], [1], [0, 0, 1, 1], [], []>} : vector<5x192xbf16>, vector<192x32xbf16>, vector<5x32xf32> -> vector<5x32xf32>
    %488 = arith.addf %487, %0 : vector<5x32xf32>
    %c0_265 = arith.constant 0 : index
    %c0_266 = arith.constant 0 : index
    %489 = vector.load %arg3[%c0_265, %c0_266] : memref<17x128xf32, #tpu.memory_space<vmem>>, vector<1x32xf32>
    %c1_267 = arith.constant 1 : index
    %c0_268 = arith.constant 0 : index
    %490 = vector.load %arg3[%c1_267, %c0_268] : memref<17x128xf32, #tpu.memory_space<vmem>>, vector<1x32xf32>
    %c2_269 = arith.constant 2 : index
    %c0_270 = arith.constant 0 : index
    %491 = vector.load %arg3[%c2_269, %c0_270] : memref<17x128xf32, #tpu.memory_space<vmem>>, vector<1x32xf32>
    %c3_271 = arith.constant 3 : index
    %c0_272 = arith.constant 0 : index
    %492 = vector.load %arg3[%c3_271, %c0_272] : memref<17x128xf32, #tpu.memory_space<vmem>>, vector<1x32xf32>
    %c4_273 = arith.constant 4 : index
    %c0_274 = arith.constant 0 : index
    %493 = vector.load %arg3[%c4_273, %c0_274] : memref<17x128xf32, #tpu.memory_space<vmem>>, vector<1x32xf32>
    %c5_275 = arith.constant 5 : index
    %c0_276 = arith.constant 0 : index
    %494 = vector.load %arg3[%c5_275, %c0_276] : memref<17x128xf32, #tpu.memory_space<vmem>>, vector<1x64xf32>
    %c6_277 = arith.constant 6 : index
    %c0_278 = arith.constant 0 : index
    %495 = vector.load %arg3[%c6_277, %c0_278] : memref<17x128xf32, #tpu.memory_space<vmem>>, vector<1x32xf32>
    %cst_279 = arith.constant dense<0.000000e+00> : vector<5xf32>
    %496 = vector.multi_reduction <add>, %488, %cst_279 [1] : vector<5x32xf32> to vector<5xf32>
    %497 = vector.shape_cast %496 : vector<5xf32> to vector<5x1xf32>
    %cst_280 = arith.constant 3.200000e+01 : f32
    %498 = vector.broadcast %cst_280 : f32 to vector<5x1xf32>
    %499 = arith.divf %497, %498 : vector<5x1xf32>
    %500 = vector.broadcast %499 : vector<5x1xf32> to vector<5x32xf32>
    %501 = arith.subf %488, %500 : vector<5x32xf32>
    %502 = arith.mulf %501, %501 : vector<5x32xf32>
    %cst_281 = arith.constant dense<0.000000e+00> : vector<5xf32>
    %503 = vector.multi_reduction <add>, %502, %cst_281 [1] : vector<5x32xf32> to vector<5xf32>
    %504 = vector.shape_cast %503 : vector<5xf32> to vector<5x1xf32>
    %cst_282 = arith.constant 3.200000e+01 : f32
    %505 = vector.broadcast %cst_282 : f32 to vector<5x1xf32>
    %506 = arith.divf %504, %505 : vector<5x1xf32>
    %507 = vector.broadcast %499 : vector<5x1xf32> to vector<5x32xf32>
    %508 = arith.subf %488, %507 : vector<5x32xf32>
    %cst_283 = arith.constant 9.99999996E-13 : f32
    %509 = vector.broadcast %cst_283 : f32 to vector<5x1xf32>
    %510 = arith.addf %506, %509 : vector<5x1xf32>
    %511 = math.rsqrt %510 : vector<5x1xf32>
    %512 = vector.broadcast %511 : vector<5x1xf32> to vector<5x32xf32>
    %513 = arith.mulf %508, %512 : vector<5x32xf32>
    %514 = vector.broadcast %489 : vector<1x32xf32> to vector<5x32xf32>
    %515 = arith.mulf %513, %514 : vector<5x32xf32>
    %516 = vector.broadcast %490 : vector<1x32xf32> to vector<5x32xf32>
    %517 = arith.addf %515, %516 : vector<5x32xf32>
    %518 = arith.truncf %517 : vector<5x32xf32> to vector<5x32xbf16>
    %c0_284 = arith.constant 0 : index
    %c0_285 = arith.constant 0 : index
    %c0_286 = arith.constant 0 : index
    %519 = vector.load %arg4[%c0_284, %c0_285, %c0_286] : memref<24x32x8xbf16, #tpu.memory_space<vmem>>, vector<1x32x8xbf16>
    %520 = vector.shape_cast %519 : vector<1x32x8xbf16> to vector<32x8xbf16>
    %c4_287 = arith.constant 4 : index
    %c0_288 = arith.constant 0 : index
    %c0_289 = arith.constant 0 : index
    %521 = vector.load %arg4[%c4_287, %c0_288, %c0_289] : memref<24x32x8xbf16, #tpu.memory_space<vmem>>, vector<1x32x8xbf16>
    %522 = vector.shape_cast %521 : vector<1x32x8xbf16> to vector<32x8xbf16>
    %c8_290 = arith.constant 8 : index
    %c0_291 = arith.constant 0 : index
    %c0_292 = arith.constant 0 : index
    %523 = vector.load %arg4[%c8_290, %c0_291, %c0_292] : memref<24x32x8xbf16, #tpu.memory_space<vmem>>, vector<1x32x8xbf16>
    %524 = vector.shape_cast %523 : vector<1x32x8xbf16> to vector<32x8xbf16>
    %cst_293 = arith.constant dense<0.000000e+00> : vector<5x8xf32>
    %525 = tpu.matmul %518, %520, %cst_293 {dimension_numbers = #tpu.dot_dimension_numbers<[1], [0], [0], [1], [0, 0, 1, 1], [], []>} : vector<5x32xbf16>, vector<32x8xbf16>, vector<5x8xf32> -> vector<5x8xf32>
    %c0_294 = arith.constant 0 : index
    %c0_295 = arith.constant 0 : index
    %c0_296 = arith.constant 0 : index
    %526 = vector.load %arg6[%c0_294, %c0_295, %c0_296] : memref<8x1x8xf32, #tpu.memory_space<vmem>>, vector<1x1x8xf32>
    %527 = vector.shape_cast %526 : vector<1x1x8xf32> to vector<1x8xf32>
    %528 = vector.broadcast %527 : vector<1x8xf32> to vector<5x8xf32>
    %529 = arith.addf %525, %528 : vector<5x8xf32>
    %cst_297 = arith.constant dense<0.000000e+00> : vector<5x8xf32>
    %530 = tpu.matmul %518, %522, %cst_297 {dimension_numbers = #tpu.dot_dimension_numbers<[1], [0], [0], [1], [0, 0, 1, 1], [], []>} : vector<5x32xbf16>, vector<32x8xbf16>, vector<5x8xf32> -> vector<5x8xf32>
    %cst_298 = arith.constant dense<0.000000e+00> : vector<5x8xf32>
    %531 = tpu.matmul %518, %524, %cst_298 {dimension_numbers = #tpu.dot_dimension_numbers<[1], [0], [0], [1], [0, 0, 1, 1], [], []>} : vector<5x32xbf16>, vector<32x8xbf16>, vector<5x8xf32> -> vector<5x8xf32>
    %532 = arith.truncf %529 : vector<5x8xf32> to vector<5x8xbf16>
    %533 = arith.truncf %530 : vector<5x8xf32> to vector<5x8xbf16>
    %cst_299 = arith.constant dense<0.000000e+00> : vector<5x5xf32>
    %534 = tpu.matmul %532, %533, %cst_299 {dimension_numbers = #tpu.dot_dimension_numbers<[1], [1], [0], [0], [0, 0, 1, 0], [], []>} : vector<5x8xbf16>, vector<5x8xbf16>, vector<5x5xf32> -> vector<5x5xf32>
    %cst_300 = arith.constant 0.353553385 : f32
    %535 = vector.broadcast %cst_300 : f32 to vector<5x5xf32>
    %536 = arith.mulf %534, %535 : vector<5x5xf32>
    %cst_301 = arith.constant dense<0xFF800000> : vector<5xf32>
    %537 = vector.multi_reduction <maximumf>, %536, %cst_301 [1] : vector<5x5xf32> to vector<5xf32>
    %538 = vector.shape_cast %537 : vector<5xf32> to vector<5x1xf32>
    %539 = vector.broadcast %538 : vector<5x1xf32> to vector<5x5xf32>
    %540 = arith.subf %536, %539 : vector<5x5xf32>
    %541 = math.exp %540 : vector<5x5xf32>
    %cst_302 = arith.constant dense<0.000000e+00> : vector<5xf32>
    %542 = vector.multi_reduction <add>, %541, %cst_302 [1] : vector<5x5xf32> to vector<5xf32>
    %543 = vector.shape_cast %542 : vector<5xf32> to vector<5x1xf32>
    %544 = tpu.reciprocal %543 {approx = true} : vector<5x1xf32> -> vector<5x1xf32>
    %545 = vector.broadcast %544 : vector<5x1xf32> to vector<5x5xf32>
    %546 = arith.mulf %541, %545 : vector<5x5xf32>
    %547 = arith.truncf %546 : vector<5x5xf32> to vector<5x5xbf16>
    %548 = arith.truncf %531 : vector<5x8xf32> to vector<5x8xbf16>
    %cst_303 = arith.constant dense<0.000000e+00> : vector<5x8xf32>
    %549 = tpu.matmul %547, %548, %cst_303 {dimension_numbers = #tpu.dot_dimension_numbers<[1], [0], [0], [1], [0, 0, 1, 1], [], []>} : vector<5x5xbf16>, vector<5x8xbf16>, vector<5x8xf32> -> vector<5x8xf32>
    %550 = arith.truncf %549 : vector<5x8xf32> to vector<5x8xbf16>
    %c0_304 = arith.constant 0 : index
    %c0_305 = arith.constant 0 : index
    %c0_306 = arith.constant 0 : index
    %551 = vector.load %arg5[%c0_304, %c0_305, %c0_306] : memref<8x8x32xbf16, #tpu.memory_space<vmem>>, vector<1x8x32xbf16>
    %552 = vector.shape_cast %551 : vector<1x8x32xbf16> to vector<8x32xbf16>
    %cst_307 = arith.constant dense<0.000000e+00> : vector<5x32xf32>
    %553 = tpu.matmul %550, %552, %cst_307 {dimension_numbers = #tpu.dot_dimension_numbers<[1], [0], [0], [1], [0, 0, 1, 1], [], []>} : vector<5x8xbf16>, vector<8x32xbf16>, vector<5x32xf32> -> vector<5x32xf32>
    %c1_308 = arith.constant 1 : index
    %c0_309 = arith.constant 0 : index
    %c0_310 = arith.constant 0 : index
    %554 = vector.load %arg4[%c1_308, %c0_309, %c0_310] : memref<24x32x8xbf16, #tpu.memory_space<vmem>>, vector<1x32x8xbf16>
    %555 = vector.shape_cast %554 : vector<1x32x8xbf16> to vector<32x8xbf16>
    %c5_311 = arith.constant 5 : index
    %c0_312 = arith.constant 0 : index
    %c0_313 = arith.constant 0 : index
    %556 = vector.load %arg4[%c5_311, %c0_312, %c0_313] : memref<24x32x8xbf16, #tpu.memory_space<vmem>>, vector<1x32x8xbf16>
    %557 = vector.shape_cast %556 : vector<1x32x8xbf16> to vector<32x8xbf16>
    %c9_314 = arith.constant 9 : index
    %c0_315 = arith.constant 0 : index
    %c0_316 = arith.constant 0 : index
    %558 = vector.load %arg4[%c9_314, %c0_315, %c0_316] : memref<24x32x8xbf16, #tpu.memory_space<vmem>>, vector<1x32x8xbf16>
    %559 = vector.shape_cast %558 : vector<1x32x8xbf16> to vector<32x8xbf16>
    %cst_317 = arith.constant dense<0.000000e+00> : vector<5x8xf32>
    %560 = tpu.matmul %518, %555, %cst_317 {dimension_numbers = #tpu.dot_dimension_numbers<[1], [0], [0], [1], [0, 0, 1, 1], [], []>} : vector<5x32xbf16>, vector<32x8xbf16>, vector<5x8xf32> -> vector<5x8xf32>
    %c1_318 = arith.constant 1 : index
    %c0_319 = arith.constant 0 : index
    %c0_320 = arith.constant 0 : index
    %561 = vector.load %arg6[%c1_318, %c0_319, %c0_320] : memref<8x1x8xf32, #tpu.memory_space<vmem>>, vector<1x1x8xf32>
    %562 = vector.shape_cast %561 : vector<1x1x8xf32> to vector<1x8xf32>
    %563 = vector.broadcast %562 : vector<1x8xf32> to vector<5x8xf32>
    %564 = arith.addf %560, %563 : vector<5x8xf32>
    %cst_321 = arith.constant dense<0.000000e+00> : vector<5x8xf32>
    %565 = tpu.matmul %518, %557, %cst_321 {dimension_numbers = #tpu.dot_dimension_numbers<[1], [0], [0], [1], [0, 0, 1, 1], [], []>} : vector<5x32xbf16>, vector<32x8xbf16>, vector<5x8xf32> -> vector<5x8xf32>
    %cst_322 = arith.constant dense<0.000000e+00> : vector<5x8xf32>
    %566 = tpu.matmul %518, %559, %cst_322 {dimension_numbers = #tpu.dot_dimension_numbers<[1], [0], [0], [1], [0, 0, 1, 1], [], []>} : vector<5x32xbf16>, vector<32x8xbf16>, vector<5x8xf32> -> vector<5x8xf32>
    %567 = arith.truncf %564 : vector<5x8xf32> to vector<5x8xbf16>
    %568 = arith.truncf %565 : vector<5x8xf32> to vector<5x8xbf16>
    %cst_323 = arith.constant dense<0.000000e+00> : vector<5x5xf32>
    %569 = tpu.matmul %567, %568, %cst_323 {dimension_numbers = #tpu.dot_dimension_numbers<[1], [1], [0], [0], [0, 0, 1, 0], [], []>} : vector<5x8xbf16>, vector<5x8xbf16>, vector<5x5xf32> -> vector<5x5xf32>
    %cst_324 = arith.constant 0.353553385 : f32
    %570 = vector.broadcast %cst_324 : f32 to vector<5x5xf32>
    %571 = arith.mulf %569, %570 : vector<5x5xf32>
    %cst_325 = arith.constant dense<0xFF800000> : vector<5xf32>
    %572 = vector.multi_reduction <maximumf>, %571, %cst_325 [1] : vector<5x5xf32> to vector<5xf32>
    %573 = vector.shape_cast %572 : vector<5xf32> to vector<5x1xf32>
    %574 = vector.broadcast %573 : vector<5x1xf32> to vector<5x5xf32>
    %575 = arith.subf %571, %574 : vector<5x5xf32>
    %576 = math.exp %575 : vector<5x5xf32>
    %cst_326 = arith.constant dense<0.000000e+00> : vector<5xf32>
    %577 = vector.multi_reduction <add>, %576, %cst_326 [1] : vector<5x5xf32> to vector<5xf32>
    %578 = vector.shape_cast %577 : vector<5xf32> to vector<5x1xf32>
    %579 = tpu.reciprocal %578 {approx = true} : vector<5x1xf32> -> vector<5x1xf32>
    %580 = vector.broadcast %579 : vector<5x1xf32> to vector<5x5xf32>
    %581 = arith.mulf %576, %580 : vector<5x5xf32>
    %582 = arith.truncf %581 : vector<5x5xf32> to vector<5x5xbf16>
    %583 = arith.truncf %566 : vector<5x8xf32> to vector<5x8xbf16>
    %cst_327 = arith.constant dense<0.000000e+00> : vector<5x8xf32>
    %584 = tpu.matmul %582, %583, %cst_327 {dimension_numbers = #tpu.dot_dimension_numbers<[1], [0], [0], [1], [0, 0, 1, 1], [], []>} : vector<5x5xbf16>, vector<5x8xbf16>, vector<5x8xf32> -> vector<5x8xf32>
    %585 = arith.truncf %584 : vector<5x8xf32> to vector<5x8xbf16>
    %c1_328 = arith.constant 1 : index
    %c0_329 = arith.constant 0 : index
    %c0_330 = arith.constant 0 : index
    %586 = vector.load %arg5[%c1_328, %c0_329, %c0_330] : memref<8x8x32xbf16, #tpu.memory_space<vmem>>, vector<1x8x32xbf16>
    %587 = vector.shape_cast %586 : vector<1x8x32xbf16> to vector<8x32xbf16>
    %cst_331 = arith.constant dense<0.000000e+00> : vector<5x32xf32>
    %588 = tpu.matmul %585, %587, %cst_331 {dimension_numbers = #tpu.dot_dimension_numbers<[1], [0], [0], [1], [0, 0, 1, 1], [], []>} : vector<5x8xbf16>, vector<8x32xbf16>, vector<5x32xf32> -> vector<5x32xf32>
    %589 = arith.addf %553, %588 : vector<5x32xf32>
    %c2_332 = arith.constant 2 : index
    %c0_333 = arith.constant 0 : index
    %c0_334 = arith.constant 0 : index
    %590 = vector.load %arg4[%c2_332, %c0_333, %c0_334] : memref<24x32x8xbf16, #tpu.memory_space<vmem>>, vector<1x32x8xbf16>
    %591 = vector.shape_cast %590 : vector<1x32x8xbf16> to vector<32x8xbf16>
    %c6_335 = arith.constant 6 : index
    %c0_336 = arith.constant 0 : index
    %c0_337 = arith.constant 0 : index
    %592 = vector.load %arg4[%c6_335, %c0_336, %c0_337] : memref<24x32x8xbf16, #tpu.memory_space<vmem>>, vector<1x32x8xbf16>
    %593 = vector.shape_cast %592 : vector<1x32x8xbf16> to vector<32x8xbf16>
    %c10_338 = arith.constant 10 : index
    %c0_339 = arith.constant 0 : index
    %c0_340 = arith.constant 0 : index
    %594 = vector.load %arg4[%c10_338, %c0_339, %c0_340] : memref<24x32x8xbf16, #tpu.memory_space<vmem>>, vector<1x32x8xbf16>
    %595 = vector.shape_cast %594 : vector<1x32x8xbf16> to vector<32x8xbf16>
    %cst_341 = arith.constant dense<0.000000e+00> : vector<5x8xf32>
    %596 = tpu.matmul %518, %591, %cst_341 {dimension_numbers = #tpu.dot_dimension_numbers<[1], [0], [0], [1], [0, 0, 1, 1], [], []>} : vector<5x32xbf16>, vector<32x8xbf16>, vector<5x8xf32> -> vector<5x8xf32>
    %c2_342 = arith.constant 2 : index
    %c0_343 = arith.constant 0 : index
    %c0_344 = arith.constant 0 : index
    %597 = vector.load %arg6[%c2_342, %c0_343, %c0_344] : memref<8x1x8xf32, #tpu.memory_space<vmem>>, vector<1x1x8xf32>
    %598 = vector.shape_cast %597 : vector<1x1x8xf32> to vector<1x8xf32>
    %599 = vector.broadcast %598 : vector<1x8xf32> to vector<5x8xf32>
    %600 = arith.addf %596, %599 : vector<5x8xf32>
    %cst_345 = arith.constant dense<0.000000e+00> : vector<5x8xf32>
    %601 = tpu.matmul %518, %593, %cst_345 {dimension_numbers = #tpu.dot_dimension_numbers<[1], [0], [0], [1], [0, 0, 1, 1], [], []>} : vector<5x32xbf16>, vector<32x8xbf16>, vector<5x8xf32> -> vector<5x8xf32>
    %cst_346 = arith.constant dense<0.000000e+00> : vector<5x8xf32>
    %602 = tpu.matmul %518, %595, %cst_346 {dimension_numbers = #tpu.dot_dimension_numbers<[1], [0], [0], [1], [0, 0, 1, 1], [], []>} : vector<5x32xbf16>, vector<32x8xbf16>, vector<5x8xf32> -> vector<5x8xf32>
    %603 = arith.truncf %600 : vector<5x8xf32> to vector<5x8xbf16>
    %604 = arith.truncf %601 : vector<5x8xf32> to vector<5x8xbf16>
    %cst_347 = arith.constant dense<0.000000e+00> : vector<5x5xf32>
    %605 = tpu.matmul %603, %604, %cst_347 {dimension_numbers = #tpu.dot_dimension_numbers<[1], [1], [0], [0], [0, 0, 1, 0], [], []>} : vector<5x8xbf16>, vector<5x8xbf16>, vector<5x5xf32> -> vector<5x5xf32>
    %cst_348 = arith.constant 0.353553385 : f32
    %606 = vector.broadcast %cst_348 : f32 to vector<5x5xf32>
    %607 = arith.mulf %605, %606 : vector<5x5xf32>
    %cst_349 = arith.constant dense<0xFF800000> : vector<5xf32>
    %608 = vector.multi_reduction <maximumf>, %607, %cst_349 [1] : vector<5x5xf32> to vector<5xf32>
    %609 = vector.shape_cast %608 : vector<5xf32> to vector<5x1xf32>
    %610 = vector.broadcast %609 : vector<5x1xf32> to vector<5x5xf32>
    %611 = arith.subf %607, %610 : vector<5x5xf32>
    %612 = math.exp %611 : vector<5x5xf32>
    %cst_350 = arith.constant dense<0.000000e+00> : vector<5xf32>
    %613 = vector.multi_reduction <add>, %612, %cst_350 [1] : vector<5x5xf32> to vector<5xf32>
    %614 = vector.shape_cast %613 : vector<5xf32> to vector<5x1xf32>
    %615 = tpu.reciprocal %614 {approx = true} : vector<5x1xf32> -> vector<5x1xf32>
    %616 = vector.broadcast %615 : vector<5x1xf32> to vector<5x5xf32>
    %617 = arith.mulf %612, %616 : vector<5x5xf32>
    %618 = arith.truncf %617 : vector<5x5xf32> to vector<5x5xbf16>
    %619 = arith.truncf %602 : vector<5x8xf32> to vector<5x8xbf16>
    %cst_351 = arith.constant dense<0.000000e+00> : vector<5x8xf32>
    %620 = tpu.matmul %618, %619, %cst_351 {dimension_numbers = #tpu.dot_dimension_numbers<[1], [0], [0], [1], [0, 0, 1, 1], [], []>} : vector<5x5xbf16>, vector<5x8xbf16>, vector<5x8xf32> -> vector<5x8xf32>
    %621 = arith.truncf %620 : vector<5x8xf32> to vector<5x8xbf16>
    %c2_352 = arith.constant 2 : index
    %c0_353 = arith.constant 0 : index
    %c0_354 = arith.constant 0 : index
    %622 = vector.load %arg5[%c2_352, %c0_353, %c0_354] : memref<8x8x32xbf16, #tpu.memory_space<vmem>>, vector<1x8x32xbf16>
    %623 = vector.shape_cast %622 : vector<1x8x32xbf16> to vector<8x32xbf16>
    %cst_355 = arith.constant dense<0.000000e+00> : vector<5x32xf32>
    %624 = tpu.matmul %621, %623, %cst_355 {dimension_numbers = #tpu.dot_dimension_numbers<[1], [0], [0], [1], [0, 0, 1, 1], [], []>} : vector<5x8xbf16>, vector<8x32xbf16>, vector<5x32xf32> -> vector<5x32xf32>
    %625 = arith.addf %589, %624 : vector<5x32xf32>
    %c3_356 = arith.constant 3 : index
    %c0_357 = arith.constant 0 : index
    %c0_358 = arith.constant 0 : index
    %626 = vector.load %arg4[%c3_356, %c0_357, %c0_358] : memref<24x32x8xbf16, #tpu.memory_space<vmem>>, vector<1x32x8xbf16>
    %627 = vector.shape_cast %626 : vector<1x32x8xbf16> to vector<32x8xbf16>
    %c7_359 = arith.constant 7 : index
    %c0_360 = arith.constant 0 : index
    %c0_361 = arith.constant 0 : index
    %628 = vector.load %arg4[%c7_359, %c0_360, %c0_361] : memref<24x32x8xbf16, #tpu.memory_space<vmem>>, vector<1x32x8xbf16>
    %629 = vector.shape_cast %628 : vector<1x32x8xbf16> to vector<32x8xbf16>
    %c11_362 = arith.constant 11 : index
    %c0_363 = arith.constant 0 : index
    %c0_364 = arith.constant 0 : index
    %630 = vector.load %arg4[%c11_362, %c0_363, %c0_364] : memref<24x32x8xbf16, #tpu.memory_space<vmem>>, vector<1x32x8xbf16>
    %631 = vector.shape_cast %630 : vector<1x32x8xbf16> to vector<32x8xbf16>
    %cst_365 = arith.constant dense<0.000000e+00> : vector<5x8xf32>
    %632 = tpu.matmul %518, %627, %cst_365 {dimension_numbers = #tpu.dot_dimension_numbers<[1], [0], [0], [1], [0, 0, 1, 1], [], []>} : vector<5x32xbf16>, vector<32x8xbf16>, vector<5x8xf32> -> vector<5x8xf32>
    %c3_366 = arith.constant 3 : index
    %c0_367 = arith.constant 0 : index
    %c0_368 = arith.constant 0 : index
    %633 = vector.load %arg6[%c3_366, %c0_367, %c0_368] : memref<8x1x8xf32, #tpu.memory_space<vmem>>, vector<1x1x8xf32>
    %634 = vector.shape_cast %633 : vector<1x1x8xf32> to vector<1x8xf32>
    %635 = vector.broadcast %634 : vector<1x8xf32> to vector<5x8xf32>
    %636 = arith.addf %632, %635 : vector<5x8xf32>
    %cst_369 = arith.constant dense<0.000000e+00> : vector<5x8xf32>
    %637 = tpu.matmul %518, %629, %cst_369 {dimension_numbers = #tpu.dot_dimension_numbers<[1], [0], [0], [1], [0, 0, 1, 1], [], []>} : vector<5x32xbf16>, vector<32x8xbf16>, vector<5x8xf32> -> vector<5x8xf32>
    %cst_370 = arith.constant dense<0.000000e+00> : vector<5x8xf32>
    %638 = tpu.matmul %518, %631, %cst_370 {dimension_numbers = #tpu.dot_dimension_numbers<[1], [0], [0], [1], [0, 0, 1, 1], [], []>} : vector<5x32xbf16>, vector<32x8xbf16>, vector<5x8xf32> -> vector<5x8xf32>
    %639 = arith.truncf %636 : vector<5x8xf32> to vector<5x8xbf16>
    %640 = arith.truncf %637 : vector<5x8xf32> to vector<5x8xbf16>
    %cst_371 = arith.constant dense<0.000000e+00> : vector<5x5xf32>
    %641 = tpu.matmul %639, %640, %cst_371 {dimension_numbers = #tpu.dot_dimension_numbers<[1], [1], [0], [0], [0, 0, 1, 0], [], []>} : vector<5x8xbf16>, vector<5x8xbf16>, vector<5x5xf32> -> vector<5x5xf32>
    %cst_372 = arith.constant 0.353553385 : f32
    %642 = vector.broadcast %cst_372 : f32 to vector<5x5xf32>
    %643 = arith.mulf %641, %642 : vector<5x5xf32>
    %cst_373 = arith.constant dense<0xFF800000> : vector<5xf32>
    %644 = vector.multi_reduction <maximumf>, %643, %cst_373 [1] : vector<5x5xf32> to vector<5xf32>
    %645 = vector.shape_cast %644 : vector<5xf32> to vector<5x1xf32>
    %646 = vector.broadcast %645 : vector<5x1xf32> to vector<5x5xf32>
    %647 = arith.subf %643, %646 : vector<5x5xf32>
    %648 = math.exp %647 : vector<5x5xf32>
    %cst_374 = arith.constant dense<0.000000e+00> : vector<5xf32>
    %649 = vector.multi_reduction <add>, %648, %cst_374 [1] : vector<5x5xf32> to vector<5xf32>
    %650 = vector.shape_cast %649 : vector<5xf32> to vector<5x1xf32>
    %651 = tpu.reciprocal %650 {approx = true} : vector<5x1xf32> -> vector<5x1xf32>
    %652 = vector.broadcast %651 : vector<5x1xf32> to vector<5x5xf32>
    %653 = arith.mulf %648, %652 : vector<5x5xf32>
    %654 = arith.truncf %653 : vector<5x5xf32> to vector<5x5xbf16>
    %655 = arith.truncf %638 : vector<5x8xf32> to vector<5x8xbf16>
    %cst_375 = arith.constant dense<0.000000e+00> : vector<5x8xf32>
    %656 = tpu.matmul %654, %655, %cst_375 {dimension_numbers = #tpu.dot_dimension_numbers<[1], [0], [0], [1], [0, 0, 1, 1], [], []>} : vector<5x5xbf16>, vector<5x8xbf16>, vector<5x8xf32> -> vector<5x8xf32>
    %657 = arith.truncf %656 : vector<5x8xf32> to vector<5x8xbf16>
    %c3_376 = arith.constant 3 : index
    %c0_377 = arith.constant 0 : index
    %c0_378 = arith.constant 0 : index
    %658 = vector.load %arg5[%c3_376, %c0_377, %c0_378] : memref<8x8x32xbf16, #tpu.memory_space<vmem>>, vector<1x8x32xbf16>
    %659 = vector.shape_cast %658 : vector<1x8x32xbf16> to vector<8x32xbf16>
    %cst_379 = arith.constant dense<0.000000e+00> : vector<5x32xf32>
    %660 = tpu.matmul %657, %659, %cst_379 {dimension_numbers = #tpu.dot_dimension_numbers<[1], [0], [0], [1], [0, 0, 1, 1], [], []>} : vector<5x8xbf16>, vector<8x32xbf16>, vector<5x32xf32> -> vector<5x32xf32>
    %661 = arith.addf %625, %660 : vector<5x32xf32>
    %662 = arith.addf %488, %661 : vector<5x32xf32>
    %663 = vector.broadcast %491 : vector<1x32xf32> to vector<5x32xf32>
    %664 = arith.addf %662, %663 : vector<5x32xf32>
    %cst_380 = arith.constant dense<0.000000e+00> : vector<5xf32>
    %665 = vector.multi_reduction <add>, %664, %cst_380 [1] : vector<5x32xf32> to vector<5xf32>
    %666 = vector.shape_cast %665 : vector<5xf32> to vector<5x1xf32>
    %cst_381 = arith.constant 3.200000e+01 : f32
    %667 = vector.broadcast %cst_381 : f32 to vector<5x1xf32>
    %668 = arith.divf %666, %667 : vector<5x1xf32>
    %669 = vector.broadcast %668 : vector<5x1xf32> to vector<5x32xf32>
    %670 = arith.subf %664, %669 : vector<5x32xf32>
    %671 = arith.mulf %670, %670 : vector<5x32xf32>
    %cst_382 = arith.constant dense<0.000000e+00> : vector<5xf32>
    %672 = vector.multi_reduction <add>, %671, %cst_382 [1] : vector<5x32xf32> to vector<5xf32>
    %673 = vector.shape_cast %672 : vector<5xf32> to vector<5x1xf32>
    %cst_383 = arith.constant 3.200000e+01 : f32
    %674 = vector.broadcast %cst_383 : f32 to vector<5x1xf32>
    %675 = arith.divf %673, %674 : vector<5x1xf32>
    %676 = vector.broadcast %668 : vector<5x1xf32> to vector<5x32xf32>
    %677 = arith.subf %664, %676 : vector<5x32xf32>
    %cst_384 = arith.constant 9.99999996E-13 : f32
    %678 = vector.broadcast %cst_384 : f32 to vector<5x1xf32>
    %679 = arith.addf %675, %678 : vector<5x1xf32>
    %680 = math.rsqrt %679 : vector<5x1xf32>
    %681 = vector.broadcast %680 : vector<5x1xf32> to vector<5x32xf32>
    %682 = arith.mulf %677, %681 : vector<5x32xf32>
    %683 = vector.broadcast %492 : vector<1x32xf32> to vector<5x32xf32>
    %684 = arith.mulf %682, %683 : vector<5x32xf32>
    %685 = vector.broadcast %493 : vector<1x32xf32> to vector<5x32xf32>
    %686 = arith.addf %684, %685 : vector<5x32xf32>
    %687 = arith.truncf %686 : vector<5x32xf32> to vector<5x32xbf16>
    %c0_385 = arith.constant 0 : index
    %c0_386 = arith.constant 0 : index
    %c0_387 = arith.constant 0 : index
    %688 = vector.load %arg7[%c0_385, %c0_386, %c0_387] : memref<2x32x64xbf16, #tpu.memory_space<vmem>>, vector<1x32x64xbf16>
    %689 = vector.shape_cast %688 : vector<1x32x64xbf16> to vector<32x64xbf16>
    %cst_388 = arith.constant dense<0.000000e+00> : vector<5x64xf32>
    %690 = tpu.matmul %687, %689, %cst_388 {dimension_numbers = #tpu.dot_dimension_numbers<[1], [0], [0], [1], [0, 0, 1, 1], [], []>} : vector<5x32xbf16>, vector<32x64xbf16>, vector<5x64xf32> -> vector<5x64xf32>
    %691 = vector.broadcast %494 : vector<1x64xf32> to vector<5x64xf32>
    %692 = arith.addf %690, %691 : vector<5x64xf32>
    %693 = arith.mulf %692, %692 : vector<5x64xf32>
    %694 = arith.mulf %692, %693 : vector<5x64xf32>
    %cst_389 = arith.constant 4.471500e-02 : f32
    %695 = vector.broadcast %cst_389 : f32 to vector<5x64xf32>
    %696 = arith.mulf %695, %694 : vector<5x64xf32>
    %697 = arith.addf %692, %696 : vector<5x64xf32>
    %cst_390 = arith.constant 0.797884583 : f32
    %698 = vector.broadcast %cst_390 : f32 to vector<5x64xf32>
    %699 = arith.mulf %698, %697 : vector<5x64xf32>
    %700 = math.tanh %699 : vector<5x64xf32>
    %cst_391 = arith.constant 1.000000e+00 : f32
    %701 = vector.broadcast %cst_391 : f32 to vector<5x64xf32>
    %702 = arith.addf %701, %700 : vector<5x64xf32>
    %cst_392 = arith.constant 5.000000e-01 : f32
    %703 = vector.broadcast %cst_392 : f32 to vector<5x64xf32>
    %704 = arith.mulf %703, %702 : vector<5x64xf32>
    %705 = arith.mulf %692, %704 : vector<5x64xf32>
    %706 = arith.truncf %705 : vector<5x64xf32> to vector<5x64xbf16>
    %c0_393 = arith.constant 0 : index
    %c0_394 = arith.constant 0 : index
    %c0_395 = arith.constant 0 : index
    %707 = vector.load %arg8[%c0_393, %c0_394, %c0_395] : memref<2x64x32xbf16, #tpu.memory_space<vmem>>, vector<1x64x32xbf16>
    %708 = vector.shape_cast %707 : vector<1x64x32xbf16> to vector<64x32xbf16>
    %cst_396 = arith.constant dense<0.000000e+00> : vector<5x32xf32>
    %709 = tpu.matmul %706, %708, %cst_396 {dimension_numbers = #tpu.dot_dimension_numbers<[1], [0], [0], [1], [0, 0, 1, 1], [], []>} : vector<5x64xbf16>, vector<64x32xbf16>, vector<5x32xf32> -> vector<5x32xf32>
    %710 = arith.addf %664, %709 : vector<5x32xf32>
    %711 = vector.broadcast %495 : vector<1x32xf32> to vector<5x32xf32>
    %712 = arith.addf %710, %711 : vector<5x32xf32>
    %c7_397 = arith.constant 7 : index
    %c0_398 = arith.constant 0 : index
    %713 = vector.load %arg3[%c7_397, %c0_398] : memref<17x128xf32, #tpu.memory_space<vmem>>, vector<1x32xf32>
    %c8_399 = arith.constant 8 : index
    %c0_400 = arith.constant 0 : index
    %714 = vector.load %arg3[%c8_399, %c0_400] : memref<17x128xf32, #tpu.memory_space<vmem>>, vector<1x32xf32>
    %c9_401 = arith.constant 9 : index
    %c0_402 = arith.constant 0 : index
    %715 = vector.load %arg3[%c9_401, %c0_402] : memref<17x128xf32, #tpu.memory_space<vmem>>, vector<1x32xf32>
    %c10_403 = arith.constant 10 : index
    %c0_404 = arith.constant 0 : index
    %716 = vector.load %arg3[%c10_403, %c0_404] : memref<17x128xf32, #tpu.memory_space<vmem>>, vector<1x32xf32>
    %c11_405 = arith.constant 11 : index
    %c0_406 = arith.constant 0 : index
    %717 = vector.load %arg3[%c11_405, %c0_406] : memref<17x128xf32, #tpu.memory_space<vmem>>, vector<1x32xf32>
    %c12_407 = arith.constant 12 : index
    %c0_408 = arith.constant 0 : index
    %718 = vector.load %arg3[%c12_407, %c0_408] : memref<17x128xf32, #tpu.memory_space<vmem>>, vector<1x64xf32>
    %c13_409 = arith.constant 13 : index
    %c0_410 = arith.constant 0 : index
    %719 = vector.load %arg3[%c13_409, %c0_410] : memref<17x128xf32, #tpu.memory_space<vmem>>, vector<1x32xf32>
    %cst_411 = arith.constant dense<0.000000e+00> : vector<5xf32>
    %720 = vector.multi_reduction <add>, %712, %cst_411 [1] : vector<5x32xf32> to vector<5xf32>
    %721 = vector.shape_cast %720 : vector<5xf32> to vector<5x1xf32>
    %cst_412 = arith.constant 3.200000e+01 : f32
    %722 = vector.broadcast %cst_412 : f32 to vector<5x1xf32>
    %723 = arith.divf %721, %722 : vector<5x1xf32>
    %724 = vector.broadcast %723 : vector<5x1xf32> to vector<5x32xf32>
    %725 = arith.subf %712, %724 : vector<5x32xf32>
    %726 = arith.mulf %725, %725 : vector<5x32xf32>
    %cst_413 = arith.constant dense<0.000000e+00> : vector<5xf32>
    %727 = vector.multi_reduction <add>, %726, %cst_413 [1] : vector<5x32xf32> to vector<5xf32>
    %728 = vector.shape_cast %727 : vector<5xf32> to vector<5x1xf32>
    %cst_414 = arith.constant 3.200000e+01 : f32
    %729 = vector.broadcast %cst_414 : f32 to vector<5x1xf32>
    %730 = arith.divf %728, %729 : vector<5x1xf32>
    %731 = vector.broadcast %723 : vector<5x1xf32> to vector<5x32xf32>
    %732 = arith.subf %712, %731 : vector<5x32xf32>
    %cst_415 = arith.constant 9.99999996E-13 : f32
    %733 = vector.broadcast %cst_415 : f32 to vector<5x1xf32>
    %734 = arith.addf %730, %733 : vector<5x1xf32>
    %735 = math.rsqrt %734 : vector<5x1xf32>
    %736 = vector.broadcast %735 : vector<5x1xf32> to vector<5x32xf32>
    %737 = arith.mulf %732, %736 : vector<5x32xf32>
    %738 = vector.broadcast %713 : vector<1x32xf32> to vector<5x32xf32>
    %739 = arith.mulf %737, %738 : vector<5x32xf32>
    %740 = vector.broadcast %714 : vector<1x32xf32> to vector<5x32xf32>
    %741 = arith.addf %739, %740 : vector<5x32xf32>
    %742 = arith.truncf %741 : vector<5x32xf32> to vector<5x32xbf16>
    %c12_416 = arith.constant 12 : index
    %c0_417 = arith.constant 0 : index
    %c0_418 = arith.constant 0 : index
    %743 = vector.load %arg4[%c12_416, %c0_417, %c0_418] : memref<24x32x8xbf16, #tpu.memory_space<vmem>>, vector<1x32x8xbf16>
    %744 = vector.shape_cast %743 : vector<1x32x8xbf16> to vector<32x8xbf16>
    %c16_419 = arith.constant 16 : index
    %c0_420 = arith.constant 0 : index
    %c0_421 = arith.constant 0 : index
    %745 = vector.load %arg4[%c16_419, %c0_420, %c0_421] : memref<24x32x8xbf16, #tpu.memory_space<vmem>>, vector<1x32x8xbf16>
    %746 = vector.shape_cast %745 : vector<1x32x8xbf16> to vector<32x8xbf16>
    %c20_422 = arith.constant 20 : index
    %c0_423 = arith.constant 0 : index
    %c0_424 = arith.constant 0 : index
    %747 = vector.load %arg4[%c20_422, %c0_423, %c0_424] : memref<24x32x8xbf16, #tpu.memory_space<vmem>>, vector<1x32x8xbf16>
    %748 = vector.shape_cast %747 : vector<1x32x8xbf16> to vector<32x8xbf16>
    %cst_425 = arith.constant dense<0.000000e+00> : vector<5x8xf32>
    %749 = tpu.matmul %742, %744, %cst_425 {dimension_numbers = #tpu.dot_dimension_numbers<[1], [0], [0], [1], [0, 0, 1, 1], [], []>} : vector<5x32xbf16>, vector<32x8xbf16>, vector<5x8xf32> -> vector<5x8xf32>
    %c4_426 = arith.constant 4 : index
    %c0_427 = arith.constant 0 : index
    %c0_428 = arith.constant 0 : index
    %750 = vector.load %arg6[%c4_426, %c0_427, %c0_428] : memref<8x1x8xf32, #tpu.memory_space<vmem>>, vector<1x1x8xf32>
    %751 = vector.shape_cast %750 : vector<1x1x8xf32> to vector<1x8xf32>
    %752 = vector.broadcast %751 : vector<1x8xf32> to vector<5x8xf32>
    %753 = arith.addf %749, %752 : vector<5x8xf32>
    %cst_429 = arith.constant dense<0.000000e+00> : vector<5x8xf32>
    %754 = tpu.matmul %742, %746, %cst_429 {dimension_numbers = #tpu.dot_dimension_numbers<[1], [0], [0], [1], [0, 0, 1, 1], [], []>} : vector<5x32xbf16>, vector<32x8xbf16>, vector<5x8xf32> -> vector<5x8xf32>
    %cst_430 = arith.constant dense<0.000000e+00> : vector<5x8xf32>
    %755 = tpu.matmul %742, %748, %cst_430 {dimension_numbers = #tpu.dot_dimension_numbers<[1], [0], [0], [1], [0, 0, 1, 1], [], []>} : vector<5x32xbf16>, vector<32x8xbf16>, vector<5x8xf32> -> vector<5x8xf32>
    %756 = arith.truncf %753 : vector<5x8xf32> to vector<5x8xbf16>
    %757 = arith.truncf %754 : vector<5x8xf32> to vector<5x8xbf16>
    %cst_431 = arith.constant dense<0.000000e+00> : vector<5x5xf32>
    %758 = tpu.matmul %756, %757, %cst_431 {dimension_numbers = #tpu.dot_dimension_numbers<[1], [1], [0], [0], [0, 0, 1, 0], [], []>} : vector<5x8xbf16>, vector<5x8xbf16>, vector<5x5xf32> -> vector<5x5xf32>
    %cst_432 = arith.constant 0.353553385 : f32
    %759 = vector.broadcast %cst_432 : f32 to vector<5x5xf32>
    %760 = arith.mulf %758, %759 : vector<5x5xf32>
    %cst_433 = arith.constant dense<0xFF800000> : vector<5xf32>
    %761 = vector.multi_reduction <maximumf>, %760, %cst_433 [1] : vector<5x5xf32> to vector<5xf32>
    %762 = vector.shape_cast %761 : vector<5xf32> to vector<5x1xf32>
    %763 = vector.broadcast %762 : vector<5x1xf32> to vector<5x5xf32>
    %764 = arith.subf %760, %763 : vector<5x5xf32>
    %765 = math.exp %764 : vector<5x5xf32>
    %cst_434 = arith.constant dense<0.000000e+00> : vector<5xf32>
    %766 = vector.multi_reduction <add>, %765, %cst_434 [1] : vector<5x5xf32> to vector<5xf32>
    %767 = vector.shape_cast %766 : vector<5xf32> to vector<5x1xf32>
    %768 = tpu.reciprocal %767 {approx = true} : vector<5x1xf32> -> vector<5x1xf32>
    %769 = vector.broadcast %768 : vector<5x1xf32> to vector<5x5xf32>
    %770 = arith.mulf %765, %769 : vector<5x5xf32>
    %771 = arith.truncf %770 : vector<5x5xf32> to vector<5x5xbf16>
    %772 = arith.truncf %755 : vector<5x8xf32> to vector<5x8xbf16>
    %cst_435 = arith.constant dense<0.000000e+00> : vector<5x8xf32>
    %773 = tpu.matmul %771, %772, %cst_435 {dimension_numbers = #tpu.dot_dimension_numbers<[1], [0], [0], [1], [0, 0, 1, 1], [], []>} : vector<5x5xbf16>, vector<5x8xbf16>, vector<5x8xf32> -> vector<5x8xf32>
    %774 = arith.truncf %773 : vector<5x8xf32> to vector<5x8xbf16>
    %c4_436 = arith.constant 4 : index
    %c0_437 = arith.constant 0 : index
    %c0_438 = arith.constant 0 : index
    %775 = vector.load %arg5[%c4_436, %c0_437, %c0_438] : memref<8x8x32xbf16, #tpu.memory_space<vmem>>, vector<1x8x32xbf16>
    %776 = vector.shape_cast %775 : vector<1x8x32xbf16> to vector<8x32xbf16>
    %cst_439 = arith.constant dense<0.000000e+00> : vector<5x32xf32>
    %777 = tpu.matmul %774, %776, %cst_439 {dimension_numbers = #tpu.dot_dimension_numbers<[1], [0], [0], [1], [0, 0, 1, 1], [], []>} : vector<5x8xbf16>, vector<8x32xbf16>, vector<5x32xf32> -> vector<5x32xf32>
    %c13_440 = arith.constant 13 : index
    %c0_441 = arith.constant 0 : index
    %c0_442 = arith.constant 0 : index
    %778 = vector.load %arg4[%c13_440, %c0_441, %c0_442] : memref<24x32x8xbf16, #tpu.memory_space<vmem>>, vector<1x32x8xbf16>
    %779 = vector.shape_cast %778 : vector<1x32x8xbf16> to vector<32x8xbf16>
    %c17_443 = arith.constant 17 : index
    %c0_444 = arith.constant 0 : index
    %c0_445 = arith.constant 0 : index
    %780 = vector.load %arg4[%c17_443, %c0_444, %c0_445] : memref<24x32x8xbf16, #tpu.memory_space<vmem>>, vector<1x32x8xbf16>
    %781 = vector.shape_cast %780 : vector<1x32x8xbf16> to vector<32x8xbf16>
    %c21_446 = arith.constant 21 : index
    %c0_447 = arith.constant 0 : index
    %c0_448 = arith.constant 0 : index
    %782 = vector.load %arg4[%c21_446, %c0_447, %c0_448] : memref<24x32x8xbf16, #tpu.memory_space<vmem>>, vector<1x32x8xbf16>
    %783 = vector.shape_cast %782 : vector<1x32x8xbf16> to vector<32x8xbf16>
    %cst_449 = arith.constant dense<0.000000e+00> : vector<5x8xf32>
    %784 = tpu.matmul %742, %779, %cst_449 {dimension_numbers = #tpu.dot_dimension_numbers<[1], [0], [0], [1], [0, 0, 1, 1], [], []>} : vector<5x32xbf16>, vector<32x8xbf16>, vector<5x8xf32> -> vector<5x8xf32>
    %c5_450 = arith.constant 5 : index
    %c0_451 = arith.constant 0 : index
    %c0_452 = arith.constant 0 : index
    %785 = vector.load %arg6[%c5_450, %c0_451, %c0_452] : memref<8x1x8xf32, #tpu.memory_space<vmem>>, vector<1x1x8xf32>
    %786 = vector.shape_cast %785 : vector<1x1x8xf32> to vector<1x8xf32>
    %787 = vector.broadcast %786 : vector<1x8xf32> to vector<5x8xf32>
    %788 = arith.addf %784, %787 : vector<5x8xf32>
    %cst_453 = arith.constant dense<0.000000e+00> : vector<5x8xf32>
    %789 = tpu.matmul %742, %781, %cst_453 {dimension_numbers = #tpu.dot_dimension_numbers<[1], [0], [0], [1], [0, 0, 1, 1], [], []>} : vector<5x32xbf16>, vector<32x8xbf16>, vector<5x8xf32> -> vector<5x8xf32>
    %cst_454 = arith.constant dense<0.000000e+00> : vector<5x8xf32>
    %790 = tpu.matmul %742, %783, %cst_454 {dimension_numbers = #tpu.dot_dimension_numbers<[1], [0], [0], [1], [0, 0, 1, 1], [], []>} : vector<5x32xbf16>, vector<32x8xbf16>, vector<5x8xf32> -> vector<5x8xf32>
    %791 = arith.truncf %788 : vector<5x8xf32> to vector<5x8xbf16>
    %792 = arith.truncf %789 : vector<5x8xf32> to vector<5x8xbf16>
    %cst_455 = arith.constant dense<0.000000e+00> : vector<5x5xf32>
    %793 = tpu.matmul %791, %792, %cst_455 {dimension_numbers = #tpu.dot_dimension_numbers<[1], [1], [0], [0], [0, 0, 1, 0], [], []>} : vector<5x8xbf16>, vector<5x8xbf16>, vector<5x5xf32> -> vector<5x5xf32>
    %cst_456 = arith.constant 0.353553385 : f32
    %794 = vector.broadcast %cst_456 : f32 to vector<5x5xf32>
    %795 = arith.mulf %793, %794 : vector<5x5xf32>
    %cst_457 = arith.constant dense<0xFF800000> : vector<5xf32>
    %796 = vector.multi_reduction <maximumf>, %795, %cst_457 [1] : vector<5x5xf32> to vector<5xf32>
    %797 = vector.shape_cast %796 : vector<5xf32> to vector<5x1xf32>
    %798 = vector.broadcast %797 : vector<5x1xf32> to vector<5x5xf32>
    %799 = arith.subf %795, %798 : vector<5x5xf32>
    %800 = math.exp %799 : vector<5x5xf32>
    %cst_458 = arith.constant dense<0.000000e+00> : vector<5xf32>
    %801 = vector.multi_reduction <add>, %800, %cst_458 [1] : vector<5x5xf32> to vector<5xf32>
    %802 = vector.shape_cast %801 : vector<5xf32> to vector<5x1xf32>
    %803 = tpu.reciprocal %802 {approx = true} : vector<5x1xf32> -> vector<5x1xf32>
    %804 = vector.broadcast %803 : vector<5x1xf32> to vector<5x5xf32>
    %805 = arith.mulf %800, %804 : vector<5x5xf32>
    %806 = arith.truncf %805 : vector<5x5xf32> to vector<5x5xbf16>
    %807 = arith.truncf %790 : vector<5x8xf32> to vector<5x8xbf16>
    %cst_459 = arith.constant dense<0.000000e+00> : vector<5x8xf32>
    %808 = tpu.matmul %806, %807, %cst_459 {dimension_numbers = #tpu.dot_dimension_numbers<[1], [0], [0], [1], [0, 0, 1, 1], [], []>} : vector<5x5xbf16>, vector<5x8xbf16>, vector<5x8xf32> -> vector<5x8xf32>
    %809 = arith.truncf %808 : vector<5x8xf32> to vector<5x8xbf16>
    %c5_460 = arith.constant 5 : index
    %c0_461 = arith.constant 0 : index
    %c0_462 = arith.constant 0 : index
    %810 = vector.load %arg5[%c5_460, %c0_461, %c0_462] : memref<8x8x32xbf16, #tpu.memory_space<vmem>>, vector<1x8x32xbf16>
    %811 = vector.shape_cast %810 : vector<1x8x32xbf16> to vector<8x32xbf16>
    %cst_463 = arith.constant dense<0.000000e+00> : vector<5x32xf32>
    %812 = tpu.matmul %809, %811, %cst_463 {dimension_numbers = #tpu.dot_dimension_numbers<[1], [0], [0], [1], [0, 0, 1, 1], [], []>} : vector<5x8xbf16>, vector<8x32xbf16>, vector<5x32xf32> -> vector<5x32xf32>
    %813 = arith.addf %777, %812 : vector<5x32xf32>
    %c14_464 = arith.constant 14 : index
    %c0_465 = arith.constant 0 : index
    %c0_466 = arith.constant 0 : index
    %814 = vector.load %arg4[%c14_464, %c0_465, %c0_466] : memref<24x32x8xbf16, #tpu.memory_space<vmem>>, vector<1x32x8xbf16>
    %815 = vector.shape_cast %814 : vector<1x32x8xbf16> to vector<32x8xbf16>
    %c18_467 = arith.constant 18 : index
    %c0_468 = arith.constant 0 : index
    %c0_469 = arith.constant 0 : index
    %816 = vector.load %arg4[%c18_467, %c0_468, %c0_469] : memref<24x32x8xbf16, #tpu.memory_space<vmem>>, vector<1x32x8xbf16>
    %817 = vector.shape_cast %816 : vector<1x32x8xbf16> to vector<32x8xbf16>
    %c22_470 = arith.constant 22 : index
    %c0_471 = arith.constant 0 : index
    %c0_472 = arith.constant 0 : index
    %818 = vector.load %arg4[%c22_470, %c0_471, %c0_472] : memref<24x32x8xbf16, #tpu.memory_space<vmem>>, vector<1x32x8xbf16>
    %819 = vector.shape_cast %818 : vector<1x32x8xbf16> to vector<32x8xbf16>
    %cst_473 = arith.constant dense<0.000000e+00> : vector<5x8xf32>
    %820 = tpu.matmul %742, %815, %cst_473 {dimension_numbers = #tpu.dot_dimension_numbers<[1], [0], [0], [1], [0, 0, 1, 1], [], []>} : vector<5x32xbf16>, vector<32x8xbf16>, vector<5x8xf32> -> vector<5x8xf32>
    %c6_474 = arith.constant 6 : index
    %c0_475 = arith.constant 0 : index
    %c0_476 = arith.constant 0 : index
    %821 = vector.load %arg6[%c6_474, %c0_475, %c0_476] : memref<8x1x8xf32, #tpu.memory_space<vmem>>, vector<1x1x8xf32>
    %822 = vector.shape_cast %821 : vector<1x1x8xf32> to vector<1x8xf32>
    %823 = vector.broadcast %822 : vector<1x8xf32> to vector<5x8xf32>
    %824 = arith.addf %820, %823 : vector<5x8xf32>
    %cst_477 = arith.constant dense<0.000000e+00> : vector<5x8xf32>
    %825 = tpu.matmul %742, %817, %cst_477 {dimension_numbers = #tpu.dot_dimension_numbers<[1], [0], [0], [1], [0, 0, 1, 1], [], []>} : vector<5x32xbf16>, vector<32x8xbf16>, vector<5x8xf32> -> vector<5x8xf32>
    %cst_478 = arith.constant dense<0.000000e+00> : vector<5x8xf32>
    %826 = tpu.matmul %742, %819, %cst_478 {dimension_numbers = #tpu.dot_dimension_numbers<[1], [0], [0], [1], [0, 0, 1, 1], [], []>} : vector<5x32xbf16>, vector<32x8xbf16>, vector<5x8xf32> -> vector<5x8xf32>
    %827 = arith.truncf %824 : vector<5x8xf32> to vector<5x8xbf16>
    %828 = arith.truncf %825 : vector<5x8xf32> to vector<5x8xbf16>
    %cst_479 = arith.constant dense<0.000000e+00> : vector<5x5xf32>
    %829 = tpu.matmul %827, %828, %cst_479 {dimension_numbers = #tpu.dot_dimension_numbers<[1], [1], [0], [0], [0, 0, 1, 0], [], []>} : vector<5x8xbf16>, vector<5x8xbf16>, vector<5x5xf32> -> vector<5x5xf32>
    %cst_480 = arith.constant 0.353553385 : f32
    %830 = vector.broadcast %cst_480 : f32 to vector<5x5xf32>
    %831 = arith.mulf %829, %830 : vector<5x5xf32>
    %cst_481 = arith.constant dense<0xFF800000> : vector<5xf32>
    %832 = vector.multi_reduction <maximumf>, %831, %cst_481 [1] : vector<5x5xf32> to vector<5xf32>
    %833 = vector.shape_cast %832 : vector<5xf32> to vector<5x1xf32>
    %834 = vector.broadcast %833 : vector<5x1xf32> to vector<5x5xf32>
    %835 = arith.subf %831, %834 : vector<5x5xf32>
    %836 = math.exp %835 : vector<5x5xf32>
    %cst_482 = arith.constant dense<0.000000e+00> : vector<5xf32>
    %837 = vector.multi_reduction <add>, %836, %cst_482 [1] : vector<5x5xf32> to vector<5xf32>
    %838 = vector.shape_cast %837 : vector<5xf32> to vector<5x1xf32>
    %839 = tpu.reciprocal %838 {approx = true} : vector<5x1xf32> -> vector<5x1xf32>
    %840 = vector.broadcast %839 : vector<5x1xf32> to vector<5x5xf32>
    %841 = arith.mulf %836, %840 : vector<5x5xf32>
    %842 = arith.truncf %841 : vector<5x5xf32> to vector<5x5xbf16>
    %843 = arith.truncf %826 : vector<5x8xf32> to vector<5x8xbf16>
    %cst_483 = arith.constant dense<0.000000e+00> : vector<5x8xf32>
    %844 = tpu.matmul %842, %843, %cst_483 {dimension_numbers = #tpu.dot_dimension_numbers<[1], [0], [0], [1], [0, 0, 1, 1], [], []>} : vector<5x5xbf16>, vector<5x8xbf16>, vector<5x8xf32> -> vector<5x8xf32>
    %845 = arith.truncf %844 : vector<5x8xf32> to vector<5x8xbf16>
    %c6_484 = arith.constant 6 : index
    %c0_485 = arith.constant 0 : index
    %c0_486 = arith.constant 0 : index
    %846 = vector.load %arg5[%c6_484, %c0_485, %c0_486] : memref<8x8x32xbf16, #tpu.memory_space<vmem>>, vector<1x8x32xbf16>
    %847 = vector.shape_cast %846 : vector<1x8x32xbf16> to vector<8x32xbf16>
    %cst_487 = arith.constant dense<0.000000e+00> : vector<5x32xf32>
    %848 = tpu.matmul %845, %847, %cst_487 {dimension_numbers = #tpu.dot_dimension_numbers<[1], [0], [0], [1], [0, 0, 1, 1], [], []>} : vector<5x8xbf16>, vector<8x32xbf16>, vector<5x32xf32> -> vector<5x32xf32>
    %849 = arith.addf %813, %848 : vector<5x32xf32>
    %c15_488 = arith.constant 15 : index
    %c0_489 = arith.constant 0 : index
    %c0_490 = arith.constant 0 : index
    %850 = vector.load %arg4[%c15_488, %c0_489, %c0_490] : memref<24x32x8xbf16, #tpu.memory_space<vmem>>, vector<1x32x8xbf16>
    %851 = vector.shape_cast %850 : vector<1x32x8xbf16> to vector<32x8xbf16>
    %c19_491 = arith.constant 19 : index
    %c0_492 = arith.constant 0 : index
    %c0_493 = arith.constant 0 : index
    %852 = vector.load %arg4[%c19_491, %c0_492, %c0_493] : memref<24x32x8xbf16, #tpu.memory_space<vmem>>, vector<1x32x8xbf16>
    %853 = vector.shape_cast %852 : vector<1x32x8xbf16> to vector<32x8xbf16>
    %c23_494 = arith.constant 23 : index
    %c0_495 = arith.constant 0 : index
    %c0_496 = arith.constant 0 : index
    %854 = vector.load %arg4[%c23_494, %c0_495, %c0_496] : memref<24x32x8xbf16, #tpu.memory_space<vmem>>, vector<1x32x8xbf16>
    %855 = vector.shape_cast %854 : vector<1x32x8xbf16> to vector<32x8xbf16>
    %cst_497 = arith.constant dense<0.000000e+00> : vector<5x8xf32>
    %856 = tpu.matmul %742, %851, %cst_497 {dimension_numbers = #tpu.dot_dimension_numbers<[1], [0], [0], [1], [0, 0, 1, 1], [], []>} : vector<5x32xbf16>, vector<32x8xbf16>, vector<5x8xf32> -> vector<5x8xf32>
    %c7_498 = arith.constant 7 : index
    %c0_499 = arith.constant 0 : index
    %c0_500 = arith.constant 0 : index
    %857 = vector.load %arg6[%c7_498, %c0_499, %c0_500] : memref<8x1x8xf32, #tpu.memory_space<vmem>>, vector<1x1x8xf32>
    %858 = vector.shape_cast %857 : vector<1x1x8xf32> to vector<1x8xf32>
    %859 = vector.broadcast %858 : vector<1x8xf32> to vector<5x8xf32>
    %860 = arith.addf %856, %859 : vector<5x8xf32>
    %cst_501 = arith.constant dense<0.000000e+00> : vector<5x8xf32>
    %861 = tpu.matmul %742, %853, %cst_501 {dimension_numbers = #tpu.dot_dimension_numbers<[1], [0], [0], [1], [0, 0, 1, 1], [], []>} : vector<5x32xbf16>, vector<32x8xbf16>, vector<5x8xf32> -> vector<5x8xf32>
    %cst_502 = arith.constant dense<0.000000e+00> : vector<5x8xf32>
    %862 = tpu.matmul %742, %855, %cst_502 {dimension_numbers = #tpu.dot_dimension_numbers<[1], [0], [0], [1], [0, 0, 1, 1], [], []>} : vector<5x32xbf16>, vector<32x8xbf16>, vector<5x8xf32> -> vector<5x8xf32>
    %863 = arith.truncf %860 : vector<5x8xf32> to vector<5x8xbf16>
    %864 = arith.truncf %861 : vector<5x8xf32> to vector<5x8xbf16>
    %cst_503 = arith.constant dense<0.000000e+00> : vector<5x5xf32>
    %865 = tpu.matmul %863, %864, %cst_503 {dimension_numbers = #tpu.dot_dimension_numbers<[1], [1], [0], [0], [0, 0, 1, 0], [], []>} : vector<5x8xbf16>, vector<5x8xbf16>, vector<5x5xf32> -> vector<5x5xf32>
    %cst_504 = arith.constant 0.353553385 : f32
    %866 = vector.broadcast %cst_504 : f32 to vector<5x5xf32>
    %867 = arith.mulf %865, %866 : vector<5x5xf32>
    %cst_505 = arith.constant dense<0xFF800000> : vector<5xf32>
    %868 = vector.multi_reduction <maximumf>, %867, %cst_505 [1] : vector<5x5xf32> to vector<5xf32>
    %869 = vector.shape_cast %868 : vector<5xf32> to vector<5x1xf32>
    %870 = vector.broadcast %869 : vector<5x1xf32> to vector<5x5xf32>
    %871 = arith.subf %867, %870 : vector<5x5xf32>
    %872 = math.exp %871 : vector<5x5xf32>
    %cst_506 = arith.constant dense<0.000000e+00> : vector<5xf32>
    %873 = vector.multi_reduction <add>, %872, %cst_506 [1] : vector<5x5xf32> to vector<5xf32>
    %874 = vector.shape_cast %873 : vector<5xf32> to vector<5x1xf32>
    %875 = tpu.reciprocal %874 {approx = true} : vector<5x1xf32> -> vector<5x1xf32>
    %876 = vector.broadcast %875 : vector<5x1xf32> to vector<5x5xf32>
    %877 = arith.mulf %872, %876 : vector<5x5xf32>
    %878 = arith.truncf %877 : vector<5x5xf32> to vector<5x5xbf16>
    %879 = arith.truncf %862 : vector<5x8xf32> to vector<5x8xbf16>
    %cst_507 = arith.constant dense<0.000000e+00> : vector<5x8xf32>
    %880 = tpu.matmul %878, %879, %cst_507 {dimension_numbers = #tpu.dot_dimension_numbers<[1], [0], [0], [1], [0, 0, 1, 1], [], []>} : vector<5x5xbf16>, vector<5x8xbf16>, vector<5x8xf32> -> vector<5x8xf32>
    %881 = arith.truncf %880 : vector<5x8xf32> to vector<5x8xbf16>
    %c7_508 = arith.constant 7 : index
    %c0_509 = arith.constant 0 : index
    %c0_510 = arith.constant 0 : index
    %882 = vector.load %arg5[%c7_508, %c0_509, %c0_510] : memref<8x8x32xbf16, #tpu.memory_space<vmem>>, vector<1x8x32xbf16>
    %883 = vector.shape_cast %882 : vector<1x8x32xbf16> to vector<8x32xbf16>
    %cst_511 = arith.constant dense<0.000000e+00> : vector<5x32xf32>
    %884 = tpu.matmul %881, %883, %cst_511 {dimension_numbers = #tpu.dot_dimension_numbers<[1], [0], [0], [1], [0, 0, 1, 1], [], []>} : vector<5x8xbf16>, vector<8x32xbf16>, vector<5x32xf32> -> vector<5x32xf32>
    %885 = arith.addf %849, %884 : vector<5x32xf32>
    %886 = arith.addf %712, %885 : vector<5x32xf32>
    %887 = vector.broadcast %715 : vector<1x32xf32> to vector<5x32xf32>
    %888 = arith.addf %886, %887 : vector<5x32xf32>
    %cst_512 = arith.constant dense<0.000000e+00> : vector<5xf32>
    %889 = vector.multi_reduction <add>, %888, %cst_512 [1] : vector<5x32xf32> to vector<5xf32>
    %890 = vector.shape_cast %889 : vector<5xf32> to vector<5x1xf32>
    %cst_513 = arith.constant 3.200000e+01 : f32
    %891 = vector.broadcast %cst_513 : f32 to vector<5x1xf32>
    %892 = arith.divf %890, %891 : vector<5x1xf32>
    %893 = vector.broadcast %892 : vector<5x1xf32> to vector<5x32xf32>
    %894 = arith.subf %888, %893 : vector<5x32xf32>
    %895 = arith.mulf %894, %894 : vector<5x32xf32>
    %cst_514 = arith.constant dense<0.000000e+00> : vector<5xf32>
    %896 = vector.multi_reduction <add>, %895, %cst_514 [1] : vector<5x32xf32> to vector<5xf32>
    %897 = vector.shape_cast %896 : vector<5xf32> to vector<5x1xf32>
    %cst_515 = arith.constant 3.200000e+01 : f32
    %898 = vector.broadcast %cst_515 : f32 to vector<5x1xf32>
    %899 = arith.divf %897, %898 : vector<5x1xf32>
    %900 = vector.broadcast %892 : vector<5x1xf32> to vector<5x32xf32>
    %901 = arith.subf %888, %900 : vector<5x32xf32>
    %cst_516 = arith.constant 9.99999996E-13 : f32
    %902 = vector.broadcast %cst_516 : f32 to vector<5x1xf32>
    %903 = arith.addf %899, %902 : vector<5x1xf32>
    %904 = math.rsqrt %903 : vector<5x1xf32>
    %905 = vector.broadcast %904 : vector<5x1xf32> to vector<5x32xf32>
    %906 = arith.mulf %901, %905 : vector<5x32xf32>
    %907 = vector.broadcast %716 : vector<1x32xf32> to vector<5x32xf32>
    %908 = arith.mulf %906, %907 : vector<5x32xf32>
    %909 = vector.broadcast %717 : vector<1x32xf32> to vector<5x32xf32>
    %910 = arith.addf %908, %909 : vector<5x32xf32>
    %911 = arith.truncf %910 : vector<5x32xf32> to vector<5x32xbf16>
    %c1_517 = arith.constant 1 : index
    %c0_518 = arith.constant 0 : index
    %c0_519 = arith.constant 0 : index
    %912 = vector.load %arg7[%c1_517, %c0_518, %c0_519] : memref<2x32x64xbf16, #tpu.memory_space<vmem>>, vector<1x32x64xbf16>
    %913 = vector.shape_cast %912 : vector<1x32x64xbf16> to vector<32x64xbf16>
    %cst_520 = arith.constant dense<0.000000e+00> : vector<5x64xf32>
    %914 = tpu.matmul %911, %913, %cst_520 {dimension_numbers = #tpu.dot_dimension_numbers<[1], [0], [0], [1], [0, 0, 1, 1], [], []>} : vector<5x32xbf16>, vector<32x64xbf16>, vector<5x64xf32> -> vector<5x64xf32>
    %915 = vector.broadcast %718 : vector<1x64xf32> to vector<5x64xf32>
    %916 = arith.addf %914, %915 : vector<5x64xf32>
    %917 = arith.mulf %916, %916 : vector<5x64xf32>
    %918 = arith.mulf %916, %917 : vector<5x64xf32>
    %cst_521 = arith.constant 4.471500e-02 : f32
    %919 = vector.broadcast %cst_521 : f32 to vector<5x64xf32>
    %920 = arith.mulf %919, %918 : vector<5x64xf32>
    %921 = arith.addf %916, %920 : vector<5x64xf32>
    %cst_522 = arith.constant 0.797884583 : f32
    %922 = vector.broadcast %cst_522 : f32 to vector<5x64xf32>
    %923 = arith.mulf %922, %921 : vector<5x64xf32>
    %924 = math.tanh %923 : vector<5x64xf32>
    %cst_523 = arith.constant 1.000000e+00 : f32
    %925 = vector.broadcast %cst_523 : f32 to vector<5x64xf32>
    %926 = arith.addf %925, %924 : vector<5x64xf32>
    %cst_524 = arith.constant 5.000000e-01 : f32
    %927 = vector.broadcast %cst_524 : f32 to vector<5x64xf32>
    %928 = arith.mulf %927, %926 : vector<5x64xf32>
    %929 = arith.mulf %916, %928 : vector<5x64xf32>
    %930 = arith.truncf %929 : vector<5x64xf32> to vector<5x64xbf16>
    %c1_525 = arith.constant 1 : index
    %c0_526 = arith.constant 0 : index
    %c0_527 = arith.constant 0 : index
    %931 = vector.load %arg8[%c1_525, %c0_526, %c0_527] : memref<2x64x32xbf16, #tpu.memory_space<vmem>>, vector<1x64x32xbf16>
    %932 = vector.shape_cast %931 : vector<1x64x32xbf16> to vector<64x32xbf16>
    %cst_528 = arith.constant dense<0.000000e+00> : vector<5x32xf32>
    %933 = tpu.matmul %930, %932, %cst_528 {dimension_numbers = #tpu.dot_dimension_numbers<[1], [0], [0], [1], [0, 0, 1, 1], [], []>} : vector<5x64xbf16>, vector<64x32xbf16>, vector<5x32xf32> -> vector<5x32xf32>
    %934 = arith.addf %888, %933 : vector<5x32xf32>
    %935 = vector.broadcast %719 : vector<1x32xf32> to vector<5x32xf32>
    %936 = arith.addf %934, %935 : vector<5x32xf32>
    %c14_529 = arith.constant 14 : index
    %c0_530 = arith.constant 0 : index
    %937 = vector.load %arg3[%c14_529, %c0_530] : memref<17x128xf32, #tpu.memory_space<vmem>>, vector<1x32xf32>
    %c15_531 = arith.constant 15 : index
    %c0_532 = arith.constant 0 : index
    %938 = vector.load %arg3[%c15_531, %c0_532] : memref<17x128xf32, #tpu.memory_space<vmem>>, vector<1x32xf32>
    %cst_533 = arith.constant dense<0.000000e+00> : vector<5xf32>
    %939 = vector.multi_reduction <add>, %936, %cst_533 [1] : vector<5x32xf32> to vector<5xf32>
    %940 = vector.shape_cast %939 : vector<5xf32> to vector<5x1xf32>
    %cst_534 = arith.constant 3.200000e+01 : f32
    %941 = vector.broadcast %cst_534 : f32 to vector<5x1xf32>
    %942 = arith.divf %940, %941 : vector<5x1xf32>
    %943 = vector.broadcast %942 : vector<5x1xf32> to vector<5x32xf32>
    %944 = arith.subf %936, %943 : vector<5x32xf32>
    %945 = arith.mulf %944, %944 : vector<5x32xf32>
    %cst_535 = arith.constant dense<0.000000e+00> : vector<5xf32>
    %946 = vector.multi_reduction <add>, %945, %cst_535 [1] : vector<5x32xf32> to vector<5xf32>
    %947 = vector.shape_cast %946 : vector<5xf32> to vector<5x1xf32>
    %cst_536 = arith.constant 3.200000e+01 : f32
    %948 = vector.broadcast %cst_536 : f32 to vector<5x1xf32>
    %949 = arith.divf %947, %948 : vector<5x1xf32>
    %950 = vector.broadcast %942 : vector<5x1xf32> to vector<5x32xf32>
    %951 = arith.subf %936, %950 : vector<5x32xf32>
    %cst_537 = arith.constant 9.99999996E-13 : f32
    %952 = vector.broadcast %cst_537 : f32 to vector<5x1xf32>
    %953 = arith.addf %949, %952 : vector<5x1xf32>
    %954 = math.rsqrt %953 : vector<5x1xf32>
    %955 = vector.broadcast %954 : vector<5x1xf32> to vector<5x32xf32>
    %956 = arith.mulf %951, %955 : vector<5x32xf32>
    %957 = vector.broadcast %937 : vector<1x32xf32> to vector<5x32xf32>
    %958 = arith.mulf %956, %957 : vector<5x32xf32>
    %959 = vector.broadcast %938 : vector<1x32xf32> to vector<5x32xf32>
    %960 = arith.addf %958, %959 : vector<5x32xf32>
    %961 = vector.extract_strided_slice %960 {offsets = [0, 0], sizes = [1, 32], strides = [1, 1]} : vector<5x32xf32> to vector<1x32xf32>
    %962 = arith.truncf %961 : vector<1x32xf32> to vector<1x32xbf16>
    %c0_538 = arith.constant 0 : index
    %c0_539 = arith.constant 0 : index
    %963 = vector.load %arg10[%c0_538, %c0_539] : memref<32x32xbf16, #tpu.memory_space<vmem>>, vector<32x32xbf16>
    %cst_540 = arith.constant dense<0.000000e+00> : vector<1x32xf32>
    %964 = tpu.matmul %962, %963, %cst_540 {dimension_numbers = #tpu.dot_dimension_numbers<[1], [0], [0], [1], [0, 0, 1, 1], [], []>} : vector<1x32xbf16>, vector<32x32xbf16>, vector<1x32xf32> -> vector<1x32xf32>
    %c16_541 = arith.constant 16 : index
    %c0_542 = arith.constant 0 : index
    %965 = vector.load %arg3[%c16_541, %c0_542] : memref<17x128xf32, #tpu.memory_space<vmem>>, vector<1x32xf32>
    %966 = arith.addf %964, %965 : vector<1x32xf32>
    %967 = math.tanh %966 : vector<1x32xf32>
    %cst_543 = arith.constant 0.000000e+00 : f32
    %968 = vector.broadcast %cst_543 : f32 to vector<1x64xf32>
    %969 = tpu.concatenate %484, %967, %968 in 1 : vector<1x32xf32>, vector<1x32xf32>, vector<1x64xf32> -> vector<1x128xf32>
    %c0_544 = arith.constant 0 : index
    %c0_545 = arith.constant 0 : index
    %c0_546 = arith.constant 0 : index
    %970 = vector.load %arg11[%c0_544, %c0_545, %c0_546] : memref<1x1x128xf32, #tpu.memory_space<vmem>>, vector<1x1x128xf32>
    %971 = vector.shape_cast %970 : vector<1x1x128xf32> to vector<1x128xf32>
    %972 = vector.shape_cast %969 : vector<1x128xf32> to vector<1x1x128xf32>
    tpu.vector_store %arg11[%c0_544, %c0_545, %c0_546], %972 {strides = array<i32>} : memref<1x1x128xf32, #tpu.memory_space<vmem>>, vector<1x1x128xf32>,
    return
  }
  func.func @transform_0(%arg0: i32) -> (i32, i32, i32) {
    %c0_i32 = arith.constant 0 : i32
    %c0_i32_0 = arith.constant 0 : i32
    %c0_i32_1 = arith.constant 0 : i32
    return %arg0, %c0_i32, %c0_i32_0 : i32, i32, i32
  }
  func.func @transform_1(%arg0: i32) -> (i32, i32) {
    %c0_i32 = arith.constant 0 : i32
    %c0_i32_0 = arith.constant 0 : i32
    %c0_i32_1 = arith.constant 0 : i32
    return %c0_i32, %c0_i32_0 : i32, i32
  }
  func.func @transform_2(%arg0: i32) -> (i32, i32) {
    %c0_i32 = arith.constant 0 : i32
    %c0_i32_0 = arith.constant 0 : i32
    %c0_i32_1 = arith.constant 0 : i32
    return %c0_i32, %c0_i32_0 : i32, i32
  }
  func.func @transform_3(%arg0: i32) -> (i32, i32, i32) {
    %c0_i32 = arith.constant 0 : i32
    %c0_i32_0 = arith.constant 0 : i32
    %c0_i32_1 = arith.constant 0 : i32
    %c0_i32_2 = arith.constant 0 : i32
    return %c0_i32, %c0_i32_0, %c0_i32_1 : i32, i32, i32
  }
  func.func @transform_4(%arg0: i32) -> (i32, i32, i32) {
    %c0_i32 = arith.constant 0 : i32
    %c0_i32_0 = arith.constant 0 : i32
    %c0_i32_1 = arith.constant 0 : i32
    %c0_i32_2 = arith.constant 0 : i32
    return %c0_i32, %c0_i32_0, %c0_i32_1 : i32, i32, i32
  }
  func.func @transform_5(%arg0: i32) -> (i32, i32, i32) {
    %c0_i32 = arith.constant 0 : i32
    %c0_i32_0 = arith.constant 0 : i32
    %c0_i32_1 = arith.constant 0 : i32
    %c0_i32_2 = arith.constant 0 : i32
    return %c0_i32, %c0_i32_0, %c0_i32_1 : i32, i32, i32
  }
  func.func @transform_6(%arg0: i32) -> (i32, i32, i32) {
    %c0_i32 = arith.constant 0 : i32
    %c0_i32_0 = arith.constant 0 : i32
    %c0_i32_1 = arith.constant 0 : i32
    %c0_i32_2 = arith.constant 0 : i32
    return %c0_i32, %c0_i32_0, %c0_i32_1 : i32, i32, i32
  }
  func.func @transform_7(%arg0: i32) -> (i32, i32, i32) {
    %c0_i32 = arith.constant 0 : i32
    %c0_i32_0 = arith.constant 0 : i32
    %c0_i32_1 = arith.constant 0 : i32
    %c0_i32_2 = arith.constant 0 : i32
    return %c0_i32, %c0_i32_0, %c0_i32_1 : i32, i32, i32
  }
  func.func @transform_8(%arg0: i32) -> (i32, i32) {
    %c0_i32 = arith.constant 0 : i32
    %c0_i32_0 = arith.constant 0 : i32
    %c0_i32_1 = arith.constant 0 : i32
    return %c0_i32, %c0_i32_0 : i32, i32
  }
  func.func @transform_9(%arg0: i32) -> (i32, i32) {
    %c0_i32 = arith.constant 0 : i32
    %c0_i32_0 = arith.constant 0 : i32
    %c0_i32_1 = arith.constant 0 : i32
    return %c0_i32, %c0_i32_0 : i32, i32
  }
  func.func @transform_10(%arg0: i32) -> (i32, i32, i32) {
    %c0_i32 = arith.constant 0 : i32
    %c0_i32_0 = arith.constant 0 : i32
    %c0_i32_1 = arith.constant 0 : i32
    return %arg0, %c0_i32, %c0_i32_0 : i32, i32, i32
  }
}

</mosaic_0001>

<bundles_post_ra>
// kernel: nlvr2_forward.5
= control target key start
LH: loop header
LB: loop body
LE: loop exit
PB: predicated region body
PF: predicated region fallthrough
CT: control target
= control target key end

     0   :  { %v425_v1 = vmov 0.0   ;;  %vm426_vm0 = vmmov 0   ;;  %s550_s0 = inlined_call_operand.vmem [shape: f32[2,128], index: 0, kind: input, shape index: {}]   ;;  %s551_s1 = inlined_call_operand.vmem [shape: f32[2,128], index: 1, kind: input, shape index: {}]   ;;  %s552_s2 = inlined_call_operand.vmem [shape: bf16[128,128], index: 2, kind: input, shape index: {}]   ;;  %s553_s3 = inlined_call_operand.vmem [shape: f32[3,128], index: 3, kind: input, shape index: {}]   ;;  %s554_s4 = inlined_call_operand.vmem [shape: bf16[128,2], index: 4, kind: input, shape index: {}]   ;;  %s555_s5 = inlined_call_operand.vmem [shape: f32[1,2], index: 5, kind: input, shape index: {}]   ;;  %s556_s6 = inlined_call_operand.hbm [shape: f32[2,2], index: 6, kind: output, shape index: {}]  }
   0x1   :  { %v383_v0 = vld [vmem:[%s552_s2 + $0x38] sm:$0xff]   ;;  %340 = vmatprep.subr.bf16.mxu0 %v425_v1  ;;  %360 = vmatprep.subr.bf16.mxu1 %v425_v1  ;;  %v384_v2 = vld [vmem:[%s552_s2 + $0x30] sm:$0xff]   ;;  %v385_v3 = vld [vmem:[%s552_s2 + $0x28] sm:$0xff]  }
   0x2   :  { %341 = vmatpush3.bf16.msra.mxu0 %v383_v0  ;;  %356 = vmatprep.mubr.msk.bf16.mxu0 %vm426_vm0, %v425_v1  ;;  %v386_v4 = vld [vmem:[%s552_s2 + $0x20] sm:$0xff]   ;;  %v387_v5 = vld [vmem:[%s552_s2 + $0x18] sm:$0xff]  }
   0x3   :  { %342 = vmatprep.subr.bf16.mxu0 %v425_v1  ;;  %376 = vmatprep.mubr.msk.bf16.mxu1 %vm426_vm0, %v425_v1 }
   0x6   :  { %343 = vmatpush3.bf16.msra.mxu0 %v384_v2 }
   0x7   :  { %344 = vmatprep.subr.bf16.mxu0 %v425_v1 }
   0xa   :  { %345 = vmatpush3.bf16.msra.mxu0 %v385_v3 }
   0xb   :  { %346 = vmatprep.subr.bf16.mxu0 %v425_v1 }
   0xe   :  { %347 = vmatpush3.bf16.msra.mxu0 %v386_v4 }
   0xf   :  { %11 = vsyncpa [#allocation3], 0  ;;  %348 = vmatprep.subr.bf16.mxu0 %v425_v1  ;;  %v388_v6 = vld [vmem:[%s552_s2 + $0x10] sm:$0xff]   ;;  %v389_v7 = vld [vmem:[%s552_s2 + $0x8] sm:$0xff]   ;;  %vm140_vm1 = vcmask 1041408   ;;  %s427_s13 = smov [#allocation2]  }
  0x10   :  { %v25_v8 = vld [vmem:[%s550_s0] sm:$0x3]  ;;  %v391_v25 = vld [vmem:[%s554_s4 + $0x38] sm:$0xff]   ;;  %v392_v26 = vld [vmem:[%s554_s4 + $0x30] sm:$0xff]   ;;  %vm286_vm2 = vcmask 9216  }
  0x11   :  { %v26_v9 = vld [vmem:[%s551_s1] sm:$0x3]  ;;  %361 = vmatpush3.bf16.msra.mxu1 %v391_v25  ;;  %v393_v27 = vld [vmem:[%s554_s4 + $0x28] sm:$0xff]   ;;  %v395_v29 = vld [vmem:[%s554_s4 + $0x18] sm:$0xff]  }
  0x12   :  { %349 = vmatpush3.bf16.msra.mxu0 %v387_v5  ;;  %v27_v10 = vadd.f32 %v26_v9, %v25_v8  ;;  %v390_v11 = vld [vmem:[%s552_s2] sm:$0xff]   ;;  %362 = vmatprep.subr.bf16.mxu1 %v425_v1  ;;  %v396_v30 = vld [vmem:[%s554_s4 + $0x10] sm:$0xff]   ;;  %v397_v31 = vld [vmem:[%s554_s4 + $0x8] sm:$0xff]  }
  0x13   :  { %350 = vmatprep.subr.bf16.mxu0 %v425_v1  ;;  %v302_v13 = vld [vmem:[%s553_s3] ss:$0 sm:$0xff]  ;;  %v311_v37 = vld [vmem:[%s553_s3 + $0x1] ss:$0 sm:$0xff]  ;;  %v312_v39 = vld [vmem:[%s553_s3 + $0x2] ss:$0 sm:$0xff] }
  0x14   :  { %v28_v12 = vpack.c.bf16 %v27_v10, %v27_v10  ;;  %v394_v28 = vld [vmem:[%s554_s4 + $0x20] sm:$0xff]   ;;  %s294_s3 = sshll.u32 %s427_s13, 4  ;;  %s295_s3 = int_to_ptr.vmem [resolvable:$true] %s294_s3 }
  0x15   :  { %363 = vmatpush3.bf16.msra.mxu1 %v392_v26  ;;  %v398_v32 = vld [vmem:[%s554_s4] sm:$0xff]   ;;  %s403_s14 = scalar_lea.vmem %s295_s3, 32  ;;  %p408_p1 = scmp.lt.s32.totalorder %s295_s3, %s295_s3 }
  0x16   :  { %351 = vmatpush3.bf16.msra.mxu0 %v388_v6  ;;  %364 = vmatprep.subr.bf16.mxu1 %v425_v1  ;;  %v313_v52 = vld [vmem:[%s555_s5] ss:$0 sm:$0xff]  ;;  %p404_p0 = scmp.ne.s32.totalorder %s295_s3, %s403_s14  ;;  %p409_p2 = scmp.lt.s32.totalorder %s403_s14, %s403_s14 }
  0x17   :  { %352 = vmatprep.subr.bf16.mxu0 %v425_v1 }
  0x18   :  { %p410_p3 = por %p409_p2, %p408_p1 }
  0x19   :  { %365 = vmatpush3.bf16.msra.mxu1 %v393_v27 }
  0x1a   :  { %353 = vmatpush3.bf16.msra.mxu0 %v389_v7  ;;  %366 = vmatprep.subr.bf16.mxu1 %v425_v1  ;;  %p411_p4 = pnand %p410_p3, %p404_p0 }
  0x1b   :  { %354 = vmatprep.subr.bf16.mxu0 %v425_v1 }
  0x1d   :  { %367 = vmatpush3.bf16.msra.mxu1 %v394_v28 }
  0x1e   :  { %355 = vmatpush3.bf16.msra.mxu0 %v390_v11  ;;  %368 = vmatprep.subr.bf16.mxu1 %v425_v1 }
  0x21   :  { %357 = vmatmul.mubr.bf16.vlgmr.msra.gmra.mxu0 %v28_v12  ;;  %369 = vmatpush3.bf16.msra.mxu1 %v395_v29 }
  0x22   :  { %370 = vmatprep.subr.bf16.mxu1 %v425_v1 }
  0x25   :  { %371 = vmatpush3.bf16.msra.mxu1 %v396_v30 }
  0x26   :  { %372 = vmatprep.subr.bf16.mxu1 %v425_v1 }
  0x29   :  { %373 = vmatpush3.bf16.msra.mxu1 %v397_v31 }
  0x2a   :  { %374 = vmatprep.subr.bf16.mxu1 %v425_v1 }
  0x2d   :  { %375 = vmatpush3.bf16.msra.mxu1 %v398_v32 }
  0xe1   :  { %v132_v14 = vpop.f32.mrf.mxu0 }
  0xe2   :  { %v133_v15 = vadd.f32 %v302_v13, %v132_v14 }
  0xe3   :  { %v358_v16 = vpop.f32.mrf.mxu0 }
  0xe4   :  { %v141_v17 = vsel %vm140_vm1, %v133_v15, 0.0 }
  0xe5   :  { %142 = vadd.xlane.f32.xlu0 %v141_v17  ;;  %v135_v18 = vpop.f32.mrf.mxu0 }
  0xe7   :  { %v359_v19 = vpop.f32.mrf.mxu0 }
 0x16e   :  { %v143_v20 = vpop.xlane.xlu0 %142 }
 0x16f   :  { %v145_v21 = vmul.f32 0.0078125, %v143_v20 }
 0x171   :  { %v146_v22 = vsub.f32 %v133_v15, %v145_v21 }
 0x173   :  { %v147_v23 = vmul.f32 %v146_v22, %v146_v22 }
 0x175   :  { %v148_v24 = vsel %vm140_vm1, %v147_v23, 0.0 }
 0x176   :  { %149 = vadd.xlane.f32.xlu0 %v148_v24 }
 0x1ff   :  { %v150_v33 = vpop.xlane.xlu0 %149 }
 0x200   :  { %v151_v34 = vmul.f32 0.0078125, %v150_v33 }
 0x202   :  { %v152_v35 = vadd.f32 1e-05, %v151_v34 }
 0x204   :  { %399 = vrsqrt.f32 %v152_v35 }
 0x211   :  { %v400_v36 = vpop.eup %399 }
 0x212   :  { %v154_v38 = vmul.f32 %v400_v36, %v146_v22 }
 0x214   :  { %v159_v40 = vmul.f32 %v311_v37, %v154_v38 }
 0x216   :  { %v164_v41 = vadd.f32 %v312_v39, %v159_v40 }
 0x218   :  { %v165_v42 = vmul.f32 %v164_v41, %v164_v41 }
 0x21a   :  { %v166_v43 = vmul.f32 %v165_v42, %v164_v41 }
 0x21c   :  { %v167_v44 = vmul.f32 0.044715, %v166_v43 }
 0x21e   :  { %v168_v45 = vadd.f32 %v167_v44, %v164_v41 }
 0x220   :  { %v169_v46 = vmul.f32 0.7978846, %v168_v45 }
 0x222   :  { %401 = vtanh.f32 %v169_v46 }
 0x22f   :  { %v402_v47 = vpop.eup %401 }
 0x230   :  { %v171_v48 = vadd.f32 1.0, %v402_v47 }
 0x232   :  { %v172_v49 = vmul.f32 0.5, %v171_v48 }
 0x234   :  { %v173_v50 = vmul.f32 %v172_v49, %v164_v41 }
 0x236   :  { %v174_v51 = vpack.c.bf16 %v173_v50, %v173_v50 }
 0x238   :  { %377 = vmatmul.mubr.bf16.vlgmr.msra.gmra.mxu1 %v174_v51 }
 0x2f8   :  { %v280_v53 = vpop.f32.mrf.mxu1 }
 0x2f9   :  { %v281_v54 = vadd.f32 %v313_v52, %v280_v53 }
 0x2fa   :  { %v378_v55 = vpop.f32.mrf.mxu1 }
 0x2fb   :  { %287 = vst.msk [vmem:[#allocation2] sm:$0x3] %vm286_vm2, %v281_v54 }
 0x2fc   :  { %v283_v56 = vpop.f32.mrf.mxu1 }
 0x2fd   :  { %414 = shalt.err (!%p411_p4)
}
 0x2fe   :  { %297 = dma.vmem_to_hbm [thread:$0]  %s295_s3, 32, %s556_s6, [#allocation3]   ;;  %v379_v57 = vpop.f32.mrf.mxu1 }
 0x2ff   :  { %423 = dma.done.wait [#allocation3], 32  }
 0x300   :  { %424 = vsyncadd [#allocation3], 4294967264 }
 0x301   :  { %301 = vsyncpa [#allocation3], 1 }

// kernel: nlvr2_forward.4
= control target key start
LH: loop header
LB: loop body
LE: loop exit
PB: predicated region body
PF: predicated region fallthrough
CT: control target
= control target key end

     0   :  { %s5377_s24 = smov 0   ;;  %s6262_s0 = inlined_call_operand.vmem [shape: f32[2,9,64], index: 0, kind: input, shape index: {}]   ;;  %s6263_s1 = inlined_call_operand.vmem [shape: f32[16,128], index: 1, kind: input, shape index: {}]   ;;  %s6264_s2 = inlined_call_operand.vmem [shape: bf16[24,64,16], index: 2, kind: input, shape index: {}]   ;;  %s6265_s3 = inlined_call_operand.vmem [shape: bf16[8,16,64], index: 3, kind: input, shape index: {}]   ;;  %s6266_s4 = inlined_call_operand.vmem [shape: f32[8,1,16], index: 4, kind: input, shape index: {}]   ;;  %s6267_s5 = inlined_call_operand.vmem [shape: bf16[2,64,128], index: 5, kind: input, shape index: {}]   ;;  %s6268_s6 = inlined_call_operand.vmem [shape: bf16[2,128,64], index: 6, kind: input, shape index: {}]   ;;  %s6269_s7 = inlined_call_operand.vmem [shape: f32[2,1,128], index: 7, kind: output, shape index: {}]  }
   0x1 LB: > { %s4006_s25 = sadd.s32 4294967295, %s5332_s24   ;;  %p4010_p0 = scmp.ge.s32.totalorder %s5332_s24, 1  ;;  %s5332_s24 = sphi %s5377_s24, %s17_s24  }
   0x2   : > { %p237_p1 = scmp.lt.s32.totalorder %s5332_s24, 3 }
   0x4   : > { %p238_p2 = pnand %p4010_p0, %p237_p1 }
   0x5   : > { %p267_p3 = scmp.lt.s32.totalorder (!%p238_p2), %s4006_s25, 1  ;;  %s5336_s27 = smov (!%p238_p2), 64  }
   0x6   : > { %241 = sbr.rel (%p238_p2) target bundleno = 9908 (0x26b4), region = 48 }
   0xb   : > { %s6271_s25 = smov (!%p267_p3, %s4006_s25), 1  ;;  %vm280_vm0 = vcmask 523264   ;;  %v5151_v7 = vld [vmem:[%s6264_s2 + $0x18] sm:$0xff]   ;;  %v5334_v8 = vmov 0.0   ;;  %v5153_v10 = vld [vmem:[%s6264_s2 + $0x10] sm:$0xff]   ;;  %v5155_v12 = vld [vmem:[%s6264_s2 + $0x8] sm:$0xff]  }
   0xc   : > { %s4447_s26 = sshll.u32 %s6271_s25, 4  ;;  %4644 = vmatprep.subr.bf16.mxu0 %v5334_v8  ;;  %4656 = vmatprep.subr.bf16.mxu1 %v5334_v8  ;;  %v5152_v9 = vld [vmem:[%s6264_s2 + $0x98] sm:$0xff]   ;;  %v5154_v11 = vld [vmem:[%s6264_s2 + $0x90] sm:$0xff]   ;;  %v5156_v13 = vld [vmem:[%s6264_s2 + $0x88] sm:$0xff]   ;;  %vm5335_vm1 = vmmov 0   ;;  %vm543_vm2 = vcmask 130048   ;;  %s274_s8 = scalar_lea.vmem %s6269_s7, %s6271_s25 }
   0xd   : > { %s5391_s29 = scalar_lea.vmem %s6262_s0, %s4447_s26  ;;  %4645 = vmatpush3.bf16.msra.mxu0 %v5151_v7  ;;  %4657 = vmatpush3.bf16.msra.mxu1 %v5152_v9  ;;  %v5157_v14 = vld [vmem:[%s6264_s2] sm:$0xff]   ;;  %v5159_v25 = vld [vmem:[%s6264_s2 + $0x118] sm:$0xff]   ;;  %v5160_v27 = vld [vmem:[%s6264_s2 + $0x110] sm:$0xff]   ;;  %vm613_vm3 = vcmask 1043456   ;;  %vm596_vm4 = vcmask 64512  }
   0xe   : > { %v276_v0 = vld [vmem:[%s5391_s29] sm:$0xff]  ;;  %4646 = vmatprep.subr.bf16.mxu0 %v5334_v8  ;;  %4658 = vmatprep.subr.bf16.mxu1 %v5334_v8  ;;  %v5161_v28 = vld [vmem:[%s6264_s2 + $0x108] sm:$0xff]   ;;  %v5163_v42 = vld [vmem:[%s6264_s2 + $0x38] sm:$0xff]  }
   0xf   : > { %v281_v1 = vsel %vm280_vm0, %v276_v0, 0.0  ;;  %v5158_v15 = vld [vmem:[%s6264_s2 + $0x80] sm:$0xff]   ;;  %4652 = vmatprep.mubr.msk.bf16.mxu0 %vm5335_vm1, %v5334_v8  ;;  %4664 = vmatprep.mubr.msk.bf16.mxu1 %vm5335_vm1, %v5334_v8  ;;  %v5164_v44 = vld [vmem:[%s6264_s2 + $0x30] sm:$0xff]   ;;  %v5165_v46 = vld [vmem:[%s6264_s2 + $0x28] sm:$0xff]  }
  0x10   : > { %282 = vadd.xlane.f32.xlu0 %v281_v1  ;;  %v4013_v20 = vld [vmem:[%s6263_s1] ss:$0 sm:$0xff]  ;;  %v4014_v22 = vld [vmem:[%s6263_s1 + $0x1] ss:$0 sm:$0xff]  ;;  %v5167_v53 = vld [vmem:[%s6264_s2 + $0x138] sm:$0xff]  }
  0x11   : > { %4647 = vmatpush3.bf16.msra.mxu0 %v5153_v10  ;;  %4659 = vmatpush3.bf16.msra.mxu1 %v5154_v11  ;;  %v5162_v29 = vld [vmem:[%s6264_s2 + $0x100] sm:$0xff]   ;;  %v5168_v54 = vld [vmem:[%s6264_s2 + $0x130] sm:$0xff]   ;;  %v5169_v55 = vld [vmem:[%s6264_s2 + $0x128] sm:$0xff]  }
  0x12   : > { %4648 = vmatprep.subr.bf16.mxu0 %v5334_v8  ;;  %4660 = vmatprep.subr.bf16.mxu1 %v5334_v8  ;;  %v4031_v33 = vld [vmem:[%s6266_s4] ss:$0 sm:$0xff]  ;;  %v5525_v57 = vld [vmem:[%s5391_s29 + $0x8] ss:$0 sm:$0xff] }
  0x13   : > { %v5166_v51 = vld [vmem:[%s6264_s2 + $0x20] sm:$0xff]  }
  0x14   : > { %v5170_v56 = vld [vmem:[%s6264_s2 + $0x120] sm:$0xff]  }
  0x15   : > { %4649 = vmatpush3.bf16.msra.mxu0 %v5155_v12  ;;  %4661 = vmatpush3.bf16.msra.mxu1 %v5156_v13 }
  0x16   : > { %4650 = vmatprep.subr.bf16.mxu0 %v5334_v8  ;;  %4662 = vmatprep.subr.bf16.mxu1 %v5334_v8 }
  0x19   : > { %4651 = vmatpush3.bf16.msra.mxu0 %v5157_v14  ;;  %4663 = vmatpush3.bf16.msra.mxu1 %v5158_v15 }
  0x1a   : > { %4668 = vmatprep.subr.bf16.mxu0 %v5334_v8  ;;  %4686 = vmatprep.subr.bf16.mxu1 %v5334_v8 }
  0x99   : > { %v283_v2 = vpop.xlane.xlu0 %282 }
  0x9a   : > { %v285_v3 = vmul.f32 0.015625, %v283_v2 }
  0x9c   : > { %v286_v4 = vsub.f32 %v276_v0, %v285_v3 }
  0x9e   : > { %v287_v5 = vmul.f32 %v286_v4, %v286_v4 }
  0xa0   : > { %v288_v6 = vsel %vm280_vm0, %v287_v5, 0.0 }
  0xa1   : > { %289 = vadd.xlane.f32.xlu0 %v288_v6 }
 0x12a   : > { %v290_v16 = vpop.xlane.xlu0 %289 }
 0x12b   : > { %v291_v17 = vmul.f32 0.015625, %v290_v16 }
 0x12d   : > { %v292_v18 = vadd.f32 1e-05, %v291_v17 }
 0x12f   : > { %5279 = vrsqrt.f32 %v292_v18  ;;  %v5171_v18 = vld [vmem:[%s6264_s2 + $0xb8] sm:$0xff]  }
 0x13c   : > { %v5280_v19 = vpop.eup %5279 }
 0x13d   : > { %v294_v21 = vmul.f32 %v5280_v19, %v286_v4 }
 0x13f   : > { %v299_v23 = vmul.f32 %v4013_v20, %v294_v21  ;;  %v5172_v20 = vld [vmem:[%s6264_s2 + $0xb0] sm:$0xff]   ;;  %v5173_v21 = vld [vmem:[%s6264_s2 + $0xa8] sm:$0xff]  }
 0x141   : > { %v5440_v24 = vadd.f32 %v4014_v22, %v299_v23  ;;  %v5174_v22 = vld [vmem:[%s6264_s2 + $0xa0] sm:$0xff]  }
 0x143   : > { %v5447_v26 = vpack.c.bf16 %v5440_v24, %v5440_v24 }
 0x145   : > { %4653 = vmatmul.mubr.msk.bf16.vlgmr.msra.gmra.mxu0 %vm280_vm0, %v5447_v26  ;;  %4665 = vmatmul.mubr.msk.bf16.vlgmr.msra.gmra.mxu1 %vm280_vm0, %v5447_v26 }
 0x146   : > { %4669 = vmatpush3.bf16.msra.mxu0 %v5159_v25  ;;  %4676 = vmatprep.mubr.msk.bf16.mxu0 %vm5335_vm1, %v5334_v8 }
 0x147   : > { %4670 = vmatprep.subr.bf16.mxu0 %v5334_v8  ;;  %4688 = vmatprep.mubr.msk.bf16.mxu1 %vm5335_vm1, %v5334_v8 }
 0x14a   : > { %4671 = vmatpush3.bf16.msra.mxu0 %v5160_v27 }
 0x14b   : > { %4672 = vmatprep.subr.bf16.mxu0 %v5334_v8 }
 0x14e   : > { %4673 = vmatpush3.bf16.msra.mxu0 %v5161_v28 }
 0x14f   : > { %4674 = vmatprep.subr.bf16.mxu0 %v5334_v8 }
 0x152   : > { %4675 = vmatpush3.bf16.msra.mxu0 %v5162_v29 }
 0x153   : > { %4680 = vmatprep.subr.bf16.mxu0 %v5334_v8 }
 0x155   : > { %4677 = vmatmul.mubr.msk.bf16.vlgmr.msra.gmra.mxu0 %vm280_vm0, %v5447_v26 }
 0x156   : > { %4682 = vmatprep.mubr.msk.bf16.mxu0 %vm5335_vm1, %v5334_v8 }
 0x205   : > { %v407_v30 = vpop.f32.mrf.mxu0  ;;  %v471_v31 = vpop.f32.mrf.mxu1 }
 0x206   : > { %v542_v32 = vpack.c.bf16 %v471_v31, %v471_v31  ;;  %v408_v39 = vadd.f32 %v4031_v33, %v407_v30  ;;  %v4075_v31 = vld [vmem:[%s6266_s4 + $0x1] ss:$0 sm:$0xff] }
 0x207   : > { %v4654_v34 = vpop.f32.mrf.mxu0  ;;  %v4666_v35 = vpop.f32.mrf.mxu1 }
 0x208   : > { %v548_v36 = vsel %vm543_vm2, %v542_v32, 0  ;;  %v541_v43 = vpack.c.bf16 %v408_v39, %v408_v39 }
 0x209   : > { %v410_v37 = vpop.f32.mrf.mxu0  ;;  %v474_v38 = vpop.f32.mrf.mxu1  ;;  %4681 = vmatpush3.bf16.xpose.msra.mxu0 %v548_v36 }
 0x20a   : > { %4692 = vmatprep.subr.bf16.mxu0 %v5334_v8 }
 0x20b   : > { %v4655_v40 = vpop.f32.mrf.mxu0  ;;  %v4667_v41 = vpop.f32.mrf.mxu1 }
 0x210   : > { %4683 = vmatmul.mubr.msk.bf16.vlgmr.msra.gmra.mxu0 %vm543_vm2, %v541_v43 }
 0x211   : > { %4693 = vmatpush3.bf16.msra.mxu0 %v5163_v42  ;;  %4700 = vmatprep.mubr.msk.bf16.mxu0 %vm5335_vm1, %v5334_v8 }
 0x212   : > { %4694 = vmatprep.subr.bf16.mxu0 %v5334_v8 }
 0x215   : > { %v535_v45 = vpop.f32.mrf.mxu0  ;;  %4695 = vmatpush3.bf16.msra.mxu0 %v5164_v44 }
 0x216   : > { %v609_v47 = vpack.c.bf16 %v535_v45, %v535_v45  ;;  %4696 = vmatprep.subr.bf16.mxu0 %v5334_v8 }
 0x217   : > { %v4678_v48 = vpop.f32.mrf.mxu0 }
 0x218   : > { %v615_v49 = vsel %vm613_vm3, %v609_v47, 0 }
 0x219   : > { %v538_v50 = vpop.f32.mrf.mxu0  ;;  %4687 = vmatpush3.bf16.msra.mxu1 %v615_v49  ;;  %4697 = vmatpush3.bf16.msra.mxu0 %v5165_v46 }
 0x21a   : > { %4698 = vmatprep.subr.bf16.mxu0 %v5334_v8  ;;  %4704 = vmatprep.subr.bf16.mxu1 %v5334_v8 }
 0x21b   : > { %v4679_v52 = vpop.f32.mrf.mxu0 }
 0x21c   : > { %v5180_v52 = vld [vmem:[%s6265_s3 + $0x8] sm:$0xff]  }
 0x21d   : > { %4699 = vmatpush3.bf16.msra.mxu0 %v5166_v51 }
 0x21e   : > { %4716 = vmatprep.subr.bf16.mxu0 %v5334_v8 }
 0x220   : > { %4701 = vmatmul.mubr.msk.bf16.vlgmr.msra.gmra.mxu0 %vm280_vm0, %v5447_v26 }
 0x221   : > { %4717 = vmatpush3.bf16.msra.mxu0 %v5167_v53  ;;  %4724 = vmatprep.mubr.msk.bf16.mxu0 %vm5335_vm1, %v5334_v8 }
 0x222   : > { %4718 = vmatprep.subr.bf16.mxu0 %v5334_v8 }
 0x225   : > { %4719 = vmatpush3.bf16.msra.mxu0 %v5168_v54 }
 0x226   : > { %4720 = vmatprep.subr.bf16.mxu0 %v5334_v8 }
 0x229   : > { %4721 = vmatpush3.bf16.msra.mxu0 %v5169_v55 }
 0x22a   : > { %4722 = vmatprep.subr.bf16.mxu0 %v5334_v8 }
 0x22d   : > { %4723 = vmatpush3.bf16.msra.mxu0 %v5170_v56  ;;  %v5175_v56 = vld [vmem:[%s6265_s3] sm:$0xff]  }
 0x22e   : > { %4740 = vmatprep.subr.bf16.mxu0 %v5334_v8 }
 0x230   : > { %4725 = vmatmul.mubr.msk.bf16.vlgmr.msra.gmra.mxu0 %vm280_vm0, %v5447_v26 }
 0x231   : > { %4742 = vmatprep.mubr.msk.bf16.mxu0 %vm5335_vm1, %v5334_v8  ;;  %4741 = vmatpush3.bf16.msra.mxu0 %v5180_v52 }
 0x232   : > { %4752 = vmatprep.subr.bf16.mxu0 %v5334_v8 }
 0x2d0   : > { %v584_v58 = vpop.f32.mrf.mxu0 }
 0x2d1   : > { %v590_v59 = vmul.f32 0.25, %v584_v58 }
 0x2d2   : > { %v4684_v60 = vpop.f32.mrf.mxu0 }
 0x2d3   : > { %v595_v61 = vadd.f32 %v5525_v57, %v590_v59  ;;  %v5176_v59 = vld [vmem:[%s6264_s2 + $0xd8] sm:$0xff]  }
 0x2d4   : > { %v587_v62 = vpop.f32.mrf.mxu0 }
 0x2d5   : > { %v597_v63 = vsel %vm596_vm4, %v595_v61, -inf  ;;  %v5178_v62 = vld [vmem:[%s6264_s2 + $0xc8] sm:$0xff]  }
 0x2d6   : > { %598 = vmax.xlane.f32.xlu1 %v597_v63  ;;  %v4685_v0 = vpop.f32.mrf.mxu0  ;;  %v5179_v63 = vld [vmem:[%s6264_s2 + $0xc0] sm:$0xff]  }
 0x2e0   : > { %v753_v1 = vpop.f32.mrf.mxu0 }
 0x2e1   : > { %v754_v35 = vadd.f32 %v4075_v31, %v753_v1  ;;  %v5181_v1 = vld [vmem:[%s6264_s2 + $0x58] sm:$0xff]  }
 0x2e2   : > { %v4702_v2 = vpop.f32.mrf.mxu0 }
 0x2e3   : > { %v887_v38 = vpack.c.bf16 %v754_v35, %v754_v35 }
 0x2e4   : > { %v756_v3 = vpop.f32.mrf.mxu0 }
 0x2e6   : > { %v4703_v4 = vpop.f32.mrf.mxu0 }
 0x2f0   : > { %v881_v5 = vpop.f32.mrf.mxu0 }
 0x2f1   : > { %v949_v37 = vpack.c.bf16 %v881_v5, %v881_v5  ;;  %v5182_v5 = vld [vmem:[%s6264_s2 + $0x50] sm:$0xff]  }
 0x2f2   : > { %v4726_v6 = vpop.f32.mrf.mxu0 }
 0x2f3   : > { %v954_v39 = vsel %vm613_vm3, %v949_v37, 0 }
 0x2f4   : > { %v884_v7 = vpop.f32.mrf.mxu0 }
 0x2f6   : > { %v4727_v9 = vpop.f32.mrf.mxu0 }
 0x2f7   : > { %v5183_v9 = vld [vmem:[%s6264_s2 + $0x48] sm:$0xff]  }
 0x35f   : > { %v599_v10 = vpop.xlane.xlu1 %598 }
 0x360   : > { %v600_v11 = vsub.f32 %v595_v61, %v599_v10  ;;  %v5177_v61 = vld [vmem:[%s6264_s2 + $0xd0] sm:$0xff]  }
 0x362   : > { %v601_v12 = vmul.f32 1.442695, %v600_v11 }
 0x364   : > { %5281 = vpow2.f32 %v601_v12  ;;  %v5184_v12 = vld [vmem:[%s6264_s2 + $0x40] sm:$0xff]  }
 0x371   : > { %v5282_v13 = vpop.eup %5281 }
 0x372   : > { %v603_v14 = vsel %vm596_vm4, %v5282_v13, 0.0 }
 0x373   : > { %604 = vadd.xlane.f32.xlu1 %v603_v14  ;;  %v5185_v14 = vld [vmem:[%s6264_s2 + $0x158] sm:$0xff]  }
 0x3fc   : > { %v605_v15 = vpop.xlane.xlu1 %604 }
 0x3fd   : > { %5283 = vrcp.f32 %v605_v15  ;;  %v5186_v15 = vld [vmem:[%s6264_s2 + $0x150] sm:$0xff]  }
 0x40a   : > { %v5284_v16 = vpop.eup %5283 }
 0x40b   : > { %v607_v17 = vmul.f32 %v5284_v16, %v5282_v13 }
 0x40d   : > { %v608_v19 = vpack.c.bf16 %v607_v17, %v607_v17  ;;  %v5187_v17 = vld [vmem:[%s6264_s2 + $0x148] sm:$0xff]  }
 0x40f   : > { %4689 = vmatmul.mubr.msk.bf16.vlgmr.msra.gmra.mxu1 %vm596_vm4, %v608_v19 }
 0x410   : > { %4705 = vmatpush3.bf16.msra.mxu1 %v5171_v18  ;;  %4712 = vmatprep.mubr.msk.bf16.mxu1 %vm5335_vm1, %v5334_v8 }
 0x411   : > { %4706 = vmatprep.subr.bf16.mxu1 %v5334_v8 }
 0x414   : > { %4707 = vmatpush3.bf16.msra.mxu1 %v5172_v20 }
 0x415   : > { %4708 = vmatprep.subr.bf16.mxu1 %v5334_v8 }
 0x418   : > { %4709 = vmatpush3.bf16.msra.mxu1 %v5173_v21 }
 0x419   : > { %4710 = vmatprep.subr.bf16.mxu1 %v5334_v8 }
 0x41c   : > { %4711 = vmatpush3.bf16.msra.mxu1 %v5174_v22  ;;  %v5188_v22 = vld [vmem:[%s6264_s2 + $0x140] sm:$0xff]  }
 0x41d   : > { %4728 = vmatprep.subr.bf16.mxu1 %v5334_v8 }
 0x41f   : > { %4713 = vmatmul.mubr.msk.bf16.vlgmr.msra.gmra.mxu1 %vm280_vm0, %v5447_v26 }
 0x420   : > { %4730 = vmatprep.mubr.msk.bf16.mxu1 %vm5335_vm1, %v5334_v8 }
 0x4cf   : > { %v651_v23 = vpop.f32.mrf.mxu1 }
 0x4d0   : > { %v657_v60 = vpack.c.bf16 %v651_v23, %v651_v23 }
 0x4d1   : > { %v4690_v25 = vpop.f32.mrf.mxu1 }
 0x4d3   : > { %v654_v27 = vpop.f32.mrf.mxu1 }
 0x4d5   : > { %v4691_v28 = vpop.f32.mrf.mxu1 }
 0x4df   : > { %v817_v29 = vpop.f32.mrf.mxu1 }
 0x4e0   : > { %v888_v30 = vpack.c.bf16 %v817_v29, %v817_v29 }
 0x4e1   : > { %v4714_v32 = vpop.f32.mrf.mxu1 }
 0x4e2   : > { %v893_v33 = vsel %vm543_vm2, %v888_v30, 0  ;;  %v4124_v30 = vld [vmem:[%s6266_s4 + $0x2] ss:$0 sm:$0xff] }
 0x4e3   : > { %v820_v34 = vpop.f32.mrf.mxu1  ;;  %4729 = vmatpush3.bf16.xpose.msra.mxu1 %v893_v33 }
 0x4e4   : > { %4734 = vmatprep.subr.bf16.mxu1 %v5334_v8 }
 0x4e5   : > { %v4715_v36 = vpop.f32.mrf.mxu1 }
 0x4ea   : > { %4731 = vmatmul.mubr.msk.bf16.vlgmr.msra.gmra.mxu1 %vm543_vm2, %v887_v38 }
 0x4eb   : > { %4735 = vmatpush3.bf16.msra.mxu1 %v954_v39  ;;  %4736 = vmatprep.mubr.msk.bf16.mxu1 %vm5335_vm1, %v5334_v8 }
 0x4ec   : > { %4746 = vmatprep.subr.bf16.mxu1 %v5334_v8 }
 0x5aa   : > { %v929_v40 = vpop.f32.mrf.mxu1 }
 0x5ab   : > { %v935_v41 = vmul.f32 0.25, %v929_v40 }
 0x5ac   : > { %v4732_v42 = vpop.f32.mrf.mxu1 }
 0x5ad   : > { %v936_v43 = vadd.f32 %v5525_v57, %v935_v41 }
 0x5ae   : > { %v932_v44 = vpop.f32.mrf.mxu1 }
 0x5af   : > { %v937_v45 = vsel %vm596_vm4, %v936_v43, -inf }
 0x5b0   : > { %938 = vmax.xlane.f32.xlu0 %v937_v45  ;;  %v4733_v46 = vpop.f32.mrf.mxu1 }
 0x639   : > { %v939_v47 = vpop.xlane.xlu0 %938 }
 0x63a   : > { %v940_v48 = vsub.f32 %v936_v43, %v939_v47 }
 0x63c   : > { %v941_v49 = vmul.f32 1.442695, %v940_v48 }
 0x63e   : > { %5285 = vpow2.f32 %v941_v49 }
 0x64b   : > { %v5286_v50 = vpop.eup %5285 }
 0x64c   : > { %v943_v51 = vsel %vm596_vm4, %v5286_v50, 0.0 }
 0x64d   : > { %944 = vadd.xlane.f32.xlu1 %v943_v51 }
 0x6d6   : > { %v945_v53 = vpop.xlane.xlu1 %944 }
 0x6d7   : > { %5287 = vrcp.f32 %v945_v53 }
 0x6e4   : > { %v5288_v54 = vpop.eup %5287 }
 0x6e5   : > { %v947_v55 = vmul.f32 %v5288_v54, %v5286_v50 }
 0x6e7   : > { %v948_v58 = vpack.c.bf16 %v947_v55, %v947_v55  ;;  %v5197_v55 = vld [vmem:[%s6265_s3 + $0x10] sm:$0xff]  }
 0x6e9   : > { %4737 = vmatmul.mubr.msk.bf16.vlgmr.msra.gmra.mxu1 %vm596_vm4, %v948_v58 }
 0x6ea   : > { %4747 = vmatpush3.bf16.msra.mxu1 %v5175_v56  ;;  %4748 = vmatprep.mubr.msk.bf16.mxu1 %vm5335_vm1, %v5334_v8 }
 0x6eb   : > { %4764 = vmatprep.subr.bf16.mxu1 %v5334_v8 }
 0x6f1   : > { %4749 = vmatmul.mubr.msk.bf16.vlgmr.msra.gmra.mxu1 %vm543_vm2, %v657_v60  ;;  %v5189_v60 = vld [vmem:[%s6264_s2 + $0x78] sm:$0xff]  }
 0x6f2   : > { %4765 = vmatpush3.bf16.msra.mxu1 %v5176_v59  ;;  %4772 = vmatprep.mubr.msk.bf16.mxu1 %vm5335_vm1, %v5334_v8 }
 0x6f3   : > { %4766 = vmatprep.subr.bf16.mxu1 %v5334_v8 }
 0x6f6   : > { %4767 = vmatpush3.bf16.msra.mxu1 %v5177_v61 }
 0x6f7   : > { %4768 = vmatprep.subr.bf16.mxu1 %v5334_v8 }
 0x6fa   : > { %4769 = vmatpush3.bf16.msra.mxu1 %v5178_v62  ;;  %v5190_v62 = vld [vmem:[%s6264_s2 + $0x70] sm:$0xff]  }
 0x6fb   : > { %4770 = vmatprep.subr.bf16.mxu1 %v5334_v8 }
 0x6fe   : > { %4771 = vmatpush3.bf16.msra.mxu1 %v5179_v63  ;;  %v5191_v63 = vld [vmem:[%s6264_s2 + $0x68] sm:$0xff]  }
 0x6ff   : > { %4788 = vmatprep.subr.bf16.mxu1 %v5334_v8 }
 0x701   : > { %4773 = vmatmul.mubr.msk.bf16.vlgmr.msra.gmra.mxu1 %vm280_vm0, %v5447_v26 }
 0x702   : > { %4790 = vmatprep.mubr.msk.bf16.mxu1 %vm5335_vm1, %v5334_v8 }
 0x7a9   : > { %v990_v0 = vpop.f32.mrf.mxu1 }
 0x7aa   : > { %v996_v2 = vpack.c.bf16 %v990_v0, %v990_v0  ;;  %v5192_v0 = vld [vmem:[%s6264_s2 + $0x60] sm:$0xff]  }
 0x7ab   : > { %v4738_v3 = vpop.f32.mrf.mxu1 }
 0x7ac   : > { %4743 = vmatmul.mubr.msk.bf16.vlgmr.msra.gmra.mxu0 %vm543_vm2, %v996_v2  ;;  %v5194_v2 = vld [vmem:[%s6264_s2 + $0x170] sm:$0xff]   ;;  %v5195_v3 = vld [vmem:[%s6264_s2 + $0x168] sm:$0xff]  }
 0x7ad   : > { %4753 = vmatpush3.bf16.msra.mxu0 %v5181_v1  ;;  %v993_v4 = vpop.f32.mrf.mxu1  ;;  %4760 = vmatprep.mubr.msk.bf16.mxu0 %vm5335_vm1, %v5334_v8  ;;  %v5193_v1 = vld [vmem:[%s6264_s2 + $0x178] sm:$0xff]  }
 0x7ae   : > { %4754 = vmatprep.subr.bf16.mxu0 %v5334_v8  ;;  %v5196_v4 = vld [vmem:[%s6264_s2 + $0x160] sm:$0xff]  }
 0x7af   : > { %v4739_v6 = vpop.f32.mrf.mxu1 }
 0x7b0   : > { %v5198_v6 = vld [vmem:[%s6264_s2 + $0xf8] sm:$0xff]  }
 0x7b1   : > { %4755 = vmatpush3.bf16.msra.mxu0 %v5182_v5  ;;  %v5610_v7 = vpop.f32.mrf.mxu1 }
 0x7b2   : > { %4756 = vmatprep.subr.bf16.mxu0 %v5334_v8 }
 0x7b3   : > { %v4750_v10 = vpop.f32.mrf.mxu1 }
 0x7b5   : > { %4757 = vmatpush3.bf16.msra.mxu0 %v5183_v9  ;;  %v1095_v11 = vpop.f32.mrf.mxu1 }
 0x7b6   : > { %4758 = vmatprep.subr.bf16.mxu0 %v5334_v8 }
 0x7b7   : > { %v4751_v13 = vpop.f32.mrf.mxu1 }
 0x7b9   : > { %4759 = vmatpush3.bf16.msra.mxu0 %v5184_v12  ;;  %v5199_v12 = vld [vmem:[%s6264_s2 + $0xf0] sm:$0xff]  }
 0x7ba   : > { %4776 = vmatprep.subr.bf16.mxu0 %v5334_v8 }
 0x7bc   : > { %4761 = vmatmul.mubr.msk.bf16.vlgmr.msra.gmra.mxu0 %vm280_vm0, %v5447_v26 }
 0x7bd   : > { %4777 = vmatpush3.bf16.msra.mxu0 %v5185_v14  ;;  %4784 = vmatprep.mubr.msk.bf16.mxu0 %vm5335_vm1, %v5334_v8  ;;  %v5200_v14 = vld [vmem:[%s6264_s2 + $0xe8] sm:$0xff]  }
 0x7be   : > { %4778 = vmatprep.subr.bf16.mxu0 %v5334_v8 }
 0x7c1   : > { %v1255_v16 = vpop.f32.mrf.mxu1  ;;  %4779 = vmatpush3.bf16.msra.mxu0 %v5186_v15  ;;  %v5201_v15 = vld [vmem:[%s6264_s2 + $0xe0] sm:$0xff]  }
 0x7c2   : > { %v1326_v18 = vpack.c.bf16 %v1255_v16, %v1255_v16  ;;  %4780 = vmatprep.subr.bf16.mxu0 %v5334_v8 }
 0x7c3   : > { %v4774_v19 = vpop.f32.mrf.mxu1 }
 0x7c4   : > { %v1331_v20 = vsel %vm543_vm2, %v1326_v18, 0 }
 0x7c5   : > { %v1258_v21 = vpop.f32.mrf.mxu1  ;;  %4781 = vmatpush3.bf16.msra.mxu0 %v5187_v17  ;;  %4789 = vmatpush3.bf16.xpose.msra.mxu1 %v1331_v20 }
 0x7c6   : > { %4782 = vmatprep.subr.bf16.mxu0 %v5334_v8  ;;  %4794 = vmatprep.subr.bf16.mxu1 %v5334_v8 }
 0x7c7   : > { %v4775_v23 = vpop.f32.mrf.mxu1 }
 0x7c9   : > { %4783 = vmatpush3.bf16.msra.mxu0 %v5188_v22 }
 0x7ca   : > { %4800 = vmatprep.subr.bf16.mxu0 %v5334_v8 }
 0x7cc   : > { %4785 = vmatmul.mubr.msk.bf16.vlgmr.msra.gmra.mxu0 %vm280_vm0, %v5447_v26 }
 0x7cd   : > { %4802 = vmatprep.mubr.msk.bf16.mxu0 %vm5335_vm1, %v5334_v8  ;;  %4801 = vmatpush3.bf16.msra.mxu0 %v5197_v55 }
 0x7ce   : > { %4818 = vmatprep.subr.bf16.mxu0 %v5334_v8 }
 0x86c   : > { %v5647_v25 = vpop.f32.mrf.mxu0 }
 0x86e   : > { %v4744_v27 = vpop.f32.mrf.mxu0 }
 0x86f   : > { %v1093_v27 = vadd.f32 %v5610_v7, %v5647_v25 }
 0x870   : > { %v1046_v28 = vpop.f32.mrf.mxu0 }
 0x872   : > { %v4745_v29 = vpop.f32.mrf.mxu0 }
 0x87c   : > { %v1191_v31 = vpop.f32.mrf.mxu0 }
 0x87d   : > { %v1192_v32 = vadd.f32 %v4124_v30, %v1191_v31 }
 0x87e   : > { %v4762_v33 = vpop.f32.mrf.mxu0 }
 0x87f   : > { %v1325_v34 = vpack.c.bf16 %v1192_v32, %v1192_v32 }
 0x880   : > { %v1194_v35 = vpop.f32.mrf.mxu0 }
 0x881   : > { %4791 = vmatmul.mubr.msk.bf16.vlgmr.msra.gmra.mxu1 %vm543_vm2, %v1325_v34 }
 0x882   : > { %v4763_v36 = vpop.f32.mrf.mxu0  ;;  %4796 = vmatprep.mubr.msk.bf16.mxu1 %vm5335_vm1, %v5334_v8 }
 0x88c   : > { %v1319_v37 = vpop.f32.mrf.mxu0 }
 0x88d   : > { %v1387_v38 = vpack.c.bf16 %v1319_v37, %v1319_v37 }
 0x88e   : > { %v4786_v39 = vpop.f32.mrf.mxu0 }
 0x88f   : > { %v1392_v40 = vsel %vm613_vm3, %v1387_v38, 0 }
 0x890   : > { %v1322_v41 = vpop.f32.mrf.mxu0  ;;  %4795 = vmatpush3.bf16.msra.mxu1 %v1392_v40 }
 0x891   : > { %4806 = vmatprep.subr.bf16.mxu1 %v5334_v8 }
 0x892   : > { %v4787_v42 = vpop.f32.mrf.mxu0 }
 0x941   : > { %v1367_v43 = vpop.f32.mrf.mxu1 }
 0x942   : > { %v1373_v44 = vmul.f32 0.25, %v1367_v43 }
 0x943   : > { %v4792_v45 = vpop.f32.mrf.mxu1 }
 0x944   : > { %v1374_v46 = vadd.f32 %v5525_v57, %v1373_v44 }
 0x945   : > { %v1370_v47 = vpop.f32.mrf.mxu1 }
 0x946   : > { %v1375_v48 = vsel %vm596_vm4, %v1374_v46, -inf }
 0x947   : > { %1376 = vmax.xlane.f32.xlu0 %v1375_v48  ;;  %v4793_v49 = vpop.f32.mrf.mxu1 }
 0x9d0   : > { %v1377_v50 = vpop.xlane.xlu0 %1376 }
 0x9d1   : > { %v1378_v51 = vsub.f32 %v1374_v46, %v1377_v50 }
 0x9d3   : > { %v1379_v52 = vmul.f32 1.442695, %v1378_v51 }
 0x9d5   : > { %5289 = vpow2.f32 %v1379_v52 }
 0x9e2   : > { %v5290_v53 = vpop.eup %5289 }
 0x9e3   : > { %v1381_v54 = vsel %vm596_vm4, %v5290_v53, 0.0 }
 0x9e4   : > { %1382 = vadd.xlane.f32.xlu1 %v1381_v54 }
 0xa6d   : > { %v1383_v56 = vpop.xlane.xlu1 %1382 }
 0xa6e   : > { %5291 = vrcp.f32 %v1383_v56 }
 0xa7b   : > { %v5292_v58 = vpop.eup %5291 }
 0xa7c   : > { %v1385_v59 = vmul.f32 %v5292_v58, %v5290_v53  ;;  %v5202_v53 = vld [vmem:[%s6265_s3 + $0x18] sm:$0xff]  }
 0xa7e   : > { %v1386_v61 = vpack.c.bf16 %v1385_v59, %v1385_v59 }
 0xa80   : > { %4797 = vmatmul.mubr.msk.bf16.vlgmr.msra.gmra.mxu1 %vm596_vm4, %v1386_v61 }
 0xa81   : > { %4807 = vmatpush3.bf16.msra.mxu1 %v5189_v60  ;;  %4814 = vmatprep.mubr.msk.bf16.mxu1 %vm5335_vm1, %v5334_v8 }
 0xa82   : > { %4808 = vmatprep.subr.bf16.mxu1 %v5334_v8 }
 0xa85   : > { %4809 = vmatpush3.bf16.msra.mxu1 %v5190_v62 }
 0xa86   : > { %4810 = vmatprep.subr.bf16.mxu1 %v5334_v8 }
 0xa89   : > { %4811 = vmatpush3.bf16.msra.mxu1 %v5191_v63  ;;  %v4193_v63 = vld [vmem:[%s6263_s1 + $0x2] ss:$0 sm:$0xff] }
 0xa8a   : > { %4812 = vmatprep.subr.bf16.mxu1 %v5334_v8 }
 0xa8d   : > { %4813 = vmatpush3.bf16.msra.mxu1 %v5192_v0 }
 0xa8e   : > { %4830 = vmatprep.subr.bf16.mxu1 %v5334_v8 }
 0xa90   : > { %4815 = vmatmul.mubr.msk.bf16.vlgmr.msra.gmra.mxu1 %vm280_vm0, %v5447_v26 }
 0xa91   : > { %4831 = vmatpush3.bf16.msra.mxu1 %v5193_v1  ;;  %4838 = vmatprep.mubr.msk.bf16.mxu1 %vm5335_vm1, %v5334_v8 }
 0xa92   : > { %4832 = vmatprep.subr.bf16.mxu1 %v5334_v8 }
 0xa95   : > { %4833 = vmatpush3.bf16.msra.mxu1 %v5194_v2 }
 0xa96   : > { %4834 = vmatprep.subr.bf16.mxu1 %v5334_v8 }
 0xa99   : > { %4835 = vmatpush3.bf16.msra.mxu1 %v5195_v3 }
 0xa9a   : > { %4836 = vmatprep.subr.bf16.mxu1 %v5334_v8 }
 0xa9d   : > { %4837 = vmatpush3.bf16.msra.mxu1 %v5196_v4 }
 0xa9e   : > { %4854 = vmatprep.subr.bf16.mxu1 %v5334_v8 }
 0xaa0   : > { %4839 = vmatmul.mubr.msk.bf16.vlgmr.msra.gmra.mxu1 %vm280_vm0, %v5447_v26 }
 0xaa1   : > { %4856 = vmatprep.mubr.msk.bf16.mxu1 %vm5335_vm1, %v5334_v8  ;;  %4855 = vmatpush3.bf16.msra.mxu1 %v5202_v53  ;;  %v4210_v53 = vld [vmem:[%s6263_s1 + $0x6] ss:$0 sm:$0xff] }
 0xaa2   : > { %4872 = vmatprep.subr.bf16.mxu1 %v5334_v8 }
 0xb40   : > { %v1428_v5 = vpop.f32.mrf.mxu1 }
 0xb41   : > { %v1434_v9 = vpack.c.bf16 %v1428_v5, %v1428_v5 }
 0xb42   : > { %v4798_v10 = vpop.f32.mrf.mxu1 }
 0xb43   : > { %4803 = vmatmul.mubr.msk.bf16.vlgmr.msra.gmra.mxu0 %vm543_vm2, %v1434_v9 }
 0xb44   : > { %4819 = vmatpush3.bf16.msra.mxu0 %v5198_v6  ;;  %v1431_v11 = vpop.f32.mrf.mxu1  ;;  %4826 = vmatprep.mubr.msk.bf16.mxu0 %vm5335_vm1, %v5334_v8 }
 0xb45   : > { %4820 = vmatprep.subr.bf16.mxu0 %v5334_v8 }
 0xb46   : > { %v4799_v13 = vpop.f32.mrf.mxu1 }
 0xb48   : > { %4821 = vmatpush3.bf16.msra.mxu0 %v5199_v12 }
 0xb49   : > { %4822 = vmatprep.subr.bf16.mxu0 %v5334_v8 }
 0xb4c   : > { %4823 = vmatpush3.bf16.msra.mxu0 %v5200_v14 }
 0xb4d   : > { %4824 = vmatprep.subr.bf16.mxu0 %v5334_v8 }
 0xb50   : > { %v1581_v16 = vpop.f32.mrf.mxu1  ;;  %4825 = vmatpush3.bf16.msra.mxu0 %v5201_v15  ;;  %v5203_v15 = vld [vmem:[%s6267_s5 + $0x18] sm:$0xff]  }
 0xb51   : > { %4842 = vmatprep.subr.bf16.mxu0 %v5334_v8 }
 0xb52   : > { %v4816_v17 = vpop.f32.mrf.mxu1 }
 0xb53   : > { %4827 = vmatmul.mubr.msk.bf16.vlgmr.msra.gmra.mxu0 %vm280_vm0, %v5447_v26  ;;  %v4171_v26 = vld [vmem:[%s6266_s4 + $0x3] ss:$0 sm:$0xff] }
 0xb54   : > { %v1584_v18 = vpop.f32.mrf.mxu1  ;;  %4844 = vmatprep.mubr.msk.bf16.mxu0 %vm5335_vm1, %v5334_v8  ;;  %v1582_v38 = vadd.f32 %v4171_v26, %v1581_v16  ;;  %v5205_v16 = vld [vmem:[%s6267_s5 + $0x8] sm:$0xff]   ;;  %v5206_v17 = vld [vmem:[%s6267_s5] sm:$0xff]   ;;  %v5211_v26 = vld [vmem:[%s6268_s6 + $0x18] sm:$0xff]  }
 0xb56   : > { %v4817_v19 = vpop.f32.mrf.mxu1  ;;  %v1715_v39 = vpack.c.bf16 %v1582_v38, %v1582_v38  ;;  %v4196_v38 = vld [vmem:[%s6263_s1 + $0x5] ss:$0 sm:$0xff] }
 0xb60   : > { %v1709_v20 = vpop.f32.mrf.mxu1 }
 0xb61   : > { %v1777_v25 = vpack.c.bf16 %v1709_v20, %v1709_v20 }
 0xb62   : > { %v4840_v21 = vpop.f32.mrf.mxu1 }
 0xb63   : > { %v1782_v40 = vsel %vm613_vm3, %v1777_v25, 0 }
 0xb64   : > { %v1712_v22 = vpop.f32.mrf.mxu1 }
 0xb65   : > { %v4194_v22 = vld [vmem:[%s6263_s1 + $0x3] ss:$0 sm:$0xff] }
 0xb66   : > { %v4841_v23 = vpop.f32.mrf.mxu1 }
 0xc03   : > { %v1481_v28 = vpop.f32.mrf.mxu0 }
 0xc04   : > { %v1487_v29 = vadd.f32 %v1481_v28, %v1093_v27  ;;  %v4195_v27 = vld [vmem:[%s6263_s1 + $0x4] ss:$0 sm:$0xff] }
 0xc05   : > { %v4804_v30 = vpop.f32.mrf.mxu0 }
 0xc07   : > { %v1484_v31 = vpop.f32.mrf.mxu0 }
 0xc08   : > { %v5207_v31 = vld [vmem:[%s6268_s6 + $0x38] sm:$0xff]  }
 0xc09   : > { %v4805_v32 = vpop.f32.mrf.mxu0 }
 0xc0a   : > { %v5208_v32 = vld [vmem:[%s6268_s6 + $0x30] sm:$0xff]  }
 0xc13   : > { %v1645_v33 = vpop.f32.mrf.mxu0 }
 0xc14   : > { %v1716_v34 = vpack.c.bf16 %v1645_v33, %v1645_v33  ;;  %v5209_v33 = vld [vmem:[%s6268_s6 + $0x28] sm:$0xff]  }
 0xc15   : > { %v4828_v35 = vpop.f32.mrf.mxu0 }
 0xc16   : > { %v1721_v36 = vsel %vm543_vm2, %v1716_v34, 0  ;;  %v5210_v34 = vld [vmem:[%s6268_s6 + $0x20] sm:$0xff]   ;;  %v5212_v35 = vld [vmem:[%s6268_s6 + $0x10] sm:$0xff]  }
 0xc17   : > { %v1648_v37 = vpop.f32.mrf.mxu0  ;;  %4843 = vmatpush3.bf16.xpose.msra.mxu0 %v1721_v36  ;;  %v5213_v36 = vld [vmem:[%s6268_s6 + $0x8] sm:$0xff]  }
 0xc18   : > { %4848 = vmatprep.subr.bf16.mxu0 %v5334_v8  ;;  %v5214_v37 = vld [vmem:[%s6268_s6] sm:$0xff]  }
 0xc19   : > { %v4829_v7 = vpop.f32.mrf.mxu0 }
 0xc1e   : > { %4845 = vmatmul.mubr.msk.bf16.vlgmr.msra.gmra.mxu0 %vm543_vm2, %v1715_v39 }
 0xc1f   : > { %4849 = vmatpush3.bf16.msra.mxu0 %v1782_v40  ;;  %4850 = vmatprep.mubr.msk.bf16.mxu0 %vm5335_vm1, %v5334_v8 }
 0xc20   : > { %4860 = vmatprep.subr.bf16.mxu0 %v5334_v8 }
 0xcde   : > { %v1757_v41 = vpop.f32.mrf.mxu0 }
 0xcdf   : > { %v1763_v42 = vmul.f32 0.25, %v1757_v41 }
 0xce0   : > { %v4846_v43 = vpop.f32.mrf.mxu0 }
 0xce1   : > { %v1764_v44 = vadd.f32 %v5525_v57, %v1763_v42 }
 0xce2   : > { %v1760_v45 = vpop.f32.mrf.mxu0 }
 0xce3   : > { %v1765_v46 = vsel %vm596_vm4, %v1764_v44, -inf }
 0xce4   : > { %1766 = vmax.xlane.f32.xlu0 %v1765_v46  ;;  %v4847_v47 = vpop.f32.mrf.mxu0 }
 0xd6d   : > { %v1767_v48 = vpop.xlane.xlu0 %1766 }
 0xd6e   : > { %v1768_v49 = vsub.f32 %v1764_v44, %v1767_v48 }
 0xd70   : > { %v1769_v50 = vmul.f32 1.442695, %v1768_v49 }
 0xd72   : > { %5293 = vpow2.f32 %v1769_v50 }
 0xd7f   : > { %v5294_v51 = vpop.eup %5293 }
 0xd80   : > { %v1771_v52 = vsel %vm596_vm4, %v5294_v51, 0.0 }
 0xd81   : > { %1772 = vadd.xlane.f32.xlu1 %v1771_v52 }
 0xe0a   : > { %v1773_v57 = vpop.xlane.xlu1 %1772 }
 0xe0b   : > { %5295 = vrcp.f32 %v1773_v57 }
 0xe18   : > { %v5296_v54 = vpop.eup %5295 }
 0xe19   : > { %v1775_v55 = vmul.f32 %v5296_v54, %v5294_v51 }
 0xe1b   : > { %v1776_v56 = vpack.c.bf16 %v1775_v55, %v1775_v55 }
 0xe1d   : > { %4851 = vmatmul.mubr.msk.bf16.vlgmr.msra.gmra.mxu0 %vm596_vm4, %v1776_v56 }
 0xe1e   : > { %4868 = vmatprep.mubr.msk.bf16.mxu0 %vm5335_vm1, %v5334_v8  ;;  %4861 = vmatpush3.bf16.msra.mxu0 %v5203_v15  ;;  %v4211_v15 = vld [vmem:[%s6263_s1 + $0x7] ss:$0 sm:$0xff] }
 0xe1f   : > { %4862 = vmatprep.subr.bf16.mxu0 %v5334_v8 }
 0xedd   : > { %v1818_v58 = vpop.f32.mrf.mxu0 }
 0xede   : > { %v1824_v59 = vpack.c.bf16 %v1818_v58, %v1818_v58 }
 0xedf   : > { %v4852_v60 = vpop.f32.mrf.mxu0 }
 0xee0   : > { %4857 = vmatmul.mubr.msk.bf16.vlgmr.msra.gmra.mxu1 %vm543_vm2, %v1824_v59 }
 0xee1   : > { %v1821_v61 = vpop.f32.mrf.mxu0  ;;  %4888 = vmatprep.mubr.msk.bf16.mxu1 %vm5335_vm1, %v5334_v8  ;;  %4873 = vmatpush3.bf16.msra.mxu1 %v5207_v31 }
 0xee2   : > { %4874 = vmatprep.subr.bf16.mxu1 %v5334_v8 }
 0xee3   : > { %v4853_v62 = vpop.f32.mrf.mxu0 }
 0xee5   : > { %4875 = vmatpush3.bf16.msra.mxu1 %v5208_v32 }
 0xee6   : > { %4876 = vmatprep.subr.bf16.mxu1 %v5334_v8 }
 0xee9   : > { %4877 = vmatpush3.bf16.msra.mxu1 %v5209_v33 }
 0xeea   : > { %4878 = vmatprep.subr.bf16.mxu1 %v5334_v8 }
 0xeed   : > { %4879 = vmatpush3.bf16.msra.mxu1 %v5210_v34 }
 0xeee   : > { %4880 = vmatprep.subr.bf16.mxu1 %v5334_v8 }
 0xef1   : > { %4881 = vmatpush3.bf16.msra.mxu1 %v5211_v26 }
 0xef2   : > { %4882 = vmatprep.subr.bf16.mxu1 %v5334_v8 }
 0xef5   : > { %4883 = vmatpush3.bf16.msra.mxu1 %v5212_v35 }
 0xef6   : > { %4884 = vmatprep.subr.bf16.mxu1 %v5334_v8 }
 0xef9   : > { %4885 = vmatpush3.bf16.msra.mxu1 %v5213_v36 }
 0xefa   : > { %4886 = vmatprep.subr.bf16.mxu1 %v5334_v8 }
 0xefd   : > { %4887 = vmatpush3.bf16.msra.mxu1 %v5214_v37 }
 0xefe   : > { %4916 = vmatprep.subr.bf16.mxu1 %v5334_v8 }
 0xfa0   : > { %v1871_v0 = vpop.f32.mrf.mxu1 }
 0xfa1   : > { %v1877_v1 = vadd.f32 %v1871_v0, %v1487_v29 }
 0xfa2   : > { %v4858_v2 = vpop.f32.mrf.mxu1 }
 0xfa3   : > { %v1882_v3 = vadd.f32 %v4193_v63, %v1877_v1  ;;  %v5215_v1 = vld [vmem:[%s6264_s2 + $0x198] sm:$0xff]  }
 0xfa4   : > { %v1874_v4 = vpop.f32.mrf.mxu1  ;;  %v5216_v2 = vld [vmem:[%s6264_s2 + $0x298] sm:$0xff]  }
 0xfa5   : > { %v1883_v5 = vadd.f32 %v1882_v3, %v5440_v24  ;;  %v5204_v24 = vld [vmem:[%s6267_s5 + $0x10] sm:$0xff]  }
 0xfa6   : > { %v4859_v6 = vpop.f32.mrf.mxu1  ;;  %4863 = vmatpush3.bf16.msra.mxu0 %v5204_v24  ;;  %v5217_v3 = vld [vmem:[%s6264_s2 + $0x190] sm:$0xff]  }
 0xfa7   : > { %v1884_v9 = vsel %vm280_vm0, %v1883_v5, 0.0  ;;  %4864 = vmatprep.subr.bf16.mxu0 %v5334_v8  ;;  %v5218_v4 = vld [vmem:[%s6264_s2 + $0x290] sm:$0xff]   ;;  %v5220_v6 = vld [vmem:[%s6264_s2 + $0x288] sm:$0xff]  }
 0xfa8   : > { %1885 = vadd.xlane.f32.xlu0 %v1884_v9  ;;  %v5221_v9 = vld [vmem:[%s6264_s2 + $0x180] sm:$0xff]  }
 0xfaa   : > { %4865 = vmatpush3.bf16.msra.mxu0 %v5205_v16  ;;  %v4212_v16 = vld [vmem:[%s6263_s1 + $0x8] ss:$0 sm:$0xff] }
 0xfab   : > { %4866 = vmatprep.subr.bf16.mxu0 %v5334_v8 }
 0xfae   : > { %4867 = vmatpush3.bf16.msra.mxu0 %v5206_v17 }
 0xfaf   : > { %4892 = vmatprep.subr.bf16.mxu0 %v5334_v8 }
0x1031   : > { %v1886_v10 = vpop.xlane.xlu0 %1885 }
0x1032   : > { %v1887_v11 = vmul.f32 0.015625, %v1886_v10  ;;  %v5222_v10 = vld [vmem:[%s6264_s2 + $0x280] sm:$0xff]  }
0x1034   : > { %v1888_v12 = vsub.f32 %v1883_v5, %v1887_v11  ;;  %v5219_v5 = vld [vmem:[%s6264_s2 + $0x188] sm:$0xff]  }
0x1036   : > { %v1889_v13 = vmul.f32 %v1888_v12, %v1888_v12 }
0x1038   : > { %v1890_v14 = vsel %vm280_vm0, %v1889_v13, 0.0 }
0x1039   : > { %1891 = vadd.xlane.f32.xlu1 %v1890_v14 }
0x10c2   : > { %v1892_v18 = vpop.xlane.xlu1 %1891 }
0x10c3   : > { %v1893_v19 = vmul.f32 0.015625, %v1892_v18 }
0x10c5   : > { %v1894_v20 = vadd.f32 1e-05, %v1893_v19  ;;  %v5223_v19 = vld [vmem:[%s6264_s2 + $0x218] sm:$0xff]  }
0x10c7   : > { %5297 = vrsqrt.f32 %v1894_v20 }
0x10d4   : > { %v5298_v21 = vpop.eup %5297 }
0x10d5   : > { %v1896_v23 = vmul.f32 %v5298_v21, %v1888_v12  ;;  %v5224_v21 = vld [vmem:[%s6264_s2 + $0x210] sm:$0xff]  }
0x10d7   : > { %v1901_v28 = vmul.f32 %v4194_v22, %v1896_v23  ;;  %v5225_v22 = vld [vmem:[%s6264_s2 + $0x208] sm:$0xff]   ;;  %v5226_v23 = vld [vmem:[%s6264_s2 + $0x200] sm:$0xff]  }
0x10d9   : > { %v1906_v29 = vadd.f32 %v4195_v27, %v1901_v28 }
0x10db   : > { %v1907_v30 = vpack.c.bf16 %v1906_v29, %v1906_v29 }
0x10dd   : > { %4869 = vmatmul.mubr.msk.bf16.vlgmr.msra.gmra.mxu0 %vm280_vm0, %v1907_v30 }
0x10de   : > { %4900 = vmatprep.mubr.msk.bf16.mxu0 %vm5335_vm1, %v5334_v8  ;;  %4893 = vmatpush3.bf16.msra.mxu0 %v5215_v1 }
0x10df   : > { %4894 = vmatprep.subr.bf16.mxu0 %v5334_v8 }
0x10e2   : > { %4895 = vmatpush3.bf16.msra.mxu0 %v5217_v3 }
0x10e3   : > { %4896 = vmatprep.subr.bf16.mxu0 %v5334_v8 }
0x10e6   : > { %4897 = vmatpush3.bf16.msra.mxu0 %v5219_v5 }
0x10e7   : > { %4898 = vmatprep.subr.bf16.mxu0 %v5334_v8 }
0x10ea   : > { %4899 = vmatpush3.bf16.msra.mxu0 %v5221_v9 }
0x10eb   : > { %4904 = vmatprep.subr.bf16.mxu0 %v5334_v8 }
0x119d   : > { %v1981_v7 = vpop.f32.mrf.mxu0 }
0x119e   : > { %v1982_v25 = vadd.f32 %v4196_v38, %v1981_v7  ;;  %v4238_v38 = vld [vmem:[%s6266_s4 + $0x4] ss:$0 sm:$0xff] }
0x119f   : > { %v4870_v39 = vpop.f32.mrf.mxu0 }
0x11a0   : > { %v1987_v40 = vmul.f32 %v1982_v25, %v1982_v25 }
0x11a1   : > { %v1984_v41 = vpop.f32.mrf.mxu0 }
0x11a2   : > { %v1988_v42 = vmul.f32 %v1987_v40, %v1982_v25 }
0x11a3   : > { %v4871_v43 = vpop.f32.mrf.mxu0 }
0x11a4   : > { %v1989_v44 = vmul.f32 0.044715, %v1988_v42  ;;  %v5227_v42 = vld [vmem:[%s6264_s2 + $0x1b8] sm:$0xff]  }
0x11a6   : > { %v1990_v45 = vadd.f32 %v1989_v44, %v1982_v25  ;;  %v5228_v44 = vld [vmem:[%s6264_s2 + $0x1b0] sm:$0xff]  }
0x11a8   : > { %v1991_v46 = vmul.f32 0.7978846, %v1990_v45  ;;  %v5229_v45 = vld [vmem:[%s6264_s2 + $0x1a8] sm:$0xff]  }
0x11aa   : > { %5299 = vtanh.f32 %v1991_v46  ;;  %v5230_v46 = vld [vmem:[%s6264_s2 + $0x1a0] sm:$0xff]  }
0x11b7   : > { %v5300_v47 = vpop.eup %5299 }
0x11b8   : > { %v1993_v48 = vadd.f32 1.0, %v5300_v47  ;;  %v5231_v47 = vld [vmem:[%s6264_s2 + $0x2b8] sm:$0xff]  }
0x11ba   : > { %v1994_v49 = vmul.f32 0.5, %v1993_v48  ;;  %v5232_v48 = vld [vmem:[%s6264_s2 + $0x2b0] sm:$0xff]  }
0x11bc   : > { %v1995_v50 = vmul.f32 %v1994_v49, %v1982_v25  ;;  %v5233_v49 = vld [vmem:[%s6264_s2 + $0x2a8] sm:$0xff]  }
0x11be   : > { %v1996_v51 = vpack.c.bf16 %v1995_v50, %v1995_v50  ;;  %v5234_v50 = vld [vmem:[%s6264_s2 + $0x2a0] sm:$0xff]  }
0x11c0   : > { %4889 = vmatmul.mubr.bf16.vlgmr.msra.gmra.mxu1 %v1996_v51 }
0x11c1   : > { %4924 = vmatprep.mubr.msk.bf16.mxu1 %vm5335_vm1, %v5334_v8  ;;  %4917 = vmatpush3.bf16.msra.mxu1 %v5216_v2 }
0x11c2   : > { %4918 = vmatprep.subr.bf16.mxu1 %v5334_v8 }
0x11c5   : > { %4919 = vmatpush3.bf16.msra.mxu1 %v5218_v4 }
0x11c6   : > { %4920 = vmatprep.subr.bf16.mxu1 %v5334_v8 }
0x11c9   : > { %4921 = vmatpush3.bf16.msra.mxu1 %v5220_v6 }
0x11ca   : > { %4922 = vmatprep.subr.bf16.mxu1 %v5334_v8 }
0x11cd   : > { %4923 = vmatpush3.bf16.msra.mxu1 %v5222_v10 }
0x11ce   : > { %4934 = vmatprep.subr.bf16.mxu1 %v5334_v8 }
0x1280   : > { %v2095_v52 = vpop.f32.mrf.mxu1 }
0x1281   : > { %v2101_v57 = vadd.f32 %v2095_v52, %v1906_v29 }
0x1282   : > { %v4890_v54 = vpop.f32.mrf.mxu1 }
0x1283   : > { %v2106_v55 = vadd.f32 %v4210_v53, %v2101_v57  ;;  %v5951_v57 = vld [vmem:[%s5391_s29 + $0x8] ss:$0 sm:$0xff] }
0x1284   : > { %v2098_v56 = vpop.f32.mrf.mxu1 }
0x1285   : > { %v2107_v58 = vsel %vm280_vm0, %v2106_v55, 0.0 }
0x1286   : > { %2108 = vadd.xlane.f32.xlu0 %v2107_v58  ;;  %v4891_v59 = vpop.f32.mrf.mxu1 }
0x130f   : > { %v2109_v60 = vpop.xlane.xlu0 %2108 }
0x1310   : > { %v2110_v61 = vmul.f32 0.015625, %v2109_v60 }
0x1312   : > { %v2111_v62 = vsub.f32 %v2106_v55, %v2110_v61 }
0x1314   : > { %v2112_v63 = vmul.f32 %v2111_v62, %v2111_v62 }
0x1316   : > { %v2113_v0 = vsel %vm280_vm0, %v2112_v63, 0.0 }
0x1317   : > { %2114 = vadd.xlane.f32.xlu1 %v2113_v0 }
0x13a0   : > { %v2115_v11 = vpop.xlane.xlu1 %2114 }
0x13a1   : > { %v2116_v12 = vmul.f32 0.015625, %v2115_v11 }
0x13a3   : > { %v2117_v13 = vadd.f32 1e-05, %v2116_v12 }
0x13a5   : > { %5301 = vrsqrt.f32 %v2117_v13  ;;  %v5235_v13 = vld [vmem:[%s6264_s2 + $0x238] sm:$0xff]  }
0x13b2   : > { %v5302_v14 = vpop.eup %5301 }
0x13b3   : > { %v2119_v24 = vmul.f32 %v5302_v14, %v2111_v62 }
0x13b5   : > { %v2124_v17 = vmul.f32 %v4211_v15, %v2119_v24  ;;  %v5236_v15 = vld [vmem:[%s6264_s2 + $0x230] sm:$0xff]   ;;  %v5237_v24 = vld [vmem:[%s6264_s2 + $0x228] sm:$0xff]  }
0x13b7   : > { %v5866_v18 = vadd.f32 %v4212_v16, %v2124_v17  ;;  %v5238_v16 = vld [vmem:[%s6264_s2 + $0x220] sm:$0xff]  }
0x13b9   : > { %v5873_v20 = vpack.c.bf16 %v5866_v18, %v5866_v18 }
0x13bb   : > { %4901 = vmatmul.mubr.msk.bf16.vlgmr.msra.gmra.mxu0 %vm280_vm0, %v5873_v20  ;;  %4925 = vmatmul.mubr.msk.bf16.vlgmr.msra.gmra.mxu1 %vm280_vm0, %v5873_v20 }
0x13bc   : > { %4905 = vmatpush3.bf16.msra.mxu0 %v5223_v19  ;;  %4912 = vmatprep.mubr.msk.bf16.mxu0 %vm5335_vm1, %v5334_v8 }
0x13bd   : > { %4906 = vmatprep.subr.bf16.mxu0 %v5334_v8  ;;  %4936 = vmatprep.mubr.msk.bf16.mxu1 %vm5335_vm1, %v5334_v8 }
0x13c0   : > { %4907 = vmatpush3.bf16.msra.mxu0 %v5224_v21 }
0x13c1   : > { %4908 = vmatprep.subr.bf16.mxu0 %v5334_v8 }
0x13c4   : > { %4909 = vmatpush3.bf16.msra.mxu0 %v5225_v22 }
0x13c5   : > { %4910 = vmatprep.subr.bf16.mxu0 %v5334_v8 }
0x13c8   : > { %4911 = vmatpush3.bf16.msra.mxu0 %v5226_v23 }
0x13c9   : > { %4928 = vmatprep.subr.bf16.mxu0 %v5334_v8 }
0x13cb   : > { %4913 = vmatmul.mubr.msk.bf16.vlgmr.msra.gmra.mxu0 %vm280_vm0, %v5873_v20 }
0x13cc   : > { %4930 = vmatprep.mubr.msk.bf16.mxu0 %vm5335_vm1, %v5334_v8 }
0x147b   : > { %v2234_v27 = vpop.f32.mrf.mxu0  ;;  %v2362_v28 = vpop.f32.mrf.mxu1 }
0x147c   : > { %v2430_v29 = vpack.c.bf16 %v2362_v28, %v2362_v28  ;;  %v2235_v40 = vadd.f32 %v4238_v38, %v2234_v27  ;;  %v4283_v28 = vld [vmem:[%s6266_s4 + $0x5] ss:$0 sm:$0xff] }
0x147d   : > { %v4902_v30 = vpop.f32.mrf.mxu0  ;;  %v4926_v31 = vpop.f32.mrf.mxu1 }
0x147e   : > { %v2435_v32 = vsel %vm613_vm3, %v2430_v29, 0  ;;  %v2368_v43 = vpack.c.bf16 %v2235_v40, %v2235_v40 }
0x147f   : > { %v2237_v33 = vpop.f32.mrf.mxu0  ;;  %v2365_v34 = vpop.f32.mrf.mxu1  ;;  %4935 = vmatpush3.bf16.msra.mxu1 %v2435_v32 }
0x1480   : > { %4952 = vmatprep.subr.bf16.mxu1 %v5334_v8 }
0x1481   : > { %v4903_v26 = vpop.f32.mrf.mxu0  ;;  %v4927_v35 = vpop.f32.mrf.mxu1 }
0x148b   : > { %v2298_v36 = vpop.f32.mrf.mxu0 }
0x148c   : > { %v2369_v37 = vpack.c.bf16 %v2298_v36, %v2298_v36 }
0x148d   : > { %v4914_v7 = vpop.f32.mrf.mxu0 }
0x148e   : > { %v2374_v25 = vsel %vm543_vm2, %v2369_v37, 0 }
0x148f   : > { %v2301_v39 = vpop.f32.mrf.mxu0  ;;  %4929 = vmatpush3.bf16.xpose.msra.mxu0 %v2374_v25 }
0x1490   : > { %4940 = vmatprep.subr.bf16.mxu0 %v5334_v8 }
0x1491   : > { %v4915_v41 = vpop.f32.mrf.mxu0 }
0x1496   : > { %4931 = vmatmul.mubr.msk.bf16.vlgmr.msra.gmra.mxu0 %vm543_vm2, %v2368_v43 }
0x1497   : > { %4941 = vmatpush3.bf16.msra.mxu0 %v5227_v42  ;;  %4948 = vmatprep.mubr.msk.bf16.mxu0 %vm5335_vm1, %v5334_v8 }
0x1498   : > { %4942 = vmatprep.subr.bf16.mxu0 %v5334_v8 }
0x149b   : > { %4943 = vmatpush3.bf16.msra.mxu0 %v5228_v44 }
0x149c   : > { %4944 = vmatprep.subr.bf16.mxu0 %v5334_v8 }
0x149f   : > { %4945 = vmatpush3.bf16.msra.mxu0 %v5229_v45 }
0x14a0   : > { %4946 = vmatprep.subr.bf16.mxu0 %v5334_v8 }
0x14a3   : > { %4947 = vmatpush3.bf16.msra.mxu0 %v5230_v46  ;;  %v5244_v46 = vld [vmem:[%s6265_s3 + $0x28] sm:$0xff]  }
0x14a4   : > { %4964 = vmatprep.subr.bf16.mxu0 %v5334_v8 }
0x14a6   : > { %4949 = vmatmul.mubr.msk.bf16.vlgmr.msra.gmra.mxu0 %vm280_vm0, %v5873_v20 }
0x14a7   : > { %4965 = vmatpush3.bf16.msra.mxu0 %v5231_v47  ;;  %4972 = vmatprep.mubr.msk.bf16.mxu0 %vm5335_vm1, %v5334_v8 }
0x14a8   : > { %4966 = vmatprep.subr.bf16.mxu0 %v5334_v8 }
0x14ab   : > { %4967 = vmatpush3.bf16.msra.mxu0 %v5232_v48 }
0x14ac   : > { %4968 = vmatprep.subr.bf16.mxu0 %v5334_v8 }
0x14af   : > { %4969 = vmatpush3.bf16.msra.mxu0 %v5233_v49 }
0x14b0   : > { %4970 = vmatprep.subr.bf16.mxu0 %v5334_v8 }
0x14b3   : > { %4971 = vmatpush3.bf16.msra.mxu0 %v5234_v50  ;;  %v5239_v50 = vld [vmem:[%s6265_s3 + $0x20] sm:$0xff]  }
0x14b4   : > { %4988 = vmatprep.subr.bf16.mxu0 %v5334_v8 }
0x14b6   : > { %4973 = vmatmul.mubr.msk.bf16.vlgmr.msra.gmra.mxu0 %vm280_vm0, %v5873_v20 }
0x14b7   : > { %4990 = vmatprep.mubr.msk.bf16.mxu0 %vm5335_vm1, %v5334_v8  ;;  %4989 = vmatpush3.bf16.msra.mxu0 %v5244_v46 }
0x14b8   : > { %5000 = vmatprep.subr.bf16.mxu0 %v5334_v8 }
0x1556   : > { %v2410_v51 = vpop.f32.mrf.mxu0 }
0x1557   : > { %v2416_v52 = vmul.f32 0.25, %v2410_v51 }
0x1558   : > { %v4932_v53 = vpop.f32.mrf.mxu0 }
0x1559   : > { %v2417_v54 = vadd.f32 %v5951_v57, %v2416_v52  ;;  %v5240_v52 = vld [vmem:[%s6264_s2 + $0x258] sm:$0xff]  }
0x155a   : > { %v2413_v55 = vpop.f32.mrf.mxu0 }
0x155b   : > { %v2418_v56 = vsel %vm596_vm4, %v2417_v54, -inf  ;;  %v5242_v55 = vld [vmem:[%s6264_s2 + $0x248] sm:$0xff]  }
0x155c   : > { %2419 = vmax.xlane.f32.xlu0 %v2418_v56  ;;  %v4933_v58 = vpop.f32.mrf.mxu0  ;;  %v5243_v56 = vld [vmem:[%s6264_s2 + $0x240] sm:$0xff]  }
0x1566   : > { %v2574_v59 = vpop.f32.mrf.mxu0 }
0x1567   : > { %v2575_v32 = vadd.f32 %v4283_v28, %v2574_v59  ;;  %v5245_v59 = vld [vmem:[%s6264_s2 + $0x1d8] sm:$0xff]  }
0x1568   : > { %v4950_v60 = vpop.f32.mrf.mxu0 }
0x1569   : > { %v2708_v26 = vpack.c.bf16 %v2575_v32, %v2575_v32 }
0x156a   : > { %v2577_v61 = vpop.f32.mrf.mxu0 }
0x156c   : > { %v4951_v62 = vpop.f32.mrf.mxu0 }
0x1576   : > { %v2702_v63 = vpop.f32.mrf.mxu0 }
0x1577   : > { %v2770_v34 = vpack.c.bf16 %v2702_v63, %v2702_v63  ;;  %v5246_v63 = vld [vmem:[%s6264_s2 + $0x1d0] sm:$0xff]  }
0x1578   : > { %v4974_v0 = vpop.f32.mrf.mxu0 }
0x1579   : > { %v2775_v35 = vsel %vm613_vm3, %v2770_v34, 0 }
0x157a   : > { %v2705_v1 = vpop.f32.mrf.mxu0 }
0x157c   : > { %v4975_v2 = vpop.f32.mrf.mxu0 }
0x157d   : > { %v5247_v2 = vld [vmem:[%s6264_s2 + $0x1c8] sm:$0xff]  }
0x15e5   : > { %v2420_v3 = vpop.xlane.xlu0 %2419 }
0x15e6   : > { %v2421_v4 = vsub.f32 %v2417_v54, %v2420_v3  ;;  %v5241_v54 = vld [vmem:[%s6264_s2 + $0x250] sm:$0xff]  }
0x15e8   : > { %v2422_v5 = vmul.f32 1.442695, %v2421_v4 }
0x15ea   : > { %5303 = vpow2.f32 %v2422_v5  ;;  %v5248_v5 = vld [vmem:[%s6264_s2 + $0x1c0] sm:$0xff]  }
0x15f7   : > { %v5304_v6 = vpop.eup %5303 }
0x15f8   : > { %v2424_v9 = vsel %vm596_vm4, %v5304_v6, 0.0 }
0x15f9   : > { %2425 = vadd.xlane.f32.xlu1 %v2424_v9  ;;  %v5249_v9 = vld [vmem:[%s6264_s2 + $0x2d8] sm:$0xff]  }
0x1682   : > { %v2426_v10 = vpop.xlane.xlu1 %2425 }
0x1683   : > { %5305 = vrcp.f32 %v2426_v10  ;;  %v5250_v10 = vld [vmem:[%s6264_s2 + $0x2d0] sm:$0xff]  }
0x1690   : > { %v5306_v11 = vpop.eup %5305 }
0x1691   : > { %v2428_v12 = vmul.f32 %v5306_v11, %v5304_v6 }
0x1693   : > { %v2429_v14 = vpack.c.bf16 %v2428_v12, %v2428_v12  ;;  %v5251_v12 = vld [vmem:[%s6264_s2 + $0x2c8] sm:$0xff]  }
0x1695   : > { %4937 = vmatmul.mubr.msk.bf16.vlgmr.msra.gmra.mxu1 %vm596_vm4, %v2429_v14 }
0x1696   : > { %4953 = vmatpush3.bf16.msra.mxu1 %v5235_v13  ;;  %4960 = vmatprep.mubr.msk.bf16.mxu1 %vm5335_vm1, %v5334_v8 }
0x1697   : > { %4954 = vmatprep.subr.bf16.mxu1 %v5334_v8 }
0x169a   : > { %4955 = vmatpush3.bf16.msra.mxu1 %v5236_v15 }
0x169b   : > { %4956 = vmatprep.subr.bf16.mxu1 %v5334_v8 }
0x169e   : > { %4957 = vmatpush3.bf16.msra.mxu1 %v5237_v24 }
0x169f   : > { %4958 = vmatprep.subr.bf16.mxu1 %v5334_v8 }
0x16a2   : > { %4959 = vmatpush3.bf16.msra.mxu1 %v5238_v16  ;;  %v5252_v16 = vld [vmem:[%s6264_s2 + $0x2c0] sm:$0xff]  }
0x16a3   : > { %4976 = vmatprep.subr.bf16.mxu1 %v5334_v8 }
0x16a5   : > { %4961 = vmatmul.mubr.msk.bf16.vlgmr.msra.gmra.mxu1 %vm280_vm0, %v5873_v20 }
0x16a6   : > { %4978 = vmatprep.mubr.msk.bf16.mxu1 %vm5335_vm1, %v5334_v8 }
0x1755   : > { %v2471_v17 = vpop.f32.mrf.mxu1 }
0x1756   : > { %v2477_v53 = vpack.c.bf16 %v2471_v17, %v2471_v17 }
0x1757   : > { %v4938_v19 = vpop.f32.mrf.mxu1 }
0x1759   : > { %v2474_v21 = vpop.f32.mrf.mxu1 }
0x175b   : > { %v4939_v22 = vpop.f32.mrf.mxu1 }
0x1765   : > { %v2638_v23 = vpop.f32.mrf.mxu1 }
0x1766   : > { %v2709_v27 = vpack.c.bf16 %v2638_v23, %v2638_v23 }
0x1767   : > { %v4962_v29 = vpop.f32.mrf.mxu1 }
0x1768   : > { %v2714_v30 = vsel %vm543_vm2, %v2709_v27, 0  ;;  %v4332_v27 = vld [vmem:[%s6266_s4 + $0x6] ss:$0 sm:$0xff] }
0x1769   : > { %v2641_v31 = vpop.f32.mrf.mxu1  ;;  %4977 = vmatpush3.bf16.xpose.msra.mxu1 %v2714_v30 }
0x176a   : > { %4982 = vmatprep.subr.bf16.mxu1 %v5334_v8 }
0x176b   : > { %v4963_v33 = vpop.f32.mrf.mxu1 }
0x1770   : > { %4979 = vmatmul.mubr.msk.bf16.vlgmr.msra.gmra.mxu1 %vm543_vm2, %v2708_v26 }
0x1771   : > { %4983 = vmatpush3.bf16.msra.mxu1 %v2775_v35  ;;  %4984 = vmatprep.mubr.msk.bf16.mxu1 %vm5335_vm1, %v5334_v8 }
0x1772   : > { %4994 = vmatprep.subr.bf16.mxu1 %v5334_v8 }
0x1830   : > { %v2750_v36 = vpop.f32.mrf.mxu1 }
0x1831   : > { %v2756_v37 = vmul.f32 0.25, %v2750_v36 }
0x1832   : > { %v4980_v38 = vpop.f32.mrf.mxu1 }
0x1833   : > { %v2757_v7 = vadd.f32 %v5951_v57, %v2756_v37 }
0x1834   : > { %v2753_v25 = vpop.f32.mrf.mxu1 }
0x1835   : > { %v2758_v39 = vsel %vm596_vm4, %v2757_v7, -inf }
0x1836   : > { %2759 = vmax.xlane.f32.xlu0 %v2758_v39  ;;  %v4981_v40 = vpop.f32.mrf.mxu1 }
0x18bf   : > { %v2760_v41 = vpop.xlane.xlu0 %2759 }
0x18c0   : > { %v2761_v42 = vsub.f32 %v2757_v7, %v2760_v41 }
0x18c2   : > { %v2762_v43 = vmul.f32 1.442695, %v2761_v42 }
0x18c4   : > { %5307 = vpow2.f32 %v2762_v43 }
0x18d1   : > { %v5308_v44 = vpop.eup %5307 }
0x18d2   : > { %v2764_v45 = vsel %vm596_vm4, %v5308_v44, 0.0 }
0x18d3   : > { %2765 = vadd.xlane.f32.xlu1 %v2764_v45 }
0x195c   : > { %v2766_v47 = vpop.xlane.xlu1 %2765 }
0x195d   : > { %5309 = vrcp.f32 %v2766_v47 }
0x196a   : > { %v5310_v48 = vpop.eup %5309 }
0x196b   : > { %v2768_v49 = vmul.f32 %v5310_v48, %v5308_v44 }
0x196d   : > { %v2769_v51 = vpack.c.bf16 %v2768_v49, %v2768_v49  ;;  %v5261_v49 = vld [vmem:[%s6265_s3 + $0x30] sm:$0xff]  }
0x196f   : > { %4985 = vmatmul.mubr.msk.bf16.vlgmr.msra.gmra.mxu1 %vm596_vm4, %v2769_v51 }
0x1970   : > { %4995 = vmatpush3.bf16.msra.mxu1 %v5239_v50  ;;  %4996 = vmatprep.mubr.msk.bf16.mxu1 %vm5335_vm1, %v5334_v8 }
0x1971   : > { %5012 = vmatprep.subr.bf16.mxu1 %v5334_v8 }
0x1977   : > { %4997 = vmatmul.mubr.msk.bf16.vlgmr.msra.gmra.mxu1 %vm543_vm2, %v2477_v53  ;;  %v5253_v53 = vld [vmem:[%s6264_s2 + $0x1f8] sm:$0xff]  }
0x1978   : > { %5013 = vmatpush3.bf16.msra.mxu1 %v5240_v52  ;;  %5020 = vmatprep.mubr.msk.bf16.mxu1 %vm5335_vm1, %v5334_v8 }
0x1979   : > { %5014 = vmatprep.subr.bf16.mxu1 %v5334_v8 }
0x197c   : > { %5015 = vmatpush3.bf16.msra.mxu1 %v5241_v54 }
0x197d   : > { %5016 = vmatprep.subr.bf16.mxu1 %v5334_v8 }
0x1980   : > { %5017 = vmatpush3.bf16.msra.mxu1 %v5242_v55  ;;  %v5254_v55 = vld [vmem:[%s6264_s2 + $0x1f0] sm:$0xff]  }
0x1981   : > { %5018 = vmatprep.subr.bf16.mxu1 %v5334_v8 }
0x1984   : > { %5019 = vmatpush3.bf16.msra.mxu1 %v5243_v56  ;;  %v5255_v56 = vld [vmem:[%s6264_s2 + $0x1e8] sm:$0xff]  }
0x1985   : > { %5036 = vmatprep.subr.bf16.mxu1 %v5334_v8 }
0x1987   : > { %5021 = vmatmul.mubr.msk.bf16.vlgmr.msra.gmra.mxu1 %vm280_vm0, %v5873_v20 }
0x1988   : > { %5038 = vmatprep.mubr.msk.bf16.mxu1 %vm5335_vm1, %v5334_v8 }
0x1a2f   : > { %v2811_v58 = vpop.f32.mrf.mxu1 }
0x1a30   : > { %v2817_v60 = vpack.c.bf16 %v2811_v58, %v2811_v58  ;;  %v5256_v58 = vld [vmem:[%s6264_s2 + $0x1e0] sm:$0xff]  }
0x1a31   : > { %v4986_v61 = vpop.f32.mrf.mxu1 }
0x1a32   : > { %4991 = vmatmul.mubr.msk.bf16.vlgmr.msra.gmra.mxu0 %vm543_vm2, %v2817_v60  ;;  %v5258_v60 = vld [vmem:[%s6264_s2 + $0x2f0] sm:$0xff]   ;;  %v5259_v61 = vld [vmem:[%s6264_s2 + $0x2e8] sm:$0xff]  }
0x1a33   : > { %5001 = vmatpush3.bf16.msra.mxu0 %v5245_v59  ;;  %v2814_v62 = vpop.f32.mrf.mxu1  ;;  %5008 = vmatprep.mubr.msk.bf16.mxu0 %vm5335_vm1, %v5334_v8  ;;  %v5257_v59 = vld [vmem:[%s6264_s2 + $0x2f8] sm:$0xff]  }
0x1a34   : > { %5002 = vmatprep.subr.bf16.mxu0 %v5334_v8  ;;  %v5260_v62 = vld [vmem:[%s6264_s2 + $0x2e0] sm:$0xff]  }
0x1a35   : > { %v4987_v0 = vpop.f32.mrf.mxu1 }
0x1a36   : > { %v5262_v0 = vld [vmem:[%s6264_s2 + $0x278] sm:$0xff]  }
0x1a37   : > { %5003 = vmatpush3.bf16.msra.mxu0 %v5246_v63  ;;  %v6036_v1 = vpop.f32.mrf.mxu1 }
0x1a38   : > { %5004 = vmatprep.subr.bf16.mxu0 %v5334_v8 }
0x1a39   : > { %v4998_v3 = vpop.f32.mrf.mxu1 }
0x1a3b   : > { %5005 = vmatpush3.bf16.msra.mxu0 %v5247_v2  ;;  %v2916_v4 = vpop.f32.mrf.mxu1 }
0x1a3c   : > { %5006 = vmatprep.subr.bf16.mxu0 %v5334_v8 }
0x1a3d   : > { %v4999_v6 = vpop.f32.mrf.mxu1 }
0x1a3f   : > { %5007 = vmatpush3.bf16.msra.mxu0 %v5248_v5  ;;  %v5263_v5 = vld [vmem:[%s6264_s2 + $0x270] sm:$0xff]  }
0x1a40   : > { %5024 = vmatprep.subr.bf16.mxu0 %v5334_v8 }
0x1a42   : > { %5009 = vmatmul.mubr.msk.bf16.vlgmr.msra.gmra.mxu0 %vm280_vm0, %v5873_v20 }
0x1a43   : > { %5025 = vmatpush3.bf16.msra.mxu0 %v5249_v9  ;;  %5032 = vmatprep.mubr.msk.bf16.mxu0 %vm5335_vm1, %v5334_v8  ;;  %v5264_v9 = vld [vmem:[%s6264_s2 + $0x268] sm:$0xff]  }
0x1a44   : > { %5026 = vmatprep.subr.bf16.mxu0 %v5334_v8 }
0x1a47   : > { %v3076_v11 = vpop.f32.mrf.mxu1  ;;  %5027 = vmatpush3.bf16.msra.mxu0 %v5250_v10  ;;  %v5265_v10 = vld [vmem:[%s6264_s2 + $0x260] sm:$0xff]  }
0x1a48   : > { %v3147_v13 = vpack.c.bf16 %v3076_v11, %v3076_v11  ;;  %5028 = vmatprep.subr.bf16.mxu0 %v5334_v8 }
0x1a49   : > { %v5022_v14 = vpop.f32.mrf.mxu1 }
0x1a4a   : > { %v3152_v15 = vsel %vm543_vm2, %v3147_v13, 0 }
0x1a4b   : > { %v3079_v24 = vpop.f32.mrf.mxu1  ;;  %5029 = vmatpush3.bf16.msra.mxu0 %v5251_v12  ;;  %5037 = vmatpush3.bf16.xpose.msra.mxu1 %v3152_v15 }
0x1a4c   : > { %5030 = vmatprep.subr.bf16.mxu0 %v5334_v8  ;;  %5042 = vmatprep.subr.bf16.mxu1 %v5334_v8 }
0x1a4d   : > { %v5023_v17 = vpop.f32.mrf.mxu1 }
0x1a4f   : > { %5031 = vmatpush3.bf16.msra.mxu0 %v5252_v16 }
0x1a50   : > { %5048 = vmatprep.subr.bf16.mxu0 %v5334_v8 }
0x1a52   : > { %5033 = vmatmul.mubr.msk.bf16.vlgmr.msra.gmra.mxu0 %vm280_vm0, %v5873_v20 }
0x1a53   : > { %5050 = vmatprep.mubr.msk.bf16.mxu0 %vm5335_vm1, %v5334_v8  ;;  %5049 = vmatpush3.bf16.msra.mxu0 %v5261_v49 }
0x1a54   : > { %5066 = vmatprep.subr.bf16.mxu0 %v5334_v8 }
0x1af2   : > { %v6073_v19 = vpop.f32.mrf.mxu0 }
0x1af4   : > { %v4992_v21 = vpop.f32.mrf.mxu0 }
0x1af5   : > { %v2914_v21 = vadd.f32 %v6036_v1, %v6073_v19 }
0x1af6   : > { %v2867_v22 = vpop.f32.mrf.mxu0 }
0x1af8   : > { %v4993_v23 = vpop.f32.mrf.mxu0 }
0x1b02   : > { %v3012_v28 = vpop.f32.mrf.mxu0 }
0x1b03   : > { %v3013_v29 = vadd.f32 %v4332_v27, %v3012_v28 }
0x1b04   : > { %v5010_v30 = vpop.f32.mrf.mxu0 }
0x1b05   : > { %v3146_v31 = vpack.c.bf16 %v3013_v29, %v3013_v29 }
0x1b06   : > { %v3015_v32 = vpop.f32.mrf.mxu0 }
0x1b07   : > { %5039 = vmatmul.mubr.msk.bf16.vlgmr.msra.gmra.mxu1 %vm543_vm2, %v3146_v31 }
0x1b08   : > { %v5011_v33 = vpop.f32.mrf.mxu0  ;;  %5044 = vmatprep.mubr.msk.bf16.mxu1 %vm5335_vm1, %v5334_v8 }
0x1b12   : > { %v3140_v34 = vpop.f32.mrf.mxu0 }
0x1b13   : > { %v3208_v26 = vpack.c.bf16 %v3140_v34, %v3140_v34 }
0x1b14   : > { %v5034_v35 = vpop.f32.mrf.mxu0 }
0x1b15   : > { %v3213_v36 = vsel %vm613_vm3, %v3208_v26, 0 }
0x1b16   : > { %v3143_v37 = vpop.f32.mrf.mxu0  ;;  %5043 = vmatpush3.bf16.msra.mxu1 %v3213_v36 }
0x1b17   : > { %5054 = vmatprep.subr.bf16.mxu1 %v5334_v8 }
0x1b18   : > { %v5035_v38 = vpop.f32.mrf.mxu0 }
0x1bc7   : > { %v3188_v7 = vpop.f32.mrf.mxu1 }
0x1bc8   : > { %v3194_v25 = vmul.f32 0.25, %v3188_v7 }
0x1bc9   : > { %v5040_v39 = vpop.f32.mrf.mxu1 }
0x1bca   : > { %v3195_v40 = vadd.f32 %v5951_v57, %v3194_v25 }
0x1bcb   : > { %v3191_v41 = vpop.f32.mrf.mxu1 }
0x1bcc   : > { %v3196_v42 = vsel %vm596_vm4, %v3195_v40, -inf }
0x1bcd   : > { %3197 = vmax.xlane.f32.xlu0 %v3196_v42  ;;  %v5041_v43 = vpop.f32.mrf.mxu1 }
0x1c56   : > { %v3198_v44 = vpop.xlane.xlu0 %3197 }
0x1c57   : > { %v3199_v45 = vsub.f32 %v3195_v40, %v3198_v44 }
0x1c59   : > { %v3200_v46 = vmul.f32 1.442695, %v3199_v45 }
0x1c5b   : > { %5311 = vpow2.f32 %v3200_v46 }
0x1c68   : > { %v5312_v47 = vpop.eup %5311 }
0x1c69   : > { %v3202_v48 = vsel %vm596_vm4, %v5312_v47, 0.0 }
0x1c6a   : > { %3203 = vadd.xlane.f32.xlu1 %v3202_v48 }
0x1cf3   : > { %v3204_v50 = vpop.xlane.xlu1 %3203 }
0x1cf4   : > { %5313 = vrcp.f32 %v3204_v50 }
0x1d01   : > { %v5314_v51 = vpop.eup %5313 }
0x1d02   : > { %v3206_v52 = vmul.f32 %v5314_v51, %v5312_v47  ;;  %v5266_v47 = vld [vmem:[%s6265_s3 + $0x38] sm:$0xff]  }
0x1d04   : > { %v3207_v54 = vpack.c.bf16 %v3206_v52, %v3206_v52 }
0x1d06   : > { %5045 = vmatmul.mubr.msk.bf16.vlgmr.msra.gmra.mxu1 %vm596_vm4, %v3207_v54 }
0x1d07   : > { %5055 = vmatpush3.bf16.msra.mxu1 %v5253_v53  ;;  %5062 = vmatprep.mubr.msk.bf16.mxu1 %vm5335_vm1, %v5334_v8 }
0x1d08   : > { %5056 = vmatprep.subr.bf16.mxu1 %v5334_v8 }
0x1d0b   : > { %5057 = vmatpush3.bf16.msra.mxu1 %v5254_v55 }
0x1d0c   : > { %5058 = vmatprep.subr.bf16.mxu1 %v5334_v8 }
0x1d0f   : > { %5059 = vmatpush3.bf16.msra.mxu1 %v5255_v56  ;;  %v4401_v56 = vld [vmem:[%s6263_s1 + $0x9] ss:$0 sm:$0xff] }
0x1d10   : > { %5060 = vmatprep.subr.bf16.mxu1 %v5334_v8 }
0x1d13   : > { %5061 = vmatpush3.bf16.msra.mxu1 %v5256_v58 }
0x1d14   : > { %5078 = vmatprep.subr.bf16.mxu1 %v5334_v8 }
0x1d16   : > { %5063 = vmatmul.mubr.msk.bf16.vlgmr.msra.gmra.mxu1 %vm280_vm0, %v5873_v20 }
0x1d17   : > { %5079 = vmatpush3.bf16.msra.mxu1 %v5257_v59  ;;  %5086 = vmatprep.mubr.msk.bf16.mxu1 %vm5335_vm1, %v5334_v8 }
0x1d18   : > { %5080 = vmatprep.subr.bf16.mxu1 %v5334_v8 }
0x1d1b   : > { %5081 = vmatpush3.bf16.msra.mxu1 %v5258_v60 }
0x1d1c   : > { %5082 = vmatprep.subr.bf16.mxu1 %v5334_v8 }
0x1d1f   : > { %5083 = vmatpush3.bf16.msra.mxu1 %v5259_v61 }
0x1d20   : > { %5084 = vmatprep.subr.bf16.mxu1 %v5334_v8 }
0x1d23   : > { %5085 = vmatpush3.bf16.msra.mxu1 %v5260_v62 }
0x1d24   : > { %5102 = vmatprep.subr.bf16.mxu1 %v5334_v8 }
0x1d26   : > { %5087 = vmatmul.mubr.msk.bf16.vlgmr.msra.gmra.mxu1 %vm280_vm0, %v5873_v20 }
0x1d27   : > { %5104 = vmatprep.mubr.msk.bf16.mxu1 %vm5335_vm1, %v5334_v8  ;;  %5103 = vmatpush3.bf16.msra.mxu1 %v5266_v47 }
0x1d28   : > { %5120 = vmatprep.subr.bf16.mxu1 %v5334_v8 }
0x1dc6   : > { %v3249_v63 = vpop.f32.mrf.mxu1 }
0x1dc7   : > { %v3255_v2 = vpack.c.bf16 %v3249_v63, %v3249_v63 }
0x1dc8   : > { %v5046_v3 = vpop.f32.mrf.mxu1 }
0x1dc9   : > { %5051 = vmatmul.mubr.msk.bf16.vlgmr.msra.gmra.mxu0 %vm543_vm2, %v3255_v2 }
0x1dca   : > { %5067 = vmatpush3.bf16.msra.mxu0 %v5262_v0  ;;  %v3252_v4 = vpop.f32.mrf.mxu1  ;;  %5074 = vmatprep.mubr.msk.bf16.mxu0 %vm5335_vm1, %v5334_v8 }
0x1dcb   : > { %5068 = vmatprep.subr.bf16.mxu0 %v5334_v8 }
0x1dcc   : > { %v5047_v6 = vpop.f32.mrf.mxu1 }
0x1dce   : > { %5069 = vmatpush3.bf16.msra.mxu0 %v5263_v5 }
0x1dcf   : > { %5070 = vmatprep.subr.bf16.mxu0 %v5334_v8 }
0x1dd2   : > { %5071 = vmatpush3.bf16.msra.mxu0 %v5264_v9 }
0x1dd3   : > { %5072 = vmatprep.subr.bf16.mxu0 %v5334_v8 }
0x1dd6   : > { %v3402_v11 = vpop.f32.mrf.mxu1  ;;  %5073 = vmatpush3.bf16.msra.mxu0 %v5265_v10  ;;  %v5267_v10 = vld [vmem:[%s6267_s5 + $0x38] sm:$0xff]  }
0x1dd7   : > { %5090 = vmatprep.subr.bf16.mxu0 %v5334_v8 }
0x1dd8   : > { %v5064_v12 = vpop.f32.mrf.mxu1 }
0x1dd9   : > { %5075 = vmatmul.mubr.msk.bf16.vlgmr.msra.gmra.mxu0 %vm280_vm0, %v5873_v20  ;;  %v4379_v20 = vld [vmem:[%s6266_s4 + $0x7] ss:$0 sm:$0xff] }
0x1dda   : > { %v3405_v13 = vpop.f32.mrf.mxu1  ;;  %5092 = vmatprep.mubr.msk.bf16.mxu0 %vm5335_vm1, %v5334_v8  ;;  %v3403_v26 = vadd.f32 %v4379_v20, %v3402_v11  ;;  %v5269_v11 = vld [vmem:[%s6267_s5 + $0x28] sm:$0xff]   ;;  %v5270_v12 = vld [vmem:[%s6267_s5 + $0x20] sm:$0xff]   ;;  %v5275_v20 = vld [vmem:[%s6268_s6 + $0x58] sm:$0xff]  }
0x1ddc   : > { %v5065_v14 = vpop.f32.mrf.mxu1  ;;  %v3536_v35 = vpack.c.bf16 %v3403_v26, %v3403_v26  ;;  %v4412_v26 = vld [vmem:[%s6263_s1 + $0xc] ss:$0 sm:$0xff] }
0x1de6   : > { %v3530_v15 = vpop.f32.mrf.mxu1 }
0x1de7   : > { %v3598_v19 = vpack.c.bf16 %v3530_v15, %v3530_v15 }
0x1de8   : > { %v5088_v24 = vpop.f32.mrf.mxu1 }
0x1de9   : > { %v3603_v36 = vsel %vm613_vm3, %v3598_v19, 0 }
0x1dea   : > { %v3533_v16 = vpop.f32.mrf.mxu1 }
0x1deb   : > { %v4402_v16 = vld [vmem:[%s6263_s1 + $0xa] ss:$0 sm:$0xff] }
0x1dec   : > { %v5089_v17 = vpop.f32.mrf.mxu1 }
0x1e89   : > { %v3302_v22 = vpop.f32.mrf.mxu0 }
0x1e8a   : > { %v3308_v23 = vadd.f32 %v3302_v22, %v2914_v21  ;;  %v4403_v21 = vld [vmem:[%s6263_s1 + $0xb] ss:$0 sm:$0xff] }
0x1e8b   : > { %v5052_v27 = vpop.f32.mrf.mxu0 }
0x1e8d   : > { %v3305_v28 = vpop.f32.mrf.mxu0 }
0x1e8e   : > { %v5271_v28 = vld [vmem:[%s6268_s6 + $0x78] sm:$0xff]  }
0x1e8f   : > { %v5053_v29 = vpop.f32.mrf.mxu0 }
0x1e90   : > { %v5272_v29 = vld [vmem:[%s6268_s6 + $0x70] sm:$0xff]  }
0x1e99   : > { %v3466_v30 = vpop.f32.mrf.mxu0 }
0x1e9a   : > { %v3537_v31 = vpack.c.bf16 %v3466_v30, %v3466_v30  ;;  %v5273_v30 = vld [vmem:[%s6268_s6 + $0x68] sm:$0xff]  }
0x1e9b   : > { %v5076_v32 = vpop.f32.mrf.mxu0 }
0x1e9c   : > { %v3542_v33 = vsel %vm543_vm2, %v3537_v31, 0  ;;  %v5274_v31 = vld [vmem:[%s6268_s6 + $0x60] sm:$0xff]   ;;  %v5276_v32 = vld [vmem:[%s6268_s6 + $0x50] sm:$0xff]  }
0x1e9d   : > { %v3469_v34 = vpop.f32.mrf.mxu0  ;;  %5091 = vmatpush3.bf16.xpose.msra.mxu0 %v3542_v33  ;;  %v5277_v33 = vld [vmem:[%s6268_s6 + $0x48] sm:$0xff]  }
0x1e9e   : > { %5096 = vmatprep.subr.bf16.mxu0 %v5334_v8  ;;  %v5278_v34 = vld [vmem:[%s6268_s6 + $0x40] sm:$0xff]  }
0x1e9f   : > { %v5077_v1 = vpop.f32.mrf.mxu0 }
0x1ea4   : > { %5093 = vmatmul.mubr.msk.bf16.vlgmr.msra.gmra.mxu0 %vm543_vm2, %v3536_v35 }
0x1ea5   : > { %5097 = vmatpush3.bf16.msra.mxu0 %v3603_v36  ;;  %5098 = vmatprep.mubr.msk.bf16.mxu0 %vm5335_vm1, %v5334_v8 }
0x1ea6   : > { %5108 = vmatprep.subr.bf16.mxu0 %v5334_v8 }
0x1f64   : > { %v3578_v37 = vpop.f32.mrf.mxu0 }
0x1f65   : > { %v3584_v38 = vmul.f32 0.25, %v3578_v37 }
0x1f66   : > { %v5094_v7 = vpop.f32.mrf.mxu0 }
0x1f67   : > { %v3585_v25 = vadd.f32 %v5951_v57, %v3584_v38 }
0x1f68   : > { %v3581_v39 = vpop.f32.mrf.mxu0 }
0x1f69   : > { %v3586_v40 = vsel %vm596_vm4, %v3585_v25, -inf }
0x1f6a   : > { %3587 = vmax.xlane.f32.xlu0 %v3586_v40  ;;  %v5095_v41 = vpop.f32.mrf.mxu0 }
0x1ff3   : > { %v3588_v42 = vpop.xlane.xlu0 %3587 }
0x1ff4   : > { %v3589_v43 = vsub.f32 %v3585_v25, %v3588_v42 }
0x1ff6   : > { %v3590_v44 = vmul.f32 1.442695, %v3589_v43 }
0x1ff8   : > { %5315 = vpow2.f32 %v3590_v44 }
0x2005   : > { %v5316_v45 = vpop.eup %5315 }
0x2006   : > { %v3592_v46 = vsel %vm596_vm4, %v5316_v45, 0.0 }
0x2007   : > { %3593 = vadd.xlane.f32.xlu1 %v3592_v46  ;;  %v4442_v46 = vld [vmem:[%s6263_s1 + $0xd] ss:$0 sm:$0xff] }
0x2090   : > { %v3594_v57 = vpop.xlane.xlu1 %3593 }
0x2091   : > { %5317 = vrcp.f32 %v3594_v57 }
0x209e   : > { %v5318_v48 = vpop.eup %5317 }
0x209f   : > { %v3596_v49 = vmul.f32 %v5318_v48, %v5316_v45 }
0x20a1   : > { %v3597_v50 = vpack.c.bf16 %v3596_v49, %v3596_v49 }
0x20a3   : > { %5099 = vmatmul.mubr.msk.bf16.vlgmr.msra.gmra.mxu0 %vm596_vm4, %v3597_v50 }
0x20a4   : > { %5116 = vmatprep.mubr.msk.bf16.mxu0 %vm5335_vm1, %v5334_v8  ;;  %5109 = vmatpush3.bf16.msra.mxu0 %v5267_v10 }
0x20a5   : > { %5110 = vmatprep.subr.bf16.mxu0 %v5334_v8 }
0x2163   : > { %v3639_v51 = vpop.f32.mrf.mxu0 }
0x2164   : > { %v3645_v52 = vpack.c.bf16 %v3639_v51, %v3639_v51 }
0x2165   : > { %v5100_v53 = vpop.f32.mrf.mxu0 }
0x2166   : > { %5105 = vmatmul.mubr.msk.bf16.vlgmr.msra.gmra.mxu1 %vm543_vm2, %v3645_v52 }
0x2167   : > { %v3642_v54 = vpop.f32.mrf.mxu0  ;;  %5136 = vmatprep.mubr.msk.bf16.mxu1 %vm5335_vm1, %v5334_v8  ;;  %5121 = vmatpush3.bf16.msra.mxu1 %v5271_v28 }
0x2168   : > { %5122 = vmatprep.subr.bf16.mxu1 %v5334_v8 }
0x2169   : > { %v5101_v55 = vpop.f32.mrf.mxu0 }
0x216b   : > { %5123 = vmatpush3.bf16.msra.mxu1 %v5272_v29 }
0x216c   : > { %5124 = vmatprep.subr.bf16.mxu1 %v5334_v8 }
0x216f   : > { %5125 = vmatpush3.bf16.msra.mxu1 %v5273_v30 }
0x2170   : > { %5126 = vmatprep.subr.bf16.mxu1 %v5334_v8 }
0x2173   : > { %5127 = vmatpush3.bf16.msra.mxu1 %v5274_v31 }
0x2174   : > { %5128 = vmatprep.subr.bf16.mxu1 %v5334_v8 }
0x2177   : > { %5129 = vmatpush3.bf16.msra.mxu1 %v5275_v20 }
0x2178   : > { %5130 = vmatprep.subr.bf16.mxu1 %v5334_v8 }
0x217b   : > { %5131 = vmatpush3.bf16.msra.mxu1 %v5276_v32 }
0x217c   : > { %5132 = vmatprep.subr.bf16.mxu1 %v5334_v8 }
0x217f   : > { %5133 = vmatpush3.bf16.msra.mxu1 %v5277_v33 }
0x2180   : > { %5134 = vmatprep.subr.bf16.mxu1 %v5334_v8 }
0x2183   : > { %5135 = vmatpush3.bf16.msra.mxu1 %v5278_v34 }
0x2226   : > { %v3692_v58 = vpop.f32.mrf.mxu1 }
0x2227   : > { %v3698_v59 = vadd.f32 %v3692_v58, %v3308_v23 }
0x2228   : > { %v5106_v60 = vpop.f32.mrf.mxu1 }
0x2229   : > { %v3703_v61 = vadd.f32 %v4401_v56, %v3698_v59 }
0x222a   : > { %v3695_v62 = vpop.f32.mrf.mxu1 }
0x222b   : > { %v3704_v63 = vadd.f32 %v3703_v61, %v5866_v18  ;;  %v5268_v18 = vld [vmem:[%s6267_s5 + $0x30] sm:$0xff]   ;;  %v4443_v62 = vld [vmem:[%s6263_s1 + $0xe] ss:$0 sm:$0xff] }
0x222c   : > { %v5107_v0 = vpop.f32.mrf.mxu1  ;;  %5111 = vmatpush3.bf16.msra.mxu0 %v5268_v18 }
0x222d   : > { %v3705_v2 = vsel %vm280_vm0, %v3704_v63, 0.0  ;;  %5112 = vmatprep.subr.bf16.mxu0 %v5334_v8  ;;  %v4444_v0 = vld [vmem:[%s6263_s1 + $0xf] ss:$0 sm:$0xff] }
0x222e   : > { %3706 = vadd.xlane.f32.xlu0 %v3705_v2 }
0x2230   : > { %5113 = vmatpush3.bf16.msra.mxu0 %v5269_v11 }
0x2231   : > { %5114 = vmatprep.subr.bf16.mxu0 %v5334_v8 }
0x2234   : > { %5115 = vmatpush3.bf16.msra.mxu0 %v5270_v12 }
0x22b7   : > { %v3707_v3 = vpop.xlane.xlu0 %3706 }
0x22b8   : > { %v3708_v4 = vmul.f32 0.015625, %v3707_v3 }
0x22ba   : > { %v3709_v5 = vsub.f32 %v3704_v63, %v3708_v4 }
0x22bc   : > { %v3710_v6 = vmul.f32 %v3709_v5, %v3709_v5 }
0x22be   : > { %v3711_v9 = vsel %vm280_vm0, %v3710_v6, 0.0 }
0x22bf   : > { %3712 = vadd.xlane.f32.xlu1 %v3711_v9 }
0x2348   : > { %v3713_v13 = vpop.xlane.xlu1 %3712 }
0x2349   : > { %v3714_v14 = vmul.f32 0.015625, %v3713_v13 }
0x234b   : > { %v3715_v15 = vadd.f32 1e-05, %v3714_v14 }
0x234d   : > { %5319 = vrsqrt.f32 %v3715_v15 }
0x235a   : > { %v5320_v24 = vpop.eup %5319 }
0x235b   : > { %v3717_v17 = vmul.f32 %v5320_v24, %v3709_v5 }
0x235d   : > { %v3722_v22 = vmul.f32 %v4402_v16, %v3717_v17 }
0x235f   : > { %v3727_v23 = vadd.f32 %v4403_v21, %v3722_v22 }
0x2361   : > { %v3728_v27 = vpack.c.bf16 %v3727_v23, %v3727_v23 }
0x2363   : > { %5117 = vmatmul.mubr.msk.bf16.vlgmr.msra.gmra.mxu0 %vm280_vm0, %v3728_v27 }
0x2423   : > { %v3803_v1 = vpop.f32.mrf.mxu0 }
0x2424   : > { %v3804_v19 = vadd.f32 %v4412_v26, %v3803_v1 }
0x2425   : > { %v5118_v35 = vpop.f32.mrf.mxu0 }
0x2426   : > { %v3809_v36 = vmul.f32 %v3804_v19, %v3804_v19 }
0x2427   : > { %v3806_v37 = vpop.f32.mrf.mxu0 }
0x2428   : > { %v3810_v38 = vmul.f32 %v3809_v36, %v3804_v19 }
0x2429   : > { %v5119_v7 = vpop.f32.mrf.mxu0 }
0x242a   : > { %v3811_v25 = vmul.f32 0.044715, %v3810_v38 }
0x242c   : > { %v3812_v39 = vadd.f32 %v3811_v25, %v3804_v19 }
0x242e   : > { %v3813_v40 = vmul.f32 0.7978846, %v3812_v39 }
0x2430   : > { %5321 = vtanh.f32 %v3813_v40 }
0x243d   : > { %v5322_v41 = vpop.eup %5321 }
0x243e   : > { %v3815_v42 = vadd.f32 1.0, %v5322_v41 }
0x2440   : > { %v3816_v43 = vmul.f32 0.5, %v3815_v42 }
0x2442   : > { %v3817_v8 = vmul.f32 %v3816_v43, %v3804_v19 }
0x2444   : > { %v3818_v44 = vpack.c.bf16 %v3817_v8, %v3817_v8 }
0x2446   : > { %5137 = vmatmul.mubr.bf16.vlgmr.msra.gmra.mxu1 %v3818_v44 }
0x2506   : > { %v3918_v45 = vpop.f32.mrf.mxu1 }
0x2507   : > { %v3924_v47 = vadd.f32 %v3918_v45, %v3727_v23 }
0x2508   : > { %v5138_v57 = vpop.f32.mrf.mxu1 }
0x2509   : > { %v3929_v48 = vadd.f32 %v4442_v46, %v3924_v47 }
0x250a   : > { %v3921_v49 = vpop.f32.mrf.mxu1 }
0x250b   : > { %v3930_v50 = vsel %vm280_vm0, %v3929_v48, 0.0 }
0x250c   : > { %3931 = vadd.xlane.f32.xlu0 %v3930_v50  ;;  %v5139_v51 = vpop.f32.mrf.mxu1 }
0x2595   : > { %v3932_v52 = vpop.xlane.xlu0 %3931 }
0x2596   : > { %v3933_v53 = vmul.f32 0.015625, %v3932_v52 }
0x2598   : > { %v3934_v54 = vsub.f32 %v3929_v48, %v3933_v53 }
0x259a   : > { %v3935_v55 = vmul.f32 %v3934_v54, %v3934_v54 }
0x259c   : > { %v3936_v56 = vsel %vm280_vm0, %v3935_v55, 0.0 }
0x259d   : > { %3937 = vadd.xlane.f32.xlu1 %v3936_v56 }
0x2626   : > { %v3938_v58 = vpop.xlane.xlu1 %3937 }
0x2627   : > { %v3939_v59 = vmul.f32 0.015625, %v3938_v58 }
0x2629   : > { %v3940_v60 = vadd.f32 1e-05, %v3939_v59 }
0x262b   : > { %5323 = vrsqrt.f32 %v3940_v60 }
0x2638   : > { %v5324_v61 = vpop.eup %5323 }
0x2639   : > { %v3942_v63 = vmul.f32 %v5324_v61, %v3934_v54 }
0x263b   : > { %v3947_v2 = vmul.f32 %v4443_v62, %v3942_v63 }
0x263d   : > { %v3952_v3 = vadd.f32 %v4444_v0, %v3947_v2 }
0x263f   : > { %3954 = vrot.lane.b32.xlu0 %v3952_v3, %s5336_s27 }
0x26b1   : > { %v3955_v4 = vpop.permute.xlu0 %3954 }
0x26b2   : > { %v3957_v5 = vsel %vm280_vm0, 0.0, %v3955_v4 }
0x26b3   : > { %3958 = vst [vmem:[%s274_s8] sm:$0x1] %v3957_v5 }
0x26b4 PF: > { %s17_s24 = sadd.s32 1, %s5332_s24  }
0x26b5   : > { %p14_p4 = scmp.ge.s32.totalorder %s17_s24, 4  }
0x26b7   :  { %16 = sbr.rel (!%p14_p4) target bundleno = 1 (0x1), region = 117 }

// kernel: nlvr2_forward.3
= control target key start
LH: loop header
LB: loop body
LE: loop exit
PB: predicated region body
PF: predicated region fallthrough
CT: control target
= control target key end

     0   :  { %s8090_s13 = smov 0   ;;  %s9495_s0 = inlined_call_operand.vmem [shape: bf16[4,5,192], index: 0, kind: input, shape index: {}]   ;;  %s9496_s1 = inlined_call_operand.vmem [shape: f32[5,32], index: 1, kind: input, shape index: {}]   ;;  %s9497_s2 = inlined_call_operand.vmem [shape: f32[17,128], index: 2, kind: input, shape index: {}]   ;;  %s9498_s3 = inlined_call_operand.vmem [shape: bf16[24,32,8], index: 3, kind: input, shape index: {}]   ;;  %s9499_s4 = inlined_call_operand.vmem [shape: bf16[8,8,32], index: 4, kind: input, shape index: {}]   ;;  %s9500_s5 = inlined_call_operand.vmem [shape: f32[8,1,8], index: 5, kind: input, shape index: {}]   ;;  %s9501_s6 = inlined_call_operand.vmem [shape: bf16[2,32,64], index: 6, kind: input, shape index: {}]   ;;  %s9502_s7 = inlined_call_operand.vmem [shape: bf16[2,64,32], index: 7, kind: input, shape index: {}]   ;;  %s9503_s8 = inlined_call_operand.vmem [shape: bf16[192,32], index: 8, kind: input, shape index: {}]   ;;  %s9504_s9 = inlined_call_operand.vmem [shape: bf16[32,32], index: 9, kind: input, shape index: {}]   ;;  %s9505_s10 = inlined_call_operand.vmem [shape: f32[2,1,128], index: 10, kind: output, shape index: {}]  }
   0x1 LB: > { %s8096_s14 = sadd.s32 4294967295, %s8028_s13   ;;  %p6354_p0 = scmp.ge.s32.totalorder %s8028_s13, 1  ;;  %s8028_s13 = sphi %s8090_s13, %s20_s13  }
   0x2   : > { %p314_p1 = scmp.lt.s32.totalorder %s8028_s13, 3 }
   0x4   : > { %p315_p2 = pnand %p6354_p0, %p314_p1 }
   0x5   : > { %s6355_s17 = sshll.u32 (!%p315_p2), %s8096_s14, 1  ;;  %s8034_s12 = smov (!%p315_p2), 32  }
   0x6   : > { %318 = sbr.rel (%p315_p2) target bundleno = 20241 (0x4f11), region = 60  ;;  %p352_p3 = scmp.lt.s32.totalorder (!%p315_p2), %s6355_s17, 3 }
   0x7   : > { %p358_p4 = scmp.lt.s32.totalorder (!%p315_p2), %s8096_s14, 1 }
   0xb   : > { %v7749_v0 = vld [vmem:[%s9503_s8 + $0x38] sm:$0xff]   ;;  %v8030_v1 = vmov 0   ;;  %v7750_v2 = vld [vmem:[%s9503_s8 + $0x30] sm:$0xff]   ;;  %s9507_s17 = smov (!%p352_p3, %s6355_s17), 3  ;;  %v7751_v3 = vld [vmem:[%s9503_s8 + $0x28] sm:$0xff]   ;;  %vm466_vm0 = vcmask 523264  }
   0xc   : > { %470 = vmatprep.subr.bf16.mxu0 %v8030_v1  ;;  %s6689_s22 = sshll.u32 %s9507_s17, 3  ;;  %v7752_v4 = vld [vmem:[%s9503_s8 + $0x20] sm:$0xff]   ;;  %v7753_v5 = vld [vmem:[%s9503_s8 + $0x18] sm:$0xff]   ;;  %v7754_v8 = vld [vmem:[%s9503_s8 + $0x10] sm:$0xff]   ;;  %vm517_vm1 = vcmask 258048   ;;  %v8031_v30 = vmov 0.0  }
   0xd   : > { %471 = vmatpush1.bf16.msra.mxu0 %v7749_v0  ;;  %s8116_s25 = scalar_lea.vmem %s9495_s0, %s6689_s22  ;;  %v7755_v9 = vld [vmem:[%s9503_s8 + $0x8] sm:$0xff]   ;;  %v7756_v10 = vld [vmem:[%s9503_s8] sm:$0xff]   ;;  %v7757_v11 = vld [vmem:[%s9503_s8 + $0x58] sm:$0xff]   ;;  %6968 = vmatprep.subr.bf16.mxu1 %v8031_v30  ;;  %vm8032_vm2 = vmmov 0   ;;  %vm576_vm3 = vcmask 261120   ;;  %vm726_vm4 = vcmask 64512  }
   0xe   : > { %472 = vmatprep.subr.bf16.mxu0 %v8030_v1  ;;  %v387_v6 = vld [vmem:[%s8116_s25] sm:$0x77]  ;;  %v7758_v12 = vld [vmem:[%s9503_s8 + $0x50] sm:$0xff]   ;;  %v7759_v13 = vld [vmem:[%s9503_s8 + $0x48] sm:$0xff]   ;;  %6972 = vmatprep.mubr.msk.bf16.mxu1 %vm8032_vm2, %v8031_v30  ;;  %vm792_vm5 = vcmask 1041408   ;;  %vm793_vm6 = vcmask 1042432  }
   0xf   : > { %v6359_v7 = vcombine.high %v387_v6, %v387_v6  ;;  %v7760_v14 = vld [vmem:[%s9503_s8 + $0x40] sm:$0xff]   ;;  %v6358_v15 = vcombine.low %v387_v6, %v387_v6  ;;  %v7765_v28 = vld [vmem:[%s9498_s3 + $0x8] sm:$0xff]   ;;  %v7766_v29 = vld [vmem:[%s9498_s3 + $0x58] sm:$0xff]   ;;  %v8033_v0 = vmov 65535   ;;  %vm774_vm7 = vcmask 36864   ;;  %s9509_s14 = smov (!%p358_p4, %s8096_s14), 1 }
  0x10   : > { %v362_v16 = vld [vmem:[%s9496_s1] sm:$0x1f]  ;;  %6969 = vmatpush3.bf16.msra.mxu1 %v7765_v28  ;;  %v7768_v32 = vld [vmem:[%s9498_s3 + $0x50] sm:$0xff]   ;;  %v7769_v42 = vld [vmem:[%s9498_s3 + $0x48] sm:$0xff]   ;;  %vm788_vm8 = vcmask 39936   ;;  %vm1134_vm9 = vcmask 1043456   ;;  %s360_s17 = scalar_lea.vmem %s9505_s10, %s9509_s14 }
  0x11   : > { %473 = vmatpush1.bf16.msra.mxu0 %v7750_v2  ;;  %6372 = vmatprep.mubr.msk.bf16.mxu0 %vm466_vm0, %v6359_v7  ;;  %v7767_v31 = vld [vmem:[%s9498_s3] sm:$0xff]   ;;  %v7771_v45 = vld [vmem:[%s9498_s3 + $0x88] sm:$0xff]   ;;  %v794_v2 = vsel %vm792_vm5, 4294967295, %v8033_v0 }
  0x12   : > { %474 = vmatprep.subr.bf16.mxu0 %v8030_v1  ;;  %6970 = vmatprep.subr.bf16.mxu1 %v8031_v30  ;;  %v6373_v37 = vld [vmem:[%s9497_s2] ss:$0 sm:$0xff]  ;;  %v6374_v39 = vld [vmem:[%s9497_s2 + $0x1] ss:$0 sm:$0xff] }
  0x13   : > { %v7770_v44 = vld [vmem:[%s9498_s3 + $0x40] sm:$0xff]  }
  0x14   : > { %6971 = vmatpush3.bf16.msra.mxu1 %v7767_v31  ;;  %v7772_v46 = vld [vmem:[%s9498_s3 + $0x80] sm:$0xff]   ;;  %v7775_v31 = vld [vmem:[%s9498_s3 + $0x98] sm:$0xff]  }
  0x15   : > { %475 = vmatpush1.bf16.msra.mxu0 %v7751_v3  ;;  %6976 = vmatprep.subr.bf16.mxu1 %v8031_v30  ;;  %v6383_v59 = vld [vmem:[%s9500_s5] ss:$0 sm:$0xff] }
  0x16   : > { %476 = vmatprep.subr.bf16.mxu0 %v8030_v1 }
  0x19   : > { %477 = vmatpush1.bf16.msra.mxu0 %v7752_v4 }
  0x1a   : > { %478 = vmatprep.subr.bf16.mxu0 %v8030_v1 }
  0x1d   : > { %479 = vmatpush1.bf16.msra.mxu0 %v7753_v5  ;;  %v8234_v5 = vsel %vm793_vm6, %v794_v2, 0 }
  0x1e   : > { %480 = vmatprep.subr.bf16.mxu0 %v8030_v1 }
  0x21   : > { %481 = vmatpush1.bf16.msra.mxu0 %v7754_v8 }
  0x22   : > { %482 = vmatprep.subr.bf16.mxu0 %v8030_v1 }
  0x25   : > { %483 = vmatpush1.bf16.msra.mxu0 %v7755_v9 }
  0x26   : > { %484 = vmatprep.subr.bf16.mxu0 %v8030_v1 }
  0x29   : > { %485 = vmatpush1.bf16.msra.mxu0 %v7756_v10 }
  0x2a   : > { %494 = vmatprep.subr.bf16.mxu0 %v8030_v1 }
  0x2d   : > { %495 = vmatpush2.bf16.msra.mxu0 %v7757_v11 }
  0x2e   : > { %496 = vmatprep.subr.bf16.mxu0 %v8030_v1 }
  0x31   : > { %497 = vmatpush2.bf16.msra.mxu0 %v7758_v12 }
  0x32   : > { %498 = vmatprep.subr.bf16.mxu0 %v8030_v1 }
  0x35   : > { %499 = vmatpush2.bf16.msra.mxu0 %v7759_v13 }
  0x36   : > { %500 = vmatprep.subr.bf16.mxu0 %v8030_v1 }
  0x39   : > { %501 = vmatpush2.bf16.msra.mxu0 %v7760_v14 }
  0x3a   : > { %7012 = vmatprep.subr.bf16.mxu0 %v8031_v30 }
  0x3c   : > { %503 = vmatmul.mubr.bf16.vlgmr.msra.gmra.mxu0 %v6358_v15 }
  0x3d   : > { %7013 = vmatpush3.bf16.msra.mxu0 %v7766_v29  ;;  %7016 = vmatprep.mubr.msk.bf16.mxu0 %vm8032_vm2, %v8031_v30  ;;  %v7774_v29 = vld [vmem:[%s9498_s3 + $0x10] sm:$0xff]  }
  0x3e   : > { %7014 = vmatprep.subr.bf16.mxu0 %v8031_v30 }
  0x41   : > { %7015 = vmatpush3.bf16.msra.mxu0 %v7768_v32  ;;  %v7776_v32 = vld [vmem:[%s9498_s3 + $0x90] sm:$0xff]  }
  0x42   : > { %7028 = vmatprep.subr.bf16.mxu0 %v8031_v30 }
  0xfc   : > { %v504_v17 = vpop.f32.mrf.mxu0 }
  0xfd   : > { %v8159_v18 = vadd.f32 %v504_v17, %v362_v16 }
  0xfe   : > { %v506_v19 = vpop.f32.mrf.mxu0 }
  0xff   : > { %v518_v20 = vsel %vm517_vm1, %v8159_v18, 0.0 }
 0x100   : > { %v507_v21 = vpop.f32.mrf.mxu0  ;;  %519 = vadd.xlane.f32.xlu0 %v518_v20 }
 0x102   : > { %v508_v22 = vpop.f32.mrf.mxu0 }
 0x189   : > { %v520_v23 = vpop.xlane.xlu0 %519 }
 0x18a   : > { %v522_v24 = vmul.f32 0.03125, %v520_v23 }
 0x18c   : > { %v523_v25 = vsub.f32 %v8159_v18, %v522_v24 }
 0x18e   : > { %v524_v26 = vmul.f32 %v523_v25, %v523_v25 }
 0x190   : > { %v525_v27 = vsel %vm517_vm1, %v524_v26, 0.0 }
 0x191   : > { %526 = vadd.xlane.f32.xlu0 %v525_v27  ;;  %v7773_v27 = vld [vmem:[%s9498_s3 + $0x18] sm:$0xff]  }
 0x21a   : > { %v527_v33 = vpop.xlane.xlu0 %526 }
 0x21b   : > { %v528_v34 = vmul.f32 0.03125, %v527_v33 }
 0x21d   : > { %v529_v35 = vadd.f32 1e-12, %v528_v34 }
 0x21f   : > { %7827 = vrsqrt.f32 %v529_v35 }
 0x22c   : > { %v7828_v36 = vpop.eup %7827 }
 0x22d   : > { %v531_v38 = vmul.f32 %v7828_v36, %v523_v25 }
 0x22f   : > { %v536_v40 = vmul.f32 %v6373_v37, %v531_v38  ;;  %v6408_v37 = vld [vmem:[%s9500_s5 + $0x1] ss:$0 sm:$0xff] }
 0x231   : > { %v541_v41 = vadd.f32 %v6374_v39, %v536_v40 }
 0x233   : > { %v8196_v43 = vpack.c.bf16 %v541_v41, %v541_v41 }
 0x235   : > { %6973 = vmatmul.mubr.msk.bf16.vlgmr.msra.gmra.mxu1 %vm576_vm3, %v8196_v43  ;;  %7017 = vmatmul.mubr.msk.bf16.vlgmr.msra.gmra.mxu0 %vm576_vm3, %v8196_v43 }
 0x236   : > { %6977 = vmatpush3.bf16.msra.mxu1 %v7769_v42  ;;  %6980 = vmatprep.mubr.msk.bf16.mxu1 %vm8032_vm2, %v8031_v30 }
 0x237   : > { %6978 = vmatprep.subr.bf16.mxu1 %v8031_v30  ;;  %7030 = vmatprep.mubr.msk.bf16.mxu0 %vm8032_vm2, %v8031_v30 }
 0x23a   : > { %6979 = vmatpush3.bf16.msra.mxu1 %v7770_v44 }
 0x23b   : > { %6984 = vmatprep.subr.bf16.mxu1 %v8031_v30 }
 0x23d   : > { %6981 = vmatmul.mubr.msk.bf16.vlgmr.msra.gmra.mxu1 %vm576_vm3, %v8196_v43 }
 0x23e   : > { %6985 = vmatpush3.bf16.msra.mxu1 %v7771_v45  ;;  %6988 = vmatprep.mubr.msk.bf16.mxu1 %vm8032_vm2, %v8031_v30 }
 0x23f   : > { %6986 = vmatprep.subr.bf16.mxu1 %v8031_v30 }
 0x242   : > { %6987 = vmatpush3.bf16.msra.mxu1 %v7772_v46 }
 0x243   : > { %6992 = vmatprep.subr.bf16.mxu1 %v8031_v30 }
 0x245   : > { %6989 = vmatmul.mubr.msk.bf16.vlgmr.msra.gmra.mxu1 %vm576_vm3, %v8196_v43 }
 0x246   : > { %6994 = vmatprep.mubr.msk.bf16.mxu1 %vm8032_vm2, %v8031_v30 }
 0x2f5   : > { %v614_v47 = vpop.f32.mrf.mxu1  ;;  %v962_v48 = vpop.f32.mrf.mxu0 }
 0x2f6   : > { %v1021_v49 = vpack.c.bf16 %v962_v48, %v962_v48  ;;  %v615_v63 = vadd.f32 %v6383_v59, %v614_v47 }
 0x2f7   : > { %v6974_v50 = vpop.f32.mrf.mxu1  ;;  %v7018_v51 = vpop.f32.mrf.mxu0 }
 0x2f8   : > { %v1026_v52 = vsel %vm726_vm4, %v1021_v49, 0  ;;  %v724_v6 = vpack.c.bf16 %v615_v63, %v615_v63 }
 0x2f9   : > { %v617_v53 = vpop.f32.mrf.mxu1  ;;  %v965_v54 = vpop.f32.mrf.mxu0  ;;  %7029 = vmatpush3.bf16.xpose.msra.mxu0 %v1026_v52 }
 0x2fa   : > { %7040 = vmatprep.subr.bf16.mxu0 %v8031_v30 }
 0x2fb   : > { %v6975_v55 = vpop.f32.mrf.mxu1  ;;  %v7019_v56 = vpop.f32.mrf.mxu0 }
 0x2fd   : > { %v666_v57 = vpop.f32.mrf.mxu1 }
 0x2fe   : > { %v725_v58 = vpack.c.bf16 %v666_v57, %v666_v57 }
 0x2ff   : > { %v6982_v60 = vpop.f32.mrf.mxu1 }
 0x300   : > { %v731_v61 = vsel %vm726_vm4, %v725_v58, 0 }
 0x301   : > { %v669_v62 = vpop.f32.mrf.mxu1  ;;  %6993 = vmatpush3.bf16.xpose.msra.mxu1 %v731_v61 }
 0x302   : > { %6998 = vmatprep.subr.bf16.mxu1 %v8031_v30  ;;  %v6420_v62 = vld [vmem:[%s9499_s4 + $0x4] sm:$0xf] }
 0x303   : > { %v6983_v3 = vpop.f32.mrf.mxu1  ;;  %v8284_v63 = vsel %vm1134_vm9, %v6420_v62, 0 }
 0x304   : > { %v840_v3 = vld [vmem:[%s9499_s4] sm:$0xf] }
 0x305   : > { %v718_v4 = vpop.f32.mrf.mxu1 }
 0x306   : > { %v787_v7 = vpack.c.bf16 %v718_v4, %v718_v4 }
 0x307   : > { %v6990_v8 = vpop.f32.mrf.mxu1 }
 0x308   : > { %v797_v9 = vand.u32 %v8234_v5, %v787_v7  ;;  %6995 = vmatmul.mubr.msk.bf16.vlgmr.msra.gmra.mxu1 %vm726_vm4, %v724_v6  ;;  %v8292_v7 = vsel %vm1134_vm9, %v840_v3, 0  ;;  %v7777_v8 = vld [vmem:[%s9498_s3 + $0x68] sm:$0xff]  }
 0x309   : > { %v721_v10 = vpop.f32.mrf.mxu1  ;;  %7000 = vmatprep.mubr.msk.bf16.mxu1 %vm8032_vm2, %v8031_v30 }
 0x30a   : > { %6999 = vmatpush3.bf16.msra.mxu1 %v797_v9  ;;  %v7778_v10 = vld [vmem:[%s9498_s3 + $0x60] sm:$0xff]  }
 0x30b   : > { %v6991_v11 = vpop.f32.mrf.mxu1  ;;  %7004 = vmatprep.subr.bf16.mxu1 %v8031_v30 }
 0x3c8   : > { %v767_v12 = vpop.f32.mrf.mxu1 }
 0x3c9   : > { %v773_v13 = vmul.f32 0.35355338, %v767_v12  ;;  %v7779_v12 = vld [vmem:[%s9498_s3 + $0x28] sm:$0xff]  }
 0x3ca   : > { %v6996_v14 = vpop.f32.mrf.mxu1 }
 0x3cb   : > { %v775_v15 = vsel %vm774_vm7, %v773_v13, -inf }
 0x3cc   : > { %776 = vmax.xlane.f32.xlu1 %v775_v15  ;;  %v770_v16 = vpop.f32.mrf.mxu1 }
 0x3cd   : > { %v7780_v16 = vld [vmem:[%s9498_s3 + $0x20] sm:$0xff]  }
 0x3ce   : > { %v6997_v17 = vpop.f32.mrf.mxu1 }
 0x455   : > { %v777_v19 = vpop.xlane.xlu1 %776 }
 0x456   : > { %v778_v20 = vsub.f32 %v773_v13, %v777_v19 }
 0x458   : > { %v779_v21 = vmul.f32 1.442695, %v778_v20  ;;  %v7781_v20 = vld [vmem:[%s9498_s3 + $0xa8] sm:$0xff]  }
 0x45a   : > { %7829 = vpow2.f32 %v779_v21 }
 0x467   : > { %v7830_v22 = vpop.eup %7829 }
 0x468   : > { %v781_v23 = vsel %vm774_vm7, %v7830_v22, 0.0 }
 0x469   : > { %782 = vadd.xlane.f32.xlu1 %v781_v23  ;;  %v7782_v23 = vld [vmem:[%s9498_s3 + $0xa0] sm:$0xff]  }
 0x4f2   : > { %v783_v24 = vpop.xlane.xlu1 %782 }
 0x4f3   : > { %7831 = vrcp.f32 %v783_v24 }
 0x500   : > { %v7832_v25 = vpop.eup %7831 }
 0x501   : > { %v785_v26 = vmul.f32 %v7832_v25, %v7830_v22 }
 0x503   : > { %v786_v28 = vpack.c.bf16 %v785_v26, %v785_v26 }
 0x505   : > { %7001 = vmatmul.mubr.msk.bf16.vlgmr.msra.gmra.mxu1 %vm788_vm8, %v786_v28 }
 0x506   : > { %7005 = vmatpush3.bf16.msra.mxu1 %v7773_v27  ;;  %7008 = vmatprep.mubr.msk.bf16.mxu1 %vm8032_vm2, %v8031_v30 }
 0x507   : > { %7006 = vmatprep.subr.bf16.mxu1 %v8031_v30 }
 0x50a   : > { %7007 = vmatpush3.bf16.msra.mxu1 %v7774_v29 }
 0x50b   : > { %7020 = vmatprep.subr.bf16.mxu1 %v8031_v30 }
 0x50d   : > { %7009 = vmatmul.mubr.msk.bf16.vlgmr.msra.gmra.mxu1 %vm576_vm3, %v8196_v43 }
 0x50e   : > { %7021 = vmatpush3.bf16.msra.mxu1 %v7775_v31  ;;  %7024 = vmatprep.mubr.msk.bf16.mxu1 %vm8032_vm2, %v8031_v30 }
 0x50f   : > { %7022 = vmatprep.subr.bf16.mxu1 %v8031_v30 }
 0x512   : > { %7023 = vmatpush3.bf16.msra.mxu1 %v7776_v32 }
 0x513   : > { %7034 = vmatprep.subr.bf16.mxu1 %v8031_v30 }
 0x515   : > { %7025 = vmatmul.mubr.msk.bf16.vlgmr.msra.gmra.mxu1 %vm576_vm3, %v8196_v43 }
 0x516   : > { %7036 = vmatprep.mubr.msk.bf16.mxu1 %vm8032_vm2, %v8031_v30 }
 0x5c5   : > { %v833_v33 = vpop.f32.mrf.mxu1 }
 0x5c6   : > { %v839_v9 = vpack.c.bf16 %v833_v33, %v833_v33 }
 0x5c7   : > { %v7002_v34 = vpop.f32.mrf.mxu1 }
 0x5c9   : > { %v836_v35 = vpop.f32.mrf.mxu1 }
 0x5cb   : > { %v7003_v36 = vpop.f32.mrf.mxu1 }
 0x5cc   : > { %v6436_v36 = vld [vmem:[%s9500_s5 + $0x2] ss:$0 sm:$0xff] }
 0x5cd   : > { %v910_v38 = vpop.f32.mrf.mxu1 }
 0x5ce   : > { %v911_v39 = vadd.f32 %v6408_v37, %v910_v38 }
 0x5cf   : > { %v7010_v40 = vpop.f32.mrf.mxu1 }
 0x5d0   : > { %v1020_v41 = vpack.c.bf16 %v911_v39, %v911_v39 }
 0x5d1   : > { %v913_v42 = vpop.f32.mrf.mxu1 }
 0x5d2   : > { %7031 = vmatmul.mubr.msk.bf16.vlgmr.msra.gmra.mxu0 %vm726_vm4, %v1020_v41 }
 0x5d3   : > { %v7011_v44 = vpop.f32.mrf.mxu1  ;;  %7042 = vmatprep.mubr.msk.bf16.mxu0 %vm8032_vm2, %v8031_v30  ;;  %7041 = vmatpush3.bf16.msra.mxu0 %v8284_v63 }
 0x5d4   : > { %7052 = vmatprep.subr.bf16.mxu0 %v8031_v30 }
 0x5d5   : > { %v1014_v45 = vpop.f32.mrf.mxu1 }
 0x5d6   : > { %v1081_v46 = vpack.c.bf16 %v1014_v45, %v1014_v45 }
 0x5d7   : > { %v7026_v47 = vpop.f32.mrf.mxu1 }
 0x5d8   : > { %v1086_v48 = vand.u32 %v1081_v46, %v8234_v5 }
 0x5d9   : > { %v1017_v49 = vpop.f32.mrf.mxu1 }
 0x5da   : > { %7035 = vmatpush3.bf16.msra.mxu1 %v1086_v48 }
 0x5db   : > { %v7027_v50 = vpop.f32.mrf.mxu1  ;;  %7046 = vmatprep.subr.bf16.mxu1 %v8031_v30 }
 0x692   : > { %v1062_v51 = vpop.f32.mrf.mxu0 }
 0x693   : > { %v1068_v52 = vmul.f32 0.35355338, %v1062_v51 }
 0x694   : > { %v7032_v53 = vpop.f32.mrf.mxu0 }
 0x695   : > { %v1069_v54 = vsel %vm774_vm7, %v1068_v52, -inf }
 0x696   : > { %1070 = vmax.xlane.f32.xlu0 %v1069_v54  ;;  %v1065_v55 = vpop.f32.mrf.mxu0 }
 0x698   : > { %v7033_v56 = vpop.f32.mrf.mxu0 }
 0x71f   : > { %v1071_v57 = vpop.xlane.xlu0 %1070 }
 0x720   : > { %v1072_v58 = vsub.f32 %v1068_v52, %v1071_v57 }
 0x722   : > { %v1073_v59 = vmul.f32 1.442695, %v1072_v58 }
 0x724   : > { %7833 = vpow2.f32 %v1073_v59 }
 0x731   : > { %v7834_v60 = vpop.eup %7833 }
 0x732   : > { %v1075_v61 = vsel %vm774_vm7, %v7834_v60, 0.0 }
 0x733   : > { %1076 = vadd.xlane.f32.xlu1 %v1075_v61  ;;  %v6448_v61 = vld [vmem:[%s9499_s4 + $0x8] sm:$0xf] }
 0x734   : > { %v8361_v62 = vsel %vm1134_vm9, %v6448_v61, 0 }
 0x7bc   : > { %v1077_v0 = vpop.xlane.xlu1 %1076 }
 0x7bd   : > { %7835 = vrcp.f32 %v1077_v0 }
 0x7ca   : > { %v7836_v2 = vpop.eup %7835 }
 0x7cb   : > { %v1079_v4 = vmul.f32 %v7836_v2, %v7834_v60 }
 0x7cd   : > { %v1080_v6 = vpack.c.bf16 %v1079_v4, %v1079_v4  ;;  %v7783_v4 = vld [vmem:[%s9498_s3 + $0x38] sm:$0xff]  }
 0x7cf   : > { %7037 = vmatmul.mubr.msk.bf16.vlgmr.msra.gmra.mxu1 %vm788_vm8, %v1080_v6 }
 0x7d0   : > { %7047 = vmatpush3.bf16.msra.mxu1 %v8292_v7  ;;  %7048 = vmatprep.mubr.msk.bf16.mxu1 %vm8032_vm2, %v8031_v30 }
 0x7d1   : > { %7060 = vmatprep.subr.bf16.mxu1 %v8031_v30 }
 0x7d7   : > { %7049 = vmatmul.mubr.msk.bf16.vlgmr.msra.gmra.mxu1 %vm726_vm4, %v839_v9  ;;  %v7785_v9 = vld [vmem:[%s9498_s3 + $0xb8] sm:$0xff]  }
 0x7d8   : > { %7061 = vmatpush3.bf16.msra.mxu1 %v7777_v8  ;;  %7064 = vmatprep.mubr.msk.bf16.mxu1 %vm8032_vm2, %v8031_v30  ;;  %v7784_v8 = vld [vmem:[%s9498_s3 + $0x30] sm:$0xff]  }
 0x7d9   : > { %7062 = vmatprep.subr.bf16.mxu1 %v8031_v30 }
 0x7dc   : > { %7063 = vmatpush3.bf16.msra.mxu1 %v7778_v10  ;;  %v7786_v10 = vld [vmem:[%s9498_s3 + $0xb0] sm:$0xff]  }
 0x7dd   : > { %7076 = vmatprep.subr.bf16.mxu1 %v8031_v30 }
 0x7df   : > { %7065 = vmatmul.mubr.msk.bf16.vlgmr.msra.gmra.mxu1 %vm576_vm3, %v8196_v43 }
 0x7e0   : > { %7078 = vmatprep.mubr.msk.bf16.mxu1 %vm8032_vm2, %v8031_v30 }
 0x88f   : > { %v1122_v11 = vpop.f32.mrf.mxu1 }
 0x890   : > { %v1128_v13 = vpack.c.bf16 %v1122_v11, %v1122_v11 }
 0x891   : > { %v7038_v14 = vpop.f32.mrf.mxu1 }
 0x892   : > { %7043 = vmatmul.mubr.msk.bf16.vlgmr.msra.gmra.mxu0 %vm726_vm4, %v1128_v13 }
 0x893   : > { %v1125_v15 = vpop.f32.mrf.mxu1  ;;  %7053 = vmatpush3.bf16.msra.mxu0 %v7779_v12  ;;  %7056 = vmatprep.mubr.msk.bf16.mxu0 %vm8032_vm2, %v8031_v30  ;;  %v7787_v12 = vld [vmem:[%s9498_s3 + $0x78] sm:$0xff]  }
 0x894   : > { %7054 = vmatprep.subr.bf16.mxu0 %v8031_v30 }
 0x895   : > { %v7039_v17 = vpop.f32.mrf.mxu1 }
 0x897   : > { %v8324_v19 = vpop.f32.mrf.mxu1  ;;  %7055 = vmatpush3.bf16.msra.mxu0 %v7780_v16  ;;  %v7788_v16 = vld [vmem:[%s9498_s3 + $0x70] sm:$0xff]  }
 0x898   : > { %7068 = vmatprep.subr.bf16.mxu0 %v8031_v30 }
 0x899   : > { %v7050_v21 = vpop.f32.mrf.mxu1 }
 0x89a   : > { %7057 = vmatmul.mubr.msk.bf16.vlgmr.msra.gmra.mxu0 %vm576_vm3, %v8196_v43 }
 0x89b   : > { %v1221_v22 = vpop.f32.mrf.mxu1  ;;  %7069 = vmatpush3.bf16.msra.mxu0 %v7781_v20  ;;  %7072 = vmatprep.mubr.msk.bf16.mxu0 %vm8032_vm2, %v8031_v30 }
 0x89c   : > { %7070 = vmatprep.subr.bf16.mxu0 %v8031_v30 }
 0x89d   : > { %v7051_v24 = vpop.f32.mrf.mxu1 }
 0x89f   : > { %v1345_v25 = vpop.f32.mrf.mxu1  ;;  %7071 = vmatpush3.bf16.msra.mxu0 %v7782_v23 }
 0x8a0   : > { %v1404_v26 = vpack.c.bf16 %v1345_v25, %v1345_v25  ;;  %7082 = vmatprep.subr.bf16.mxu0 %v8031_v30 }
 0x8a1   : > { %v7066_v27 = vpop.f32.mrf.mxu1 }
 0x8a2   : > { %v1409_v28 = vsel %vm726_vm4, %v1404_v26, 0  ;;  %7073 = vmatmul.mubr.msk.bf16.vlgmr.msra.gmra.mxu0 %vm576_vm3, %v8196_v43 }
 0x8a3   : > { %v1348_v29 = vpop.f32.mrf.mxu1  ;;  %7077 = vmatpush3.bf16.xpose.msra.mxu1 %v1409_v28  ;;  %7084 = vmatprep.mubr.msk.bf16.mxu0 %vm8032_vm2, %v8031_v30 }
 0x8a4   : > { %7088 = vmatprep.subr.bf16.mxu1 %v8031_v30 }
 0x8a5   : > { %v7067_v31 = vpop.f32.mrf.mxu1 }
 0x952   : > { %v8345_v32 = vpop.f32.mrf.mxu0 }
 0x953   : > { %v1219_v31 = vadd.f32 %v8324_v19, %v8345_v32 }
 0x954   : > { %v7044_v33 = vpop.f32.mrf.mxu0 }
 0x956   : > { %v1175_v34 = vpop.f32.mrf.mxu0 }
 0x958   : > { %v7045_v35 = vpop.f32.mrf.mxu0 }
 0x95a   : > { %v1293_v37 = vpop.f32.mrf.mxu0 }
 0x95b   : > { %v1294_v38 = vadd.f32 %v6436_v36, %v1293_v37 }
 0x95c   : > { %v7058_v39 = vpop.f32.mrf.mxu0 }
 0x95d   : > { %v1403_v40 = vpack.c.bf16 %v1294_v38, %v1294_v38  ;;  %v6463_v39 = vld [vmem:[%s9500_s5 + $0x3] ss:$0 sm:$0xff] }
 0x95e   : > { %v1296_v41 = vpop.f32.mrf.mxu0 }
 0x95f   : > { %7079 = vmatmul.mubr.msk.bf16.vlgmr.msra.gmra.mxu1 %vm726_vm4, %v1403_v40 }
 0x960   : > { %v7059_v42 = vpop.f32.mrf.mxu0  ;;  %7090 = vmatprep.mubr.msk.bf16.mxu1 %vm8032_vm2, %v8031_v30  ;;  %7089 = vmatpush3.bf16.msra.mxu1 %v8361_v62 }
 0x961   : > { %7102 = vmatprep.subr.bf16.mxu1 %v8031_v30 }
 0x962   : > { %v1397_v44 = vpop.f32.mrf.mxu0 }
 0x963   : > { %v1464_v45 = vpack.c.bf16 %v1397_v44, %v1397_v44 }
 0x964   : > { %v7074_v46 = vpop.f32.mrf.mxu0 }
 0x965   : > { %v1469_v47 = vand.u32 %v1464_v45, %v8234_v5 }
 0x966   : > { %v1400_v48 = vpop.f32.mrf.mxu0 }
 0x967   : > { %7083 = vmatpush3.bf16.msra.mxu0 %v1469_v47 }
 0x968   : > { %v7075_v49 = vpop.f32.mrf.mxu0  ;;  %7094 = vmatprep.subr.bf16.mxu0 %v8031_v30 }
 0xa1f   : > { %v1445_v50 = vpop.f32.mrf.mxu1 }
 0xa20   : > { %v1451_v51 = vmul.f32 0.35355338, %v1445_v50 }
 0xa21   : > { %v7080_v52 = vpop.f32.mrf.mxu1 }
 0xa22   : > { %v1452_v53 = vsel %vm774_vm7, %v1451_v51, -inf }
 0xa23   : > { %1453 = vmax.xlane.f32.xlu0 %v1452_v53  ;;  %v1448_v54 = vpop.f32.mrf.mxu1 }
 0xa25   : > { %v7081_v55 = vpop.f32.mrf.mxu1 }
 0xaac   : > { %v1454_v56 = vpop.xlane.xlu0 %1453 }
 0xaad   : > { %v1455_v57 = vsub.f32 %v1451_v51, %v1454_v56  ;;  %v6475_v56 = vld [vmem:[%s9499_s4 + $0xc] sm:$0xf] }
 0xaaf   : > { %v1456_v58 = vmul.f32 1.442695, %v1455_v57  ;;  %v8425_v57 = vsel %vm1134_vm9, %v6475_v56, 0 }
 0xab1   : > { %7837 = vpow2.f32 %v1456_v58 }
 0xabe   : > { %v7838_v59 = vpop.eup %7837 }
 0xabf   : > { %v1458_v60 = vsel %vm774_vm7, %v7838_v59, 0.0 }
 0xac0   : > { %1459 = vadd.xlane.f32.xlu1 %v1458_v60 }
 0xb49   : > { %v1460_v0 = vpop.xlane.xlu1 %1459 }
 0xb4a   : > { %7839 = vrcp.f32 %v1460_v0 }
 0xb57   : > { %v7840_v2 = vpop.eup %7839 }
 0xb58   : > { %v1462_v3 = vmul.f32 %v7840_v2, %v7838_v59 }
 0xb5a   : > { %v1463_v6 = vpack.c.bf16 %v1462_v3, %v1462_v3 }
 0xb5c   : > { %7085 = vmatmul.mubr.msk.bf16.vlgmr.msra.gmra.mxu0 %vm788_vm8, %v1463_v6 }
 0xb5d   : > { %7095 = vmatpush3.bf16.msra.mxu0 %v7783_v4  ;;  %7098 = vmatprep.mubr.msk.bf16.mxu0 %vm8032_vm2, %v8031_v30 }
 0xb5e   : > { %7096 = vmatprep.subr.bf16.mxu0 %v8031_v30 }
 0xb61   : > { %7097 = vmatpush3.bf16.msra.mxu0 %v7784_v8 }
 0xb62   : > { %7110 = vmatprep.subr.bf16.mxu0 %v8031_v30 }
 0xb64   : > { %7099 = vmatmul.mubr.msk.bf16.vlgmr.msra.gmra.mxu0 %vm576_vm3, %v8196_v43 }
 0xb65   : > { %7111 = vmatpush3.bf16.msra.mxu0 %v7785_v9  ;;  %7114 = vmatprep.mubr.msk.bf16.mxu0 %vm8032_vm2, %v8031_v30 }
 0xb66   : > { %7112 = vmatprep.subr.bf16.mxu0 %v8031_v30 }
 0xb69   : > { %7113 = vmatpush3.bf16.msra.mxu0 %v7786_v10  ;;  %v6477_v10 = vld [vmem:[%s9497_s2 + $0x2] ss:$0 sm:$0xff] }
 0xb6a   : > { %7124 = vmatprep.subr.bf16.mxu0 %v8031_v30 }
 0xb6c   : > { %7115 = vmatmul.mubr.msk.bf16.vlgmr.msra.gmra.mxu0 %vm576_vm3, %v8196_v43 }
 0xb6d   : > { %7126 = vmatprep.mubr.msk.bf16.mxu0 %vm8032_vm2, %v8031_v30 }
 0xc1c   : > { %v1505_v11 = vpop.f32.mrf.mxu0 }
 0xc1d   : > { %v1511_v13 = vpack.c.bf16 %v1505_v11, %v1505_v11 }
 0xc1e   : > { %v7086_v14 = vpop.f32.mrf.mxu0 }
 0xc1f   : > { %7091 = vmatmul.mubr.msk.bf16.vlgmr.msra.gmra.mxu1 %vm726_vm4, %v1511_v13 }
 0xc20   : > { %v1508_v15 = vpop.f32.mrf.mxu0  ;;  %7103 = vmatpush3.bf16.msra.mxu1 %v7787_v12  ;;  %7106 = vmatprep.mubr.msk.bf16.mxu1 %vm8032_vm2, %v8031_v30 }
 0xc21   : > { %7104 = vmatprep.subr.bf16.mxu1 %v8031_v30 }
 0xc22   : > { %v7087_v17 = vpop.f32.mrf.mxu0 }
 0xc24   : > { %v1630_v20 = vpop.f32.mrf.mxu0  ;;  %7105 = vmatpush3.bf16.msra.mxu1 %v7788_v16 }
 0xc25   : > { %7118 = vmatprep.subr.bf16.mxu1 %v8031_v30  ;;  %v1631_v44 = vadd.f32 %v6463_v39, %v1630_v20  ;;  %v7794_v39 = vld [vmem:[%s9502_s7] sm:$0xff]  }
 0xc26   : > { %v7100_v21 = vpop.f32.mrf.mxu0 }
 0xc27   : > { %7107 = vmatmul.mubr.msk.bf16.vlgmr.msra.gmra.mxu1 %vm576_vm3, %v8196_v43  ;;  %v1740_v32 = vpack.c.bf16 %v1631_v44, %v1631_v44 }
 0xc28   : > { %v1633_v22 = vpop.f32.mrf.mxu0  ;;  %7120 = vmatprep.mubr.msk.bf16.mxu1 %vm8032_vm2, %v8031_v30 }
 0xc2a   : > { %v7101_v23 = vpop.f32.mrf.mxu0 }
 0xc2c   : > { %v1734_v24 = vpop.f32.mrf.mxu0 }
 0xc2d   : > { %v1801_v25 = vpack.c.bf16 %v1734_v24, %v1734_v24  ;;  %v7789_v24 = vld [vmem:[%s9501_s6 + $0x8] sm:$0xff]  }
 0xc2e   : > { %v7116_v26 = vpop.f32.mrf.mxu0 }
 0xc2f   : > { %v1806_v27 = vand.u32 %v1801_v25, %v8234_v5 }
 0xc30   : > { %v1737_v28 = vpop.f32.mrf.mxu0 }
 0xc31   : > { %7125 = vmatpush3.bf16.msra.mxu0 %v1806_v27 }
 0xc32   : > { %v7117_v29 = vpop.f32.mrf.mxu0  ;;  %7136 = vmatprep.subr.bf16.mxu0 %v8031_v30 }
 0xc33   : > { %v6478_v29 = vld [vmem:[%s9497_s2 + $0x3] ss:$0 sm:$0xff] }
 0xcdf   : > { %v1554_v33 = vpop.f32.mrf.mxu1 }
 0xce0   : > { %v1560_v43 = vadd.f32 %v1554_v33, %v1219_v31  ;;  %v6479_v33 = vld [vmem:[%s9497_s2 + $0x4] ss:$0 sm:$0xff] }
 0xce1   : > { %v7092_v34 = vpop.f32.mrf.mxu1 }
 0xce3   : > { %v1557_v35 = vpop.f32.mrf.mxu1 }
 0xce5   : > { %v7093_v36 = vpop.f32.mrf.mxu1 }
 0xce6   : > { %v7791_v36 = vld [vmem:[%s9502_s7 + $0x18] sm:$0xff]  }
 0xce7   : > { %v1682_v37 = vpop.f32.mrf.mxu1 }
 0xce8   : > { %v1741_v38 = vpack.c.bf16 %v1682_v37, %v1682_v37  ;;  %v7792_v37 = vld [vmem:[%s9502_s7 + $0x10] sm:$0xff]  }
 0xce9   : > { %v7108_v40 = vpop.f32.mrf.mxu1 }
 0xcea   : > { %v1746_v41 = vsel %vm726_vm4, %v1741_v38, 0  ;;  %v7793_v38 = vld [vmem:[%s9502_s7 + $0x8] sm:$0xff]   ;;  %v6480_v40 = vld [vmem:[%s9497_s2 + $0x5] ss:$0 sm:$0xff] }
 0xceb   : > { %v1685_v42 = vpop.f32.mrf.mxu1  ;;  %7119 = vmatpush3.bf16.xpose.msra.mxu1 %v1746_v41 }
 0xcec   : > { %7130 = vmatprep.subr.bf16.mxu1 %v8031_v30 }
 0xced   : > { %v7109_v19 = vpop.f32.mrf.mxu1 }
 0xcf2   : > { %7121 = vmatmul.mubr.msk.bf16.vlgmr.msra.gmra.mxu1 %vm726_vm4, %v1740_v32 }
 0xcf3   : > { %7132 = vmatprep.mubr.msk.bf16.mxu1 %vm8032_vm2, %v8031_v30  ;;  %7131 = vmatpush3.bf16.msra.mxu1 %v8425_v57 }
 0xcf4   : > { %7144 = vmatprep.subr.bf16.mxu1 %v8031_v30 }
 0xdb2   : > { %v1782_v45 = vpop.f32.mrf.mxu1 }
 0xdb3   : > { %v1788_v46 = vmul.f32 0.35355338, %v1782_v45 }
 0xdb4   : > { %v7122_v47 = vpop.f32.mrf.mxu1 }
 0xdb5   : > { %v1789_v48 = vsel %vm774_vm7, %v1788_v46, -inf }
 0xdb6   : > { %1790 = vmax.xlane.f32.xlu0 %v1789_v48  ;;  %v1785_v49 = vpop.f32.mrf.mxu1 }
 0xdb8   : > { %v7123_v50 = vpop.f32.mrf.mxu1 }
 0xe3f   : > { %v1791_v51 = vpop.xlane.xlu0 %1790 }
 0xe40   : > { %v1792_v52 = vsub.f32 %v1788_v46, %v1791_v51 }
 0xe42   : > { %v1793_v53 = vmul.f32 1.442695, %v1792_v52 }
 0xe44   : > { %7841 = vpow2.f32 %v1793_v53 }
 0xe51   : > { %v7842_v54 = vpop.eup %7841 }
 0xe52   : > { %v1795_v55 = vsel %vm774_vm7, %v7842_v54, 0.0 }
 0xe53   : > { %1796 = vadd.xlane.f32.xlu1 %v1795_v55  ;;  %v6489_v55 = vld [vmem:[%s9497_s2 + $0x6] ss:$0 sm:$0xff] }
 0xedc   : > { %v1797_v58 = vpop.xlane.xlu1 %1796 }
 0xedd   : > { %7843 = vrcp.f32 %v1797_v58 }
 0xeea   : > { %v7844_v59 = vpop.eup %7843 }
 0xeeb   : > { %v1799_v60 = vmul.f32 %v7844_v59, %v7842_v54 }
 0xeed   : > { %v1800_v61 = vpack.c.bf16 %v1799_v60, %v1799_v60 }
 0xeef   : > { %7127 = vmatmul.mubr.msk.bf16.vlgmr.msra.gmra.mxu0 %vm788_vm8, %v1800_v61 }
 0xef0   : > { %7140 = vmatprep.mubr.msk.bf16.mxu0 %vm8032_vm2, %v8031_v30  ;;  %7137 = vmatpush3.bf16.msra.mxu0 %v7789_v24 }
 0xef1   : > { %7138 = vmatprep.subr.bf16.mxu0 %v8031_v30 }
 0xfaf   : > { %v1842_v0 = vpop.f32.mrf.mxu0 }
 0xfb0   : > { %v1848_v2 = vpack.c.bf16 %v1842_v0, %v1842_v0 }
 0xfb1   : > { %v7128_v3 = vpop.f32.mrf.mxu0 }
 0xfb2   : > { %7133 = vmatmul.mubr.msk.bf16.vlgmr.msra.gmra.mxu1 %vm726_vm4, %v1848_v2 }
 0xfb3   : > { %v1845_v4 = vpop.f32.mrf.mxu0  ;;  %7152 = vmatprep.mubr.msk.bf16.mxu1 %vm8032_vm2, %v8031_v30  ;;  %7145 = vmatpush3.bf16.msra.mxu1 %v7791_v36 }
 0xfb4   : > { %7146 = vmatprep.subr.bf16.mxu1 %v8031_v30 }
 0xfb5   : > { %v7129_v6 = vpop.f32.mrf.mxu0 }
 0xfb7   : > { %7147 = vmatpush3.bf16.msra.mxu1 %v7792_v37 }
 0xfb8   : > { %7148 = vmatprep.subr.bf16.mxu1 %v8031_v30 }
 0xfbb   : > { %7149 = vmatpush3.bf16.msra.mxu1 %v7793_v38 }
 0xfbc   : > { %7150 = vmatprep.subr.bf16.mxu1 %v8031_v30 }
 0xfbf   : > { %7151 = vmatpush3.bf16.msra.mxu1 %v7794_v39 }
 0xfc0   : > { %7172 = vmatprep.subr.bf16.mxu1 %v8031_v30 }
0x1072   : > { %v1891_v8 = vpop.f32.mrf.mxu1 }
0x1073   : > { %v1897_v9 = vadd.f32 %v1891_v8, %v1560_v43 }
0x1074   : > { %v7134_v11 = vpop.f32.mrf.mxu1 }
0x1075   : > { %v1898_v12 = vadd.f32 %v1897_v9, %v8159_v18  ;;  %v7790_v18 = vld [vmem:[%s9501_s6] sm:$0xff]   ;;  %v7796_v11 = vld [vmem:[%s9498_s3 + $0x148] sm:$0xff]  }
0x1076   : > { %v1894_v13 = vpop.f32.mrf.mxu1  ;;  %7139 = vmatpush3.bf16.msra.mxu0 %v7790_v18  ;;  %v7799_v18 = vld [vmem:[%s9498_s3 + $0x108] sm:$0xff]  }
0x1077   : > { %v1903_v14 = vadd.f32 %v6477_v10, %v1898_v12  ;;  %7156 = vmatprep.subr.bf16.mxu0 %v8031_v30  ;;  %v7795_v10 = vld [vmem:[%s9498_s3 + $0xc8] sm:$0xff]   ;;  %v7797_v12 = vld [vmem:[%s9498_s3 + $0xc0] sm:$0xff]  }
0x1078   : > { %v7135_v15 = vpop.f32.mrf.mxu1  ;;  %v7798_v13 = vld [vmem:[%s9498_s3 + $0x140] sm:$0xff]  }
0x1079   : > { %v1904_v16 = vsel %vm517_vm1, %v1903_v14, 0.0 }
0x107a   : > { %1905 = vadd.xlane.f32.xlu0 %v1904_v16 }
0x1103   : > { %v1906_v17 = vpop.xlane.xlu0 %1905 }
0x1104   : > { %v1907_v20 = vmul.f32 0.03125, %v1906_v17 }
0x1106   : > { %v1908_v21 = vsub.f32 %v1903_v14, %v1907_v20  ;;  %v6490_v20 = vld [vmem:[%s9497_s2 + $0x7] ss:$0 sm:$0xff] }
0x1108   : > { %v1909_v22 = vmul.f32 %v1908_v21, %v1908_v21 }
0x110a   : > { %v1910_v23 = vsel %vm517_vm1, %v1909_v22, 0.0  ;;  %v6491_v22 = vld [vmem:[%s9497_s2 + $0x8] ss:$0 sm:$0xff] }
0x110b   : > { %1911 = vadd.xlane.f32.xlu1 %v1910_v23 }
0x1194   : > { %v1912_v25 = vpop.xlane.xlu1 %1911 }
0x1195   : > { %v1913_v26 = vmul.f32 0.03125, %v1912_v25 }
0x1197   : > { %v1914_v27 = vadd.f32 1e-12, %v1913_v26  ;;  %v7800_v26 = vld [vmem:[%s9498_s3 + $0x100] sm:$0xff]  }
0x1199   : > { %7845 = vrsqrt.f32 %v1914_v27 }
0x11a6   : > { %v7846_v28 = vpop.eup %7845 }
0x11a7   : > { %v1916_v31 = vmul.f32 %v7846_v28, %v1908_v21 }
0x11a9   : > { %v1921_v43 = vmul.f32 %v6478_v29, %v1916_v31 }
0x11ab   : > { %v1926_v34 = vadd.f32 %v6479_v33, %v1921_v43 }
0x11ad   : > { %v1927_v35 = vpack.c.bf16 %v1926_v34, %v1926_v34 }
0x11af   : > { %7141 = vmatmul.mubr.msk.bf16.vlgmr.msra.gmra.mxu0 %vm576_vm3, %v1927_v35 }
0x11b0   : > { %7160 = vmatprep.mubr.msk.bf16.mxu0 %vm8032_vm2, %v8031_v30  ;;  %7157 = vmatpush3.bf16.msra.mxu0 %v7795_v10 }
0x11b1   : > { %7158 = vmatprep.subr.bf16.mxu0 %v8031_v30 }
0x11b4   : > { %7159 = vmatpush3.bf16.msra.mxu0 %v7797_v12 }
0x11b5   : > { %7164 = vmatprep.subr.bf16.mxu0 %v8031_v30 }
0x126f   : > { %v1985_v41 = vpop.f32.mrf.mxu0 }
0x1270   : > { %v1986_v42 = vadd.f32 %v6480_v40, %v1985_v41  ;;  %v6505_v40 = vld [vmem:[%s9500_s5 + $0x4] ss:$0 sm:$0xff] }
0x1271   : > { %v7142_v44 = vpop.f32.mrf.mxu0 }
0x1272   : > { %v1991_v19 = vmul.f32 %v1986_v42, %v1986_v42 }
0x1273   : > { %v1988_v32 = vpop.f32.mrf.mxu0 }
0x1274   : > { %v1992_v45 = vmul.f32 %v1991_v19, %v1986_v42 }
0x1275   : > { %v7143_v46 = vpop.f32.mrf.mxu0 }
0x1276   : > { %v1993_v47 = vmul.f32 0.044715, %v1992_v45  ;;  %v7801_v45 = vld [vmem:[%s9498_s3 + $0xd8] sm:$0xff]  }
0x1278   : > { %v1994_v48 = vadd.f32 %v1993_v47, %v1986_v42  ;;  %v7802_v47 = vld [vmem:[%s9498_s3 + $0xd0] sm:$0xff]  }
0x127a   : > { %v1995_v49 = vmul.f32 0.7978846, %v1994_v48  ;;  %v7803_v48 = vld [vmem:[%s9498_s3 + $0x158] sm:$0xff]  }
0x127c   : > { %7847 = vtanh.f32 %v1995_v49  ;;  %v7804_v49 = vld [vmem:[%s9498_s3 + $0x150] sm:$0xff]  }
0x1289   : > { %v7848_v50 = vpop.eup %7847 }
0x128a   : > { %v1997_v51 = vadd.f32 1.0, %v7848_v50 }
0x128c   : > { %v1998_v52 = vmul.f32 0.5, %v1997_v51 }
0x128e   : > { %v1999_v53 = vmul.f32 %v1998_v52, %v1986_v42 }
0x1290   : > { %v2000_v54 = vpack.c.bf16 %v1999_v53, %v1999_v53 }
0x1292   : > { %7153 = vmatmul.mubr.msk.bf16.vlgmr.msra.gmra.mxu1 %vm466_vm0, %v2000_v54 }
0x1293   : > { %7176 = vmatprep.mubr.msk.bf16.mxu1 %vm8032_vm2, %v8031_v30  ;;  %7173 = vmatpush3.bf16.msra.mxu1 %v7796_v11 }
0x1294   : > { %7174 = vmatprep.subr.bf16.mxu1 %v8031_v30 }
0x1297   : > { %7175 = vmatpush3.bf16.msra.mxu1 %v7798_v13 }
0x1298   : > { %7186 = vmatprep.subr.bf16.mxu1 %v8031_v30 }
0x1352   : > { %v2070_v56 = vpop.f32.mrf.mxu1 }
0x1353   : > { %v2076_v58 = vadd.f32 %v2070_v56, %v1903_v14 }
0x1354   : > { %v7154_v59 = vpop.f32.mrf.mxu1 }
0x1355   : > { %v8483_v60 = vadd.f32 %v6489_v55, %v2076_v58 }
0x1356   : > { %v2073_v61 = vpop.f32.mrf.mxu1 }
0x1357   : > { %v2089_v0 = vsel %vm517_vm1, %v8483_v60, 0.0 }
0x1358   : > { %2090 = vadd.xlane.f32.xlu0 %v2089_v0  ;;  %v7155_v2 = vpop.f32.mrf.mxu1 }
0x13e1   : > { %v2091_v3 = vpop.xlane.xlu0 %2090 }
0x13e2   : > { %v2092_v4 = vmul.f32 0.03125, %v2091_v3 }
0x13e4   : > { %v2093_v6 = vsub.f32 %v8483_v60, %v2092_v4 }
0x13e6   : > { %v2094_v8 = vmul.f32 %v2093_v6, %v2093_v6 }
0x13e8   : > { %v2095_v9 = vsel %vm517_vm1, %v2094_v8, 0.0 }
0x13e9   : > { %2096 = vadd.xlane.f32.xlu1 %v2095_v9 }
0x1472   : > { %v2097_v14 = vpop.xlane.xlu1 %2096 }
0x1473   : > { %v2098_v15 = vmul.f32 0.03125, %v2097_v14 }
0x1475   : > { %v2099_v16 = vadd.f32 1e-12, %v2098_v15 }
0x1477   : > { %7849 = vrsqrt.f32 %v2099_v16 }
0x1484   : > { %v7850_v17 = vpop.eup %7849 }
0x1485   : > { %v2101_v21 = vmul.f32 %v7850_v17, %v2093_v6  ;;  %v7805_v17 = vld [vmem:[%s9498_s3 + $0x118] sm:$0xff]  }
0x1487   : > { %v2106_v23 = vmul.f32 %v6490_v20, %v2101_v21  ;;  %v7806_v21 = vld [vmem:[%s9498_s3 + $0x110] sm:$0xff]  }
0x1489   : > { %v2111_v24 = vadd.f32 %v6491_v22, %v2106_v23 }
0x148b   : > { %v8514_v25 = vpack.c.bf16 %v2111_v24, %v2111_v24 }
0x148d   : > { %7161 = vmatmul.mubr.msk.bf16.vlgmr.msra.gmra.mxu0 %vm576_vm3, %v8514_v25  ;;  %7177 = vmatmul.mubr.msk.bf16.vlgmr.msra.gmra.mxu1 %vm576_vm3, %v8514_v25 }
0x148e   : > { %7165 = vmatpush3.bf16.msra.mxu0 %v7799_v18  ;;  %7168 = vmatprep.mubr.msk.bf16.mxu0 %vm8032_vm2, %v8031_v30 }
0x148f   : > { %7166 = vmatprep.subr.bf16.mxu0 %v8031_v30  ;;  %7188 = vmatprep.mubr.msk.bf16.mxu1 %vm8032_vm2, %v8031_v30 }
0x1492   : > { %7167 = vmatpush3.bf16.msra.mxu0 %v7800_v26 }
0x1493   : > { %7180 = vmatprep.subr.bf16.mxu0 %v8031_v30 }
0x1495   : > { %7169 = vmatmul.mubr.msk.bf16.vlgmr.msra.gmra.mxu0 %vm576_vm3, %v8514_v25 }
0x1496   : > { %7182 = vmatprep.mubr.msk.bf16.mxu0 %vm8032_vm2, %v8031_v30 }
0x154d   : > { %v2185_v27 = vpop.f32.mrf.mxu0  ;;  %v2289_v28 = vpop.f32.mrf.mxu1 }
0x154e   : > { %v2356_v29 = vpack.c.bf16 %v2289_v28, %v2289_v28  ;;  %v2186_v19 = vadd.f32 %v6505_v40, %v2185_v27  ;;  %v6531_v28 = vld [vmem:[%s9500_s5 + $0x5] ss:$0 sm:$0xff] }
0x154f   : > { %v7162_v31 = vpop.f32.mrf.mxu0  ;;  %v7178_v33 = vpop.f32.mrf.mxu1 }
0x1550   : > { %v2361_v43 = vand.u32 %v2356_v29, %v8234_v5  ;;  %v2295_v46 = vpack.c.bf16 %v2186_v19, %v2186_v19 }
0x1551   : > { %v2188_v34 = vpop.f32.mrf.mxu0  ;;  %v2292_v35 = vpop.f32.mrf.mxu1 }
0x1552   : > { %7187 = vmatpush3.bf16.msra.mxu1 %v2361_v43 }
0x1553   : > { %v7163_v36 = vpop.f32.mrf.mxu0  ;;  %v7179_v37 = vpop.f32.mrf.mxu1  ;;  %7200 = vmatprep.subr.bf16.mxu1 %v8031_v30 }
0x1555   : > { %v2237_v38 = vpop.f32.mrf.mxu0 }
0x1556   : > { %v2296_v39 = vpack.c.bf16 %v2237_v38, %v2237_v38 }
0x1557   : > { %v7170_v41 = vpop.f32.mrf.mxu0 }
0x1558   : > { %v2301_v42 = vsel %vm726_vm4, %v2296_v39, 0 }
0x1559   : > { %v2240_v44 = vpop.f32.mrf.mxu0  ;;  %7181 = vmatpush3.bf16.xpose.msra.mxu0 %v2301_v42 }
0x155a   : > { %7192 = vmatprep.subr.bf16.mxu0 %v8031_v30 }
0x155b   : > { %v7171_v32 = vpop.f32.mrf.mxu0 }
0x1560   : > { %7183 = vmatmul.mubr.msk.bf16.vlgmr.msra.gmra.mxu0 %vm726_vm4, %v2295_v46  ;;  %v6543_v46 = vld [vmem:[%s9499_s4 + $0x14] sm:$0xf] }
0x1561   : > { %7193 = vmatpush3.bf16.msra.mxu0 %v7801_v45  ;;  %7196 = vmatprep.mubr.msk.bf16.mxu0 %vm8032_vm2, %v8031_v30 }
0x1562   : > { %7194 = vmatprep.subr.bf16.mxu0 %v8031_v30 }
0x1565   : > { %7195 = vmatpush3.bf16.msra.mxu0 %v7802_v47  ;;  %v8600_v47 = vsel %vm1134_vm9, %v6543_v46, 0 }
0x1566   : > { %7208 = vmatprep.subr.bf16.mxu0 %v8031_v30 }
0x1568   : > { %7197 = vmatmul.mubr.msk.bf16.vlgmr.msra.gmra.mxu0 %vm576_vm3, %v8514_v25 }
0x1569   : > { %7209 = vmatpush3.bf16.msra.mxu0 %v7803_v48  ;;  %7212 = vmatprep.mubr.msk.bf16.mxu0 %vm8032_vm2, %v8031_v30 }
0x156a   : > { %7210 = vmatprep.subr.bf16.mxu0 %v8031_v30 }
0x156d   : > { %7211 = vmatpush3.bf16.msra.mxu0 %v7804_v49 }
0x156e   : > { %7222 = vmatprep.subr.bf16.mxu0 %v8031_v30 }
0x1570   : > { %7213 = vmatmul.mubr.msk.bf16.vlgmr.msra.gmra.mxu0 %vm576_vm3, %v8514_v25 }
0x1571   : > { %7224 = vmatprep.mubr.msk.bf16.mxu0 %vm8032_vm2, %v8031_v30 }
0x1620   : > { %v2337_v50 = vpop.f32.mrf.mxu0 }
0x1621   : > { %v2343_v51 = vmul.f32 0.35355338, %v2337_v50  ;;  %v6517_v50 = vld [vmem:[%s9499_s4 + $0x10] sm:$0xf] }
0x1622   : > { %v7184_v52 = vpop.f32.mrf.mxu0 }
0x1623   : > { %v2344_v53 = vsel %vm774_vm7, %v2343_v51, -inf }
0x1624   : > { %2345 = vmax.xlane.f32.xlu0 %v2344_v53  ;;  %v2340_v54 = vpop.f32.mrf.mxu0  ;;  %v8608_v53 = vsel %vm1134_vm9, %v6517_v50, 0  ;;  %v6571_v50 = vld [vmem:[%s9499_s4 + $0x18] sm:$0xf] }
0x1625   : > { %v7807_v54 = vld [vmem:[%s9498_s3 + $0x128] sm:$0xff]  }
0x1626   : > { %v7185_v55 = vpop.f32.mrf.mxu0 }
0x1628   : > { %v2475_v56 = vpop.f32.mrf.mxu0 }
0x1629   : > { %v2476_v43 = vadd.f32 %v6531_v28, %v2475_v56  ;;  %v7808_v56 = vld [vmem:[%s9498_s3 + $0x120] sm:$0xff]  }
0x162a   : > { %v7198_v58 = vpop.f32.mrf.mxu0 }
0x162b   : > { %v2585_v35 = vpack.c.bf16 %v2476_v43, %v2476_v43 }
0x162c   : > { %v2478_v59 = vpop.f32.mrf.mxu0 }
0x162d   : > { %v7809_v59 = vld [vmem:[%s9498_s3 + $0xe8] sm:$0xff]  }
0x162e   : > { %v7199_v61 = vpop.f32.mrf.mxu0 }
0x1630   : > { %v2579_v0 = vpop.f32.mrf.mxu0 }
0x1631   : > { %v2646_v2 = vpack.c.bf16 %v2579_v0, %v2579_v0 }
0x1632   : > { %v7214_v3 = vpop.f32.mrf.mxu0 }
0x1633   : > { %v2651_v4 = vand.u32 %v2646_v2, %v8234_v5  ;;  %v7810_v3 = vld [vmem:[%s9498_s3 + $0xe0] sm:$0xff]  }
0x1634   : > { %v2582_v6 = vpop.f32.mrf.mxu0 }
0x1635   : > { %7223 = vmatpush3.bf16.msra.mxu0 %v2651_v4 }
0x1636   : > { %v7215_v8 = vpop.f32.mrf.mxu0  ;;  %7234 = vmatprep.subr.bf16.mxu0 %v8031_v30 }
0x1637   : > { %v7811_v8 = vld [vmem:[%s9498_s3 + $0x168] sm:$0xff]  }
0x16ad   : > { %v2346_v9 = vpop.xlane.xlu0 %2345 }
0x16ae   : > { %v2347_v10 = vsub.f32 %v2343_v51, %v2346_v9 }
0x16b0   : > { %v2348_v11 = vmul.f32 1.442695, %v2347_v10 }
0x16b2   : > { %7851 = vpow2.f32 %v2348_v11  ;;  %v7812_v11 = vld [vmem:[%s9498_s3 + $0x160] sm:$0xff]  }
0x16bf   : > { %v7852_v12 = vpop.eup %7851 }
0x16c0   : > { %v2350_v13 = vsel %vm774_vm7, %v7852_v12, 0.0 }
0x16c1   : > { %2351 = vadd.xlane.f32.xlu1 %v2350_v13 }
0x174a   : > { %v2352_v14 = vpop.xlane.xlu1 %2351 }
0x174b   : > { %7853 = vrcp.f32 %v2352_v14 }
0x1758   : > { %v7854_v15 = vpop.eup %7853 }
0x1759   : > { %v2354_v16 = vmul.f32 %v7854_v15, %v7852_v12 }
0x175b   : > { %v2355_v20 = vpack.c.bf16 %v2354_v16, %v2354_v16 }
0x175d   : > { %7189 = vmatmul.mubr.msk.bf16.vlgmr.msra.gmra.mxu1 %vm788_vm8, %v2355_v20 }
0x175e   : > { %7201 = vmatpush3.bf16.msra.mxu1 %v7805_v17  ;;  %7204 = vmatprep.mubr.msk.bf16.mxu1 %vm8032_vm2, %v8031_v30 }
0x175f   : > { %7202 = vmatprep.subr.bf16.mxu1 %v8031_v30 }
0x1762   : > { %7203 = vmatpush3.bf16.msra.mxu1 %v7806_v21 }
0x1763   : > { %7216 = vmatprep.subr.bf16.mxu1 %v8031_v30 }
0x1765   : > { %7205 = vmatmul.mubr.msk.bf16.vlgmr.msra.gmra.mxu1 %vm576_vm3, %v8514_v25 }
0x1766   : > { %7218 = vmatprep.mubr.msk.bf16.mxu1 %vm8032_vm2, %v8031_v30 }
0x181d   : > { %v2397_v22 = vpop.f32.mrf.mxu1 }
0x181e   : > { %v2403_v55 = vpack.c.bf16 %v2397_v22, %v2397_v22 }
0x181f   : > { %v7190_v23 = vpop.f32.mrf.mxu1 }
0x1821   : > { %v2400_v24 = vpop.f32.mrf.mxu1 }
0x1823   : > { %v7191_v18 = vpop.f32.mrf.mxu1 }
0x1824   : > { %v6559_v18 = vld [vmem:[%s9500_s5 + $0x6] ss:$0 sm:$0xff] }
0x1825   : > { %v2527_v26 = vpop.f32.mrf.mxu1 }
0x1826   : > { %v2586_v27 = vpack.c.bf16 %v2527_v26, %v2527_v26 }
0x1827   : > { %v7206_v29 = vpop.f32.mrf.mxu1 }
0x1828   : > { %v2591_v31 = vsel %vm726_vm4, %v2586_v27, 0 }
0x1829   : > { %v2530_v33 = vpop.f32.mrf.mxu1  ;;  %7217 = vmatpush3.bf16.xpose.msra.mxu1 %v2591_v31 }
0x182a   : > { %7228 = vmatprep.subr.bf16.mxu1 %v8031_v30 }
0x182b   : > { %v7207_v34 = vpop.f32.mrf.mxu1 }
0x1830   : > { %7219 = vmatmul.mubr.msk.bf16.vlgmr.msra.gmra.mxu1 %vm726_vm4, %v2585_v35 }
0x1831   : > { %7230 = vmatprep.mubr.msk.bf16.mxu1 %vm8032_vm2, %v8031_v30  ;;  %7229 = vmatpush3.bf16.msra.mxu1 %v8600_v47 }
0x1832   : > { %7240 = vmatprep.subr.bf16.mxu1 %v8031_v30 }
0x18f0   : > { %v2627_v36 = vpop.f32.mrf.mxu1 }
0x18f1   : > { %v2633_v37 = vmul.f32 0.35355338, %v2627_v36 }
0x18f2   : > { %v7220_v38 = vpop.f32.mrf.mxu1 }
0x18f3   : > { %v2634_v39 = vsel %vm774_vm7, %v2633_v37, -inf }
0x18f4   : > { %2635 = vmax.xlane.f32.xlu0 %v2634_v39  ;;  %v2630_v40 = vpop.f32.mrf.mxu1 }
0x18f6   : > { %v7221_v41 = vpop.f32.mrf.mxu1 }
0x197d   : > { %v2636_v42 = vpop.xlane.xlu0 %2635 }
0x197e   : > { %v2637_v44 = vsub.f32 %v2633_v37, %v2636_v42 }
0x1980   : > { %v2638_v19 = vmul.f32 1.442695, %v2637_v44 }
0x1982   : > { %7855 = vpow2.f32 %v2638_v19 }
0x198f   : > { %v7856_v32 = vpop.eup %7855 }
0x1990   : > { %v2640_v45 = vsel %vm774_vm7, %v7856_v32, 0.0 }
0x1991   : > { %2641 = vadd.xlane.f32.xlu1 %v2640_v45 }
0x1a1a   : > { %v2642_v48 = vpop.xlane.xlu1 %2641 }
0x1a1b   : > { %7857 = vrcp.f32 %v2642_v48 }
0x1a28   : > { %v7858_v49 = vpop.eup %7857 }
0x1a29   : > { %v2644_v51 = vmul.f32 %v7858_v49, %v7856_v32 }
0x1a2b   : > { %v2645_v52 = vpack.c.bf16 %v2644_v51, %v2644_v51  ;;  %v8677_v51 = vsel %vm1134_vm9, %v6571_v50, 0 }
0x1a2d   : > { %7225 = vmatmul.mubr.msk.bf16.vlgmr.msra.gmra.mxu0 %vm788_vm8, %v2645_v52 }
0x1a2e   : > { %7235 = vmatpush3.bf16.msra.mxu0 %v8608_v53  ;;  %7236 = vmatprep.mubr.msk.bf16.mxu0 %vm8032_vm2, %v8031_v30 }
0x1a2f   : > { %7248 = vmatprep.subr.bf16.mxu0 %v8031_v30 }
0x1a35   : > { %7237 = vmatmul.mubr.msk.bf16.vlgmr.msra.gmra.mxu0 %vm726_vm4, %v2403_v55 }
0x1a36   : > { %7249 = vmatpush3.bf16.msra.mxu0 %v7807_v54  ;;  %7252 = vmatprep.mubr.msk.bf16.mxu0 %vm8032_vm2, %v8031_v30 }
0x1a37   : > { %7250 = vmatprep.subr.bf16.mxu0 %v8031_v30 }
0x1a3a   : > { %7251 = vmatpush3.bf16.msra.mxu0 %v7808_v56  ;;  %v7813_v56 = vld [vmem:[%s9498_s3 + $0xf8] sm:$0xff]  }
0x1a3b   : > { %7264 = vmatprep.subr.bf16.mxu0 %v8031_v30 }
0x1a3d   : > { %7253 = vmatmul.mubr.msk.bf16.vlgmr.msra.gmra.mxu0 %vm576_vm3, %v8514_v25 }
0x1a3e   : > { %7266 = vmatprep.mubr.msk.bf16.mxu0 %vm8032_vm2, %v8031_v30 }
0x1aed   : > { %v2687_v58 = vpop.f32.mrf.mxu0 }
0x1aee   : > { %v2693_v61 = vpack.c.bf16 %v2687_v58, %v2687_v58 }
0x1aef   : > { %v7226_v0 = vpop.f32.mrf.mxu0 }
0x1af0   : > { %7231 = vmatmul.mubr.msk.bf16.vlgmr.msra.gmra.mxu1 %vm726_vm4, %v2693_v61  ;;  %v7815_v61 = vld [vmem:[%s9498_s3 + $0x178] sm:$0xff]   ;;  %v7816_v0 = vld [vmem:[%s9498_s3 + $0x170] sm:$0xff]  }
0x1af1   : > { %v2690_v2 = vpop.f32.mrf.mxu0  ;;  %7241 = vmatpush3.bf16.msra.mxu1 %v7809_v59  ;;  %7244 = vmatprep.mubr.msk.bf16.mxu1 %vm8032_vm2, %v8031_v30  ;;  %v7814_v59 = vld [vmem:[%s9498_s3 + $0xf0] sm:$0xff]  }
0x1af2   : > { %7242 = vmatprep.subr.bf16.mxu1 %v8031_v30 }
0x1af3   : > { %v7227_v4 = vpop.f32.mrf.mxu0 }
0x1af5   : > { %v8640_v6 = vpop.f32.mrf.mxu0  ;;  %7243 = vmatpush3.bf16.msra.mxu1 %v7810_v3  ;;  %v7817_v3 = vld [vmem:[%s9498_s3 + $0x138] sm:$0xff]  }
0x1af6   : > { %7256 = vmatprep.subr.bf16.mxu1 %v8031_v30 }
0x1af7   : > { %v7238_v9 = vpop.f32.mrf.mxu0 }
0x1af8   : > { %7245 = vmatmul.mubr.msk.bf16.vlgmr.msra.gmra.mxu1 %vm576_vm3, %v8514_v25 }
0x1af9   : > { %v2785_v10 = vpop.f32.mrf.mxu0  ;;  %7257 = vmatpush3.bf16.msra.mxu1 %v7811_v8  ;;  %7260 = vmatprep.mubr.msk.bf16.mxu1 %vm8032_vm2, %v8031_v30 }
0x1afa   : > { %7258 = vmatprep.subr.bf16.mxu1 %v8031_v30  ;;  %v7818_v10 = vld [vmem:[%s9498_s3 + $0x130] sm:$0xff]  }
0x1afb   : > { %v7239_v12 = vpop.f32.mrf.mxu0 }
0x1afd   : > { %v2909_v13 = vpop.f32.mrf.mxu0  ;;  %7259 = vmatpush3.bf16.msra.mxu1 %v7812_v11 }
0x1afe   : > { %v2968_v14 = vpack.c.bf16 %v2909_v13, %v2909_v13  ;;  %7270 = vmatprep.subr.bf16.mxu1 %v8031_v30 }
0x1aff   : > { %v7254_v15 = vpop.f32.mrf.mxu0 }
0x1b00   : > { %v2973_v16 = vsel %vm726_vm4, %v2968_v14, 0  ;;  %7261 = vmatmul.mubr.msk.bf16.vlgmr.msra.gmra.mxu1 %vm576_vm3, %v8514_v25 }
0x1b01   : > { %v2912_v17 = vpop.f32.mrf.mxu0  ;;  %7265 = vmatpush3.bf16.xpose.msra.mxu0 %v2973_v16  ;;  %7272 = vmatprep.mubr.msk.bf16.mxu1 %vm8032_vm2, %v8031_v30 }
0x1b02   : > { %7276 = vmatprep.subr.bf16.mxu0 %v8031_v30 }
0x1b03   : > { %v7255_v20 = vpop.f32.mrf.mxu0 }
0x1bb0   : > { %v8661_v21 = vpop.f32.mrf.mxu1 }
0x1bb2   : > { %v7232_v22 = vpop.f32.mrf.mxu1 }
0x1bb4   : > { %v2739_v23 = vpop.f32.mrf.mxu1 }
0x1bb6   : > { %v7233_v24 = vpop.f32.mrf.mxu1 }
0x1bb8   : > { %v2857_v26 = vpop.f32.mrf.mxu1 }
0x1bb9   : > { %v2858_v27 = vadd.f32 %v6559_v18, %v2857_v26  ;;  %v2783_v18 = vadd.f32 %v8640_v6, %v8661_v21 }
0x1bba   : > { %v7246_v28 = vpop.f32.mrf.mxu1 }
0x1bbb   : > { %v2967_v29 = vpack.c.bf16 %v2858_v27, %v2858_v27 }
0x1bbc   : > { %v2860_v31 = vpop.f32.mrf.mxu1 }
0x1bbd   : > { %7267 = vmatmul.mubr.msk.bf16.vlgmr.msra.gmra.mxu0 %vm726_vm4, %v2967_v29 }
0x1bbe   : > { %v7247_v33 = vpop.f32.mrf.mxu1  ;;  %7278 = vmatprep.mubr.msk.bf16.mxu0 %vm8032_vm2, %v8031_v30  ;;  %7277 = vmatpush3.bf16.msra.mxu0 %v8677_v51 }
0x1bbf   : > { %7290 = vmatprep.subr.bf16.mxu0 %v8031_v30 }
0x1bc0   : > { %v2961_v43 = vpop.f32.mrf.mxu1 }
0x1bc1   : > { %v3028_v34 = vpack.c.bf16 %v2961_v43, %v2961_v43  ;;  %v6586_v43 = vld [vmem:[%s9500_s5 + $0x7] ss:$0 sm:$0xff] }
0x1bc2   : > { %v7262_v35 = vpop.f32.mrf.mxu1 }
0x1bc3   : > { %v3033_v36 = vand.u32 %v3028_v34, %v8234_v5 }
0x1bc4   : > { %v2964_v37 = vpop.f32.mrf.mxu1 }
0x1bc5   : > { %7271 = vmatpush3.bf16.msra.mxu1 %v3033_v36 }
0x1bc6   : > { %v7263_v38 = vpop.f32.mrf.mxu1  ;;  %7282 = vmatprep.subr.bf16.mxu1 %v8031_v30 }
0x1c7d   : > { %v3009_v39 = vpop.f32.mrf.mxu0 }
0x1c7e   : > { %v3015_v40 = vmul.f32 0.35355338, %v3009_v39 }
0x1c7f   : > { %v7268_v41 = vpop.f32.mrf.mxu0 }
0x1c80   : > { %v3016_v42 = vsel %vm774_vm7, %v3015_v40, -inf }
0x1c81   : > { %3017 = vmax.xlane.f32.xlu0 %v3016_v42  ;;  %v3012_v44 = vpop.f32.mrf.mxu0 }
0x1c83   : > { %v7269_v19 = vpop.f32.mrf.mxu0 }
0x1d0a   : > { %v3018_v32 = vpop.xlane.xlu0 %3017 }
0x1d0b   : > { %v3019_v45 = vsub.f32 %v3015_v40, %v3018_v32 }
0x1d0d   : > { %v3020_v46 = vmul.f32 1.442695, %v3019_v45 }
0x1d0f   : > { %7859 = vpow2.f32 %v3020_v46 }
0x1d1c   : > { %v7860_v48 = vpop.eup %7859 }
0x1d1d   : > { %v3022_v49 = vsel %vm774_vm7, %v7860_v48, 0.0 }
0x1d1e   : > { %3023 = vadd.xlane.f32.xlu1 %v3022_v49  ;;  %v6598_v49 = vld [vmem:[%s9499_s4 + $0x1c] sm:$0xf] }
0x1d1f   : > { %v8741_v50 = vsel %vm1134_vm9, %v6598_v49, 0 }
0x1da7   : > { %v3024_v52 = vpop.xlane.xlu1 %3023 }
0x1da8   : > { %7861 = vrcp.f32 %v3024_v52 }
0x1db5   : > { %v7862_v54 = vpop.eup %7861 }
0x1db6   : > { %v3026_v55 = vmul.f32 %v7862_v54, %v7860_v48 }
0x1db8   : > { %v3027_v58 = vpack.c.bf16 %v3026_v55, %v3026_v55 }
0x1dba   : > { %7273 = vmatmul.mubr.msk.bf16.vlgmr.msra.gmra.mxu1 %vm788_vm8, %v3027_v58 }
0x1dbb   : > { %7283 = vmatpush3.bf16.msra.mxu1 %v7813_v56  ;;  %7286 = vmatprep.mubr.msk.bf16.mxu1 %vm8032_vm2, %v8031_v30 }
0x1dbc   : > { %7284 = vmatprep.subr.bf16.mxu1 %v8031_v30 }
0x1dbf   : > { %7285 = vmatpush3.bf16.msra.mxu1 %v7814_v59 }
0x1dc0   : > { %7298 = vmatprep.subr.bf16.mxu1 %v8031_v30 }
0x1dc2   : > { %7287 = vmatmul.mubr.msk.bf16.vlgmr.msra.gmra.mxu1 %vm576_vm3, %v8514_v25 }
0x1dc3   : > { %7299 = vmatpush3.bf16.msra.mxu1 %v7815_v61  ;;  %7302 = vmatprep.mubr.msk.bf16.mxu1 %vm8032_vm2, %v8031_v30 }
0x1dc4   : > { %7300 = vmatprep.subr.bf16.mxu1 %v8031_v30 }
0x1dc7   : > { %7301 = vmatpush3.bf16.msra.mxu1 %v7816_v0 }
0x1dc8   : > { %7312 = vmatprep.subr.bf16.mxu1 %v8031_v30 }
0x1dca   : > { %7303 = vmatmul.mubr.msk.bf16.vlgmr.msra.gmra.mxu1 %vm576_vm3, %v8514_v25 }
0x1dcb   : > { %7314 = vmatprep.mubr.msk.bf16.mxu1 %vm8032_vm2, %v8031_v30 }
0x1e7a   : > { %v3069_v2 = vpop.f32.mrf.mxu1 }
0x1e7b   : > { %v3075_v4 = vpack.c.bf16 %v3069_v2, %v3069_v2 }
0x1e7c   : > { %v7274_v8 = vpop.f32.mrf.mxu1 }
0x1e7d   : > { %7279 = vmatmul.mubr.msk.bf16.vlgmr.msra.gmra.mxu0 %vm726_vm4, %v3075_v4  ;;  %v6600_v8 = vld [vmem:[%s9497_s2 + $0x9] ss:$0 sm:$0xff] }
0x1e7e   : > { %v3072_v9 = vpop.f32.mrf.mxu1  ;;  %7291 = vmatpush3.bf16.msra.mxu0 %v7817_v3  ;;  %7294 = vmatprep.mubr.msk.bf16.mxu0 %vm8032_vm2, %v8031_v30 }
0x1e7f   : > { %7292 = vmatprep.subr.bf16.mxu0 %v8031_v30 }
0x1e80   : > { %v7275_v11 = vpop.f32.mrf.mxu1 }
0x1e82   : > { %v3194_v12 = vpop.f32.mrf.mxu1  ;;  %7293 = vmatpush3.bf16.msra.mxu0 %v7818_v10 }
0x1e83   : > { %7306 = vmatprep.subr.bf16.mxu0 %v8031_v30  ;;  %v3195_v37 = vadd.f32 %v6586_v43, %v3194_v12 }
0x1e84   : > { %v7288_v13 = vpop.f32.mrf.mxu1 }
0x1e85   : > { %7295 = vmatmul.mubr.msk.bf16.vlgmr.msra.gmra.mxu0 %vm576_vm3, %v8514_v25  ;;  %v3304_v21 = vpack.c.bf16 %v3195_v37, %v3195_v37  ;;  %v7824_v37 = vld [vmem:[%s9502_s7 + $0x20] sm:$0xff]  }
0x1e86   : > { %v3197_v14 = vpop.f32.mrf.mxu1  ;;  %7308 = vmatprep.mubr.msk.bf16.mxu0 %vm8032_vm2, %v8031_v30 }
0x1e88   : > { %v7289_v15 = vpop.f32.mrf.mxu1 }
0x1e8a   : > { %v3298_v16 = vpop.f32.mrf.mxu1 }
0x1e8b   : > { %v3365_v17 = vpack.c.bf16 %v3298_v16, %v3298_v16 }
0x1e8c   : > { %v7304_v20 = vpop.f32.mrf.mxu1 }
0x1e8d   : > { %v3370_v22 = vand.u32 %v3365_v17, %v8234_v5 }
0x1e8e   : > { %v3301_v23 = vpop.f32.mrf.mxu1 }
0x1e8f   : > { %7313 = vmatpush3.bf16.msra.mxu1 %v3370_v22  ;;  %v7820_v23 = vld [vmem:[%s9501_s6 + $0x10] sm:$0xff]  }
0x1e90   : > { %v7305_v24 = vpop.f32.mrf.mxu1  ;;  %7324 = vmatprep.subr.bf16.mxu1 %v8031_v30 }
0x1f3d   : > { %v3118_v26 = vpop.f32.mrf.mxu0 }
0x1f3e   : > { %v3124_v25 = vadd.f32 %v3118_v26, %v2783_v18 }
0x1f3f   : > { %v7280_v27 = vpop.f32.mrf.mxu0 }
0x1f40   : > { %v6601_v27 = vld [vmem:[%s9497_s2 + $0xa] ss:$0 sm:$0xff] }
0x1f41   : > { %v3121_v28 = vpop.f32.mrf.mxu0 }
0x1f43   : > { %v7281_v29 = vpop.f32.mrf.mxu0 }
0x1f44   : > { %v6602_v29 = vld [vmem:[%s9497_s2 + $0xb] ss:$0 sm:$0xff] }
0x1f45   : > { %v3246_v31 = vpop.f32.mrf.mxu0 }
0x1f46   : > { %v3305_v33 = vpack.c.bf16 %v3246_v31, %v3246_v31 }
0x1f47   : > { %v7296_v34 = vpop.f32.mrf.mxu0 }
0x1f48   : > { %v3310_v35 = vsel %vm726_vm4, %v3305_v33, 0  ;;  %v7821_v34 = vld [vmem:[%s9502_s7 + $0x38] sm:$0xff]  }
0x1f49   : > { %v3249_v36 = vpop.f32.mrf.mxu0  ;;  %7307 = vmatpush3.bf16.xpose.msra.mxu0 %v3310_v35  ;;  %v7822_v35 = vld [vmem:[%s9502_s7 + $0x30] sm:$0xff]  }
0x1f4a   : > { %7318 = vmatprep.subr.bf16.mxu0 %v8031_v30  ;;  %v7823_v36 = vld [vmem:[%s9502_s7 + $0x28] sm:$0xff]  }
0x1f4b   : > { %v7297_v6 = vpop.f32.mrf.mxu0 }
0x1f4c   : > { %v6607_v6 = vld [vmem:[%s9497_s2 + $0xc] ss:$0 sm:$0xff] }
0x1f50   : > { %7309 = vmatmul.mubr.msk.bf16.vlgmr.msra.gmra.mxu0 %vm726_vm4, %v3304_v21 }
0x1f51   : > { %7320 = vmatprep.mubr.msk.bf16.mxu0 %vm8032_vm2, %v8031_v30  ;;  %7319 = vmatpush3.bf16.msra.mxu0 %v8741_v50 }
0x1f52   : > { %7332 = vmatprep.subr.bf16.mxu0 %v8031_v30 }
0x2010   : > { %v3346_v38 = vpop.f32.mrf.mxu0 }
0x2011   : > { %v3352_v39 = vmul.f32 0.35355338, %v3346_v38 }
0x2012   : > { %v7310_v40 = vpop.f32.mrf.mxu0 }
0x2013   : > { %v3353_v41 = vsel %vm774_vm7, %v3352_v39, -inf }
0x2014   : > { %3354 = vmax.xlane.f32.xlu0 %v3353_v41  ;;  %v3349_v42 = vpop.f32.mrf.mxu0 }
0x2016   : > { %v7311_v44 = vpop.f32.mrf.mxu0 }
0x209d   : > { %v3355_v19 = vpop.xlane.xlu0 %3354 }
0x209e   : > { %v3356_v32 = vsub.f32 %v3352_v39, %v3355_v19 }
0x20a0   : > { %v3357_v45 = vmul.f32 1.442695, %v3356_v32 }
0x20a2   : > { %7863 = vpow2.f32 %v3357_v45 }
0x20af   : > { %v7864_v46 = vpop.eup %7863 }
0x20b0   : > { %v3359_v48 = vsel %vm774_vm7, %v7864_v46, 0.0 }
0x20b1   : > { %3360 = vadd.xlane.f32.xlu1 %v3359_v48 }
0x213a   : > { %v3361_v52 = vpop.xlane.xlu1 %3360 }
0x213b   : > { %7865 = vrcp.f32 %v3361_v52 }
0x2148   : > { %v7866_v54 = vpop.eup %7865 }
0x2149   : > { %v3363_v55 = vmul.f32 %v7866_v54, %v7864_v46 }
0x214b   : > { %v3364_v56 = vpack.c.bf16 %v3363_v55, %v3363_v55  ;;  %v7923_v55 = vld [vmem:[%s9498_s3 + $0x8] sm:$0xff]  }
0x214d   : > { %7315 = vmatmul.mubr.msk.bf16.vlgmr.msra.gmra.mxu1 %vm788_vm8, %v3364_v56  ;;  %v7924_v56 = vld [vmem:[%s9498_s3] sm:$0xff]  }
0x214e   : > { %7328 = vmatprep.mubr.msk.bf16.mxu1 %vm8032_vm2, %v8031_v30 }
0x220d   : > { %v3406_v58 = vpop.f32.mrf.mxu1 }
0x220e   : > { %v3412_v59 = vpack.c.bf16 %v3406_v58, %v3406_v58 }
0x220f   : > { %v7316_v61 = vpop.f32.mrf.mxu1 }
0x2210   : > { %7321 = vmatmul.mubr.msk.bf16.vlgmr.msra.gmra.mxu0 %vm726_vm4, %v3412_v59  ;;  %v6624_v59 = vld [vmem:[%s9497_s2 + $0xd] ss:$0 sm:$0xff] }
0x2211   : > { %v3409_v0 = vpop.f32.mrf.mxu1  ;;  %7340 = vmatprep.mubr.msk.bf16.mxu0 %vm8032_vm2, %v8031_v30  ;;  %7333 = vmatpush3.bf16.msra.mxu0 %v7821_v34  ;;  %v7929_v34 = vld [vmem:[%s9503_s8 + $0x18] sm:$0xff]  }
0x2212   : > { %7334 = vmatprep.subr.bf16.mxu0 %v8031_v30 }
0x2213   : > { %v7317_v2 = vpop.f32.mrf.mxu1 }
0x2215   : > { %7335 = vmatpush3.bf16.msra.mxu0 %v7822_v35  ;;  %v7930_v35 = vld [vmem:[%s9503_s8 + $0x10] sm:$0xff]  }
0x2216   : > { %7336 = vmatprep.subr.bf16.mxu0 %v8031_v30 }
0x2219   : > { %7337 = vmatpush3.bf16.msra.mxu0 %v7823_v36  ;;  %v7931_v36 = vld [vmem:[%s9503_s8 + $0x8] sm:$0xff]  }
0x221a   : > { %7338 = vmatprep.subr.bf16.mxu0 %v8031_v30 }
0x221d   : > { %7339 = vmatpush3.bf16.msra.mxu0 %v7824_v37  ;;  %v7932_v37 = vld [vmem:[%s9503_s8] sm:$0xff]  }
0x221e   : > { %7352 = vmatprep.subr.bf16.mxu0 %v8031_v30 }
0x22d0   : > { %v3455_v3 = vpop.f32.mrf.mxu0 }
0x22d1   : > { %v3461_v4 = vadd.f32 %v3455_v3, %v3124_v25 }
0x22d2   : > { %v7322_v9 = vpop.f32.mrf.mxu0 }
0x22d3   : > { %v3462_v10 = vadd.f32 %v3461_v4, %v8483_v60  ;;  %v7819_v60 = vld [vmem:[%s9501_s6 + $0x18] sm:$0xff]  }
0x22d4   : > { %v3458_v11 = vpop.f32.mrf.mxu0  ;;  %7325 = vmatpush3.bf16.msra.mxu1 %v7819_v60  ;;  %v6625_v60 = vld [vmem:[%s9497_s2 + $0xe] ss:$0 sm:$0xff] }
0x22d5   : > { %v8755_v12 = vadd.f32 %v6600_v8, %v3462_v10  ;;  %7326 = vmatprep.subr.bf16.mxu1 %v8031_v30 }
0x22d6   : > { %v7323_v13 = vpop.f32.mrf.mxu0 }
0x22d7   : > { %v3468_v14 = vsel %vm517_vm1, %v8755_v12, 0.0 }
0x22d8   : > { %3469 = vadd.xlane.f32.xlu0 %v3468_v14  ;;  %7327 = vmatpush3.bf16.msra.mxu1 %v7820_v23 }
0x22d9   : > { %7344 = vmatprep.subr.bf16.mxu1 %v8031_v30 }
0x2361   : > { %v3470_v15 = vpop.xlane.xlu0 %3469 }
0x2362   : > { %v3471_v16 = vmul.f32 0.03125, %v3470_v15  ;;  %v7825_v15 = vld [vmem:[%s9504_s9 + $0x8] sm:$0xff]  }
0x2364   : > { %v3472_v17 = vsub.f32 %v8755_v12, %v3471_v16 }
0x2366   : > { %v3473_v20 = vmul.f32 %v3472_v17, %v3472_v17 }
0x2368   : > { %v3474_v22 = vsel %vm517_vm1, %v3473_v20, 0.0 }
0x2369   : > { %3475 = vadd.xlane.f32.xlu1 %v3474_v22 }
0x23f2   : > { %v3476_v24 = vpop.xlane.xlu1 %3475 }
0x23f3   : > { %v3477_v18 = vmul.f32 0.03125, %v3476_v24  ;;  %v6626_v24 = vld [vmem:[%s9497_s2 + $0xf] ss:$0 sm:$0xff] }
0x23f5   : > { %v3478_v26 = vadd.f32 1e-12, %v3477_v18  ;;  %v6630_v18 = vld [vmem:[%s8116_s25 + $0x8] sm:$0x77] }
0x23f7   : > { %7867 = vrsqrt.f32 %v3478_v26 }
0x2404   : > { %v7868_v25 = vpop.eup %7867 }
0x2405   : > { %v3480_v28 = vmul.f32 %v7868_v25, %v3472_v17 }
0x2407   : > { %v3485_v31 = vmul.f32 %v6601_v27, %v3480_v28  ;;  %v6632_v27 = vcombine.high %v6630_v18, %v6630_v18 }
0x2409   : > { %v3490_v33 = vadd.f32 %v6602_v29, %v3485_v31  ;;  %v7925_v29 = vld [vmem:[%s9503_s8 + $0x38] sm:$0xff]   ;;  %v7926_v31 = vld [vmem:[%s9503_s8 + $0x30] sm:$0xff]  }
0x240b   : > { %v3491_v43 = vpack.c.bf16 %v3490_v33, %v3490_v33  ;;  %v7927_v33 = vld [vmem:[%s9503_s8 + $0x28] sm:$0xff]  }
0x240d   : > { %7329 = vmatmul.mubr.msk.bf16.vlgmr.msra.gmra.mxu1 %vm576_vm3, %v3491_v43  ;;  %v7928_v43 = vld [vmem:[%s9503_s8 + $0x20] sm:$0xff]  }
0x240e   : > { %7348 = vmatprep.mubr.msk.bf16.mxu1 %vm8032_vm2, %v8031_v30  ;;  %7345 = vmatpush3.bf16.msra.mxu1 %v7825_v15 }
0x240f   : > { %7346 = vmatprep.subr.bf16.mxu1 %v8031_v30 }
0x24cd   : > { %v3550_v21 = vpop.f32.mrf.mxu1 }
0x24ce   : > { %v3551_v38 = vadd.f32 %v6607_v6, %v3550_v21  ;;  %v7933_v6 = vld [vmem:[%s9503_s8 + $0x58] sm:$0xff]   ;;  %v7934_v21 = vld [vmem:[%s9503_s8 + $0x50] sm:$0xff]  }
0x24cf   : > { %v7330_v39 = vpop.f32.mrf.mxu1 }
0x24d0   : > { %v3556_v40 = vmul.f32 %v3551_v38, %v3551_v38  ;;  %v6631_v39 = vcombine.low %v6630_v18, %v6630_v18 }
0x24d1   : > { %v3553_v41 = vpop.f32.mrf.mxu1 }
0x24d2   : > { %v3557_v42 = vmul.f32 %v3556_v40, %v3551_v38  ;;  %v7936_v40 = vld [vmem:[%s9503_s8 + $0x40] sm:$0xff]   ;;  %v7937_v41 = vld [vmem:[%s9498_s3 + $0x58] sm:$0xff]  }
0x24d3   : > { %v7331_v44 = vpop.f32.mrf.mxu1 }
0x24d4   : > { %v3558_v19 = vmul.f32 0.044715, %v3557_v42 }
0x24d6   : > { %v3559_v32 = vadd.f32 %v3558_v19, %v3551_v38 }
0x24d8   : > { %v3560_v45 = vmul.f32 0.7978846, %v3559_v32 }
0x24da   : > { %7869 = vtanh.f32 %v3560_v45 }
0x24e7   : > { %v7870_v46 = vpop.eup %7869 }
0x24e8   : > { %v3562_v48 = vadd.f32 1.0, %v7870_v46  ;;  %v7939_v46 = vld [vmem:[%s9496_s1] sm:$0x1f] }
0x24ea   : > { %v3563_v49 = vmul.f32 0.5, %v3562_v48 }
0x24ec   : > { %v3564_v52 = vmul.f32 %v3563_v49, %v3551_v38  ;;  %v7935_v38 = vld [vmem:[%s9503_s8 + $0x48] sm:$0xff]  }
0x24ee   : > { %v3565_v54 = vpack.c.bf16 %v3564_v52, %v3564_v52 }
0x24f0   : > { %7341 = vmatmul.mubr.msk.bf16.vlgmr.msra.gmra.mxu0 %vm466_vm0, %v3565_v54 }
0x24f1   : > { %7353 = vmatpush3.bf16.msra.mxu0 %v7923_v55  ;;  %7356 = vmatprep.mubr.msk.bf16.mxu0 %vm8032_vm2, %v8031_v30 }
0x24f2   : > { %7354 = vmatprep.subr.bf16.mxu0 %v8031_v30 }
0x24f5   : > { %7355 = vmatpush3.bf16.msra.mxu0 %v7924_v56 }
0x24f6   : > { %7360 = vmatprep.subr.bf16.mxu0 %v8031_v30 }
0x25b0   : > { %v3636_v58 = vpop.f32.mrf.mxu0 }
0x25b1   : > { %v3642_v61 = vadd.f32 %v3636_v58, %v8755_v12  ;;  %v7826_v12 = vld [vmem:[%s9504_s9] sm:$0xff]  }
0x25b2   : > { %v7342_v0 = vpop.f32.mrf.mxu0  ;;  %7347 = vmatpush3.bf16.msra.mxu1 %v7826_v12  ;;  %v7942_v12 = vld [vmem:[%s9498_s3 + $0x48] sm:$0xff]  }
0x25b3   : > { %v3647_v2 = vadd.f32 %v6624_v59, %v3642_v61  ;;  %3746 = vmatprep.subr.bf16.mxu1 %v8030_v1 }
0x25b4   : > { %v3639_v3 = vpop.f32.mrf.mxu0 }
0x25b5   : > { %v3650_v4 = vsel %vm517_vm1, %v3647_v2, 0.0 }
0x25b6   : > { %3651 = vadd.xlane.f32.xlu0 %v3650_v4  ;;  %v7343_v8 = vpop.f32.mrf.mxu0 }
0x263f   : > { %v3652_v9 = vpop.xlane.xlu0 %3651 }
0x2640   : > { %v3653_v10 = vmul.f32 0.03125, %v3652_v9 }
0x2642   : > { %v3654_v11 = vsub.f32 %v3647_v2, %v3653_v10  ;;  %v7940_v10 = vld [vmem:[%s9497_s2] ss:$0 sm:$0xff] }
0x2644   : > { %v3655_v13 = vmul.f32 %v3654_v11, %v3654_v11 }
0x2646   : > { %v3656_v14 = vsel %vm517_vm1, %v3655_v13, 0.0  ;;  %v7941_v13 = vld [vmem:[%s9497_s2 + $0x1] ss:$0 sm:$0xff] }
0x2647   : > { %3657 = vadd.xlane.f32.xlu1 %v3656_v14 }
0x26d0   : > { %v3658_v16 = vpop.xlane.xlu1 %3657 }
0x26d1   : > { %v3659_v17 = vmul.f32 0.03125, %v3658_v16  ;;  %v7943_v16 = vld [vmem:[%s9498_s3 + $0x40] sm:$0xff]  }
0x26d3   : > { %v3660_v20 = vadd.f32 1e-12, %v3659_v17  ;;  %v7944_v17 = vld [vmem:[%s9498_s3 + $0x88] sm:$0xff]  }
0x26d5   : > { %7871 = vrsqrt.f32 %v3660_v20  ;;  %v7945_v20 = vld [vmem:[%s9498_s3 + $0x80] sm:$0xff]  }
0x26e2   : > { %v7872_v22 = vpop.eup %7871 }
0x26e3   : > { %v3662_v23 = vmul.f32 %v7872_v22, %v3654_v11 }
0x26e5   : > { %v3667_v26 = vmul.f32 %v6625_v60, %v3662_v23 }
0x26e7   : > { %v3672_v25 = vadd.f32 %v6626_v24, %v3667_v26 }
0x26e9   : > { %v3673_v28 = vpack.c.bf16 %v3672_v25, %v3672_v25 }
0x26eb   : > { %7349 = vmatmul.mubr.msk.bf16.vlgmr.msra.gmra.mxu1 %vm576_vm3, %v3673_v28 }
0x26ec   : > { %3747 = vmatpush1.bf16.msra.mxu1 %v7925_v29  ;;  %6633 = vmatprep.mubr.msk.bf16.mxu1 %vm466_vm0, %v6632_v27 }
0x26ed   : > { %3748 = vmatprep.subr.bf16.mxu1 %v8030_v1 }
0x26f0   : > { %3749 = vmatpush1.bf16.msra.mxu1 %v7926_v31 }
0x26f1   : > { %3750 = vmatprep.subr.bf16.mxu1 %v8030_v1 }
0x26f4   : > { %3751 = vmatpush1.bf16.msra.mxu1 %v7927_v33 }
0x26f5   : > { %3752 = vmatprep.subr.bf16.mxu1 %v8030_v1 }
0x26f8   : > { %3753 = vmatpush1.bf16.msra.mxu1 %v7928_v43 }
0x26f9   : > { %3754 = vmatprep.subr.bf16.mxu1 %v8030_v1 }
0x26fc   : > { %3755 = vmatpush1.bf16.msra.mxu1 %v7929_v34 }
0x26fd   : > { %3756 = vmatprep.subr.bf16.mxu1 %v8030_v1 }
0x2700   : > { %3757 = vmatpush1.bf16.msra.mxu1 %v7930_v35 }
0x2701   : > { %3758 = vmatprep.subr.bf16.mxu1 %v8030_v1 }
0x2704   : > { %3759 = vmatpush1.bf16.msra.mxu1 %v7931_v36  ;;  %v7946_v36 = vld [vmem:[%s9500_s5] ss:$0 sm:$0xff] }
0x2705   : > { %3760 = vmatprep.subr.bf16.mxu1 %v8030_v1 }
0x2708   : > { %3761 = vmatpush1.bf16.msra.mxu1 %v7932_v37 }
0x2709   : > { %3770 = vmatprep.subr.bf16.mxu1 %v8030_v1 }
0x270c   : > { %3771 = vmatpush2.bf16.msra.mxu1 %v7933_v6 }
0x270d   : > { %3772 = vmatprep.subr.bf16.mxu1 %v8030_v1 }
0x2710   : > { %3773 = vmatpush2.bf16.msra.mxu1 %v7934_v21 }
0x2711   : > { %3774 = vmatprep.subr.bf16.mxu1 %v8030_v1 }
0x2714   : > { %3775 = vmatpush2.bf16.msra.mxu1 %v7935_v38 }
0x2715   : > { %3776 = vmatprep.subr.bf16.mxu1 %v8030_v1  ;;  %v7938_v1 = vld [vmem:[%s9498_s3 + $0x50] sm:$0xff]  }
0x2718   : > { %3777 = vmatpush2.bf16.msra.mxu1 %v7936_v40 }
0x2719   : > { %7396 = vmatprep.subr.bf16.mxu1 %v8031_v30 }
0x271b   : > { %3779 = vmatmul.mubr.bf16.vlgmr.msra.gmra.mxu1 %v6631_v39 }
0x271c   : > { %7397 = vmatpush3.bf16.msra.mxu1 %v7937_v41  ;;  %7400 = vmatprep.mubr.msk.bf16.mxu1 %vm8032_vm2, %v8031_v30 }
0x271d   : > { %7398 = vmatprep.subr.bf16.mxu1 %v8031_v30 }
0x2720   : > { %7399 = vmatpush3.bf16.msra.mxu1 %v7938_v1 }
0x2721   : > { %7412 = vmatprep.subr.bf16.mxu1 %v8031_v30 }
0x27ab   : > { %v8889_v42 = vpop.f32.mrf.mxu1 }
0x27ad   : > { %v7350_v44 = vpop.f32.mrf.mxu1 }
0x27af   : > { %v3731_v19 = vpop.f32.mrf.mxu1 }
0x27b1   : > { %v7351_v32 = vpop.f32.mrf.mxu1 }
0x27db   : > { %v3780_v45 = vpop.f32.mrf.mxu1 }
0x27dc   : > { %v8894_v48 = vadd.f32 %v7939_v46, %v3780_v45 }
0x27dd   : > { %v3782_v49 = vpop.f32.mrf.mxu1 }
0x27de   : > { %v3786_v52 = vsel %vm517_vm1, %v8894_v48, 0.0 }
0x27df   : > { %v3783_v54 = vpop.f32.mrf.mxu1  ;;  %3787 = vadd.xlane.f32.xlu0 %v3786_v52 }
0x27e1   : > { %v3784_v55 = vpop.f32.mrf.mxu1 }
0x2868   : > { %v3788_v56 = vpop.xlane.xlu0 %3787 }
0x2869   : > { %v3789_v58 = vmul.f32 0.03125, %v3788_v56 }
0x286b   : > { %v3790_v59 = vsub.f32 %v8894_v48, %v3789_v58 }
0x286d   : > { %v3791_v61 = vmul.f32 %v3790_v59, %v3790_v59 }
0x286f   : > { %v3792_v0 = vsel %vm517_vm1, %v3791_v61, 0.0 }
0x2870   : > { %3793 = vadd.xlane.f32.xlu1 %v3792_v0 }
0x28f9   : > { %v3794_v2 = vpop.xlane.xlu1 %3793 }
0x28fa   : > { %v3795_v3 = vmul.f32 0.03125, %v3794_v2 }
0x28fc   : > { %v3796_v4 = vadd.f32 1e-12, %v3795_v3 }
0x28fe   : > { %7873 = vrsqrt.f32 %v3796_v4  ;;  %v7947_v4 = vld [vmem:[%s9498_s3 + $0x18] sm:$0xff]  }
0x290b   : > { %v7874_v8 = vpop.eup %7873 }
0x290c   : > { %v3798_v9 = vmul.f32 %v7874_v8, %v3790_v59  ;;  %v7948_v8 = vld [vmem:[%s9498_s3 + $0x10] sm:$0xff]  }
0x290e   : > { %v3799_v11 = vmul.f32 %v7940_v10, %v3798_v9  ;;  %v7949_v9 = vld [vmem:[%s9498_s3 + $0x98] sm:$0xff]   ;;  %v7950_v10 = vld [vmem:[%s9498_s3 + $0x90] sm:$0xff]  }
0x2910   : > { %v3800_v14 = vadd.f32 %v7941_v13, %v3799_v11 }
0x2912   : > { %v8906_v15 = vpack.c.bf16 %v3800_v14, %v3800_v14 }
0x2914   : > { %7357 = vmatmul.mubr.msk.bf16.vlgmr.msra.gmra.mxu0 %vm576_vm3, %v8906_v15  ;;  %7401 = vmatmul.mubr.msk.bf16.vlgmr.msra.gmra.mxu1 %vm576_vm3, %v8906_v15 }
0x2915   : > { %7361 = vmatpush3.bf16.msra.mxu0 %v7942_v12  ;;  %7364 = vmatprep.mubr.msk.bf16.mxu0 %vm8032_vm2, %v8031_v30 }
0x2916   : > { %7362 = vmatprep.subr.bf16.mxu0 %v8031_v30  ;;  %7414 = vmatprep.mubr.msk.bf16.mxu1 %vm8032_vm2, %v8031_v30 }
0x2919   : > { %7363 = vmatpush3.bf16.msra.mxu0 %v7943_v16 }
0x291a   : > { %7368 = vmatprep.subr.bf16.mxu0 %v8031_v30 }
0x291c   : > { %7365 = vmatmul.mubr.msk.bf16.vlgmr.msra.gmra.mxu0 %vm576_vm3, %v8906_v15 }
0x291d   : > { %7369 = vmatpush3.bf16.msra.mxu0 %v7944_v17  ;;  %7372 = vmatprep.mubr.msk.bf16.mxu0 %vm8032_vm2, %v8031_v30  ;;  %v7951_v17 = vld [vmem:[%s9500_s5 + $0x1] ss:$0 sm:$0xff] }
0x291e   : > { %7370 = vmatprep.subr.bf16.mxu0 %v8031_v30 }
0x2921   : > { %7371 = vmatpush3.bf16.msra.mxu0 %v7945_v20 }
0x2922   : > { %7376 = vmatprep.subr.bf16.mxu0 %v8031_v30 }
0x2924   : > { %7373 = vmatmul.mubr.msk.bf16.vlgmr.msra.gmra.mxu0 %vm576_vm3, %v8906_v15 }
0x2925   : > { %7378 = vmatprep.mubr.msk.bf16.mxu0 %vm8032_vm2, %v8031_v30 }
0x29d4   : > { %v3839_v22 = vpop.f32.mrf.mxu0  ;;  %v4108_v60 = vpop.f32.mrf.mxu1 }
0x29d5   : > { %v4155_v23 = vpack.c.bf16 %v4108_v60, %v4108_v60  ;;  %v3840_v37 = vadd.f32 %v7946_v36, %v3839_v22 }
0x29d6   : > { %v7358_v24 = vpop.f32.mrf.mxu0  ;;  %v7402_v18 = vpop.f32.mrf.mxu1 }
0x29d7   : > { %v4160_v26 = vsel %vm726_vm4, %v4155_v23, 0  ;;  %v3925_v38 = vpack.c.bf16 %v3840_v37, %v3840_v37 }
0x29d8   : > { %v3842_v25 = vpop.f32.mrf.mxu0  ;;  %v4111_v27 = vpop.f32.mrf.mxu1  ;;  %7413 = vmatpush3.bf16.xpose.msra.mxu1 %v4160_v26 }
0x29d9   : > { %7424 = vmatprep.subr.bf16.mxu1 %v8031_v30 }
0x29da   : > { %v7359_v28 = vpop.f32.mrf.mxu0  ;;  %v7403_v29 = vpop.f32.mrf.mxu1 }
0x29dc   : > { %v3879_v31 = vpop.f32.mrf.mxu0 }
0x29dd   : > { %v3926_v33 = vpack.c.bf16 %v3879_v31, %v3879_v31 }
0x29de   : > { %v7366_v43 = vpop.f32.mrf.mxu0 }
0x29df   : > { %v3931_v34 = vsel %vm726_vm4, %v3926_v33, 0 }
0x29e0   : > { %v3882_v35 = vpop.f32.mrf.mxu0  ;;  %7377 = vmatpush3.bf16.xpose.msra.mxu0 %v3931_v34 }
0x29e1   : > { %7382 = vmatprep.subr.bf16.mxu0 %v8031_v30 }
0x29e2   : > { %v7367_v6 = vpop.f32.mrf.mxu0 }
0x29e4   : > { %v3919_v21 = vpop.f32.mrf.mxu0 }
0x29e5   : > { %v3986_v39 = vpack.c.bf16 %v3919_v21, %v3919_v21 }
0x29e6   : > { %v7374_v40 = vpop.f32.mrf.mxu0 }
0x29e7   : > { %v3991_v41 = vand.u32 %v3986_v39, %v8234_v5  ;;  %7379 = vmatmul.mubr.msk.bf16.vlgmr.msra.gmra.mxu0 %vm726_vm4, %v3925_v38 }
0x29e8   : > { %v3922_v1 = vpop.f32.mrf.mxu0  ;;  %7384 = vmatprep.mubr.msk.bf16.mxu0 %vm8032_vm2, %v8031_v30 }
0x29e9   : > { %7383 = vmatpush3.bf16.msra.mxu0 %v3991_v41 }
0x29ea   : > { %v7375_v44 = vpop.f32.mrf.mxu0  ;;  %7388 = vmatprep.subr.bf16.mxu0 %v8031_v30 }
0x2aa7   : > { %v3967_v19 = vpop.f32.mrf.mxu0 }
0x2aa8   : > { %v3973_v32 = vmul.f32 0.35355338, %v3967_v19  ;;  %v7952_v19 = vld [vmem:[%s9498_s3 + $0x68] sm:$0xff]  }
0x2aa9   : > { %v7380_v45 = vpop.f32.mrf.mxu0 }
0x2aaa   : > { %v3974_v46 = vsel %vm774_vm7, %v3973_v32, -inf }
0x2aab   : > { %3975 = vmax.xlane.f32.xlu0 %v3974_v46  ;;  %v3970_v49 = vpop.f32.mrf.mxu0 }
0x2aad   : > { %v7381_v52 = vpop.f32.mrf.mxu0 }
0x2aae   : > { %v7954_v52 = vld [vmem:[%s9498_s3 + $0x28] sm:$0xff]  }
0x2b34   : > { %v3976_v54 = vpop.xlane.xlu0 %3975 }
0x2b35   : > { %v3977_v55 = vsub.f32 %v3973_v32, %v3976_v54 }
0x2b37   : > { %v3978_v56 = vmul.f32 1.442695, %v3977_v55 }
0x2b39   : > { %7875 = vpow2.f32 %v3978_v56  ;;  %v7955_v56 = vld [vmem:[%s9498_s3 + $0x20] sm:$0xff]  }
0x2b46   : > { %v7876_v58 = vpop.eup %7875 }
0x2b47   : > { %v3980_v59 = vsel %vm774_vm7, %v7876_v58, 0.0 }
0x2b48   : > { %3981 = vadd.xlane.f32.xlu1 %v3980_v59 }
0x2bd1   : > { %v3982_v61 = vpop.xlane.xlu1 %3981 }
0x2bd2   : > { %7877 = vrcp.f32 %v3982_v61  ;;  %v7956_v61 = vld [vmem:[%s9498_s3 + $0xa8] sm:$0xff]  }
0x2bdf   : > { %v7878_v0 = vpop.eup %7877 }
0x2be0   : > { %v3984_v2 = vmul.f32 %v7878_v0, %v7876_v58 }
0x2be2   : > { %v3985_v3 = vpack.c.bf16 %v3984_v2, %v3984_v2 }
0x2be4   : > { %7385 = vmatmul.mubr.msk.bf16.vlgmr.msra.gmra.mxu0 %vm788_vm8, %v3985_v3  ;;  %v7957_v3 = vld [vmem:[%s9498_s3 + $0xa0] sm:$0xff]  }
0x2be5   : > { %7389 = vmatpush3.bf16.msra.mxu0 %v7947_v4  ;;  %7392 = vmatprep.mubr.msk.bf16.mxu0 %vm8032_vm2, %v8031_v30 }
0x2be6   : > { %7390 = vmatprep.subr.bf16.mxu0 %v8031_v30 }
0x2be9   : > { %7391 = vmatpush3.bf16.msra.mxu0 %v7948_v8 }
0x2bea   : > { %7404 = vmatprep.subr.bf16.mxu0 %v8031_v30 }
0x2bec   : > { %7393 = vmatmul.mubr.msk.bf16.vlgmr.msra.gmra.mxu0 %vm576_vm3, %v8906_v15 }
0x2bed   : > { %7405 = vmatpush3.bf16.msra.mxu0 %v7949_v9  ;;  %7408 = vmatprep.mubr.msk.bf16.mxu0 %vm8032_vm2, %v8031_v30 }
0x2bee   : > { %7406 = vmatprep.subr.bf16.mxu0 %v8031_v30 }
0x2bf1   : > { %7407 = vmatpush3.bf16.msra.mxu0 %v7950_v10 }
0x2bf2   : > { %7418 = vmatprep.subr.bf16.mxu0 %v8031_v30 }
0x2bf4   : > { %7409 = vmatmul.mubr.msk.bf16.vlgmr.msra.gmra.mxu0 %vm576_vm3, %v8906_v15 }
0x2bf5   : > { %7420 = vmatprep.mubr.msk.bf16.mxu0 %vm8032_vm2, %v8031_v30 }
0x2ca4   : > { %v4027_v11 = vpop.f32.mrf.mxu0 }
0x2ca5   : > { %v4033_v44 = vpack.c.bf16 %v4027_v11, %v4027_v11 }
0x2ca6   : > { %v7386_v13 = vpop.f32.mrf.mxu0 }
0x2ca8   : > { %v4030_v14 = vpop.f32.mrf.mxu0 }
0x2caa   : > { %v7387_v12 = vpop.f32.mrf.mxu0 }
0x2cac   : > { %v4068_v16 = vpop.f32.mrf.mxu0 }
0x2cad   : > { %v4069_v20 = vadd.f32 %v7951_v17, %v4068_v16 }
0x2cae   : > { %v7394_v22 = vpop.f32.mrf.mxu0 }
0x2caf   : > { %v4154_v60 = vpack.c.bf16 %v4069_v20, %v4069_v20  ;;  %v7958_v20 = vld [vmem:[%s9500_s5 + $0x2] ss:$0 sm:$0xff] }
0x2cb0   : > { %v4071_v23 = vpop.f32.mrf.mxu0 }
0x2cb1   : > { %7415 = vmatmul.mubr.msk.bf16.vlgmr.msra.gmra.mxu1 %vm726_vm4, %v4154_v60 }
0x2cb2   : > { %v7395_v24 = vpop.f32.mrf.mxu0  ;;  %7425 = vmatpush3.bf16.msra.mxu1 %v8284_v63  ;;  %7426 = vmatprep.mubr.msk.bf16.mxu1 %vm8032_vm2, %v8031_v30 }
0x2cb3   : > { %7436 = vmatprep.subr.bf16.mxu1 %v8031_v30 }
0x2cb4   : > { %v4148_v18 = vpop.f32.mrf.mxu0 }
0x2cb5   : > { %v4215_v26 = vpack.c.bf16 %v4148_v18, %v4148_v18 }
0x2cb6   : > { %v7410_v25 = vpop.f32.mrf.mxu0 }
0x2cb7   : > { %v4220_v27 = vand.u32 %v4215_v26, %v8234_v5 }
0x2cb8   : > { %v4151_v28 = vpop.f32.mrf.mxu0 }
0x2cb9   : > { %7419 = vmatpush3.bf16.msra.mxu0 %v4220_v27 }
0x2cba   : > { %v7411_v29 = vpop.f32.mrf.mxu0  ;;  %7430 = vmatprep.subr.bf16.mxu0 %v8031_v30 }
0x2d71   : > { %v4196_v31 = vpop.f32.mrf.mxu1 }
0x2d72   : > { %v4202_v33 = vmul.f32 0.35355338, %v4196_v31 }
0x2d73   : > { %v7416_v43 = vpop.f32.mrf.mxu1 }
0x2d74   : > { %v4203_v63 = vsel %vm774_vm7, %v4202_v33, -inf }
0x2d75   : > { %4204 = vmax.xlane.f32.xlu0 %v4203_v63  ;;  %v4199_v34 = vpop.f32.mrf.mxu1 }
0x2d77   : > { %v7417_v35 = vpop.f32.mrf.mxu1 }
0x2dfe   : > { %v4205_v36 = vpop.xlane.xlu0 %4204 }
0x2dff   : > { %v4206_v37 = vsub.f32 %v4202_v33, %v4205_v36 }
0x2e01   : > { %v4207_v6 = vmul.f32 1.442695, %v4206_v37 }
0x2e03   : > { %7879 = vpow2.f32 %v4207_v6 }
0x2e10   : > { %v7880_v21 = vpop.eup %7879 }
0x2e11   : > { %v4209_v38 = vsel %vm774_vm7, %v7880_v21, 0.0 }
0x2e12   : > { %4210 = vadd.xlane.f32.xlu1 %v4209_v38 }
0x2e9b   : > { %v4211_v39 = vpop.xlane.xlu1 %4210 }
0x2e9c   : > { %7881 = vrcp.f32 %v4211_v39 }
0x2ea9   : > { %v7882_v40 = vpop.eup %7881 }
0x2eaa   : > { %v4213_v41 = vmul.f32 %v7882_v40, %v7880_v21 }
0x2eac   : > { %v4214_v1 = vpack.c.bf16 %v4213_v41, %v4213_v41 }
0x2eae   : > { %7421 = vmatmul.mubr.msk.bf16.vlgmr.msra.gmra.mxu0 %vm788_vm8, %v4214_v1 }
0x2eaf   : > { %7431 = vmatpush3.bf16.msra.mxu0 %v8292_v7  ;;  %7432 = vmatprep.mubr.msk.bf16.mxu0 %vm8032_vm2, %v8031_v30  ;;  %v7953_v7 = vld [vmem:[%s9498_s3 + $0x60] sm:$0xff]  }
0x2eb0   : > { %7444 = vmatprep.subr.bf16.mxu0 %v8031_v30 }
0x2eb6   : > { %7433 = vmatmul.mubr.msk.bf16.vlgmr.msra.gmra.mxu0 %vm726_vm4, %v4033_v44  ;;  %v7959_v44 = vld [vmem:[%s9498_s3 + $0x38] sm:$0xff]  }
0x2eb7   : > { %7445 = vmatpush3.bf16.msra.mxu0 %v7952_v19  ;;  %7448 = vmatprep.mubr.msk.bf16.mxu0 %vm8032_vm2, %v8031_v30  ;;  %v7960_v19 = vld [vmem:[%s9498_s3 + $0x30] sm:$0xff]  }
0x2eb8   : > { %7446 = vmatprep.subr.bf16.mxu0 %v8031_v30 }
0x2ebb   : > { %7447 = vmatpush3.bf16.msra.mxu0 %v7953_v7  ;;  %v7961_v7 = vld [vmem:[%s9498_s3 + $0xb8] sm:$0xff]  }
0x2ebc   : > { %7460 = vmatprep.subr.bf16.mxu0 %v8031_v30 }
0x2ebe   : > { %7449 = vmatmul.mubr.msk.bf16.vlgmr.msra.gmra.mxu0 %vm576_vm3, %v8906_v15 }
0x2ebf   : > { %7462 = vmatprep.mubr.msk.bf16.mxu0 %vm8032_vm2, %v8031_v30 }
0x2f6e   : > { %v4256_v32 = vpop.f32.mrf.mxu0 }
0x2f6f   : > { %v4262_v45 = vpack.c.bf16 %v4256_v32, %v4256_v32  ;;  %v7962_v32 = vld [vmem:[%s9498_s3 + $0xb0] sm:$0xff]  }
0x2f70   : > { %v7422_v46 = vpop.f32.mrf.mxu0 }
0x2f71   : > { %7427 = vmatmul.mubr.msk.bf16.vlgmr.msra.gmra.mxu1 %vm726_vm4, %v4262_v45 }
0x2f72   : > { %v4259_v49 = vpop.f32.mrf.mxu0  ;;  %7437 = vmatpush3.bf16.msra.mxu1 %v7954_v52  ;;  %7440 = vmatprep.mubr.msk.bf16.mxu1 %vm8032_vm2, %v8031_v30 }
0x2f73   : > { %7438 = vmatprep.subr.bf16.mxu1 %v8031_v30 }
0x2f74   : > { %v7423_v54 = vpop.f32.mrf.mxu0 }
0x2f75   : > { %v7963_v54 = vld [vmem:[%s9498_s3 + $0x78] sm:$0xff]  }
0x2f76   : > { %v9020_v55 = vpop.f32.mrf.mxu0  ;;  %7439 = vmatpush3.bf16.msra.mxu1 %v7955_v56 }
0x2f77   : > { %7452 = vmatprep.subr.bf16.mxu1 %v8031_v30 }
0x2f78   : > { %v7434_v58 = vpop.f32.mrf.mxu0 }
0x2f79   : > { %7441 = vmatmul.mubr.msk.bf16.vlgmr.msra.gmra.mxu1 %vm576_vm3, %v8906_v15 }
0x2f7a   : > { %v4346_v59 = vpop.f32.mrf.mxu0  ;;  %7453 = vmatpush3.bf16.msra.mxu1 %v7956_v61  ;;  %7456 = vmatprep.mubr.msk.bf16.mxu1 %vm8032_vm2, %v8031_v30 }
0x2f7b   : > { %7454 = vmatprep.subr.bf16.mxu1 %v8031_v30  ;;  %v7964_v59 = vld [vmem:[%s9498_s3 + $0x70] sm:$0xff]  }
0x2f7c   : > { %v7435_v0 = vpop.f32.mrf.mxu0 }
0x2f7e   : > { %v4423_v2 = vpop.f32.mrf.mxu0  ;;  %7455 = vmatpush3.bf16.msra.mxu1 %v7957_v3 }
0x2f7f   : > { %v4470_v4 = vpack.c.bf16 %v4423_v2, %v4423_v2  ;;  %7466 = vmatprep.subr.bf16.mxu1 %v8031_v30 }
0x2f80   : > { %v7450_v8 = vpop.f32.mrf.mxu0 }
0x2f81   : > { %v4475_v9 = vsel %vm726_vm4, %v4470_v4, 0  ;;  %7457 = vmatmul.mubr.msk.bf16.vlgmr.msra.gmra.mxu1 %vm576_vm3, %v8906_v15 }
0x2f82   : > { %v4426_v10 = vpop.f32.mrf.mxu0  ;;  %7461 = vmatpush3.bf16.xpose.msra.mxu0 %v4475_v9  ;;  %7468 = vmatprep.mubr.msk.bf16.mxu1 %vm8032_vm2, %v8031_v30 }
0x2f83   : > { %7472 = vmatprep.subr.bf16.mxu0 %v8031_v30 }
0x2f84   : > { %v7451_v11 = vpop.f32.mrf.mxu0 }
0x3031   : > { %v9044_v13 = vpop.f32.mrf.mxu1 }
0x3033   : > { %v7428_v14 = vpop.f32.mrf.mxu1 }
0x3034   : > { %v4344_v14 = vadd.f32 %v9020_v55, %v9044_v13 }
0x3035   : > { %v4303_v12 = vpop.f32.mrf.mxu1 }
0x3037   : > { %v7429_v16 = vpop.f32.mrf.mxu1 }
0x3039   : > { %v4383_v17 = vpop.f32.mrf.mxu1 }
0x303a   : > { %v4384_v22 = vadd.f32 %v7958_v20, %v4383_v17 }
0x303b   : > { %v7442_v60 = vpop.f32.mrf.mxu1 }
0x303c   : > { %v4469_v23 = vpack.c.bf16 %v4384_v22, %v4384_v22 }
0x303d   : > { %v4386_v24 = vpop.f32.mrf.mxu1 }
0x303e   : > { %7463 = vmatmul.mubr.msk.bf16.vlgmr.msra.gmra.mxu0 %vm726_vm4, %v4469_v23 }
0x303f   : > { %v7443_v18 = vpop.f32.mrf.mxu1  ;;  %7473 = vmatpush3.bf16.msra.mxu0 %v8361_v62  ;;  %7474 = vmatprep.mubr.msk.bf16.mxu0 %vm8032_vm2, %v8031_v30 }
0x3040   : > { %7486 = vmatprep.subr.bf16.mxu0 %v8031_v30 }
0x3041   : > { %v4463_v26 = vpop.f32.mrf.mxu1 }
0x3042   : > { %v4530_v25 = vpack.c.bf16 %v4463_v26, %v4463_v26  ;;  %v7965_v26 = vld [vmem:[%s9500_s5 + $0x3] ss:$0 sm:$0xff] }
0x3043   : > { %v7458_v27 = vpop.f32.mrf.mxu1 }
0x3044   : > { %v4535_v28 = vand.u32 %v4530_v25, %v8234_v5 }
0x3045   : > { %v4466_v29 = vpop.f32.mrf.mxu1 }
0x3046   : > { %7467 = vmatpush3.bf16.msra.mxu1 %v4535_v28 }
0x3047   : > { %v7459_v31 = vpop.f32.mrf.mxu1  ;;  %7478 = vmatprep.subr.bf16.mxu1 %v8031_v30 }
0x30fe   : > { %v4511_v33 = vpop.f32.mrf.mxu0 }
0x30ff   : > { %v4517_v43 = vmul.f32 0.35355338, %v4511_v33 }
0x3100   : > { %v7464_v63 = vpop.f32.mrf.mxu0 }
0x3101   : > { %v4518_v62 = vsel %vm774_vm7, %v4517_v43, -inf }
0x3102   : > { %4519 = vmax.xlane.f32.xlu0 %v4518_v62  ;;  %v4514_v34 = vpop.f32.mrf.mxu0 }
0x3104   : > { %v7465_v35 = vpop.f32.mrf.mxu0 }
0x318b   : > { %v4520_v36 = vpop.xlane.xlu0 %4519 }
0x318c   : > { %v4521_v37 = vsub.f32 %v4517_v43, %v4520_v36 }
0x318e   : > { %v4522_v6 = vmul.f32 1.442695, %v4521_v37 }
0x3190   : > { %7883 = vpow2.f32 %v4522_v6 }
0x319d   : > { %v7884_v21 = vpop.eup %7883 }
0x319e   : > { %v4524_v38 = vsel %vm774_vm7, %v7884_v21, 0.0 }
0x319f   : > { %4525 = vadd.xlane.f32.xlu1 %v4524_v38  ;;  %v7966_v38 = vld [vmem:[%s9501_s6 + $0x8] sm:$0xff]  }
0x3228   : > { %v4526_v39 = vpop.xlane.xlu1 %4525 }
0x3229   : > { %7885 = vrcp.f32 %v4526_v39  ;;  %v7967_v39 = vld [vmem:[%s9501_s6] sm:$0xff]  }
0x3236   : > { %v7886_v40 = vpop.eup %7885 }
0x3237   : > { %v4528_v41 = vmul.f32 %v7886_v40, %v7884_v21 }
0x3239   : > { %v4529_v1 = vpack.c.bf16 %v4528_v41, %v4528_v41 }
0x323b   : > { %7469 = vmatmul.mubr.msk.bf16.vlgmr.msra.gmra.mxu1 %vm788_vm8, %v4529_v1 }
0x323c   : > { %7479 = vmatpush3.bf16.msra.mxu1 %v7959_v44  ;;  %7482 = vmatprep.mubr.msk.bf16.mxu1 %vm8032_vm2, %v8031_v30 }
0x323d   : > { %7480 = vmatprep.subr.bf16.mxu1 %v8031_v30 }
0x3240   : > { %7481 = vmatpush3.bf16.msra.mxu1 %v7960_v19  ;;  %v7968_v19 = vld [vmem:[%s9502_s7 + $0x18] sm:$0xff]  }
0x3241   : > { %7494 = vmatprep.subr.bf16.mxu1 %v8031_v30 }
0x3243   : > { %7483 = vmatmul.mubr.msk.bf16.vlgmr.msra.gmra.mxu1 %vm576_vm3, %v8906_v15 }
0x3244   : > { %7495 = vmatpush3.bf16.msra.mxu1 %v7961_v7  ;;  %7498 = vmatprep.mubr.msk.bf16.mxu1 %vm8032_vm2, %v8031_v30 }
0x3245   : > { %7496 = vmatprep.subr.bf16.mxu1 %v8031_v30 }
0x3248   : > { %7497 = vmatpush3.bf16.msra.mxu1 %v7962_v32  ;;  %v7969_v32 = vld [vmem:[%s9502_s7 + $0x10] sm:$0xff]  }
0x3249   : > { %7508 = vmatprep.subr.bf16.mxu1 %v8031_v30 }
0x324b   : > { %7499 = vmatmul.mubr.msk.bf16.vlgmr.msra.gmra.mxu1 %vm576_vm3, %v8906_v15 }
0x324c   : > { %7510 = vmatprep.mubr.msk.bf16.mxu1 %vm8032_vm2, %v8031_v30 }
0x32fb   : > { %v4571_v45 = vpop.f32.mrf.mxu1 }
0x32fc   : > { %v4577_v46 = vpack.c.bf16 %v4571_v45, %v4571_v45  ;;  %v7970_v45 = vld [vmem:[%s9502_s7 + $0x8] sm:$0xff]  }
0x32fd   : > { %v7470_v49 = vpop.f32.mrf.mxu1 }
0x32fe   : > { %7475 = vmatmul.mubr.msk.bf16.vlgmr.msra.gmra.mxu0 %vm726_vm4, %v4577_v46  ;;  %v7971_v46 = vld [vmem:[%s9502_s7] sm:$0xff]  }
0x32ff   : > { %v4574_v52 = vpop.f32.mrf.mxu1  ;;  %7487 = vmatpush3.bf16.msra.mxu0 %v7963_v54  ;;  %7490 = vmatprep.mubr.msk.bf16.mxu0 %vm8032_vm2, %v8031_v30 }
0x3300   : > { %7488 = vmatprep.subr.bf16.mxu0 %v8031_v30 }
0x3301   : > { %v7471_v56 = vpop.f32.mrf.mxu1 }
0x3303   : > { %v4656_v58 = vpop.f32.mrf.mxu1  ;;  %7489 = vmatpush3.bf16.msra.mxu0 %v7964_v59  ;;  %v7972_v59 = vld [vmem:[%s9497_s2 + $0x2] ss:$0 sm:$0xff] }
0x3304   : > { %7502 = vmatprep.subr.bf16.mxu0 %v8031_v30  ;;  %v4657_v25 = vadd.f32 %v7965_v26, %v4656_v58  ;;  %v7977_v26 = vld [vmem:[%s9497_s2 + $0x5] ss:$0 sm:$0xff] }
0x3305   : > { %v7484_v61 = vpop.f32.mrf.mxu1 }
0x3306   : > { %7491 = vmatmul.mubr.msk.bf16.vlgmr.msra.gmra.mxu0 %vm576_vm3, %v8906_v15  ;;  %v4742_v13 = vpack.c.bf16 %v4657_v25, %v4657_v25 }
0x3307   : > { %v4659_v0 = vpop.f32.mrf.mxu1  ;;  %7504 = vmatprep.mubr.msk.bf16.mxu0 %vm8032_vm2, %v8031_v30 }
0x3309   : > { %v7485_v2 = vpop.f32.mrf.mxu1 }
0x330b   : > { %v4736_v3 = vpop.f32.mrf.mxu1 }
0x330c   : > { %v4803_v4 = vpack.c.bf16 %v4736_v3, %v4736_v3 }
0x330d   : > { %v7500_v8 = vpop.f32.mrf.mxu1 }
0x330e   : > { %v4808_v9 = vand.u32 %v4803_v4, %v8234_v5 }
0x330f   : > { %v4739_v10 = vpop.f32.mrf.mxu1 }
0x3310   : > { %7509 = vmatpush3.bf16.msra.mxu1 %v4808_v9 }
0x3311   : > { %v7501_v11 = vpop.f32.mrf.mxu1  ;;  %7520 = vmatprep.subr.bf16.mxu1 %v8031_v30 }
0x33be   : > { %v4615_v12 = vpop.f32.mrf.mxu0 }
0x33bf   : > { %v9104_v15 = vadd.f32 %v4615_v12, %v4344_v14 }
0x33c0   : > { %v7476_v16 = vpop.f32.mrf.mxu0 }
0x33c1   : > { %v7973_v16 = vld [vmem:[%s9497_s2 + $0x3] ss:$0 sm:$0xff] }
0x33c2   : > { %v4618_v17 = vpop.f32.mrf.mxu0 }
0x33c4   : > { %v7477_v20 = vpop.f32.mrf.mxu0 }
0x33c5   : > { %v7974_v20 = vld [vmem:[%s9497_s2 + $0x4] ss:$0 sm:$0xff] }
0x33c6   : > { %v4696_v22 = vpop.f32.mrf.mxu0 }
0x33c7   : > { %v4743_v60 = vpack.c.bf16 %v4696_v22, %v4696_v22 }
0x33c8   : > { %v7492_v23 = vpop.f32.mrf.mxu0 }
0x33c9   : > { %v4748_v24 = vsel %vm726_vm4, %v4743_v60, 0  ;;  %v7975_v23 = vld [vmem:[%s9498_s3 + $0xc8] sm:$0xff]  }
0x33ca   : > { %v4699_v18 = vpop.f32.mrf.mxu0  ;;  %7503 = vmatpush3.bf16.xpose.msra.mxu0 %v4748_v24  ;;  %v7976_v24 = vld [vmem:[%s9498_s3 + $0xc0] sm:$0xff]  }
0x33cb   : > { %7514 = vmatprep.subr.bf16.mxu0 %v8031_v30 }
0x33cc   : > { %v7493_v55 = vpop.f32.mrf.mxu0 }
0x33d1   : > { %7505 = vmatmul.mubr.msk.bf16.vlgmr.msra.gmra.mxu0 %vm726_vm4, %v4742_v13 }
0x33d2   : > { %7515 = vmatpush3.bf16.msra.mxu0 %v8425_v57  ;;  %7516 = vmatprep.mubr.msk.bf16.mxu0 %vm8032_vm2, %v8031_v30 }
0x33d3   : > { %7528 = vmatprep.subr.bf16.mxu0 %v8031_v30 }
0x3491   : > { %v4784_v27 = vpop.f32.mrf.mxu0 }
0x3492   : > { %v4790_v28 = vmul.f32 0.35355338, %v4784_v27 }
0x3493   : > { %v7506_v29 = vpop.f32.mrf.mxu0 }
0x3494   : > { %v4791_v31 = vsel %vm774_vm7, %v4790_v28, -inf }
0x3495   : > { %4792 = vmax.xlane.f32.xlu0 %v4791_v31  ;;  %v4787_v33 = vpop.f32.mrf.mxu0 }
0x3497   : > { %v7507_v43 = vpop.f32.mrf.mxu0 }
0x351e   : > { %v4793_v63 = vpop.xlane.xlu0 %4792 }
0x351f   : > { %v4794_v62 = vsub.f32 %v4790_v28, %v4793_v63 }
0x3521   : > { %v4795_v34 = vmul.f32 1.442695, %v4794_v62 }
0x3523   : > { %7887 = vpow2.f32 %v4795_v34 }
0x3530   : > { %v7888_v35 = vpop.eup %7887 }
0x3531   : > { %v4797_v57 = vsel %vm774_vm7, %v7888_v35, 0.0 }
0x3532   : > { %4798 = vadd.xlane.f32.xlu1 %v4797_v57 }
0x35bb   : > { %v4799_v36 = vpop.xlane.xlu1 %4798 }
0x35bc   : > { %7889 = vrcp.f32 %v4799_v36  ;;  %v7978_v36 = vld [vmem:[%s9498_s3 + $0x148] sm:$0xff]  }
0x35c9   : > { %v7890_v37 = vpop.eup %7889 }
0x35ca   : > { %v4801_v6 = vmul.f32 %v7890_v37, %v7888_v35  ;;  %v7979_v37 = vld [vmem:[%s9498_s3 + $0x140] sm:$0xff]  }
0x35cc   : > { %v4802_v21 = vpack.c.bf16 %v4801_v6, %v4801_v6 }
0x35ce   : > { %7511 = vmatmul.mubr.msk.bf16.vlgmr.msra.gmra.mxu1 %vm788_vm8, %v4802_v21 }
0x35cf   : > { %7521 = vmatpush3.bf16.msra.mxu1 %v7966_v38  ;;  %7524 = vmatprep.mubr.msk.bf16.mxu1 %vm8032_vm2, %v8031_v30 }
0x35d0   : > { %7522 = vmatprep.subr.bf16.mxu1 %v8031_v30 }
0x35d3   : > { %7523 = vmatpush3.bf16.msra.mxu1 %v7967_v39  ;;  %v7980_v39 = vld [vmem:[%s9497_s2 + $0x6] ss:$0 sm:$0xff] }
0x35d4   : > { %7540 = vmatprep.subr.bf16.mxu1 %v8031_v30 }
0x368e   : > { %v4844_v40 = vpop.f32.mrf.mxu1 }
0x368f   : > { %v4850_v41 = vpack.c.bf16 %v4844_v40, %v4844_v40 }
0x3690   : > { %v7512_v1 = vpop.f32.mrf.mxu1 }
0x3691   : > { %7517 = vmatmul.mubr.msk.bf16.vlgmr.msra.gmra.mxu0 %vm726_vm4, %v4850_v41 }
0x3692   : > { %v4847_v44 = vpop.f32.mrf.mxu1  ;;  %7529 = vmatpush3.bf16.msra.mxu0 %v7968_v19  ;;  %7536 = vmatprep.mubr.msk.bf16.mxu0 %vm8032_vm2, %v8031_v30 }
0x3693   : > { %7530 = vmatprep.subr.bf16.mxu0 %v8031_v30 }
0x3694   : > { %v7513_v7 = vpop.f32.mrf.mxu1 }
0x3696   : > { %7531 = vmatpush3.bf16.msra.mxu0 %v7969_v32 }
0x3697   : > { %7532 = vmatprep.subr.bf16.mxu0 %v8031_v30 }
0x369a   : > { %7533 = vmatpush3.bf16.msra.mxu0 %v7970_v45 }
0x369b   : > { %7534 = vmatprep.subr.bf16.mxu0 %v8031_v30 }
0x369e   : > { %7535 = vmatpush3.bf16.msra.mxu0 %v7971_v46 }
0x369f   : > { %7556 = vmatprep.subr.bf16.mxu0 %v8031_v30 }
0x3751   : > { %v4888_v49 = vpop.f32.mrf.mxu0 }
0x3752   : > { %v4894_v52 = vadd.f32 %v4888_v49, %v9104_v15 }
0x3753   : > { %v7518_v54 = vpop.f32.mrf.mxu0 }
0x3754   : > { %v4895_v56 = vadd.f32 %v4894_v52, %v8894_v48 }
0x3755   : > { %v4891_v58 = vpop.f32.mrf.mxu0 }
0x3756   : > { %v4896_v61 = vadd.f32 %v7972_v59, %v4895_v56  ;;  %v7981_v59 = vld [vmem:[%s9497_s2 + $0x7] ss:$0 sm:$0xff] }
0x3757   : > { %v7519_v0 = vpop.f32.mrf.mxu0 }
0x3758   : > { %v4897_v2 = vsel %vm517_vm1, %v4896_v61, 0.0  ;;  %v7982_v0 = vld [vmem:[%s9497_s2 + $0x8] ss:$0 sm:$0xff] }
0x3759   : > { %4898 = vadd.xlane.f32.xlu0 %v4897_v2 }
0x37e2   : > { %v4899_v3 = vpop.xlane.xlu0 %4898 }
0x37e3   : > { %v4900_v4 = vmul.f32 0.03125, %v4899_v3 }
0x37e5   : > { %v4901_v8 = vsub.f32 %v4896_v61, %v4900_v4  ;;  %v7983_v4 = vld [vmem:[%s9498_s3 + $0x108] sm:$0xff]  }
0x37e7   : > { %v4902_v9 = vmul.f32 %v4901_v8, %v4901_v8 }
0x37e9   : > { %v4903_v10 = vsel %vm517_vm1, %v4902_v9, 0.0 }
0x37ea   : > { %4904 = vadd.xlane.f32.xlu1 %v4903_v10 }
0x3873   : > { %v4905_v11 = vpop.xlane.xlu1 %4904 }
0x3874   : > { %v4906_v14 = vmul.f32 0.03125, %v4905_v11 }
0x3876   : > { %v4907_v48 = vadd.f32 1e-12, %v4906_v14 }
0x3878   : > { %7891 = vrsqrt.f32 %v4907_v48 }
0x3885   : > { %v7892_v12 = vpop.eup %7891 }
0x3886   : > { %v4909_v15 = vmul.f32 %v7892_v12, %v4901_v8  ;;  %v7984_v8 = vld [vmem:[%s9498_s3 + $0x100] sm:$0xff]  }
0x3888   : > { %v4910_v17 = vmul.f32 %v7973_v16, %v4909_v15 }
0x388a   : > { %v4911_v22 = vadd.f32 %v7974_v20, %v4910_v17 }
0x388c   : > { %v4912_v60 = vpack.c.bf16 %v4911_v22, %v4911_v22 }
0x388e   : > { %7525 = vmatmul.mubr.msk.bf16.vlgmr.msra.gmra.mxu1 %vm576_vm3, %v4912_v60 }
0x388f   : > { %7541 = vmatpush3.bf16.msra.mxu1 %v7975_v23  ;;  %7544 = vmatprep.mubr.msk.bf16.mxu1 %vm8032_vm2, %v8031_v30 }
0x3890   : > { %7542 = vmatprep.subr.bf16.mxu1 %v8031_v30 }
0x3893   : > { %7543 = vmatpush3.bf16.msra.mxu1 %v7976_v24 }
0x3894   : > { %7548 = vmatprep.subr.bf16.mxu1 %v8031_v30 }
0x394e   : > { %v4950_v18 = vpop.f32.mrf.mxu1 }
0x394f   : > { %v4951_v25 = vadd.f32 %v7977_v26, %v4950_v18  ;;  %v7985_v26 = vld [vmem:[%s9500_s5 + $0x4] ss:$0 sm:$0xff] }
0x3950   : > { %v7526_v55 = vpop.f32.mrf.mxu1 }
0x3951   : > { %v4956_v13 = vmul.f32 %v4951_v25, %v4951_v25 }
0x3952   : > { %v4953_v27 = vpop.f32.mrf.mxu1 }
0x3953   : > { %v4957_v28 = vmul.f32 %v4956_v13, %v4951_v25  ;;  %v7986_v27 = vld [vmem:[%s9498_s3 + $0xd8] sm:$0xff]  }
0x3954   : > { %v7527_v29 = vpop.f32.mrf.mxu1 }
0x3955   : > { %v4958_v31 = vmul.f32 0.044715, %v4957_v28  ;;  %v7987_v28 = vld [vmem:[%s9498_s3 + $0xd0] sm:$0xff]   ;;  %v7988_v29 = vld [vmem:[%s9498_s3 + $0x158] sm:$0xff]  }
0x3957   : > { %v4959_v33 = vadd.f32 %v4958_v31, %v4951_v25  ;;  %v7989_v31 = vld [vmem:[%s9498_s3 + $0x150] sm:$0xff]  }
0x3959   : > { %v4960_v43 = vmul.f32 0.7978846, %v4959_v33 }
0x395b   : > { %7893 = vtanh.f32 %v4960_v43 }
0x3968   : > { %v7894_v63 = vpop.eup %7893 }
0x3969   : > { %v4962_v62 = vadd.f32 1.0, %v7894_v63 }
0x396b   : > { %v4963_v34 = vmul.f32 0.5, %v4962_v62 }
0x396d   : > { %v4964_v35 = vmul.f32 %v4963_v34, %v4951_v25 }
0x396f   : > { %v4965_v57 = vpack.c.bf16 %v4964_v35, %v4964_v35 }
0x3971   : > { %7537 = vmatmul.mubr.msk.bf16.vlgmr.msra.gmra.mxu0 %vm466_vm0, %v4965_v57 }
0x3972   : > { %7557 = vmatpush3.bf16.msra.mxu0 %v7978_v36  ;;  %7560 = vmatprep.mubr.msk.bf16.mxu0 %vm8032_vm2, %v8031_v30 }
0x3973   : > { %7558 = vmatprep.subr.bf16.mxu0 %v8031_v30 }
0x3976   : > { %7559 = vmatpush3.bf16.msra.mxu0 %v7979_v37 }
0x3977   : > { %7570 = vmatprep.subr.bf16.mxu0 %v8031_v30 }
0x3a31   : > { %v5003_v6 = vpop.f32.mrf.mxu0 }
0x3a32   : > { %v5009_v21 = vadd.f32 %v5003_v6, %v4896_v61 }
0x3a33   : > { %v7538_v38 = vpop.f32.mrf.mxu0 }
0x3a34   : > { %v9189_v40 = vadd.f32 %v7980_v39, %v5009_v21 }
0x3a35   : > { %v5006_v41 = vpop.f32.mrf.mxu0 }
0x3a36   : > { %v5011_v1 = vsel %vm517_vm1, %v9189_v40, 0.0 }
0x3a37   : > { %5012 = vadd.xlane.f32.xlu0 %v5011_v1  ;;  %v7539_v44 = vpop.f32.mrf.mxu0 }
0x3ac0   : > { %v5013_v19 = vpop.xlane.xlu0 %5012 }
0x3ac1   : > { %v5014_v7 = vmul.f32 0.03125, %v5013_v19 }
0x3ac3   : > { %v5015_v32 = vsub.f32 %v9189_v40, %v5014_v7 }
0x3ac5   : > { %v5016_v45 = vmul.f32 %v5015_v32, %v5015_v32 }
0x3ac7   : > { %v5017_v46 = vsel %vm517_vm1, %v5016_v45, 0.0 }
0x3ac8   : > { %5018 = vadd.xlane.f32.xlu1 %v5017_v46 }
0x3b51   : > { %v5019_v49 = vpop.xlane.xlu1 %5018 }
0x3b52   : > { %v5020_v52 = vmul.f32 0.03125, %v5019_v49 }
0x3b54   : > { %v5021_v54 = vadd.f32 1e-12, %v5020_v52 }
0x3b56   : > { %7895 = vrsqrt.f32 %v5021_v54 }
0x3b63   : > { %v7896_v56 = vpop.eup %7895 }
0x3b64   : > { %v5023_v58 = vmul.f32 %v7896_v56, %v5015_v32 }
0x3b66   : > { %v5024_v61 = vmul.f32 %v7981_v59, %v5023_v58  ;;  %v7990_v58 = vld [vmem:[%s9498_s3 + $0x118] sm:$0xff]   ;;  %v7991_v59 = vld [vmem:[%s9498_s3 + $0x110] sm:$0xff]  }
0x3b68   : > { %v5025_v2 = vadd.f32 %v7982_v0, %v5024_v61 }
0x3b6a   : > { %v9201_v3 = vpack.c.bf16 %v5025_v2, %v5025_v2 }
0x3b6c   : > { %7545 = vmatmul.mubr.msk.bf16.vlgmr.msra.gmra.mxu1 %vm576_vm3, %v9201_v3  ;;  %7561 = vmatmul.mubr.msk.bf16.vlgmr.msra.gmra.mxu0 %vm576_vm3, %v9201_v3 }
0x3b6d   : > { %7549 = vmatpush3.bf16.msra.mxu1 %v7983_v4  ;;  %7552 = vmatprep.mubr.msk.bf16.mxu1 %vm8032_vm2, %v8031_v30 }
0x3b6e   : > { %7550 = vmatprep.subr.bf16.mxu1 %v8031_v30  ;;  %7572 = vmatprep.mubr.msk.bf16.mxu0 %vm8032_vm2, %v8031_v30 }
0x3b71   : > { %7551 = vmatpush3.bf16.msra.mxu1 %v7984_v8 }
0x3b72   : > { %7564 = vmatprep.subr.bf16.mxu1 %v8031_v30 }
0x3b74   : > { %7553 = vmatmul.mubr.msk.bf16.vlgmr.msra.gmra.mxu1 %vm576_vm3, %v9201_v3 }
0x3b75   : > { %7566 = vmatprep.mubr.msk.bf16.mxu1 %vm8032_vm2, %v8031_v30 }
0x3c2c   : > { %v5064_v9 = vpop.f32.mrf.mxu1  ;;  %v5144_v10 = vpop.f32.mrf.mxu0 }
0x3c2d   : > { %v5211_v11 = vpack.c.bf16 %v5144_v10, %v5144_v10  ;;  %v5065_v25 = vadd.f32 %v7985_v26, %v5064_v9 }
0x3c2e   : > { %v7546_v14 = vpop.f32.mrf.mxu1  ;;  %v7562_v48 = vpop.f32.mrf.mxu0 }
0x3c2f   : > { %v5216_v12 = vand.u32 %v5211_v11, %v8234_v5  ;;  %v5150_v13 = vpack.c.bf16 %v5065_v25, %v5065_v25  ;;  %v7992_v48 = vld [vmem:[%s9500_s5 + $0x5] ss:$0 sm:$0xff] }
0x3c30   : > { %v5067_v15 = vpop.f32.mrf.mxu1  ;;  %v5147_v16 = vpop.f32.mrf.mxu0 }
0x3c31   : > { %7571 = vmatpush3.bf16.msra.mxu0 %v5216_v12 }
0x3c32   : > { %v7547_v17 = vpop.f32.mrf.mxu1  ;;  %v7563_v20 = vpop.f32.mrf.mxu0  ;;  %7584 = vmatprep.subr.bf16.mxu0 %v8031_v30 }
0x3c34   : > { %v5104_v22 = vpop.f32.mrf.mxu1 }
0x3c35   : > { %v5151_v60 = vpack.c.bf16 %v5104_v22, %v5104_v22 }
0x3c36   : > { %v7554_v23 = vpop.f32.mrf.mxu1 }
0x3c37   : > { %v5156_v24 = vsel %vm726_vm4, %v5151_v60, 0 }
0x3c38   : > { %v5107_v18 = vpop.f32.mrf.mxu1  ;;  %7565 = vmatpush3.bf16.xpose.msra.mxu1 %v5156_v24 }
0x3c39   : > { %7576 = vmatprep.subr.bf16.mxu1 %v8031_v30 }
0x3c3a   : > { %v7555_v55 = vpop.f32.mrf.mxu1 }
0x3c3f   : > { %7567 = vmatmul.mubr.msk.bf16.vlgmr.msra.gmra.mxu1 %vm726_vm4, %v5150_v13 }
0x3c40   : > { %7577 = vmatpush3.bf16.msra.mxu1 %v7986_v27  ;;  %7580 = vmatprep.mubr.msk.bf16.mxu1 %vm8032_vm2, %v8031_v30 }
0x3c41   : > { %7578 = vmatprep.subr.bf16.mxu1 %v8031_v30 }
0x3c44   : > { %7579 = vmatpush3.bf16.msra.mxu1 %v7987_v28 }
0x3c45   : > { %7592 = vmatprep.subr.bf16.mxu1 %v8031_v30 }
0x3c47   : > { %7581 = vmatmul.mubr.msk.bf16.vlgmr.msra.gmra.mxu1 %vm576_vm3, %v9201_v3 }
0x3c48   : > { %7593 = vmatpush3.bf16.msra.mxu1 %v7988_v29  ;;  %7596 = vmatprep.mubr.msk.bf16.mxu1 %vm8032_vm2, %v8031_v30 }
0x3c49   : > { %7594 = vmatprep.subr.bf16.mxu1 %v8031_v30 }
0x3c4c   : > { %7595 = vmatpush3.bf16.msra.mxu1 %v7989_v31 }
0x3c4d   : > { %7606 = vmatprep.subr.bf16.mxu1 %v8031_v30 }
0x3c4f   : > { %7597 = vmatmul.mubr.msk.bf16.vlgmr.msra.gmra.mxu1 %vm576_vm3, %v9201_v3 }
0x3c50   : > { %7608 = vmatprep.mubr.msk.bf16.mxu1 %vm8032_vm2, %v8031_v30 }
0x3cff   : > { %v5192_v33 = vpop.f32.mrf.mxu1 }
0x3d00   : > { %v5198_v43 = vmul.f32 0.35355338, %v5192_v33  ;;  %v7993_v33 = vld [vmem:[%s9498_s3 + $0x128] sm:$0xff]  }
0x3d01   : > { %v7568_v63 = vpop.f32.mrf.mxu1 }
0x3d02   : > { %v5199_v62 = vsel %vm774_vm7, %v5198_v43, -inf }
0x3d03   : > { %5200 = vmax.xlane.f32.xlu0 %v5199_v62  ;;  %v5195_v34 = vpop.f32.mrf.mxu1 }
0x3d05   : > { %v7569_v35 = vpop.f32.mrf.mxu1 }
0x3d06   : > { %v7995_v35 = vld [vmem:[%s9498_s3 + $0xe8] sm:$0xff]  }
0x3d07   : > { %v5293_v57 = vpop.f32.mrf.mxu1 }
0x3d08   : > { %v5294_v12 = vadd.f32 %v7992_v48, %v5293_v57 }
0x3d09   : > { %v7582_v36 = vpop.f32.mrf.mxu1 }
0x3d0a   : > { %v5379_v16 = vpack.c.bf16 %v5294_v12, %v5294_v12 }
0x3d0b   : > { %v5296_v37 = vpop.f32.mrf.mxu1 }
0x3d0c   : > { %v7996_v37 = vld [vmem:[%s9498_s3 + $0xe0] sm:$0xff]  }
0x3d0d   : > { %v7583_v6 = vpop.f32.mrf.mxu1 }
0x3d0f   : > { %v5373_v21 = vpop.f32.mrf.mxu1 }
0x3d10   : > { %v5440_v38 = vpack.c.bf16 %v5373_v21, %v5373_v21 }
0x3d11   : > { %v7598_v39 = vpop.f32.mrf.mxu1 }
0x3d12   : > { %v5445_v41 = vand.u32 %v5440_v38, %v8234_v5  ;;  %v7997_v38 = vld [vmem:[%s9498_s3 + $0x168] sm:$0xff]  }
0x3d13   : > { %v5376_v1 = vpop.f32.mrf.mxu1 }
0x3d14   : > { %7607 = vmatpush3.bf16.msra.mxu1 %v5445_v41  ;;  %v7998_v1 = vld [vmem:[%s9498_s3 + $0x160] sm:$0xff]  }
0x3d15   : > { %v7599_v44 = vpop.f32.mrf.mxu1  ;;  %7618 = vmatprep.subr.bf16.mxu1 %v8031_v30 }
0x3d8c   : > { %v5201_v19 = vpop.xlane.xlu0 %5200 }
0x3d8d   : > { %v5202_v7 = vsub.f32 %v5198_v43, %v5201_v19 }
0x3d8f   : > { %v5203_v32 = vmul.f32 1.442695, %v5202_v7 }
0x3d91   : > { %7897 = vpow2.f32 %v5203_v32 }
0x3d9e   : > { %v7898_v45 = vpop.eup %7897 }
0x3d9f   : > { %v5205_v46 = vsel %vm774_vm7, %v7898_v45, 0.0 }
0x3da0   : > { %5206 = vadd.xlane.f32.xlu1 %v5205_v46 }
0x3e29   : > { %v5207_v49 = vpop.xlane.xlu1 %5206 }
0x3e2a   : > { %7899 = vrcp.f32 %v5207_v49 }
0x3e37   : > { %v7900_v52 = vpop.eup %7899 }
0x3e38   : > { %v5209_v54 = vmul.f32 %v7900_v52, %v7898_v45 }
0x3e3a   : > { %v5210_v56 = vpack.c.bf16 %v5209_v54, %v5209_v54 }
0x3e3c   : > { %7573 = vmatmul.mubr.msk.bf16.vlgmr.msra.gmra.mxu0 %vm788_vm8, %v5210_v56 }
0x3e3d   : > { %7585 = vmatpush3.bf16.msra.mxu0 %v7990_v58  ;;  %7588 = vmatprep.mubr.msk.bf16.mxu0 %vm8032_vm2, %v8031_v30  ;;  %v7999_v58 = vld [vmem:[%s9500_s5 + $0x6] ss:$0 sm:$0xff] }
0x3e3e   : > { %7586 = vmatprep.subr.bf16.mxu0 %v8031_v30 }
0x3e41   : > { %7587 = vmatpush3.bf16.msra.mxu0 %v7991_v59 }
0x3e42   : > { %7600 = vmatprep.subr.bf16.mxu0 %v8031_v30 }
0x3e44   : > { %7589 = vmatmul.mubr.msk.bf16.vlgmr.msra.gmra.mxu0 %vm576_vm3, %v9201_v3 }
0x3e45   : > { %7602 = vmatprep.mubr.msk.bf16.mxu0 %vm8032_vm2, %v8031_v30 }
0x3efc   : > { %v5252_v61 = vpop.f32.mrf.mxu0 }
0x3efd   : > { %v5258_v31 = vpack.c.bf16 %v5252_v61, %v5252_v61 }
0x3efe   : > { %v7574_v0 = vpop.f32.mrf.mxu0 }
0x3f00   : > { %v5255_v2 = vpop.f32.mrf.mxu0 }
0x3f02   : > { %v7575_v4 = vpop.f32.mrf.mxu0 }
0x3f04   : > { %v5333_v8 = vpop.f32.mrf.mxu0 }
0x3f05   : > { %v5380_v9 = vpack.c.bf16 %v5333_v8, %v5333_v8 }
0x3f06   : > { %v7590_v10 = vpop.f32.mrf.mxu0 }
0x3f07   : > { %v5385_v11 = vsel %vm726_vm4, %v5380_v9, 0 }
0x3f08   : > { %v5336_v14 = vpop.f32.mrf.mxu0  ;;  %7601 = vmatpush3.bf16.xpose.msra.mxu0 %v5385_v11 }
0x3f09   : > { %7612 = vmatprep.subr.bf16.mxu0 %v8031_v30 }
0x3f0a   : > { %v7591_v15 = vpop.f32.mrf.mxu0 }
0x3f0f   : > { %7603 = vmatmul.mubr.msk.bf16.vlgmr.msra.gmra.mxu0 %vm726_vm4, %v5379_v16 }
0x3f10   : > { %7613 = vmatpush3.bf16.msra.mxu0 %v8600_v47  ;;  %7614 = vmatprep.mubr.msk.bf16.mxu0 %vm8032_vm2, %v8031_v30 }
0x3f11   : > { %7624 = vmatprep.subr.bf16.mxu0 %v8031_v30 }
0x3fcf   : > { %v5421_v17 = vpop.f32.mrf.mxu0 }
0x3fd0   : > { %v5427_v20 = vmul.f32 0.35355338, %v5421_v17 }
0x3fd1   : > { %v7604_v22 = vpop.f32.mrf.mxu0 }
0x3fd2   : > { %v5428_v60 = vsel %vm774_vm7, %v5427_v20, -inf }
0x3fd3   : > { %5429 = vmax.xlane.f32.xlu0 %v5428_v60  ;;  %v5424_v23 = vpop.f32.mrf.mxu0 }
0x3fd5   : > { %v7605_v24 = vpop.f32.mrf.mxu0 }
0x405c   : > { %v5430_v18 = vpop.xlane.xlu0 %5429 }
0x405d   : > { %v5431_v26 = vsub.f32 %v5427_v20, %v5430_v18 }
0x405f   : > { %v5432_v25 = vmul.f32 1.442695, %v5431_v26 }
0x4061   : > { %7901 = vpow2.f32 %v5432_v25 }
0x406e   : > { %v7902_v55 = vpop.eup %7901 }
0x406f   : > { %v5434_v47 = vsel %vm774_vm7, %v7902_v55, 0.0 }
0x4070   : > { %5435 = vadd.xlane.f32.xlu1 %v5434_v47 }
0x40f9   : > { %v5436_v13 = vpop.xlane.xlu1 %5435 }
0x40fa   : > { %7903 = vrcp.f32 %v5436_v13  ;;  %v8000_v13 = vld [vmem:[%s9498_s3 + $0xf8] sm:$0xff]  }
0x4107   : > { %v7904_v27 = vpop.eup %7903 }
0x4108   : > { %v5438_v28 = vmul.f32 %v7904_v27, %v7902_v55  ;;  %v8001_v27 = vld [vmem:[%s9498_s3 + $0xf0] sm:$0xff]  }
0x410a   : > { %v5439_v29 = vpack.c.bf16 %v5438_v28, %v5438_v28  ;;  %v8002_v28 = vld [vmem:[%s9498_s3 + $0x178] sm:$0xff]  }
0x410c   : > { %7609 = vmatmul.mubr.msk.bf16.vlgmr.msra.gmra.mxu1 %vm788_vm8, %v5439_v29  ;;  %v8003_v29 = vld [vmem:[%s9498_s3 + $0x170] sm:$0xff]  }
0x410d   : > { %7619 = vmatpush3.bf16.msra.mxu1 %v8608_v53  ;;  %7620 = vmatprep.mubr.msk.bf16.mxu1 %vm8032_vm2, %v8031_v30  ;;  %v7994_v53 = vld [vmem:[%s9498_s3 + $0x120] sm:$0xff]  }
0x410e   : > { %7632 = vmatprep.subr.bf16.mxu1 %v8031_v30 }
0x4114   : > { %7621 = vmatmul.mubr.msk.bf16.vlgmr.msra.gmra.mxu1 %vm726_vm4, %v5258_v31 }
0x4115   : > { %7633 = vmatpush3.bf16.msra.mxu1 %v7993_v33  ;;  %7636 = vmatprep.mubr.msk.bf16.mxu1 %vm8032_vm2, %v8031_v30 }
0x4116   : > { %7634 = vmatprep.subr.bf16.mxu1 %v8031_v30 }
0x4119   : > { %7635 = vmatpush3.bf16.msra.mxu1 %v7994_v53 }
0x411a   : > { %7648 = vmatprep.subr.bf16.mxu1 %v8031_v30 }
0x411c   : > { %7637 = vmatmul.mubr.msk.bf16.vlgmr.msra.gmra.mxu1 %vm576_vm3, %v9201_v3 }
0x411d   : > { %7650 = vmatprep.mubr.msk.bf16.mxu1 %vm8032_vm2, %v8031_v30 }
0x41cc   : > { %v5481_v43 = vpop.f32.mrf.mxu1 }
0x41cd   : > { %v5487_v63 = vpack.c.bf16 %v5481_v43, %v5481_v43 }
0x41ce   : > { %v7610_v62 = vpop.f32.mrf.mxu1 }
0x41cf   : > { %7615 = vmatmul.mubr.msk.bf16.vlgmr.msra.gmra.mxu0 %vm726_vm4, %v5487_v63  ;;  %v8004_v63 = vld [vmem:[%s9498_s3 + $0x138] sm:$0xff]  }
0x41d0   : > { %v5484_v34 = vpop.f32.mrf.mxu1  ;;  %7625 = vmatpush3.bf16.msra.mxu0 %v7995_v35  ;;  %7628 = vmatprep.mubr.msk.bf16.mxu0 %vm8032_vm2, %v8031_v30  ;;  %v8005_v35 = vld [vmem:[%s9498_s3 + $0x130] sm:$0xff]  }
0x41d1   : > { %7626 = vmatprep.subr.bf16.mxu0 %v8031_v30 }
0x41d2   : > { %v7611_v57 = vpop.f32.mrf.mxu1 }
0x41d4   : > { %v9315_v36 = vpop.f32.mrf.mxu1  ;;  %7627 = vmatpush3.bf16.msra.mxu0 %v7996_v37 }
0x41d5   : > { %7640 = vmatprep.subr.bf16.mxu0 %v8031_v30 }
0x41d6   : > { %v7622_v6 = vpop.f32.mrf.mxu1 }
0x41d7   : > { %7629 = vmatmul.mubr.msk.bf16.vlgmr.msra.gmra.mxu0 %vm576_vm3, %v9201_v3 }
0x41d8   : > { %v5571_v21 = vpop.f32.mrf.mxu1  ;;  %7641 = vmatpush3.bf16.msra.mxu0 %v7997_v38  ;;  %7644 = vmatprep.mubr.msk.bf16.mxu0 %vm8032_vm2, %v8031_v30 }
0x41d9   : > { %7642 = vmatprep.subr.bf16.mxu0 %v8031_v30 }
0x41da   : > { %v7623_v39 = vpop.f32.mrf.mxu1 }
0x41dc   : > { %v5648_v41 = vpop.f32.mrf.mxu1  ;;  %7643 = vmatpush3.bf16.msra.mxu0 %v7998_v1 }
0x41dd   : > { %v5695_v44 = vpack.c.bf16 %v5648_v41, %v5648_v41  ;;  %7654 = vmatprep.subr.bf16.mxu0 %v8031_v30 }
0x41de   : > { %v7638_v19 = vpop.f32.mrf.mxu1 }
0x41df   : > { %v5700_v7 = vsel %vm726_vm4, %v5695_v44, 0  ;;  %7645 = vmatmul.mubr.msk.bf16.vlgmr.msra.gmra.mxu0 %vm576_vm3, %v9201_v3 }
0x41e0   : > { %v5651_v32 = vpop.f32.mrf.mxu1  ;;  %7649 = vmatpush3.bf16.xpose.msra.mxu1 %v5700_v7  ;;  %7656 = vmatprep.mubr.msk.bf16.mxu0 %vm8032_vm2, %v8031_v30 }
0x41e1   : > { %7660 = vmatprep.subr.bf16.mxu1 %v8031_v30 }
0x41e2   : > { %v7639_v45 = vpop.f32.mrf.mxu1 }
0x428f   : > { %v9339_v46 = vpop.f32.mrf.mxu0 }
0x4290   : > { %v5569_v19 = vadd.f32 %v9315_v36, %v9339_v46 }
0x4291   : > { %v7616_v49 = vpop.f32.mrf.mxu0 }
0x4293   : > { %v5528_v52 = vpop.f32.mrf.mxu0 }
0x4295   : > { %v7617_v54 = vpop.f32.mrf.mxu0 }
0x4297   : > { %v5608_v56 = vpop.f32.mrf.mxu0 }
0x4298   : > { %v5609_v59 = vadd.f32 %v7999_v58, %v5608_v56 }
0x4299   : > { %v7630_v61 = vpop.f32.mrf.mxu0 }
0x429a   : > { %v5694_v0 = vpack.c.bf16 %v5609_v59, %v5609_v59  ;;  %v8006_v59 = vld [vmem:[%s9500_s5 + $0x7] ss:$0 sm:$0xff] }
0x429b   : > { %v5611_v2 = vpop.f32.mrf.mxu0 }
0x429c   : > { %7651 = vmatmul.mubr.msk.bf16.vlgmr.msra.gmra.mxu1 %vm726_vm4, %v5694_v0 }
0x429d   : > { %v7631_v4 = vpop.f32.mrf.mxu0  ;;  %7661 = vmatpush3.bf16.msra.mxu1 %v8677_v51  ;;  %7662 = vmatprep.mubr.msk.bf16.mxu1 %vm8032_vm2, %v8031_v30 }
0x429e   : > { %7674 = vmatprep.subr.bf16.mxu1 %v8031_v30 }
0x429f   : > { %v5688_v8 = vpop.f32.mrf.mxu0 }
0x42a0   : > { %v5755_v9 = vpack.c.bf16 %v5688_v8, %v5688_v8 }
0x42a1   : > { %v7646_v10 = vpop.f32.mrf.mxu0 }
0x42a2   : > { %v5760_v11 = vand.u32 %v5755_v9, %v8234_v5 }
0x42a3   : > { %v5691_v14 = vpop.f32.mrf.mxu0 }
0x42a4   : > { %7655 = vmatpush3.bf16.msra.mxu0 %v5760_v11 }
0x42a5   : > { %v7647_v48 = vpop.f32.mrf.mxu0  ;;  %7666 = vmatprep.subr.bf16.mxu0 %v8031_v30 }
0x435c   : > { %v5736_v12 = vpop.f32.mrf.mxu1 }
0x435d   : > { %v5742_v15 = vmul.f32 0.35355338, %v5736_v12 }
0x435e   : > { %v7652_v16 = vpop.f32.mrf.mxu1 }
0x435f   : > { %v5743_v51 = vsel %vm774_vm7, %v5742_v15, -inf }
0x4360   : > { %5744 = vmax.xlane.f32.xlu0 %v5743_v51  ;;  %v5739_v17 = vpop.f32.mrf.mxu1 }
0x4362   : > { %v7653_v20 = vpop.f32.mrf.mxu1 }
0x4363   : > { %v8007_v20 = vld [vmem:[%s9501_s6 + $0x18] sm:$0xff]  }
0x43e9   : > { %v5745_v22 = vpop.xlane.xlu0 %5744 }
0x43ea   : > { %v5746_v60 = vsub.f32 %v5742_v15, %v5745_v22  ;;  %v8008_v22 = vld [vmem:[%s9501_s6 + $0x10] sm:$0xff]  }
0x43ec   : > { %v5747_v23 = vmul.f32 1.442695, %v5746_v60 }
0x43ee   : > { %7905 = vpow2.f32 %v5747_v23 }
0x43fb   : > { %v7906_v24 = vpop.eup %7905 }
0x43fc   : > { %v5749_v18 = vsel %vm774_vm7, %v7906_v24, 0.0 }
0x43fd   : > { %5750 = vadd.xlane.f32.xlu1 %v5749_v18 }
0x4486   : > { %v5751_v26 = vpop.xlane.xlu1 %5750 }
0x4487   : > { %7907 = vrcp.f32 %v5751_v26  ;;  %v8009_v26 = vld [vmem:[%s9502_s7 + $0x38] sm:$0xff]  }
0x4494   : > { %v7908_v25 = vpop.eup %7907 }
0x4495   : > { %v5753_v55 = vmul.f32 %v7908_v25, %v7906_v24 }
0x4497   : > { %v5754_v47 = vpack.c.bf16 %v5753_v55, %v5753_v55  ;;  %v8010_v55 = vld [vmem:[%s9502_s7 + $0x30] sm:$0xff]  }
0x4499   : > { %7657 = vmatmul.mubr.msk.bf16.vlgmr.msra.gmra.mxu0 %vm788_vm8, %v5754_v47  ;;  %v8011_v47 = vld [vmem:[%s9502_s7 + $0x28] sm:$0xff]  }
0x449a   : > { %7667 = vmatpush3.bf16.msra.mxu0 %v8000_v13  ;;  %7670 = vmatprep.mubr.msk.bf16.mxu0 %vm8032_vm2, %v8031_v30  ;;  %v8012_v13 = vld [vmem:[%s9502_s7 + $0x20] sm:$0xff]  }
0x449b   : > { %7668 = vmatprep.subr.bf16.mxu0 %v8031_v30 }
0x449e   : > { %7669 = vmatpush3.bf16.msra.mxu0 %v8001_v27 }
0x449f   : > { %7682 = vmatprep.subr.bf16.mxu0 %v8031_v30 }
0x44a1   : > { %7671 = vmatmul.mubr.msk.bf16.vlgmr.msra.gmra.mxu0 %vm576_vm3, %v9201_v3 }
0x44a2   : > { %7683 = vmatpush3.bf16.msra.mxu0 %v8002_v28  ;;  %7686 = vmatprep.mubr.msk.bf16.mxu0 %vm8032_vm2, %v8031_v30 }
0x44a3   : > { %7684 = vmatprep.subr.bf16.mxu0 %v8031_v30 }
0x44a6   : > { %7685 = vmatpush3.bf16.msra.mxu0 %v8003_v29 }
0x44a7   : > { %7696 = vmatprep.subr.bf16.mxu0 %v8031_v30 }
0x44a9   : > { %7687 = vmatmul.mubr.msk.bf16.vlgmr.msra.gmra.mxu0 %vm576_vm3, %v9201_v3 }
0x44aa   : > { %7698 = vmatprep.mubr.msk.bf16.mxu0 %vm8032_vm2, %v8031_v30 }
0x4559   : > { %v5796_v31 = vpop.f32.mrf.mxu0 }
0x455a   : > { %v5802_v33 = vpack.c.bf16 %v5796_v31, %v5796_v31 }
0x455b   : > { %v7658_v53 = vpop.f32.mrf.mxu0 }
0x455c   : > { %7663 = vmatmul.mubr.msk.bf16.vlgmr.msra.gmra.mxu1 %vm726_vm4, %v5802_v33  ;;  %v8013_v53 = vld [vmem:[%s9497_s2 + $0x9] ss:$0 sm:$0xff] }
0x455d   : > { %v5799_v43 = vpop.f32.mrf.mxu0  ;;  %7675 = vmatpush3.bf16.msra.mxu1 %v8004_v63  ;;  %7678 = vmatprep.mubr.msk.bf16.mxu1 %vm8032_vm2, %v8031_v30 }
0x455e   : > { %7676 = vmatprep.subr.bf16.mxu1 %v8031_v30 }
0x455f   : > { %v7659_v62 = vpop.f32.mrf.mxu0 }
0x4561   : > { %v5881_v34 = vpop.f32.mrf.mxu0  ;;  %7677 = vmatpush3.bf16.msra.mxu1 %v8005_v35 }
0x4562   : > { %7690 = vmatprep.subr.bf16.mxu1 %v8031_v30  ;;  %v5882_v61 = vadd.f32 %v8006_v59, %v5881_v34 }
0x4563   : > { %v7672_v57 = vpop.f32.mrf.mxu0 }
0x4564   : > { %7679 = vmatmul.mubr.msk.bf16.vlgmr.msra.gmra.mxu1 %vm576_vm3, %v9201_v3  ;;  %v5967_v46 = vpack.c.bf16 %v5882_v61, %v5882_v61 }
0x4565   : > { %v5884_v37 = vpop.f32.mrf.mxu0  ;;  %7692 = vmatprep.mubr.msk.bf16.mxu1 %vm8032_vm2, %v8031_v30 }
0x4567   : > { %v7673_v6 = vpop.f32.mrf.mxu0 }
0x4569   : > { %v5961_v21 = vpop.f32.mrf.mxu0 }
0x456a   : > { %v6028_v38 = vpack.c.bf16 %v5961_v21, %v5961_v21 }
0x456b   : > { %v7688_v39 = vpop.f32.mrf.mxu0 }
0x456c   : > { %v6033_v41 = vand.u32 %v6028_v38, %v8234_v5 }
0x456d   : > { %v5964_v1 = vpop.f32.mrf.mxu0 }
0x456e   : > { %7697 = vmatpush3.bf16.msra.mxu0 %v6033_v41  ;;  %v8014_v1 = vld [vmem:[%s9497_s2 + $0xa] ss:$0 sm:$0xff] }
0x456f   : > { %v7689_v44 = vpop.f32.mrf.mxu0  ;;  %7708 = vmatprep.subr.bf16.mxu0 %v8031_v30 }
0x461c   : > { %v5840_v7 = vpop.f32.mrf.mxu1 }
0x461d   : > { %v9399_v3 = vadd.f32 %v5840_v7, %v5569_v19  ;;  %v8015_v19 = vld [vmem:[%s9497_s2 + $0xb] ss:$0 sm:$0xff] }
0x461e   : > { %v7664_v32 = vpop.f32.mrf.mxu1 }
0x461f   : > { %v8016_v32 = vld [vmem:[%s9504_s9 + $0x8] sm:$0xff]  }
0x4620   : > { %v5843_v45 = vpop.f32.mrf.mxu1 }
0x4621   : > { %v8017_v45 = vld [vmem:[%s9504_s9] sm:$0xff]  }
0x4622   : > { %v7665_v49 = vpop.f32.mrf.mxu1 }
0x4624   : > { %v5921_v52 = vpop.f32.mrf.mxu1 }
0x4625   : > { %v5968_v54 = vpack.c.bf16 %v5921_v52, %v5921_v52  ;;  %v8018_v52 = vld [vmem:[%s9497_s2 + $0xc] ss:$0 sm:$0xff] }
0x4626   : > { %v7680_v56 = vpop.f32.mrf.mxu1 }
0x4627   : > { %v5973_v58 = vsel %vm726_vm4, %v5968_v54, 0 }
0x4628   : > { %v5924_v5 = vpop.f32.mrf.mxu1  ;;  %7691 = vmatpush3.bf16.xpose.msra.mxu1 %v5973_v58 }
0x4629   : > { %7702 = vmatprep.subr.bf16.mxu1 %v8031_v30 }
0x462a   : > { %v7681_v36 = vpop.f32.mrf.mxu1 }
0x462f   : > { %7693 = vmatmul.mubr.msk.bf16.vlgmr.msra.gmra.mxu1 %vm726_vm4, %v5967_v46 }
0x4630   : > { %7703 = vmatpush3.bf16.msra.mxu1 %v8741_v50  ;;  %7704 = vmatprep.mubr.msk.bf16.mxu1 %vm8032_vm2, %v8031_v30 }
0x4631   : > { %7716 = vmatprep.subr.bf16.mxu1 %v8031_v30 }
0x46ef   : > { %v6009_v0 = vpop.f32.mrf.mxu1 }
0x46f0   : > { %v6015_v2 = vmul.f32 0.35355338, %v6009_v0 }
0x46f1   : > { %v7694_v4 = vpop.f32.mrf.mxu1 }
0x46f2   : > { %v6016_v8 = vsel %vm774_vm7, %v6015_v2, -inf }
0x46f3   : > { %6017 = vmax.xlane.f32.xlu0 %v6016_v8  ;;  %v6012_v9 = vpop.f32.mrf.mxu1 }
0x46f5   : > { %v7695_v10 = vpop.f32.mrf.mxu1 }
0x477c   : > { %v6018_v11 = vpop.xlane.xlu0 %6017 }
0x477d   : > { %v6019_v14 = vsub.f32 %v6015_v2, %v6018_v11 }
0x477f   : > { %v6020_v48 = vmul.f32 1.442695, %v6019_v14 }
0x4781   : > { %7909 = vpow2.f32 %v6020_v48  ;;  %v8019_v48 = vld [vmem:[%s9497_s2 + $0xd] ss:$0 sm:$0xff] }
0x478e   : > { %v7910_v12 = vpop.eup %7909 }
0x478f   : > { %v6022_v50 = vsel %vm774_vm7, %v7910_v12, 0.0 }
0x4790   : > { %6023 = vadd.xlane.f32.xlu1 %v6022_v50 }
0x4819   : > { %v6024_v15 = vpop.xlane.xlu1 %6023 }
0x481a   : > { %7911 = vrcp.f32 %v6024_v15 }
0x4827   : > { %v7912_v16 = vpop.eup %7911 }
0x4828   : > { %v6026_v51 = vmul.f32 %v7912_v16, %v7910_v12 }
0x482a   : > { %v6027_v17 = vpack.c.bf16 %v6026_v51, %v6026_v51 }
0x482c   : > { %7699 = vmatmul.mubr.msk.bf16.vlgmr.msra.gmra.mxu0 %vm788_vm8, %v6027_v17 }
0x482d   : > { %7709 = vmatpush3.bf16.msra.mxu0 %v8007_v20  ;;  %7712 = vmatprep.mubr.msk.bf16.mxu0 %vm8032_vm2, %v8031_v30 }
0x482e   : > { %7710 = vmatprep.subr.bf16.mxu0 %v8031_v30 }
0x4831   : > { %7711 = vmatpush3.bf16.msra.mxu0 %v8008_v22 }
0x4832   : > { %7728 = vmatprep.subr.bf16.mxu0 %v8031_v30 }
0x48ec   : > { %v6069_v60 = vpop.f32.mrf.mxu0 }
0x48ed   : > { %v6075_v23 = vpack.c.bf16 %v6069_v60, %v6069_v60 }
0x48ee   : > { %v7700_v24 = vpop.f32.mrf.mxu0 }
0x48ef   : > { %7705 = vmatmul.mubr.msk.bf16.vlgmr.msra.gmra.mxu1 %vm726_vm4, %v6075_v23 }
0x48f0   : > { %v6072_v18 = vpop.f32.mrf.mxu0  ;;  %7717 = vmatpush3.bf16.msra.mxu1 %v8009_v26  ;;  %7724 = vmatprep.mubr.msk.bf16.mxu1 %vm8032_vm2, %v8031_v30 }
0x48f1   : > { %7718 = vmatprep.subr.bf16.mxu1 %v8031_v30 }
0x48f2   : > { %v7701_v25 = vpop.f32.mrf.mxu0 }
0x48f4   : > { %7719 = vmatpush3.bf16.msra.mxu1 %v8010_v55  ;;  %v8020_v55 = vld [vmem:[%s9497_s2 + $0xe] ss:$0 sm:$0xff] }
0x48f5   : > { %7720 = vmatprep.subr.bf16.mxu1 %v8031_v30 }
0x48f8   : > { %7721 = vmatpush3.bf16.msra.mxu1 %v8011_v47 }
0x48f9   : > { %7722 = vmatprep.subr.bf16.mxu1 %v8031_v30 }
0x48fc   : > { %7723 = vmatpush3.bf16.msra.mxu1 %v8012_v13  ;;  %v8021_v13 = vld [vmem:[%s9497_s2 + $0xf] ss:$0 sm:$0xff] }
0x49af   : > { %v6113_v27 = vpop.f32.mrf.mxu1 }
0x49b0   : > { %v6119_v28 = vadd.f32 %v6113_v27, %v9399_v3 }
0x49b1   : > { %v7706_v29 = vpop.f32.mrf.mxu1 }
0x49b2   : > { %v6120_v31 = vadd.f32 %v6119_v28, %v9189_v40  ;;  %v3678_v29 = vld [vmem:[%s9497_s2 + $0x10] sm:$0x1] }
0x49b3   : > { %v6116_v33 = vpop.f32.mrf.mxu1 }
0x49b4   : > { %v6121_v43 = vadd.f32 %v8013_v53, %v6120_v31 }
0x49b5   : > { %v7707_v63 = vpop.f32.mrf.mxu1 }
0x49b6   : > { %v6122_v62 = vsel %vm517_vm1, %v6121_v43, 0.0 }
0x49b7   : > { %6123 = vadd.xlane.f32.xlu0 %v6122_v62 }
0x4a40   : > { %v6124_v34 = vpop.xlane.xlu0 %6123 }
0x4a41   : > { %v6125_v35 = vmul.f32 0.03125, %v6124_v34  ;;  %v3729_v34 = vadd.f32 %v8889_v42, %v3678_v29 }
0x4a43   : > { %v6126_v57 = vsub.f32 %v6121_v43, %v6125_v35 }
0x4a45   : > { %v6127_v37 = vmul.f32 %v6126_v57, %v6126_v57 }
0x4a47   : > { %v6128_v6 = vsel %vm517_vm1, %v6127_v37, 0.0 }
0x4a48   : > { %6129 = vadd.xlane.f32.xlu1 %v6128_v6 }
0x4ad1   : > { %v6130_v21 = vpop.xlane.xlu1 %6129 }
0x4ad2   : > { %v6131_v38 = vmul.f32 0.03125, %v6130_v21 }
0x4ad4   : > { %v6132_v40 = vadd.f32 1e-12, %v6131_v38 }
0x4ad6   : > { %7913 = vrsqrt.f32 %v6132_v40 }
0x4ae3   : > { %v7914_v39 = vpop.eup %7913 }
0x4ae4   : > { %v6134_v41 = vmul.f32 %v7914_v39, %v6126_v57 }
0x4ae6   : > { %v6135_v44 = vmul.f32 %v8014_v1, %v6134_v41 }
0x4ae8   : > { %v6136_v7 = vadd.f32 %v8015_v19, %v6135_v44 }
0x4aea   : > { %v6137_v3 = vpack.c.bf16 %v6136_v7, %v6136_v7 }
0x4aec   : > { %7713 = vmatmul.mubr.msk.bf16.vlgmr.msra.gmra.mxu0 %vm576_vm3, %v6137_v3 }
0x4aed   : > { %7729 = vmatpush3.bf16.msra.mxu0 %v8016_v32  ;;  %7732 = vmatprep.mubr.msk.bf16.mxu0 %vm8032_vm2, %v8031_v30 }
0x4aee   : > { %7730 = vmatprep.subr.bf16.mxu0 %v8031_v30 }
0x4af1   : > { %7731 = vmatpush3.bf16.msra.mxu0 %v8017_v45 }
0x4bac   : > { %v6175_v49 = vpop.f32.mrf.mxu0 }
0x4bad   : > { %v6176_v54 = vadd.f32 %v8018_v52, %v6175_v49 }
0x4bae   : > { %v7714_v56 = vpop.f32.mrf.mxu0 }
0x4baf   : > { %v6181_v58 = vmul.f32 %v6176_v54, %v6176_v54 }
0x4bb0   : > { %v6178_v5 = vpop.f32.mrf.mxu0 }
0x4bb1   : > { %v6182_v59 = vmul.f32 %v6181_v58, %v6176_v54 }
0x4bb2   : > { %v7715_v61 = vpop.f32.mrf.mxu0 }
0x4bb3   : > { %v6183_v36 = vmul.f32 0.044715, %v6182_v59 }
0x4bb5   : > { %v6184_v46 = vadd.f32 %v6183_v36, %v6176_v54 }
0x4bb7   : > { %v6185_v0 = vmul.f32 0.7978846, %v6184_v46 }
0x4bb9   : > { %7915 = vtanh.f32 %v6185_v0 }
0x4bc6   : > { %v7916_v30 = vpop.eup %7915 }
0x4bc7   : > { %v6187_v2 = vadd.f32 1.0, %v7916_v30 }
0x4bc9   : > { %v6188_v4 = vmul.f32 0.5, %v6187_v2 }
0x4bcb   : > { %v6189_v8 = vmul.f32 %v6188_v4, %v6176_v54 }
0x4bcd   : > { %v6190_v9 = vpack.c.bf16 %v6189_v8, %v6189_v8 }
0x4bcf   : > { %7725 = vmatmul.mubr.msk.bf16.vlgmr.msra.gmra.mxu1 %vm466_vm0, %v6190_v9 }
0x4c8f   : > { %v6228_v10 = vpop.f32.mrf.mxu1 }
0x4c90   : > { %v6234_v11 = vadd.f32 %v6228_v10, %v6121_v43 }
0x4c91   : > { %v7726_v14 = vpop.f32.mrf.mxu1 }
0x4c92   : > { %v6235_v12 = vadd.f32 %v8019_v48, %v6234_v11 }
0x4c93   : > { %v6231_v50 = vpop.f32.mrf.mxu1 }
0x4c94   : > { %v6236_v15 = vsel %vm517_vm1, %v6235_v12, 0.0 }
0x4c95   : > { %6237 = vadd.xlane.f32.xlu0 %v6236_v15  ;;  %v7727_v16 = vpop.f32.mrf.mxu1 }
0x4d1e   : > { %v6238_v51 = vpop.xlane.xlu0 %6237 }
0x4d1f   : > { %v6239_v17 = vmul.f32 0.03125, %v6238_v51 }
0x4d21   : > { %v6240_v20 = vsub.f32 %v6235_v12, %v6239_v17 }
0x4d23   : > { %v6241_v22 = vmul.f32 %v6240_v20, %v6240_v20 }
0x4d25   : > { %v6242_v60 = vsel %vm517_vm1, %v6241_v22, 0.0 }
0x4d26   : > { %6243 = vadd.xlane.f32.xlu1 %v6242_v60 }
0x4daf   : > { %v6244_v23 = vpop.xlane.xlu1 %6243 }
0x4db0   : > { %v6245_v24 = vmul.f32 0.03125, %v6244_v23 }
0x4db2   : > { %v6246_v18 = vadd.f32 1e-12, %v6245_v24 }
0x4db4   : > { %7917 = vrsqrt.f32 %v6246_v18 }
0x4dc1   : > { %v7918_v26 = vpop.eup %7917 }
0x4dc2   : > { %v6248_v25 = vmul.f32 %v7918_v26, %v6240_v20 }
0x4dc4   : > { %v6249_v47 = vmul.f32 %v8020_v55, %v6248_v25 }
0x4dc6   : > { %v6250_v27 = vadd.f32 %v8021_v13, %v6249_v47 }
0x4dc8   : > { %v6251_v28 = vpack.c.bf16 %v6250_v27, %v6250_v27 }
0x4dca   : > { %7733 = vmatmul.mubr.msk.bf16.vlgmr.msra.gmra.mxu0 %vm576_vm3, %v6251_v28 }
0x4e8a   : > { %v6289_v31 = vpop.f32.mrf.mxu0 }
0x4e8b   : > { %v6290_v33 = vadd.f32 %v6289_v31, %v3678_v29 }
0x4e8c   : > { %v7734_v53 = vpop.f32.mrf.mxu0 }
0x4e8d   : > { %7919 = vtanh.f32 %v6290_v33 }
0x4e8e   : > { %v6292_v43 = vpop.f32.mrf.mxu0  ;;  %7921 = vtanh.f32 %v3729_v34 }
0x4e90   : > { %v7735_v63 = vpop.f32.mrf.mxu0 }
0x4e9a   : > { %v7920_v62 = vpop.eup %7919 }
0x4e9b   : > { %6297 = vrot.lane.b32.xlu0 %v7920_v62, %s8034_s12  ;;  %v7922_v35 = vpop.eup %7921 }
0x4f0d   : > { %v6298_v57 = vpop.permute.xlu0 %6297 }
0x4f0e   : > { %v6300_v37 = vsel %vm576_vm3, %v7922_v35, %v6298_v57 }
0x4f0f   : > { %v6301_v6 = vsel %vm466_vm0, %v6300_v37, 0.0 }
0x4f10   : > { %6302 = vst [vmem:[%s360_s17] sm:$0x1] %v6301_v6 }
0x4f11 PF: > { %s20_s13 = sadd.s32 1, %s8028_s13  }
0x4f12   : > { %p17_p5 = scmp.ge.s32.totalorder %s20_s13, 4  }
0x4f14   :  { %19 = sbr.rel (!%p17_p5) target bundleno = 1 (0x1), region = 130 }

</bundles_post_ra>
